<compile_context>
chip_gen: v7x
topology: tpu7x:2x2x1
jax: 0.10.0
libtpu: 0.0.40
codegen_flags: <defaults>
</compile_context>

<pallas_src>
import functools
import math

import jax
import jax.numpy as jnp
from jax.experimental import pallas as pl
from jax.experimental.pallas import tpu as pltpu


def _round_up(x, m):
    return ((x + m - 1) // m) * m


def _retina_head_kernel(x_ref, *refs, H, W, Cin, num_layers):
    """Fused RetinaHead (cls tower + bbox tower + both predictors) for one image.

    refs layout (after x_ref, which is the (1, H, W, Cin) f32 unpadded input block):
      refs[0 : 2*L]   : per layer (w_l, b_l); w_l (9, Cact, Cout_l) bf16 (tap-major),
                        b_l (1, Cout_l) f32.  Tower layers have Cout_l == Cact with
                        zero-padded extra columns (so pad channels stay exactly 0);
                        the predictor has Cout_l == cpad ([cls | bbox | zero pad]).
      refs[2*L]       : (1, H, W, cpad) f32 output block (lane-dense).
      refs[2*L + 1]   : (H+2, W+2, Cact) bf16 activation scratch with a 1-px halo.
    """
    wb_refs = refs[:2 * num_layers]
    o_ref = refs[2 * num_layers]
    act_ref = refs[2 * num_layers + 1]

    hw = H * W
    cact = act_ref.shape[-1]
    bf = act_ref.dtype

    # Zero ONLY the top/bottom halo rows (full-width, lane-dense stores).  The
    # left/right halo columns and the channel padding are (re)written by every
    # full-width activation store below, so no full-buffer fill is needed.  Done
    # every grid step so the halo stays valid under megacore batch splitting.
    zrow = jnp.zeros((1, W + 2, cact), bf)
    act_ref[0:1, :, :] = zrow
    act_ref[H + 1:H + 2, :, :] = zrow

    # Layer-0 input: f32 x -> bf16, zero halo columns + zero channel lanes built in
    # registers, then one sublane/lane-aligned full-width store into the scratch.
    x = x_ref[0, :, :, :].astype(bf)                          # (H, W, Cin)
    if cact > Cin:
        x = jnp.concatenate([x, jnp.zeros((H, W, cact - Cin), bf)], axis=-1)
    zcol = jnp.zeros((H, 1, cact), bf)
    act_ref[1:H + 1, :, :] = jnp.concatenate([zcol, x, zcol], axis=1)

    for l in range(num_layers):
        w_ref = wb_refs[2 * l]
        b_ref = wb_refs[2 * l + 1]
        cout = w_ref.shape[-1]
        is_last = l == num_layers - 1

        # 9 accumulating MXU matmuls straight from shifted activation views
        # (K = Cact per tap, bf16 operands, f32 accumulation) -- no materialized
        # im2col buffer.
        acc = None
        for dy in range(3):
            for dx in range(3):
                v = act_ref[dy:dy + H, dx:dx + W, :].reshape(hw, cact)
                p = jnp.dot(v, w_ref[dy * 3 + dx],
                            preferred_element_type=jnp.float32)
                acc = p if acc is None else acc + p
        acc = acc + b_ref[...]                                 # f32 bias epilogue

        if not is_last:
            a = jnp.maximum(acc, 0.0).astype(bf).reshape(H, W, cout)
            # Full-width store (zero halo columns included) -> unmasked and
            # sublane-aligned; also re-zeroes the left/right halo for free.
            zc = jnp.zeros((H, 1, cout), bf)
            act_ref[1:H + 1, :, :] = jnp.concatenate([zc, a, zc], axis=1)
        else:
            o_ref[...] = acc.reshape(1, H, W, cout).astype(o_ref.dtype)


def retina_head_level(x_nhwc, fused_w, fused_b, *, act_channels, cpad):
    """Run the fused head for one FPN level.

    x_nhwc: (N, H, W, Cin) f32 (unpadded).  Returns (N, H, W, cpad) f32 with
    [cls_logits | bbox_reg | zero pad] along the last (lane-dense) dim.
    """
    N, H, W, Cin = x_nhwc.shape
    num_layers = len(fused_w)

    in_specs = [pl.BlockSpec((1, H, W, Cin), lambda n: (n, 0, 0, 0))]
    inputs = [x_nhwc]
    for w, b in zip(fused_w, fused_b):
        in_specs.append(pl.BlockSpec(w.shape, lambda n: (0, 0, 0)))   # VMEM-resident
        in_specs.append(pl.BlockSpec(b.shape, lambda n: (0, 0)))
        inputs += [w, b]

    kernel = functools.partial(_retina_head_kernel, H=H, W=W, Cin=Cin,
                               num_layers=num_layers)
    # TODO(synk): production shapes need an H-strip grid axis with halo rows
    # ("parallel" with batch for v7x's 2 TCs) and a raised vmem_limit_bytes.
    return pl.pallas_call(
        kernel,
        out_shape=jax.ShapeDtypeStruct((N, H, W, cpad), jnp.float32),
        grid_spec=pltpu.PrefetchScalarGridSpec(
            num_scalar_prefetch=0,
            grid=(N,),
            in_specs=in_specs,
            out_specs=pl.BlockSpec((1, H, W, cpad), lambda n: (n, 0, 0, 0)),
            scratch_shapes=[
                pltpu.VMEM((H + 2, W + 2, act_channels), jnp.bfloat16)],
        ),
        compiler_params=pltpu.CompilerParams(
            dimension_semantics=("parallel",)),
    )(*inputs)


def _block_diag_hwio(w_a, w_b):
    """(3,3,Ca_i,Ca_o), (3,3,Cb_i,Cb_o) -> block-diagonal (3,3,Ca_i+Cb_i,Ca_o+Cb_o)."""
    ca_i, ca_o = w_a.shape[2], w_a.shape[3]
    cb_i, cb_o = w_b.shape[2], w_b.shape[3]
    top = jnp.concatenate([w_a, jnp.zeros((3, 3, ca_i, cb_o), w_a.dtype)], axis=3)
    bot = jnp.concatenate([jnp.zeros((3, 3, cb_i, ca_o), w_b.dtype), w_b], axis=3)
    return jnp.concatenate([top, bot], axis=2)


def _pad_hwio(w, ci_pad, co_pad):
    """Zero-pad a (3,3,ci,co) HWIO weight to (3,3,ci_pad,co_pad)."""
    ci, co = w.shape[2], w.shape[3]
    return jnp.pad(w, ((0, 0), (0, 0), (0, ci_pad - ci), (0, co_pad - co)))


class RetinaHeadPallas:
    """Mirror of the PyTorch RetinaHead (two conv towers + two predictors)."""

    def __init__(self, key, in_channels, num_classes, num_convs, num_anchors,
                 prior_prob=0.01):
        self.in_channels = in_channels
        self.num_classes = num_classes
        self.num_convs = num_convs
        self.num_anchors = num_anchors
        self.cls_out = num_anchors * num_classes
        self.box_out = num_anchors * 4
        std = 0.01

        def conv_w(k, cin, cout):
            return jax.random.normal(k, (3, 3, cin, cout), jnp.float32) * std

        keys = jax.random.split(key, 2 * num_convs + 2)
        self.cls_tower, self.bbox_tower = [], []
        for i in range(num_convs):
            self.cls_tower.append((conv_w(keys[2 * i], in_channels, in_channels),
                                   jnp.zeros((in_channels,), jnp.float32)))
            self.bbox_tower.append((conv_w(keys[2 * i + 1], in_channels, in_channels),
                                    jnp.zeros((in_channels,), jnp.float32)))
        bias_value = -math.log((1.0 - prior_prob) / prior_prob)
        self.cls_score = (conv_w(keys[-2], in_channels, self.cls_out),
                          jnp.full((self.cls_out,), bias_value, jnp.float32))
        self.bbox_pred = (conv_w(keys[-1], in_channels, self.box_out),
                          jnp.zeros((self.box_out,), jnp.float32))
        self._build_fused()

    def _build_fused(self):
        """Precompute branch-fused, lane-dense, MXU-ready weights.

        Each fused layer weight is (9, Cact, Cout_l) bf16 (tap-major); Cact and all
        Cout_l are multiples of 128 so both K-per-tap and the stores are lane-dense.
        Zero-padded input rows / output columns keep the padding exact.
        """
        cin = self.in_channels
        L = self.num_convs
        c_tower = 2 * cin if L >= 1 else cin
        cact = _round_up(max(cin, c_tower), 128)
        cout_pred = self.cls_out + self.box_out
        cpad = _round_up(cout_pred, 128)

        ws, bs = [], []
        if L >= 1:
            # Layer 0: both towers read the same x -> concatenate outputs.
            w0 = jnp.concatenate([self.cls_tower[0][0], self.bbox_tower[0][0]], axis=3)
            b0 = jnp.concatenate([self.cls_tower[0][1], self.bbox_tower[0][1]])
            ws.append(_pad_hwio(w0, cact, cact))
            bs.append(jnp.pad(b0, (0, cact - b0.shape[0])))
            # Deeper tower layers: block-diagonal keeps the branches independent.
            # TODO(synk): for production C >= 128 split these (and the predictor)
            # into two per-branch matmuls to avoid the 2x zero-block FLOPs/VMEM.
            for i in range(1, L):
                w = _block_diag_hwio(self.cls_tower[i][0], self.bbox_tower[i][0])
                b = jnp.concatenate([self.cls_tower[i][1], self.bbox_tower[i][1]])
                ws.append(_pad_hwio(w, cact, cact))
                bs.append(jnp.pad(b, (0, cact - b.shape[0])))
            wp = _block_diag_hwio(self.cls_score[0], self.bbox_pred[0])
        else:
            wp = jnp.concatenate([self.cls_score[0], self.bbox_pred[0]], axis=3)
        bp = jnp.concatenate([self.cls_score[1], self.bbox_pred[1]])
        ws.append(_pad_hwio(wp, cact, cpad))
        bs.append(jnp.pad(bp, (0, cpad - bp.shape[0])))

        self.fused_w = [w.reshape(9, cact, w.shape[-1]).astype(jnp.bfloat16)
                        for w in ws]
        self.fused_b = [b.reshape(1, -1).astype(jnp.float32) for b in bs]
        self.act_channels = cact
        self.cpad = cpad

    def __call__(self, features_nchw):
        logits, bbox_reg = [], []
        for feat in features_nchw:
            x = jnp.transpose(feat, (0, 2, 3, 1))              # NCHW -> NHWC
            out = retina_head_level(x, self.fused_w, self.fused_b,
                                    act_channels=self.act_channels, cpad=self.cpad)
            cls = out[..., :self.cls_out]
            box = out[..., self.cls_out:self.cls_out + self.box_out]
            logits.append(jnp.transpose(cls, (0, 3, 1, 2)))    # back to NCHW
            bbox_reg.append(jnp.transpose(box, (0, 3, 1, 2)))
        return logits, bbox_reg


def _conv3x3_ref(x_nhwc, w, b, apply_relu):
    # Matches the kernel numerics: bf16 MXU inputs, f32 accumulation, f32 epilogue.
    out = jax.lax.conv_general_dilated(
        x_nhwc.astype(jnp.bfloat16), w.astype(jnp.bfloat16),
        window_strides=(1, 1), padding="SAME",
        dimension_numbers=("NHWC", "HWIO", "NHWC"),
        preferred_element_type=jnp.float32)
    out = out + b
    return jnp.maximum(out, 0.0) if apply_relu else out


def _ref_branch(x_nhwc, tower, predictor):
    h = x_nhwc
    for w, b in tower:
        h = _conv3x3_ref(h, w, b, True)
    return _conv3x3_ref(h, *predictor, False)


if __name__ == "__main__":
    key = jax.random.PRNGKey(0)
    k_params, k_f0, k_f1 = jax.random.split(key, 3)

    in_channels = 32
    num_classes = 8
    num_convs = 2
    num_anchors = 4

    head = RetinaHeadPallas(k_params, in_channels, num_classes,
                            num_convs, num_anchors, prior_prob=0.01)

    # Two FPN levels, NCHW like the PyTorch module expects.
    features = [
        jax.random.normal(k_f0, (2, in_channels, 16, 16), jnp.float32),
        jax.random.normal(k_f1, (2, in_channels, 8, 8), jnp.float32),
    ]

    logits, bbox_reg = head(features)
    jax.block_until_ready(logits)
    jax.block_until_ready(bbox_reg)

    # Shape checks (match PyTorch semantics).
    for feat, lg, bx in zip(features, logits, bbox_reg):
        N, _, H, W = feat.shape
        assert lg.shape == (N, num_anchors * num_classes, H, W), lg.shape
        assert bx.shape == (N, num_anchors * 4, H, W), bx.shape

    # Numerical check against a bf16-matched lax.conv reference (both levels/branches).
    for lvl, feat in enumerate(features):
        x_nhwc = jnp.transpose(feat, (0, 2, 3, 1))
        cls_ref = jnp.transpose(
            _ref_branch(x_nhwc, head.cls_tower, head.cls_score), (0, 3, 1, 2))
        box_ref = jnp.transpose(
            _ref_branch(x_nhwc, head.bbox_tower, head.bbox_pred), (0, 3, 1, 2))
        assert jnp.allclose(logits[lvl], cls_ref, atol=5e-4, rtol=2e-2), lvl
        assert jnp.allclose(bbox_reg[lvl], box_ref, atol=5e-4, rtol=2e-2), lvl

    print("KERNEL_OK")
</pallas_src>

<mosaic_0001>
module attributes {stable_mosaic.version = 11 : i64} {
  func.func @_retina_head_kernel(%arg0: i32, %arg1: memref<1x16x16x32xf32, #tpu.memory_space<vmem>>, %arg2: memref<9x128x128xbf16, #tpu.memory_space<vmem>>, %arg3: memref<1x128xf32, #tpu.memory_space<vmem>>, %arg4: memref<9x128x128xbf16, #tpu.memory_space<vmem>>, %arg5: memref<1x128xf32, #tpu.memory_space<vmem>>, %arg6: memref<9x128x128xbf16, #tpu.memory_space<vmem>>, %arg7: memref<1x128xf32, #tpu.memory_space<vmem>>, %arg8: memref<1x16x16x128xf32, #tpu.memory_space<vmem>>, %arg9: memref<18x18x128xbf16, #tpu.memory_space<vmem>>) attributes {dimension_semantics = [#tpu.dimension_semantics<parallel>], iteration_bounds = array<i64: 2>, scalar_prefetch = 0 : i64, scratch_operands = 1 : i64, tpu.core_type = #tpu.core_type<tc>, window_params = [{transform_indices = @transform_0, window_bounds = array<i64: 1, 16, 16, 32>}, {pipeline_mode = #tpu.pipeline_mode<synchronous>, transform_indices = @transform_1, window_bounds = array<i64: 9, 128, 128>}, {pipeline_mode = #tpu.pipeline_mode<synchronous>, transform_indices = @transform_2, window_bounds = array<i64: 1, 128>}, {pipeline_mode = #tpu.pipeline_mode<synchronous>, transform_indices = @transform_3, window_bounds = array<i64: 9, 128, 128>}, {pipeline_mode = #tpu.pipeline_mode<synchronous>, transform_indices = @transform_4, window_bounds = array<i64: 1, 128>}, {pipeline_mode = #tpu.pipeline_mode<synchronous>, transform_indices = @transform_5, window_bounds = array<i64: 9, 128, 128>}, {pipeline_mode = #tpu.pipeline_mode<synchronous>, transform_indices = @transform_6, window_bounds = array<i64: 1, 128>}, {transform_indices = @transform_7, window_bounds = array<i64: 1, 16, 16, 128>}]} {
    %cst = arith.constant 0.000000e+00 : bf16
    %0 = vector.broadcast %cst : bf16 to vector<1x18x128xbf16>
    %c0 = arith.constant 0 : index
    %c0_0 = arith.constant 0 : index
    %c0_1 = arith.constant 0 : index
    %1 = vector.load %arg9[%c0, %c0_0, %c0_1] : memref<18x18x128xbf16, #tpu.memory_space<vmem>>, vector<1x18x128xbf16>
    tpu.vector_store %arg9[%c0, %c0_0, %c0_1], %0 {strides = array<i32>} : memref<18x18x128xbf16, #tpu.memory_space<vmem>>, vector<1x18x128xbf16>,
    %c17 = arith.constant 17 : index
    %c0_2 = arith.constant 0 : index
    %c0_3 = arith.constant 0 : index
    %2 = vector.load %arg9[%c17, %c0_2, %c0_3] : memref<18x18x128xbf16, #tpu.memory_space<vmem>>, vector<1x18x128xbf16>
    tpu.vector_store %arg9[%c17, %c0_2, %c0_3], %0 {strides = array<i32>} : memref<18x18x128xbf16, #tpu.memory_space<vmem>>, vector<1x18x128xbf16>,
    %c0_4 = arith.constant 0 : index
    %c0_5 = arith.constant 0 : index
    %c0_6 = arith.constant 0 : index
    %c0_7 = arith.constant 0 : index
    %3 = vector.load %arg1[%c0_4, %c0_5, %c0_6, %c0_7] : memref<1x16x16x32xf32, #tpu.memory_space<vmem>>, vector<1x16x16x32xf32>
    %4 = vector.shape_cast %3 : vector<1x16x16x32xf32> to vector<16x16x32xf32>
    %5 = arith.truncf %4 : vector<16x16x32xf32> to vector<16x16x32xbf16>
    %cst_8 = arith.constant 0.000000e+00 : bf16
    %6 = vector.broadcast %cst_8 : bf16 to vector<16x16x96xbf16>
    %7 = tpu.concatenate %5, %6 in 2 : vector<16x16x32xbf16>, vector<16x16x96xbf16> -> vector<16x16x128xbf16>
    %cst_9 = arith.constant 0.000000e+00 : bf16
    %8 = vector.broadcast %cst_9 : bf16 to vector<16x1x128xbf16>
    %9 = tpu.concatenate %8, %7, %8 in 1 : vector<16x1x128xbf16>, vector<16x16x128xbf16>, vector<16x1x128xbf16> -> vector<16x18x128xbf16>
    %c1 = arith.constant 1 : index
    %c0_10 = arith.constant 0 : index
    %c0_11 = arith.constant 0 : index
    %10 = vector.load %arg9[%c1, %c0_10, %c0_11] : memref<18x18x128xbf16, #tpu.memory_space<vmem>>, vector<16x18x128xbf16>
    tpu.vector_store %arg9[%c1, %c0_10, %c0_11], %9 {strides = array<i32>} : memref<18x18x128xbf16, #tpu.memory_space<vmem>>, vector<16x18x128xbf16>,
    %c0_12 = arith.constant 0 : index
    %c0_13 = arith.constant 0 : index
    %c0_14 = arith.constant 0 : index
    %11 = vector.load %arg9[%c0_12, %c0_13, %c0_14] : memref<18x18x128xbf16, #tpu.memory_space<vmem>>, vector<16x16x128xbf16>
    %12 = vector.shape_cast %11 : vector<16x16x128xbf16> to vector<256x128xbf16>
    %c0_15 = arith.constant 0 : index
    %c0_16 = arith.constant 0 : index
    %c0_17 = arith.constant 0 : index
    %13 = vector.load %arg2[%c0_15, %c0_16, %c0_17] : memref<9x128x128xbf16, #tpu.memory_space<vmem>>, vector<1x128x128xbf16>
    %14 = vector.shape_cast %13 : vector<1x128x128xbf16> to vector<128x128xbf16>
    %cst_18 = arith.constant dense<0.000000e+00> : vector<256x128xf32>
    %15 = tpu.matmul %12, %14, %cst_18 {dimension_numbers = #tpu.dot_dimension_numbers<[1], [0], [0], [1], [0, 0, 1, 1], [], []>} : vector<256x128xbf16>, vector<128x128xbf16>, vector<256x128xf32> -> vector<256x128xf32>
    %c0_19 = arith.constant 0 : index
    %c1_20 = arith.constant 1 : index
    %c0_21 = arith.constant 0 : index
    %16 = vector.load %arg9[%c0_19, %c1_20, %c0_21] : memref<18x18x128xbf16, #tpu.memory_space<vmem>>, vector<16x16x128xbf16>
    %17 = vector.shape_cast %16 : vector<16x16x128xbf16> to vector<256x128xbf16>
    %c1_22 = arith.constant 1 : index
    %c0_23 = arith.constant 0 : index
    %c0_24 = arith.constant 0 : index
    %18 = vector.load %arg2[%c1_22, %c0_23, %c0_24] : memref<9x128x128xbf16, #tpu.memory_space<vmem>>, vector<1x128x128xbf16>
    %19 = vector.shape_cast %18 : vector<1x128x128xbf16> to vector<128x128xbf16>
    %cst_25 = arith.constant dense<0.000000e+00> : vector<256x128xf32>
    %20 = tpu.matmul %17, %19, %cst_25 {dimension_numbers = #tpu.dot_dimension_numbers<[1], [0], [0], [1], [0, 0, 1, 1], [], []>} : vector<256x128xbf16>, vector<128x128xbf16>, vector<256x128xf32> -> vector<256x128xf32>
    %21 = arith.addf %15, %20 : vector<256x128xf32>
    %c0_26 = arith.constant 0 : index
    %c2 = arith.constant 2 : index
    %c0_27 = arith.constant 0 : index
    %22 = vector.load %arg9[%c0_26, %c2, %c0_27] : memref<18x18x128xbf16, #tpu.memory_space<vmem>>, vector<16x16x128xbf16>
    %23 = vector.shape_cast %22 : vector<16x16x128xbf16> to vector<256x128xbf16>
    %c2_28 = arith.constant 2 : index
    %c0_29 = arith.constant 0 : index
    %c0_30 = arith.constant 0 : index
    %24 = vector.load %arg2[%c2_28, %c0_29, %c0_30] : memref<9x128x128xbf16, #tpu.memory_space<vmem>>, vector<1x128x128xbf16>
    %25 = vector.shape_cast %24 : vector<1x128x128xbf16> to vector<128x128xbf16>
    %cst_31 = arith.constant dense<0.000000e+00> : vector<256x128xf32>
    %26 = tpu.matmul %23, %25, %cst_31 {dimension_numbers = #tpu.dot_dimension_numbers<[1], [0], [0], [1], [0, 0, 1, 1], [], []>} : vector<256x128xbf16>, vector<128x128xbf16>, vector<256x128xf32> -> vector<256x128xf32>
    %27 = arith.addf %21, %26 : vector<256x128xf32>
    %c1_32 = arith.constant 1 : index
    %c0_33 = arith.constant 0 : index
    %c0_34 = arith.constant 0 : index
    %28 = vector.load %arg9[%c1_32, %c0_33, %c0_34] : memref<18x18x128xbf16, #tpu.memory_space<vmem>>, vector<16x16x128xbf16>
    %29 = vector.shape_cast %28 : vector<16x16x128xbf16> to vector<256x128xbf16>
    %c3 = arith.constant 3 : index
    %c0_35 = arith.constant 0 : index
    %c0_36 = arith.constant 0 : index
    %30 = vector.load %arg2[%c3, %c0_35, %c0_36] : memref<9x128x128xbf16, #tpu.memory_space<vmem>>, vector<1x128x128xbf16>
    %31 = vector.shape_cast %30 : vector<1x128x128xbf16> to vector<128x128xbf16>
    %cst_37 = arith.constant dense<0.000000e+00> : vector<256x128xf32>
    %32 = tpu.matmul %29, %31, %cst_37 {dimension_numbers = #tpu.dot_dimension_numbers<[1], [0], [0], [1], [0, 0, 1, 1], [], []>} : vector<256x128xbf16>, vector<128x128xbf16>, vector<256x128xf32> -> vector<256x128xf32>
    %33 = arith.addf %27, %32 : vector<256x128xf32>
    %c1_38 = arith.constant 1 : index
    %c1_39 = arith.constant 1 : index
    %c0_40 = arith.constant 0 : index
    %34 = vector.load %arg9[%c1_38, %c1_39, %c0_40] : memref<18x18x128xbf16, #tpu.memory_space<vmem>>, vector<16x16x128xbf16>
    %35 = vector.shape_cast %34 : vector<16x16x128xbf16> to vector<256x128xbf16>
    %c4 = arith.constant 4 : index
    %c0_41 = arith.constant 0 : index
    %c0_42 = arith.constant 0 : index
    %36 = vector.load %arg2[%c4, %c0_41, %c0_42] : memref<9x128x128xbf16, #tpu.memory_space<vmem>>, vector<1x128x128xbf16>
    %37 = vector.shape_cast %36 : vector<1x128x128xbf16> to vector<128x128xbf16>
    %cst_43 = arith.constant dense<0.000000e+00> : vector<256x128xf32>
    %38 = tpu.matmul %35, %37, %cst_43 {dimension_numbers = #tpu.dot_dimension_numbers<[1], [0], [0], [1], [0, 0, 1, 1], [], []>} : vector<256x128xbf16>, vector<128x128xbf16>, vector<256x128xf32> -> vector<256x128xf32>
    %39 = arith.addf %33, %38 : vector<256x128xf32>
    %c1_44 = arith.constant 1 : index
    %c2_45 = arith.constant 2 : index
    %c0_46 = arith.constant 0 : index
    %40 = vector.load %arg9[%c1_44, %c2_45, %c0_46] : memref<18x18x128xbf16, #tpu.memory_space<vmem>>, vector<16x16x128xbf16>
    %41 = vector.shape_cast %40 : vector<16x16x128xbf16> to vector<256x128xbf16>
    %c5 = arith.constant 5 : index
    %c0_47 = arith.constant 0 : index
    %c0_48 = arith.constant 0 : index
    %42 = vector.load %arg2[%c5, %c0_47, %c0_48] : memref<9x128x128xbf16, #tpu.memory_space<vmem>>, vector<1x128x128xbf16>
    %43 = vector.shape_cast %42 : vector<1x128x128xbf16> to vector<128x128xbf16>
    %cst_49 = arith.constant dense<0.000000e+00> : vector<256x128xf32>
    %44 = tpu.matmul %41, %43, %cst_49 {dimension_numbers = #tpu.dot_dimension_numbers<[1], [0], [0], [1], [0, 0, 1, 1], [], []>} : vector<256x128xbf16>, vector<128x128xbf16>, vector<256x128xf32> -> vector<256x128xf32>
    %45 = arith.addf %39, %44 : vector<256x128xf32>
    %c2_50 = arith.constant 2 : index
    %c0_51 = arith.constant 0 : index
    %c0_52 = arith.constant 0 : index
    %46 = vector.load %arg9[%c2_50, %c0_51, %c0_52] : memref<18x18x128xbf16, #tpu.memory_space<vmem>>, vector<16x16x128xbf16>
    %47 = vector.shape_cast %46 : vector<16x16x128xbf16> to vector<256x128xbf16>
    %c6 = arith.constant 6 : index
    %c0_53 = arith.constant 0 : index
    %c0_54 = arith.constant 0 : index
    %48 = vector.load %arg2[%c6, %c0_53, %c0_54] : memref<9x128x128xbf16, #tpu.memory_space<vmem>>, vector<1x128x128xbf16>
    %49 = vector.shape_cast %48 : vector<1x128x128xbf16> to vector<128x128xbf16>
    %cst_55 = arith.constant dense<0.000000e+00> : vector<256x128xf32>
    %50 = tpu.matmul %47, %49, %cst_55 {dimension_numbers = #tpu.dot_dimension_numbers<[1], [0], [0], [1], [0, 0, 1, 1], [], []>} : vector<256x128xbf16>, vector<128x128xbf16>, vector<256x128xf32> -> vector<256x128xf32>
    %51 = arith.addf %45, %50 : vector<256x128xf32>
    %c2_56 = arith.constant 2 : index
    %c1_57 = arith.constant 1 : index
    %c0_58 = arith.constant 0 : index
    %52 = vector.load %arg9[%c2_56, %c1_57, %c0_58] : memref<18x18x128xbf16, #tpu.memory_space<vmem>>, vector<16x16x128xbf16>
    %53 = vector.shape_cast %52 : vector<16x16x128xbf16> to vector<256x128xbf16>
    %c7 = arith.constant 7 : index
    %c0_59 = arith.constant 0 : index
    %c0_60 = arith.constant 0 : index
    %54 = vector.load %arg2[%c7, %c0_59, %c0_60] : memref<9x128x128xbf16, #tpu.memory_space<vmem>>, vector<1x128x128xbf16>
    %55 = vector.shape_cast %54 : vector<1x128x128xbf16> to vector<128x128xbf16>
    %cst_61 = arith.constant dense<0.000000e+00> : vector<256x128xf32>
    %56 = tpu.matmul %53, %55, %cst_61 {dimension_numbers = #tpu.dot_dimension_numbers<[1], [0], [0], [1], [0, 0, 1, 1], [], []>} : vector<256x128xbf16>, vector<128x128xbf16>, vector<256x128xf32> -> vector<256x128xf32>
    %57 = arith.addf %51, %56 : vector<256x128xf32>
    %c2_62 = arith.constant 2 : index
    %c2_63 = arith.constant 2 : index
    %c0_64 = arith.constant 0 : index
    %58 = vector.load %arg9[%c2_62, %c2_63, %c0_64] : memref<18x18x128xbf16, #tpu.memory_space<vmem>>, vector<16x16x128xbf16>
    %59 = vector.shape_cast %58 : vector<16x16x128xbf16> to vector<256x128xbf16>
    %c8 = arith.constant 8 : index
    %c0_65 = arith.constant 0 : index
    %c0_66 = arith.constant 0 : index
    %60 = vector.load %arg2[%c8, %c0_65, %c0_66] : memref<9x128x128xbf16, #tpu.memory_space<vmem>>, vector<1x128x128xbf16>
    %61 = vector.shape_cast %60 : vector<1x128x128xbf16> to vector<128x128xbf16>
    %cst_67 = arith.constant dense<0.000000e+00> : vector<256x128xf32>
    %62 = tpu.matmul %59, %61, %cst_67 {dimension_numbers = #tpu.dot_dimension_numbers<[1], [0], [0], [1], [0, 0, 1, 1], [], []>} : vector<256x128xbf16>, vector<128x128xbf16>, vector<256x128xf32> -> vector<256x128xf32>
    %63 = arith.addf %57, %62 : vector<256x128xf32>
    %c0_68 = arith.constant 0 : index
    %c0_69 = arith.constant 0 : index
    %64 = vector.load %arg3[%c0_68, %c0_69] : memref<1x128xf32, #tpu.memory_space<vmem>>, vector<1x128xf32>
    %65 = vector.broadcast %64 : vector<1x128xf32> to vector<256x128xf32>
    %66 = arith.addf %63, %65 : vector<256x128xf32>
    %cst_70 = arith.constant 0.000000e+00 : f32
    %67 = vector.broadcast %cst_70 : f32 to vector<256x128xf32>
    %68 = arith.maximumf %66, %67 : vector<256x128xf32>
    %69 = arith.truncf %68 : vector<256x128xf32> to vector<256x128xbf16>
    %70 = vector.shape_cast %69 : vector<256x128xbf16> to vector<16x16x128xbf16>
    %cst_71 = arith.constant 0.000000e+00 : bf16
    %71 = vector.broadcast %cst_71 : bf16 to vector<16x1x128xbf16>
    %72 = tpu.concatenate %71, %70, %71 in 1 : vector<16x1x128xbf16>, vector<16x16x128xbf16>, vector<16x1x128xbf16> -> vector<16x18x128xbf16>
    %c1_72 = arith.constant 1 : index
    %c0_73 = arith.constant 0 : index
    %c0_74 = arith.constant 0 : index
    %73 = vector.load %arg9[%c1_72, %c0_73, %c0_74] : memref<18x18x128xbf16, #tpu.memory_space<vmem>>, vector<16x18x128xbf16>
    tpu.vector_store %arg9[%c1_72, %c0_73, %c0_74], %72 {strides = array<i32>} : memref<18x18x128xbf16, #tpu.memory_space<vmem>>, vector<16x18x128xbf16>,
    %c0_75 = arith.constant 0 : index
    %c0_76 = arith.constant 0 : index
    %c0_77 = arith.constant 0 : index
    %74 = vector.load %arg9[%c0_75, %c0_76, %c0_77] : memref<18x18x128xbf16, #tpu.memory_space<vmem>>, vector<16x16x128xbf16>
    %75 = vector.shape_cast %74 : vector<16x16x128xbf16> to vector<256x128xbf16>
    %c0_78 = arith.constant 0 : index
    %c0_79 = arith.constant 0 : index
    %c0_80 = arith.constant 0 : index
    %76 = vector.load %arg4[%c0_78, %c0_79, %c0_80] : memref<9x128x128xbf16, #tpu.memory_space<vmem>>, vector<1x128x128xbf16>
    %77 = vector.shape_cast %76 : vector<1x128x128xbf16> to vector<128x128xbf16>
    %cst_81 = arith.constant dense<0.000000e+00> : vector<256x128xf32>
    %78 = tpu.matmul %75, %77, %cst_81 {dimension_numbers = #tpu.dot_dimension_numbers<[1], [0], [0], [1], [0, 0, 1, 1], [], []>} : vector<256x128xbf16>, vector<128x128xbf16>, vector<256x128xf32> -> vector<256x128xf32>
    %c0_82 = arith.constant 0 : index
    %c1_83 = arith.constant 1 : index
    %c0_84 = arith.constant 0 : index
    %79 = vector.load %arg9[%c0_82, %c1_83, %c0_84] : memref<18x18x128xbf16, #tpu.memory_space<vmem>>, vector<16x16x128xbf16>
    %80 = vector.shape_cast %79 : vector<16x16x128xbf16> to vector<256x128xbf16>
    %c1_85 = arith.constant 1 : index
    %c0_86 = arith.constant 0 : index
    %c0_87 = arith.constant 0 : index
    %81 = vector.load %arg4[%c1_85, %c0_86, %c0_87] : memref<9x128x128xbf16, #tpu.memory_space<vmem>>, vector<1x128x128xbf16>
    %82 = vector.shape_cast %81 : vector<1x128x128xbf16> to vector<128x128xbf16>
    %cst_88 = arith.constant dense<0.000000e+00> : vector<256x128xf32>
    %83 = tpu.matmul %80, %82, %cst_88 {dimension_numbers = #tpu.dot_dimension_numbers<[1], [0], [0], [1], [0, 0, 1, 1], [], []>} : vector<256x128xbf16>, vector<128x128xbf16>, vector<256x128xf32> -> vector<256x128xf32>
    %84 = arith.addf %78, %83 : vector<256x128xf32>
    %c0_89 = arith.constant 0 : index
    %c2_90 = arith.constant 2 : index
    %c0_91 = arith.constant 0 : index
    %85 = vector.load %arg9[%c0_89, %c2_90, %c0_91] : memref<18x18x128xbf16, #tpu.memory_space<vmem>>, vector<16x16x128xbf16>
    %86 = vector.shape_cast %85 : vector<16x16x128xbf16> to vector<256x128xbf16>
    %c2_92 = arith.constant 2 : index
    %c0_93 = arith.constant 0 : index
    %c0_94 = arith.constant 0 : index
    %87 = vector.load %arg4[%c2_92, %c0_93, %c0_94] : memref<9x128x128xbf16, #tpu.memory_space<vmem>>, vector<1x128x128xbf16>
    %88 = vector.shape_cast %87 : vector<1x128x128xbf16> to vector<128x128xbf16>
    %cst_95 = arith.constant dense<0.000000e+00> : vector<256x128xf32>
    %89 = tpu.matmul %86, %88, %cst_95 {dimension_numbers = #tpu.dot_dimension_numbers<[1], [0], [0], [1], [0, 0, 1, 1], [], []>} : vector<256x128xbf16>, vector<128x128xbf16>, vector<256x128xf32> -> vector<256x128xf32>
    %90 = arith.addf %84, %89 : vector<256x128xf32>
    %c1_96 = arith.constant 1 : index
    %c0_97 = arith.constant 0 : index
    %c0_98 = arith.constant 0 : index
    %91 = vector.load %arg9[%c1_96, %c0_97, %c0_98] : memref<18x18x128xbf16, #tpu.memory_space<vmem>>, vector<16x16x128xbf16>
    %92 = vector.shape_cast %91 : vector<16x16x128xbf16> to vector<256x128xbf16>
    %c3_99 = arith.constant 3 : index
    %c0_100 = arith.constant 0 : index
    %c0_101 = arith.constant 0 : index
    %93 = vector.load %arg4[%c3_99, %c0_100, %c0_101] : memref<9x128x128xbf16, #tpu.memory_space<vmem>>, vector<1x128x128xbf16>
    %94 = vector.shape_cast %93 : vector<1x128x128xbf16> to vector<128x128xbf16>
    %cst_102 = arith.constant dense<0.000000e+00> : vector<256x128xf32>
    %95 = tpu.matmul %92, %94, %cst_102 {dimension_numbers = #tpu.dot_dimension_numbers<[1], [0], [0], [1], [0, 0, 1, 1], [], []>} : vector<256x128xbf16>, vector<128x128xbf16>, vector<256x128xf32> -> vector<256x128xf32>
    %96 = arith.addf %90, %95 : vector<256x128xf32>
    %c1_103 = arith.constant 1 : index
    %c1_104 = arith.constant 1 : index
    %c0_105 = arith.constant 0 : index
    %97 = vector.load %arg9[%c1_103, %c1_104, %c0_105] : memref<18x18x128xbf16, #tpu.memory_space<vmem>>, vector<16x16x128xbf16>
    %98 = vector.shape_cast %97 : vector<16x16x128xbf16> to vector<256x128xbf16>
    %c4_106 = arith.constant 4 : index
    %c0_107 = arith.constant 0 : index
    %c0_108 = arith.constant 0 : index
    %99 = vector.load %arg4[%c4_106, %c0_107, %c0_108] : memref<9x128x128xbf16, #tpu.memory_space<vmem>>, vector<1x128x128xbf16>
    %100 = vector.shape_cast %99 : vector<1x128x128xbf16> to vector<128x128xbf16>
    %cst_109 = arith.constant dense<0.000000e+00> : vector<256x128xf32>
    %101 = tpu.matmul %98, %100, %cst_109 {dimension_numbers = #tpu.dot_dimension_numbers<[1], [0], [0], [1], [0, 0, 1, 1], [], []>} : vector<256x128xbf16>, vector<128x128xbf16>, vector<256x128xf32> -> vector<256x128xf32>
    %102 = arith.addf %96, %101 : vector<256x128xf32>
    %c1_110 = arith.constant 1 : index
    %c2_111 = arith.constant 2 : index
    %c0_112 = arith.constant 0 : index
    %103 = vector.load %arg9[%c1_110, %c2_111, %c0_112] : memref<18x18x128xbf16, #tpu.memory_space<vmem>>, vector<16x16x128xbf16>
    %104 = vector.shape_cast %103 : vector<16x16x128xbf16> to vector<256x128xbf16>
    %c5_113 = arith.constant 5 : index
    %c0_114 = arith.constant 0 : index
    %c0_115 = arith.constant 0 : index
    %105 = vector.load %arg4[%c5_113, %c0_114, %c0_115] : memref<9x128x128xbf16, #tpu.memory_space<vmem>>, vector<1x128x128xbf16>
    %106 = vector.shape_cast %105 : vector<1x128x128xbf16> to vector<128x128xbf16>
    %cst_116 = arith.constant dense<0.000000e+00> : vector<256x128xf32>
    %107 = tpu.matmul %104, %106, %cst_116 {dimension_numbers = #tpu.dot_dimension_numbers<[1], [0], [0], [1], [0, 0, 1, 1], [], []>} : vector<256x128xbf16>, vector<128x128xbf16>, vector<256x128xf32> -> vector<256x128xf32>
    %108 = arith.addf %102, %107 : vector<256x128xf32>
    %c2_117 = arith.constant 2 : index
    %c0_118 = arith.constant 0 : index
    %c0_119 = arith.constant 0 : index
    %109 = vector.load %arg9[%c2_117, %c0_118, %c0_119] : memref<18x18x128xbf16, #tpu.memory_space<vmem>>, vector<16x16x128xbf16>
    %110 = vector.shape_cast %109 : vector<16x16x128xbf16> to vector<256x128xbf16>
    %c6_120 = arith.constant 6 : index
    %c0_121 = arith.constant 0 : index
    %c0_122 = arith.constant 0 : index
    %111 = vector.load %arg4[%c6_120, %c0_121, %c0_122] : memref<9x128x128xbf16, #tpu.memory_space<vmem>>, vector<1x128x128xbf16>
    %112 = vector.shape_cast %111 : vector<1x128x128xbf16> to vector<128x128xbf16>
    %cst_123 = arith.constant dense<0.000000e+00> : vector<256x128xf32>
    %113 = tpu.matmul %110, %112, %cst_123 {dimension_numbers = #tpu.dot_dimension_numbers<[1], [0], [0], [1], [0, 0, 1, 1], [], []>} : vector<256x128xbf16>, vector<128x128xbf16>, vector<256x128xf32> -> vector<256x128xf32>
    %114 = arith.addf %108, %113 : vector<256x128xf32>
    %c2_124 = arith.constant 2 : index
    %c1_125 = arith.constant 1 : index
    %c0_126 = arith.constant 0 : index
    %115 = vector.load %arg9[%c2_124, %c1_125, %c0_126] : memref<18x18x128xbf16, #tpu.memory_space<vmem>>, vector<16x16x128xbf16>
    %116 = vector.shape_cast %115 : vector<16x16x128xbf16> to vector<256x128xbf16>
    %c7_127 = arith.constant 7 : index
    %c0_128 = arith.constant 0 : index
    %c0_129 = arith.constant 0 : index
    %117 = vector.load %arg4[%c7_127, %c0_128, %c0_129] : memref<9x128x128xbf16, #tpu.memory_space<vmem>>, vector<1x128x128xbf16>
    %118 = vector.shape_cast %117 : vector<1x128x128xbf16> to vector<128x128xbf16>
    %cst_130 = arith.constant dense<0.000000e+00> : vector<256x128xf32>
    %119 = tpu.matmul %116, %118, %cst_130 {dimension_numbers = #tpu.dot_dimension_numbers<[1], [0], [0], [1], [0, 0, 1, 1], [], []>} : vector<256x128xbf16>, vector<128x128xbf16>, vector<256x128xf32> -> vector<256x128xf32>
    %120 = arith.addf %114, %119 : vector<256x128xf32>
    %c2_131 = arith.constant 2 : index
    %c2_132 = arith.constant 2 : index
    %c0_133 = arith.constant 0 : index
    %121 = vector.load %arg9[%c2_131, %c2_132, %c0_133] : memref<18x18x128xbf16, #tpu.memory_space<vmem>>, vector<16x16x128xbf16>
    %122 = vector.shape_cast %121 : vector<16x16x128xbf16> to vector<256x128xbf16>
    %c8_134 = arith.constant 8 : index
    %c0_135 = arith.constant 0 : index
    %c0_136 = arith.constant 0 : index
    %123 = vector.load %arg4[%c8_134, %c0_135, %c0_136] : memref<9x128x128xbf16, #tpu.memory_space<vmem>>, vector<1x128x128xbf16>
    %124 = vector.shape_cast %123 : vector<1x128x128xbf16> to vector<128x128xbf16>
    %cst_137 = arith.constant dense<0.000000e+00> : vector<256x128xf32>
    %125 = tpu.matmul %122, %124, %cst_137 {dimension_numbers = #tpu.dot_dimension_numbers<[1], [0], [0], [1], [0, 0, 1, 1], [], []>} : vector<256x128xbf16>, vector<128x128xbf16>, vector<256x128xf32> -> vector<256x128xf32>
    %126 = arith.addf %120, %125 : vector<256x128xf32>
    %c0_138 = arith.constant 0 : index
    %c0_139 = arith.constant 0 : index
    %127 = vector.load %arg5[%c0_138, %c0_139] : memref<1x128xf32, #tpu.memory_space<vmem>>, vector<1x128xf32>
    %128 = vector.broadcast %127 : vector<1x128xf32> to vector<256x128xf32>
    %129 = arith.addf %126, %128 : vector<256x128xf32>
    %cst_140 = arith.constant 0.000000e+00 : f32
    %130 = vector.broadcast %cst_140 : f32 to vector<256x128xf32>
    %131 = arith.maximumf %129, %130 : vector<256x128xf32>
    %132 = arith.truncf %131 : vector<256x128xf32> to vector<256x128xbf16>
    %133 = vector.shape_cast %132 : vector<256x128xbf16> to vector<16x16x128xbf16>
    %cst_141 = arith.constant 0.000000e+00 : bf16
    %134 = vector.broadcast %cst_141 : bf16 to vector<16x1x128xbf16>
    %135 = tpu.concatenate %134, %133, %134 in 1 : vector<16x1x128xbf16>, vector<16x16x128xbf16>, vector<16x1x128xbf16> -> vector<16x18x128xbf16>
    %c1_142 = arith.constant 1 : index
    %c0_143 = arith.constant 0 : index
    %c0_144 = arith.constant 0 : index
    %136 = vector.load %arg9[%c1_142, %c0_143, %c0_144] : memref<18x18x128xbf16, #tpu.memory_space<vmem>>, vector<16x18x128xbf16>
    tpu.vector_store %arg9[%c1_142, %c0_143, %c0_144], %135 {strides = array<i32>} : memref<18x18x128xbf16, #tpu.memory_space<vmem>>, vector<16x18x128xbf16>,
    %c0_145 = arith.constant 0 : index
    %c0_146 = arith.constant 0 : index
    %c0_147 = arith.constant 0 : index
    %137 = vector.load %arg9[%c0_145, %c0_146, %c0_147] : memref<18x18x128xbf16, #tpu.memory_space<vmem>>, vector<16x16x128xbf16>
    %138 = vector.shape_cast %137 : vector<16x16x128xbf16> to vector<256x128xbf16>
    %c0_148 = arith.constant 0 : index
    %c0_149 = arith.constant 0 : index
    %c0_150 = arith.constant 0 : index
    %139 = vector.load %arg6[%c0_148, %c0_149, %c0_150] : memref<9x128x128xbf16, #tpu.memory_space<vmem>>, vector<1x128x128xbf16>
    %140 = vector.shape_cast %139 : vector<1x128x128xbf16> to vector<128x128xbf16>
    %cst_151 = arith.constant dense<0.000000e+00> : vector<256x128xf32>
    %141 = tpu.matmul %138, %140, %cst_151 {dimension_numbers = #tpu.dot_dimension_numbers<[1], [0], [0], [1], [0, 0, 1, 1], [], []>} : vector<256x128xbf16>, vector<128x128xbf16>, vector<256x128xf32> -> vector<256x128xf32>
    %c0_152 = arith.constant 0 : index
    %c1_153 = arith.constant 1 : index
    %c0_154 = arith.constant 0 : index
    %142 = vector.load %arg9[%c0_152, %c1_153, %c0_154] : memref<18x18x128xbf16, #tpu.memory_space<vmem>>, vector<16x16x128xbf16>
    %143 = vector.shape_cast %142 : vector<16x16x128xbf16> to vector<256x128xbf16>
    %c1_155 = arith.constant 1 : index
    %c0_156 = arith.constant 0 : index
    %c0_157 = arith.constant 0 : index
    %144 = vector.load %arg6[%c1_155, %c0_156, %c0_157] : memref<9x128x128xbf16, #tpu.memory_space<vmem>>, vector<1x128x128xbf16>
    %145 = vector.shape_cast %144 : vector<1x128x128xbf16> to vector<128x128xbf16>
    %cst_158 = arith.constant dense<0.000000e+00> : vector<256x128xf32>
    %146 = tpu.matmul %143, %145, %cst_158 {dimension_numbers = #tpu.dot_dimension_numbers<[1], [0], [0], [1], [0, 0, 1, 1], [], []>} : vector<256x128xbf16>, vector<128x128xbf16>, vector<256x128xf32> -> vector<256x128xf32>
    %147 = arith.addf %141, %146 : vector<256x128xf32>
    %c0_159 = arith.constant 0 : index
    %c2_160 = arith.constant 2 : index
    %c0_161 = arith.constant 0 : index
    %148 = vector.load %arg9[%c0_159, %c2_160, %c0_161] : memref<18x18x128xbf16, #tpu.memory_space<vmem>>, vector<16x16x128xbf16>
    %149 = vector.shape_cast %148 : vector<16x16x128xbf16> to vector<256x128xbf16>
    %c2_162 = arith.constant 2 : index
    %c0_163 = arith.constant 0 : index
    %c0_164 = arith.constant 0 : index
    %150 = vector.load %arg6[%c2_162, %c0_163, %c0_164] : memref<9x128x128xbf16, #tpu.memory_space<vmem>>, vector<1x128x128xbf16>
    %151 = vector.shape_cast %150 : vector<1x128x128xbf16> to vector<128x128xbf16>
    %cst_165 = arith.constant dense<0.000000e+00> : vector<256x128xf32>
    %152 = tpu.matmul %149, %151, %cst_165 {dimension_numbers = #tpu.dot_dimension_numbers<[1], [0], [0], [1], [0, 0, 1, 1], [], []>} : vector<256x128xbf16>, vector<128x128xbf16>, vector<256x128xf32> -> vector<256x128xf32>
    %153 = arith.addf %147, %152 : vector<256x128xf32>
    %c1_166 = arith.constant 1 : index
    %c0_167 = arith.constant 0 : index
    %c0_168 = arith.constant 0 : index
    %154 = vector.load %arg9[%c1_166, %c0_167, %c0_168] : memref<18x18x128xbf16, #tpu.memory_space<vmem>>, vector<16x16x128xbf16>
    %155 = vector.shape_cast %154 : vector<16x16x128xbf16> to vector<256x128xbf16>
    %c3_169 = arith.constant 3 : index
    %c0_170 = arith.constant 0 : index
    %c0_171 = arith.constant 0 : index
    %156 = vector.load %arg6[%c3_169, %c0_170, %c0_171] : memref<9x128x128xbf16, #tpu.memory_space<vmem>>, vector<1x128x128xbf16>
    %157 = vector.shape_cast %156 : vector<1x128x128xbf16> to vector<128x128xbf16>
    %cst_172 = arith.constant dense<0.000000e+00> : vector<256x128xf32>
    %158 = tpu.matmul %155, %157, %cst_172 {dimension_numbers = #tpu.dot_dimension_numbers<[1], [0], [0], [1], [0, 0, 1, 1], [], []>} : vector<256x128xbf16>, vector<128x128xbf16>, vector<256x128xf32> -> vector<256x128xf32>
    %159 = arith.addf %153, %158 : vector<256x128xf32>
    %c1_173 = arith.constant 1 : index
    %c1_174 = arith.constant 1 : index
    %c0_175 = arith.constant 0 : index
    %160 = vector.load %arg9[%c1_173, %c1_174, %c0_175] : memref<18x18x128xbf16, #tpu.memory_space<vmem>>, vector<16x16x128xbf16>
    %161 = vector.shape_cast %160 : vector<16x16x128xbf16> to vector<256x128xbf16>
    %c4_176 = arith.constant 4 : index
    %c0_177 = arith.constant 0 : index
    %c0_178 = arith.constant 0 : index
    %162 = vector.load %arg6[%c4_176, %c0_177, %c0_178] : memref<9x128x128xbf16, #tpu.memory_space<vmem>>, vector<1x128x128xbf16>
    %163 = vector.shape_cast %162 : vector<1x128x128xbf16> to vector<128x128xbf16>
    %cst_179 = arith.constant dense<0.000000e+00> : vector<256x128xf32>
    %164 = tpu.matmul %161, %163, %cst_179 {dimension_numbers = #tpu.dot_dimension_numbers<[1], [0], [0], [1], [0, 0, 1, 1], [], []>} : vector<256x128xbf16>, vector<128x128xbf16>, vector<256x128xf32> -> vector<256x128xf32>
    %165 = arith.addf %159, %164 : vector<256x128xf32>
    %c1_180 = arith.constant 1 : index
    %c2_181 = arith.constant 2 : index
    %c0_182 = arith.constant 0 : index
    %166 = vector.load %arg9[%c1_180, %c2_181, %c0_182] : memref<18x18x128xbf16, #tpu.memory_space<vmem>>, vector<16x16x128xbf16>
    %167 = vector.shape_cast %166 : vector<16x16x128xbf16> to vector<256x128xbf16>
    %c5_183 = arith.constant 5 : index
    %c0_184 = arith.constant 0 : index
    %c0_185 = arith.constant 0 : index
    %168 = vector.load %arg6[%c5_183, %c0_184, %c0_185] : memref<9x128x128xbf16, #tpu.memory_space<vmem>>, vector<1x128x128xbf16>
    %169 = vector.shape_cast %168 : vector<1x128x128xbf16> to vector<128x128xbf16>
    %cst_186 = arith.constant dense<0.000000e+00> : vector<256x128xf32>
    %170 = tpu.matmul %167, %169, %cst_186 {dimension_numbers = #tpu.dot_dimension_numbers<[1], [0], [0], [1], [0, 0, 1, 1], [], []>} : vector<256x128xbf16>, vector<128x128xbf16>, vector<256x128xf32> -> vector<256x128xf32>
    %171 = arith.addf %165, %170 : vector<256x128xf32>
    %c2_187 = arith.constant 2 : index
    %c0_188 = arith.constant 0 : index
    %c0_189 = arith.constant 0 : index
    %172 = vector.load %arg9[%c2_187, %c0_188, %c0_189] : memref<18x18x128xbf16, #tpu.memory_space<vmem>>, vector<16x16x128xbf16>
    %173 = vector.shape_cast %172 : vector<16x16x128xbf16> to vector<256x128xbf16>
    %c6_190 = arith.constant 6 : index
    %c0_191 = arith.constant 0 : index
    %c0_192 = arith.constant 0 : index
    %174 = vector.load %arg6[%c6_190, %c0_191, %c0_192] : memref<9x128x128xbf16, #tpu.memory_space<vmem>>, vector<1x128x128xbf16>
    %175 = vector.shape_cast %174 : vector<1x128x128xbf16> to vector<128x128xbf16>
    %cst_193 = arith.constant dense<0.000000e+00> : vector<256x128xf32>
    %176 = tpu.matmul %173, %175, %cst_193 {dimension_numbers = #tpu.dot_dimension_numbers<[1], [0], [0], [1], [0, 0, 1, 1], [], []>} : vector<256x128xbf16>, vector<128x128xbf16>, vector<256x128xf32> -> vector<256x128xf32>
    %177 = arith.addf %171, %176 : vector<256x128xf32>
    %c2_194 = arith.constant 2 : index
    %c1_195 = arith.constant 1 : index
    %c0_196 = arith.constant 0 : index
    %178 = vector.load %arg9[%c2_194, %c1_195, %c0_196] : memref<18x18x128xbf16, #tpu.memory_space<vmem>>, vector<16x16x128xbf16>
    %179 = vector.shape_cast %178 : vector<16x16x128xbf16> to vector<256x128xbf16>
    %c7_197 = arith.constant 7 : index
    %c0_198 = arith.constant 0 : index
    %c0_199 = arith.constant 0 : index
    %180 = vector.load %arg6[%c7_197, %c0_198, %c0_199] : memref<9x128x128xbf16, #tpu.memory_space<vmem>>, vector<1x128x128xbf16>
    %181 = vector.shape_cast %180 : vector<1x128x128xbf16> to vector<128x128xbf16>
    %cst_200 = arith.constant dense<0.000000e+00> : vector<256x128xf32>
    %182 = tpu.matmul %179, %181, %cst_200 {dimension_numbers = #tpu.dot_dimension_numbers<[1], [0], [0], [1], [0, 0, 1, 1], [], []>} : vector<256x128xbf16>, vector<128x128xbf16>, vector<256x128xf32> -> vector<256x128xf32>
    %183 = arith.addf %177, %182 : vector<256x128xf32>
    %c2_201 = arith.constant 2 : index
    %c2_202 = arith.constant 2 : index
    %c0_203 = arith.constant 0 : index
    %184 = vector.load %arg9[%c2_201, %c2_202, %c0_203] : memref<18x18x128xbf16, #tpu.memory_space<vmem>>, vector<16x16x128xbf16>
    %185 = vector.shape_cast %184 : vector<16x16x128xbf16> to vector<256x128xbf16>
    %c8_204 = arith.constant 8 : index
    %c0_205 = arith.constant 0 : index
    %c0_206 = arith.constant 0 : index
    %186 = vector.load %arg6[%c8_204, %c0_205, %c0_206] : memref<9x128x128xbf16, #tpu.memory_space<vmem>>, vector<1x128x128xbf16>
    %187 = vector.shape_cast %186 : vector<1x128x128xbf16> to vector<128x128xbf16>
    %cst_207 = arith.constant dense<0.000000e+00> : vector<256x128xf32>
    %188 = tpu.matmul %185, %187, %cst_207 {dimension_numbers = #tpu.dot_dimension_numbers<[1], [0], [0], [1], [0, 0, 1, 1], [], []>} : vector<256x128xbf16>, vector<128x128xbf16>, vector<256x128xf32> -> vector<256x128xf32>
    %189 = arith.addf %183, %188 : vector<256x128xf32>
    %c0_208 = arith.constant 0 : index
    %c0_209 = arith.constant 0 : index
    %190 = vector.load %arg7[%c0_208, %c0_209] : memref<1x128xf32, #tpu.memory_space<vmem>>, vector<1x128xf32>
    %191 = vector.broadcast %190 : vector<1x128xf32> to vector<256x128xf32>
    %192 = arith.addf %189, %191 : vector<256x128xf32>
    %193 = vector.shape_cast %192 : vector<256x128xf32> to vector<1x16x16x128xf32>
    %c0_210 = arith.constant 0 : index
    %c0_211 = arith.constant 0 : index
    %c0_212 = arith.constant 0 : index
    %c0_213 = arith.constant 0 : index
    %194 = vector.load %arg8[%c0_210, %c0_211, %c0_212, %c0_213] : memref<1x16x16x128xf32, #tpu.memory_space<vmem>>, vector<1x16x16x128xf32>
    tpu.vector_store %arg8[%c0_210, %c0_211, %c0_212, %c0_213], %193 {strides = array<i32>} : memref<1x16x16x128xf32, #tpu.memory_space<vmem>>, vector<1x16x16x128xf32>,
    return
  }
  func.func @transform_0(%arg0: i32) -> (i32, i32, i32, i32) {
    %c0_i32 = arith.constant 0 : i32
    %c0_i32_0 = arith.constant 0 : i32
    %c0_i32_1 = arith.constant 0 : i32
    %c0_i32_2 = arith.constant 0 : i32
    return %arg0, %c0_i32, %c0_i32_0, %c0_i32_1 : i32, i32, i32, i32
  }
  func.func @transform_1(%arg0: i32) -> (i32, i32, i32) {
    %c0_i32 = arith.constant 0 : i32
    %c0_i32_0 = arith.constant 0 : i32
    %c0_i32_1 = arith.constant 0 : i32
    %c0_i32_2 = arith.constant 0 : i32
    return %c0_i32, %c0_i32_0, %c0_i32_1 : i32, i32, i32
  }
  func.func @transform_2(%arg0: i32) -> (i32, i32) {
    %c0_i32 = arith.constant 0 : i32
    %c0_i32_0 = arith.constant 0 : i32
    %c0_i32_1 = arith.constant 0 : i32
    return %c0_i32, %c0_i32_0 : i32, i32
  }
  func.func @transform_3(%arg0: i32) -> (i32, i32, i32) {
    %c0_i32 = arith.constant 0 : i32
    %c0_i32_0 = arith.constant 0 : i32
    %c0_i32_1 = arith.constant 0 : i32
    %c0_i32_2 = arith.constant 0 : i32
    return %c0_i32, %c0_i32_0, %c0_i32_1 : i32, i32, i32
  }
  func.func @transform_4(%arg0: i32) -> (i32, i32) {
    %c0_i32 = arith.constant 0 : i32
    %c0_i32_0 = arith.constant 0 : i32
    %c0_i32_1 = arith.constant 0 : i32
    return %c0_i32, %c0_i32_0 : i32, i32
  }
  func.func @transform_5(%arg0: i32) -> (i32, i32, i32) {
    %c0_i32 = arith.constant 0 : i32
    %c0_i32_0 = arith.constant 0 : i32
    %c0_i32_1 = arith.constant 0 : i32
    %c0_i32_2 = arith.constant 0 : i32
    return %c0_i32, %c0_i32_0, %c0_i32_1 : i32, i32, i32
  }
  func.func @transform_6(%arg0: i32) -> (i32, i32) {
    %c0_i32 = arith.constant 0 : i32
    %c0_i32_0 = arith.constant 0 : i32
    %c0_i32_1 = arith.constant 0 : i32
    return %c0_i32, %c0_i32_0 : i32, i32
  }
  func.func @transform_7(%arg0: i32) -> (i32, i32, i32, i32) {
    %c0_i32 = arith.constant 0 : i32
    %c0_i32_0 = arith.constant 0 : i32
    %c0_i32_1 = arith.constant 0 : i32
    %c0_i32_2 = arith.constant 0 : i32
    return %arg0, %c0_i32, %c0_i32_0, %c0_i32_1 : i32, i32, i32, i32
  }
}

</mosaic_0001>

<bundles_post_ra>
// kernel: tpu_custom_call.1
= control target key start
LH: loop header
LB: loop body
LE: loop exit
PB: predicated region body
PF: predicated region fallthrough
CT: control target
= control target key end

     0   :  { %12 = vsyncpa [#allocation4], 0  ;;  %s25774_s0 = inlined_call_operand.hbm [shape: f32[2,16,16,32], index: 0, kind: input, shape index: {}]   ;;  %s25775_s1 = inlined_call_operand.hbm [shape: bf16[9,128,128], index: 1, kind: input, shape index: {}]   ;;  %s25776_s2 = inlined_call_operand.vmem [shape: f32[1,128], index: 2, kind: input, shape index: {}]   ;;  %s25777_s3 = inlined_call_operand.hbm [shape: bf16[9,128,128], index: 3, kind: input, shape index: {}]   ;;  %s25778_s4 = inlined_call_operand.vmem [shape: f32[1,128], index: 4, kind: input, shape index: {}]   ;;  %s25779_s5 = inlined_call_operand.hbm [shape: bf16[9,128,128], index: 5, kind: input, shape index: {}]   ;;  %s25780_s6 = inlined_call_operand.vmem [shape: f32[1,128], index: 6, kind: input, shape index: {}]   ;;  %s25781_s7 = inlined_call_operand.hbm [shape: f32[2,16,16,128], index: 7, kind: output, shape index: {}]  }
   0x1   :  { %14 = vsyncpa [#allocation4 + $0x1], 0 }
   0x2   :  { %15 = vsyncpa [#allocation7], 0 }
   0x3   :  { %16 = vsyncpa [#allocation10], 0 }
   0x4   :  { %17 = vsyncpa [#allocation5], 0 }
   0x5   :  { %19 = vsyncpa [#allocation5 + $0x1], 0  ;;  %s20887_s24 = smov 0   ;;  %s20889_s25 = smov 0  }
   0x6   :  { %s20891_s26 = smov 0   ;;  %s20893_s27 = smov 0  }
   0x7 LB: > { %s20908_s28 = sadd.s32 4294967295, %s20833_s27   ;;  %s16390_s29 = sadd.s32 4294967294, %s20833_s27   ;;  %s20833_s27 = sphi %s20893_s27, %s26385_s27   ;;  %s20829_s26 = sphi %s20891_s26, %s26384_s26   ;;  %s20825_s25 = sphi %s20889_s25, %s26383_s25   ;;  %s20821_s24 = sphi %s20887_s24, %s26382_s24  }
   0x8   : > { %p45_p0 = scmp.ne.s32.totalorder %s20825_s25, %s20821_s24  ;;  %p25782_p1 = scmp.eq.s32.totalorder %s20908_s28, 0 }
   0x9   : > { %p201_p3 = scmp.eq.s32.totalorder %s16390_s29, 1  ;;  %p16391_p5 = scmp.ge.s32.totalorder %s20833_s27, 1 }
   0xa   : > { %p20917_p4 = por %p25782_p1, %p45_p0  ;;  %p208_p7 = scmp.lt.s32.totalorder %s20833_s27, 3 }
   0xb   : > { %p20922_p6 = por %p201_p3, %p45_p0  ;;  %s20835_s10 = smov [#allocation6]  }
   0xc   : > { %s25941_s30 = scalar_select %p20917_p4, 1, 0 }
   0xd   : > { %s25942_s8 = scalar_select %p20922_p6, 1, 0 }
   0xe   : > { %p20927_p8 = pnand %p16391_p5, %p208_p7  ;;  %s220_s11 = sshll.u32 %s20835_s10, 4  ;;  %s20931_s11 = int_to_ptr.vmem [resolvable:$true] %s220_s11 }
   0xf   : > { %25943 = sst [smem:[#allocation16_spill]] %s25942_s8  ;;  %s20836_s13 = smov [#allocation8]  }
  0x10   : > { %s25944_s9 = scalar_select %p20927_p8, 1, 0 }
  0x11   : > { %p20095_p9 = pneg %p20927_p8  ;;  %s236_s14 = sshll.u32 %s20836_s13, 4  ;;  %s20942_s14 = int_to_ptr.vmem [resolvable:$true] %s236_s14 }
  0x12   : > { %s20837_s15 = smov [#allocation9]   ;;  %s20645_s19 = scalar_lea.hbm %s25775_s1, 9216 }
  0x13   : > { %p20938_p11 = pnand %p20095_p9, %p25782_p1  ;;  %s20944_s16 = sshll.u32 %s20837_s15, 4  ;;  %s253_s16 = int_to_ptr.vmem [resolvable:$true] %s20944_s16 }
  0x14   : > { %p20646_p12 = scmp.ne.s32.totalorder %s25775_s1, %s20645_s19  ;;  %p20652_p5 = scmp.lt.u32.totalorder %s20645_s19, %s25775_s1 }
  0x15   : > { %p20954_p13 = pneg %p20938_p11 }
  0x17   : > { %p20648_p0 = pnand %p20954_p13, %p20646_p12 }
  0x19   : > { %p20649_p3 = pneg %p20648_p0 }
  0x1b   : > { %p20654_p7 = pnand %p20652_p5, %p20649_p3 }
  0x1d   : > { %20657 = shalt.err (!%p20654_p7)
}
  0x1e   : > { %s20658_s10 = scalar_lea.vmem %s20931_s11, 9216  ;;  %p20666_p2 = scmp.lt.s32.totalorder %s20931_s11, %s20931_s11 }
  0x1f   : > { %p20659_p9 = scmp.ne.s32.totalorder %s20931_s11, %s20658_s10  ;;  %p20667_p6 = scmp.lt.s32.totalorder %s20658_s10, %s20658_s10 }
  0x21   : > { %p20661_p10 = pnand %p20659_p9, %p20954_p13  ;;  %p20668_p12 = por %p20667_p6, %p20666_p2 }
  0x23   : > { %p20662_p1 = pneg %p20661_p10 }
  0x25   : > { %p20669_p0 = pnand %p20668_p12, %p20662_p1 }
  0x27   : > { %20672 = shalt.err (!%p20669_p0)
}
  0x28   : > { %s20838_s13 = smov 64   ;;  %s20839_s15 = smov 4  }
  0x29   : > { %20098 = dma.hbm_to_vmem [thread:$0]  (!%p20938_p11), %s25775_s1, 9216, %s20931_s11, [#allocation7], %s20838_s13, %s20838_s13, %s20839_s15  }
  0x2a   : > { %s20673_s21 = scalar_lea.hbm %s25777_s3, 9216 }
  0x2b   : > { %p20674_p1 = scmp.ne.s32.totalorder %s25777_s3, %s20673_s21  ;;  %p20680_p10 = scmp.lt.u32.totalorder %s20673_s21, %s25777_s3 }
  0x2d   : > { %p20676_p2 = pnand %p20674_p1, %p20954_p13 }
  0x2f   : > { %p20677_p6 = pneg %p20676_p2 }
  0x31   : > { %p20682_p3 = pnand %p20680_p10, %p20677_p6 }
  0x33   : > { %20685 = shalt.err (!%p20682_p3)
}
  0x34   : > { %s20686_s11 = scalar_lea.vmem %s20942_s14, 9216  ;;  %p20694_p12 = scmp.lt.s32.totalorder %s20942_s14, %s20942_s14 }
  0x35   : > { %p20687_p5 = scmp.ne.s32.totalorder %s20942_s14, %s20686_s11  ;;  %p20695_p0 = scmp.lt.s32.totalorder %s20686_s11, %s20686_s11 }
  0x37   : > { %p20689_p7 = pnand %p20687_p5, %p20954_p13  ;;  %p20696_p1 = por %p20695_p0, %p20694_p12 }
  0x39   : > { %p20690_p9 = pneg %p20689_p7 }
  0x3b   : > { %p20697_p2 = pnand %p20696_p1, %p20690_p9 }
  0x3d   : > { %20700 = shalt.err (!%p20697_p2)
}
  0x3e   : > { %20101 = dma.hbm_to_vmem [thread:$0]  (!%p20938_p11), %s25777_s3, 9216, %s20942_s14, [#allocation7], %s20838_s13, %s20838_s13, %s20839_s15  }
  0x3f   : > { %s20701_s20 = scalar_lea.hbm %s25779_s5, 9216 }
  0x40   : > { %p20702_p6 = scmp.ne.s32.totalorder %s25779_s5, %s20701_s20  ;;  %p20708_p5 = scmp.lt.u32.totalorder %s20701_s20, %s25779_s5 }
  0x42   : > { %p20704_p10 = pnand %p20702_p6, %p20954_p13 }
  0x44   : > { %p20705_p3 = pneg %p20704_p10 }
  0x46   : > { %p20710_p7 = pnand %p20708_p5, %p20705_p3 }
  0x48   : > { %20713 = shalt.err (!%p20710_p7)
}
  0x49   : > { %s20714_s11 = scalar_lea.vmem %s253_s16, 9216  ;;  %p20722_p1 = scmp.lt.s32.totalorder %s253_s16, %s253_s16 }
  0x4a   : > { %p20715_p9 = scmp.ne.s32.totalorder %s253_s16, %s20714_s11  ;;  %p20723_p2 = scmp.lt.s32.totalorder %s20714_s11, %s20714_s11 }
  0x4c   : > { %p20717_p12 = pnand %p20715_p9, %p20954_p13  ;;  %p20724_p4 = por %p20723_p2, %p20722_p1 }
  0x4e   : > { %p20718_p0 = pneg %p20717_p12 }
  0x50   : > { %p20725_p8 = pnand %p20724_p4, %p20718_p0 }
  0x52   : > { %20728 = shalt.err (!%p20725_p8)
}
  0x53   : > { %20104 = dma.hbm_to_vmem [thread:$0]  (!%p20938_p11), %s25779_s5, 9216, %s253_s16, [#allocation10], %s20838_s13, %s20838_s13, %s20839_s15  }
  0x54   : > { %s21027_s22 = sadd.s32 1, %s20833_s27   ;;  %s32_s17 = sadd.s32 1, %s20829_s26 }
  0x55   : > { %s29_s12 = ssub.s32 %s20833_s27, %s21027_s22  ;;  %p39_p8 = scmp.ne.s32.totalorder %s20829_s26, %s20825_s25 }
  0x56   : > { %p30_p4 = scmp.eq.s32.totalorder %s29_s12, 0  ;;  %p40_p13 = scmp.eq.s32.totalorder %s20833_s27, 0 }
  0x57   : > { %p20116_p6 = scmp.lt.s32.totalorder %s20833_s27, 2  ;;  %p25947_p3 = scmp.eq.s32.totalorder %s20908_s28, 1 }
  0x58   : > { %s21037_s18 = scalar_select %p30_p4, %s20829_s26, %s32_s17  }
  0x59   : > { %p41_p10 = por %p40_p13, %p39_p8  ;;  %p21041_p5 = por %p25947_p3, %p39_p8 }
  0x5a   : > { %s269_s20 = sand.u32 1, %s20829_s26   ;;  %s17349_s21 = sshll.u32 %s20833_s27, 12 }
  0x5b   : > { %s16396_s16 = sshll.u32 %s269_s20, 8  ;;  %s21050_s23 = scalar_lea.hbm %s25774_s0, %s17349_s21 }
  0x5c   : > { %s273_s29 = scalar_lea.vmem [#allocation3], %s16396_s16  ;;  %p21052_p11 = pnand %p20116_p6, %p41_p10 }
  0x5d   : > { %s280_s10 = sshll.u32 %s273_s29, 4  ;;  %s21058_s14 = scalar_lea.sflag [#allocation4], %s269_s20  ;;  %s21056_s10 = int_to_ptr.vmem [resolvable:$true] %s280_s10 }
  0x5e   : > { %s20729_s8 = scalar_lea.hbm %s21050_s23, 4096  ;;  %p20731_p9 = pneg %p21052_p11 }
  0x5f   : > { %p20730_p7 = scmp.ne.s32.totalorder %s21050_s23, %s20729_s8  ;;  %s20734_s21 = scalar_lea.hbm %s25774_s0, 8192 }
  0x60   : > { %p20735_p1 = scmp.lt.u32.totalorder %s21050_s23, %s25774_s0  ;;  %p20736_p2 = scmp.lt.u32.totalorder %s20734_s21, %s20729_s8 }
  0x61   : > { %p20732_p12 = pnand %p20731_p9, %p20730_p7  ;;  %p20738_p8 = scmp.lt.u32.totalorder %s20729_s8, %s21050_s23 }
  0x62   : > { %p20737_p4 = por %p20736_p2, %p20735_p1 }
  0x63   : > { %p20733_p0 = pneg %p20732_p12 }
  0x64   : > { %p20739_p13 = por %p20738_p8, %p20737_p4 }
  0x66   : > { %p20740_p6 = pnand %p20739_p13, %p20733_p0 }
  0x68   : > { %20743 = shalt.err (!%p20740_p6)
}
  0x69   : > { %s20744_s20 = scalar_lea.vmem %s21056_s10, 4096  ;;  %s20840_s15 = smov [#allocation3]  }
  0x6a   : > { %p20745_p10 = scmp.ne.s32.totalorder %s21056_s10, %s20744_s20  ;;  %s20749_s29 = sshll.u32 %s20840_s15, 4  ;;  %s20750_s29 = int_to_ptr.vmem [resolvable:$false] %s20749_s29 }
  0x6b   : > { %s20751_s12 = scalar_lea.vmem %s20750_s29, 8192  ;;  %p20752_p12 = scmp.lt.s32.totalorder %s21056_s10, %s20750_s29 }
  0x6c   : > { %p20747_p3 = pnand %p20745_p10, %p20731_p9  ;;  %p20753_p1 = scmp.lt.s32.totalorder %s20751_s12, %s20744_s20 }
  0x6e   : > { %p20748_p7 = pneg %p20747_p3  ;;  %p20754_p2 = por %p20753_p1, %p20752_p12 }
  0x70   : > { %p20755_p4 = pnand %p20754_p2, %p20748_p7 }
  0x72   : > { %20758 = shalt.err (!%p20755_p4)
}
  0x73   : > { %s20841_s8 = smov 128   ;;  %s20842_s17 = smov 8  }
  0x74   : > { %20108 = dma.hbm_to_vmem [thread:$0]  (!%p21052_p11), %s21050_s23, 4096, %s21056_s10, %s21058_s14, %s20841_s8, %s20841_s8, %s20842_s17  }
  0x75   : > { %p25950_p9 = scmp.ne.s32.totalorder %s25944_s9, 0 }
  0x77   : > { %292 = sbr.rel (%p25950_p9) target bundleno = 2388 (0x954), region = 48 }
  0x7e   : > { %s21089_s21 = sand.u32 1, %s20825_s25   ;;  %p25951_p0 = scmp.ne.s32.totalorder %s25941_s30, 0 }
  0x7f   : > { %s16400_s16 = sshll.u32 %s21089_s21, 8  ;;  %s295_s13 = scalar_lea.sflag [#allocation4], %s21089_s21 }
  0x80   : > { %s21095_s20 = scalar_lea.vmem [#allocation3], %s16400_s16 }
  0x81   : > { %20804 = dma.done.wait (%p25951_p0), %s295_s13, 4096  }
  0x82   : > { %20806 = vsyncadd (%p25951_p0), %s295_s13, 4294963200  ;;  %p25952_p11 = scmp.eq.s32.totalorder %s20908_s28, 0 }
  0x84   : > { %20808 = dma.done.wait (%p25952_p11), [#allocation7], 18432   ;;  %p25953_p8 = pmov %p25952_p11 }
  0x86   : > { %20810 = vsyncadd (%p25953_p8), [#allocation7], 4294948864  ;;  %p25954_p13 = pmov %p25953_p8 }
  0x87   : > { %p25955_p6 = pmov %p25953_p8 }
  0x88   : > { %20812 = dma.done.wait (%p25954_p13), [#allocation10], 9216  }
  0x89   : > { %20814 = vsyncadd (%p25955_p6), [#allocation10], 4294958080  ;;  %v20843_v0 = vmov 0   ;;  %v20163_v1 = vld [vmem:[#allocation6 + $0x40] sm:$0xff]   ;;  %v20165_v3 = vld [vmem:[#allocation6 + $0x48] sm:$0xff]   ;;  %vm397_vm3 = vcmask 261120  }
  0x8a   : > { %342 = vst [vmem:[#allocation2] sm:$0xf] %v20843_v0  ;;  %343 = vst [vmem:[#allocation2 + $0x4] sm:$0xf] %v20843_v0  ;;  %v20164_v2 = vld [vmem:[#allocation6 + $0x100] sm:$0xff]   ;;  %17999 = vmatprep.subr.bf16.mxu1 %v20163_v1  ;;  %v20166_v4 = vld [vmem:[#allocation6 + $0x108] sm:$0xff]  }
  0x8b   : > { %344 = vst [vmem:[#allocation2 + $0x8] sm:$0x1] %v20843_v0  ;;  %346 = vst [vmem:[#allocation2 + $0xcc] sm:$0xf] %v20843_v0  ;;  %18191 = vmatprep.subr.bf16.mxu0 %v20164_v2  ;;  %18000 = vmatpush3.bf16.msra.mxu1 %v20163_v1  ;;  %v20167_v5 = vld [vmem:[#allocation6 + $0x50] sm:$0xff]   ;;  %v20169_v7 = vld [vmem:[#allocation6 + $0x58] sm:$0xff]  }
  0x8c   : > { %347 = vst [vmem:[#allocation2 + $0xd0] sm:$0xf] %v20843_v0  ;;  %348 = vst [vmem:[#allocation2 + $0xd4] sm:$0x1] %v20843_v0  ;;  %18192 = vmatpush3.bf16.msra.mxu0 %v20164_v2  ;;  %18001 = vmatprep.subr.bf16.mxu1 %v20165_v3  ;;  %v20168_v6 = vld [vmem:[#allocation6 + $0x110] sm:$0xff]   ;;  %v20170_v8 = vld [vmem:[#allocation6 + $0x118] sm:$0xff]  }
  0x8d   : > { %18193 = vmatprep.subr.bf16.mxu0 %v20166_v4  ;;  %vm883_vm0 = vsmask.f32 3328  ;;  %vm884_vm1 = vsmask.f32 7440  ;;  %v20171_v9 = vld [vmem:[#allocation6 + $0x60] sm:$0xff]   ;;  %v20173_v11 = vld [vmem:[#allocation6 + $0x68] sm:$0xff]  }
  0x8e   : > { %vm560_vm2 = vsmask.f32 256  ;;  %v20172_v10 = vld [vmem:[#allocation6 + $0x120] sm:$0xff]   ;;  %v20174_v12 = vld [vmem:[#allocation6 + $0x128] sm:$0xff]   ;;  %vm559_vm4 = vcmask 1040384   ;;  %v20175_v24 = vld [vmem:[#allocation6 + $0x70] sm:$0xff]  }
  0x8f   : > { %18002 = vmatpush3.bf16.msra.mxu1 %v20165_v3  ;;  %v349_v20 = vld [vmem:[%s21095_s20] sm:$0xff]  ;;  %v350_v21 = vld [vmem:[%s21095_s20 + $0x8] sm:$0xff]  ;;  %v351_v29 = vld [vmem:[%s21095_s20 + $0x10] sm:$0xff]  ;;  %v25958_v45 = vmov 0  ;;  %vm1913_vm7 = vcmask 1042432   ;;  %vm1914_vm8 = vcmask 1046532  }
  0x90   : > { %18194 = vmatpush3.bf16.msra.mxu0 %v20166_v4  ;;  %18003 = vmatprep.subr.bf16.mxu1 %v20167_v5  ;;  %v381_v23 = vpack.c.bf16 %v350_v21, %v349_v20  ;;  %v20176_v30 = vld [vmem:[#allocation6 + $0x130] sm:$0xff]   ;;  %v352_v33 = vld [vmem:[%s21095_s20 + $0x18] sm:$0xff]  ;;  %vm21116_vm5 = vmor %vm883_vm0, %vm884_vm1  ;;  %s25659_s15 = scalar_lea.vmem [#allocation11], %s16400_s16  ;;  %s17350_s29 = sshll.u32 %s20908_s28, 12 }
  0x91   : > { %18195 = vmatprep.subr.bf16.mxu0 %v20168_v6  ;;  %v819_v13 = vld [vmem:[#allocation2] sm:$0xf]  ;;  %v820_v14 = vld [vmem:[#allocation2 + $0x4] sm:$0xf]  ;;  %v20177_v39 = vld [vmem:[#allocation6 + $0x78] sm:$0xff]   ;;  %v382_v40 = vpack.c.bf16 %v352_v33, %v351_v29  ;;  %s16288_s12 = sshll.u32 %s25659_s15, 4  ;;  %s25724_s16 = scalar_lea.hbm %s25781_s7, %s17350_s29  ;;  %s25726_s12 = int_to_ptr.vmem [resolvable:$true] %s16288_s12 }
  0x92   : > { %v867_v15 = vld [vmem:[#allocation2 + $0x8] sm:$0x1]  ;;  %v887_v16 = vshrl.u32 %v819_v13, 16  ;;  %v890_v17 = vshll.u32 %v819_v13, 16  ;;  %v896_v18 = vshll.u32 %v820_v14, 16  ;;  %v900_v19 = vshrl.u32 %v820_v14, 16  ;;  %vm21123_vm6 = vmand %vm559_vm4, %vm560_vm2 }
  0x93   : > { %18004 = vmatpush3.bf16.msra.mxu1 %v20167_v5  ;;  %v906_v22 = vshll.u32 %v867_v15, 16  ;;  %v400_v32 = vsel %vm397_vm3, %v381_v23, 0  ;;  %v353_v41 = vld [vmem:[%s21095_s20 + $0x20] sm:$0xff]  ;;  %v25959_v45 = vsel %vm21123_vm6, 4294967295, %v25958_v45  ;;  %v354_v46 = vld [vmem:[%s21095_s20 + $0x28] sm:$0xff]  ;;  %v20178_v47 = vld [vmem:[#allocation6 + $0x138] sm:$0xff]  }
  0x94   : > { %18196 = vmatpush3.bf16.msra.mxu0 %v20168_v6  ;;  %18005 = vmatprep.subr.bf16.mxu1 %v20169_v7  ;;  %v889_v25 = vrot.slane %v887_v16, 4  ;;  %v892_v26 = vrot.slane %v890_v17, 5  ;;  %v898_v27 = vrot.slane %v896_v18, 5  ;;  %v902_v28 = vrot.slane %v900_v19, 4  ;;  %25960 = vst [vmem:[#allocation17_spill] sm:$0xff] %v25959_v45  ;;  %v355_v50 = vld [vmem:[%s21095_s20 + $0x30] sm:$0xff]  ;;  %vm21274_vm9 = vmor %vm1913_vm7, %vm1914_vm8 }
  0x95   : > { %18197 = vmatprep.subr.bf16.mxu0 %v20170_v8  ;;  %v908_v31 = vrot.slane %v906_v22, 5  ;;  %v431_v37 = vshrl.u32 %v400_v32, 16  ;;  %v434_v38 = vshll.u32 %v400_v32, 16  ;;  %v402_v48 = vsel %vm397_vm3, %v382_v40, 0  ;;  %v356_v55 = vld [vmem:[%s21095_s20 + $0x38] sm:$0xff]  ;;  %v21137_v58 = vld [vmem:[#allocation6] sm:$0xff]  }
  0x96   : > { %v893_v35 = vor.u32 %v892_v26, %v889_v25  ;;  %v903_v36 = vor.u32 %v902_v28, %v898_v27  ;;  %v383_v49 = vpack.c.bf16 %v354_v46, %v353_v41  ;;  %v437_v59 = vshrl.u32 %v402_v48, 16  ;;  %v357_v0 = vld [vmem:[%s21095_s20 + $0x40] sm:$0xff]  ;;  %v358_v1 = vld [vmem:[%s21095_s20 + $0x48] sm:$0xff]  ;;  %s16275_s28 = scalar_lea.sflag [#allocation5], %s21089_s21  ;;  %s20759_s13 = scalar_lea.vmem %s25726_s12, 4096 }
  0x97   : > { %18006 = vmatpush3.bf16.msra.mxu1 %v20169_v7  ;;  %v433_v44 = vrot.slane %v431_v37, 7  ;;  %v440_v60 = vshll.u32 %v402_v48, 16  ;;  %v384_v63 = vpack.c.bf16 %v356_v55, %v355_v50  ;;  %v21144_v6 = vld [vmem:[#allocation6 + $0x140] sm:$0xff]   ;;  %v21166_v33 = vld [vmem:[%s21095_s20 + $0x68] sm:$0xff]  ;;  %p20760_p10 = scmp.ne.s32.totalorder %s25726_s12, %s20759_s13 }
  0x98   : > { %18198 = vmatpush3.bf16.msra.mxu0 %v20170_v8  ;;  %18007 = vmatprep.subr.bf16.mxu1 %v20171_v9  ;;  %v894_v42 = vrot.slane %v893_v35, 4  ;;  %v904_v43 = vrot.slane %v903_v36, 4  ;;  %v404_v62 = vsel %vm397_vm3, %v383_v49, 0  ;;  %v439_v4 = vrot.slane %v437_v59, 7  ;;  %v21159_v28 = vld [vmem:[%s21095_s20 + $0x60] sm:$0xff] }
  0x99   : > { %18199 = vmatprep.subr.bf16.mxu0 %v20172_v10  ;;  %v436_v53 = vor.u32 %v434_v38, %v433_v44  ;;  %v578_v54 = vsel %vm21123_vm6, %v433_v44, 0  ;;  %v443_v5 = vshrl.u32 %v404_v62, 16  ;;  %v446_v7 = vshll.u32 %v404_v62, 16  ;;  %p20761_p3 = pnand %p20760_p10, %p21041_p5 }
  0x9a   : > { %v899_v51 = vsel %vm21116_vm5, %v894_v42, %v898_v27  ;;  %v909_v52 = vsel %vm21116_vm5, %v904_v43, %v908_v31  ;;  %v16407_v57 = vcombine.low %v578_v54, %v578_v54  ;;  %v406_v8 = vsel %vm397_vm3, %v384_v63, 0 }
  0x9b   : > { %18008 = vmatpush3.bf16.msra.mxu1 %v20171_v9  ;;  %v16453_v56 = vcombine.low %v899_v51, %v909_v52  ;;  %v562_v61 = vsel %vm21123_vm6, 0, %v436_v53  ;;  %v385_v9 = vpack.c.bf16 %v358_v1, %v357_v0  ;;  %v579_v13 = vsel %vm21123_vm6, %v439_v4, 0  ;;  %p20762_p7 = pneg %p20761_p3 }
  0x9c   : > { %18200 = vmatpush3.bf16.msra.mxu0 %v20172_v10  ;;  %18009 = vmatprep.subr.bf16.mxu1 %v20173_v11  ;;  %v16405_v2 = vcombine.low %v562_v61, %v562_v61  ;;  %v16406_v3 = vcombine.high %v562_v61, %v562_v61  ;;  %773 = vst [vmem:[#allocation2 + $0x14] sm:$0x1] %v16407_v57  ;;  %v359_v10 = vld [vmem:[%s21095_s20 + $0x50] sm:$0xff]  ;;  %v445_v14 = vrot.slane %v443_v5, 7  ;;  %v449_v15 = vshrl.u32 %v406_v8, 16 }
  0x9d   : > { %18201 = vmatprep.subr.bf16.mxu0 %v20174_v12  ;;  %18015 = vmatprep.mubr.bf16.mxu1 %v16453_v56  ;;  %v16410_v16 = vcombine.low %v579_v13, %v579_v13  ;;  %v452_v17 = vshll.u32 %v406_v8, 16  ;;  %v408_v18 = vsel %vm397_vm3, %v385_v9, 0  ;;  %v387_v52 = vpack.c.bf16 %v21166_v33, %v21159_v28 }
  0x9e   : > { %771 = vst [vmem:[#allocation2 + $0xc] sm:$0xf] %v16405_v2  ;;  %772 = vst [vmem:[#allocation2 + $0x10] sm:$0xf] %v16406_v3  ;;  %v448_v21 = vor.u32 %v446_v7, %v445_v14  ;;  %v580_v22 = vsel %vm21123_vm6, %v445_v14, 0  ;;  %v451_v23 = vrot.slane %v449_v15, 7 }
  0x9f   : > { %18010 = vmatpush3.bf16.msra.mxu1 %v20173_v11  ;;  %v360_v11 = vld [vmem:[%s21095_s20 + $0x58] sm:$0xff]  ;;  %776 = vst [vmem:[#allocation2 + $0x20] sm:$0x1] %v16410_v16  ;;  %v16413_v26 = vcombine.low %v580_v22, %v580_v22  ;;  %v455_v27 = vshrl.u32 %v408_v18, 16  ;;  %v458_v32 = vshll.u32 %v408_v18, 16 }
  0xa0   : > { %18202 = vmatpush3.bf16.msra.mxu0 %v20174_v12  ;;  %18011 = vmatprep.subr.bf16.mxu1 %v20175_v24  ;;  %v442_v12 = vor.u32 %v440_v60, %v439_v4  ;;  %v386_v19 = vpack.c.bf16 %v360_v11, %v359_v10  ;;  %v564_v29 = vsel %vm21123_vm6, 0, %v448_v21  ;;  %v581_v31 = vsel %vm21123_vm6, %v451_v23, 0 }
  0xa1   : > { %18203 = vmatprep.subr.bf16.mxu0 %v20176_v30  ;;  %v16411_v37 = vcombine.low %v564_v29, %v564_v29  ;;  %v16412_v38 = vcombine.high %v564_v29, %v564_v29  ;;  %779 = vst [vmem:[#allocation2 + $0x2c] sm:$0x1] %v16413_v26  ;;  %v21170_v40 = vrot.slane %v455_v27, 7 }
  0xa2   : > { %v563_v20 = vsel %vm21123_vm6, 0, %v442_v12  ;;  %v21176_v44 = vsel %vm397_vm3, %v386_v19, 0 }
  0xa3   : > { %18012 = vmatpush3.bf16.msra.mxu1 %v20175_v24  ;;  %v16408_v24 = vcombine.low %v563_v20, %v563_v20  ;;  %v16409_v25 = vcombine.high %v563_v20, %v563_v20  ;;  %v21168_v35 = vld [vmem:[#allocation2 + $0x14] sm:$0x1]  ;;  %777 = vst [vmem:[#allocation2 + $0x24] sm:$0xf] %v16411_v37  ;;  %778 = vst [vmem:[#allocation2 + $0x28] sm:$0xf] %v16412_v38  ;;  %v21181_v51 = vor.u32 %v458_v32, %v21170_v40 }
  0xa4   : > { %18204 = vmatpush3.bf16.msra.mxu0 %v20176_v30  ;;  %18013 = vmatprep.subr.bf16.mxu1 %v20177_v39  ;;  %v454_v30 = vor.u32 %v452_v17, %v451_v23  ;;  %v868_v36 = vld [vmem:[#allocation2 + $0x14] sm:$0x1]  ;;  %v2804_v41 = vshll.u32 %v21168_v35, 16 }
  0xa5   : > { %18205 = vmatprep.subr.bf16.mxu0 %v20178_v47  ;;  %774 = vst [vmem:[#allocation2 + $0x18] sm:$0xf] %v16408_v24  ;;  %775 = vst [vmem:[#allocation2 + $0x1c] sm:$0xf] %v16409_v25  ;;  %v930_v42 = vshll.u32 %v868_v36, 16 }
  0xa6   : > { %v565_v43 = vsel %vm21123_vm6, 0, %v454_v30  ;;  %v2736_v46 = vld [vmem:[#allocation2 + $0xc] sm:$0xf]  ;;  %v822_v57 = vld [vmem:[#allocation2 + $0x10] sm:$0xf]  ;;  %v2806_v59 = vrot.slane %v2804_v41, 5 }
  0xa7   : > { %18014 = vmatpush3.bf16.msra.mxu1 %v20177_v39  ;;  %v16416_v39 = vcombine.low %v581_v31, %v581_v31  ;;  %v821_v48 = vld [vmem:[#allocation2 + $0xc] sm:$0xf]  ;;  %v16414_v49 = vcombine.low %v565_v43, %v565_v43  ;;  %v16415_v50 = vcombine.high %v565_v43, %v565_v43  ;;  %v2785_v53 = vshrl.u32 %v2736_v46, 16  ;;  %v21187_v3 = vld [vmem:[#allocation2 + $0x20] sm:$0x1] }
  0xa8   : > { %18206 = vmatpush3.bf16.msra.mxu0 %v20178_v47  ;;  %18047 = vmatprep.subr.bf16.mxu1 %v21137_v58  ;;  %v21178_v47 = vld [vmem:[#allocation2 + $0x10] sm:$0xf]  ;;  %v2788_v54 = vshll.u32 %v2736_v46, 16  ;;  %v911_v60 = vshrl.u32 %v821_v48, 16  ;;  %v914_v61 = vshll.u32 %v821_v48, 16  ;;  %v920_v62 = vshll.u32 %v822_v57, 16 }
  0xa9   : > { %18239 = vmatprep.subr.bf16.mxu0 %v21144_v6  ;;  %782 = vst [vmem:[#allocation2 + $0x38] sm:$0x1] %v16416_v39  ;;  %v2794_v55 = vshll.u32 %v21178_v47, 16  ;;  %v2798_v56 = vshrl.u32 %v21178_v47, 16  ;;  %780 = vst [vmem:[#allocation2 + $0x30] sm:$0xf] %v16414_v49 }
  0xaa   : > { %781 = vst [vmem:[#allocation2 + $0x34] sm:$0xf] %v16415_v50  ;;  %v2787_v63 = vrot.slane %v2785_v53, 4  ;;  %v2790_v0 = vrot.slane %v2788_v54, 5  ;;  %v913_v4 = vrot.slane %v911_v60, 4  ;;  %v916_v5 = vrot.slane %v914_v61, 5 }
  0xab   : > { %v2796_v1 = vrot.slane %v2794_v55, 5  ;;  %v2800_v2 = vrot.slane %v2798_v56, 4  ;;  %v922_v7 = vrot.slane %v920_v62, 5  ;;  %v924_v8 = vshrl.u32 %v822_v57, 16  ;;  %v869_v46 = vld [vmem:[#allocation2 + $0x20] sm:$0x1] }
  0xac   : > { %v2791_v9 = vor.u32 %v2790_v0, %v2787_v63  ;;  %v932_v11 = vrot.slane %v930_v42, 5  ;;  %v2739_v12 = vld [vmem:[#allocation2 + $0x18] sm:$0xf]  ;;  %v21189_v13 = vld [vmem:[#allocation2 + $0x1c] sm:$0xf]  ;;  %v2828_v14 = vshll.u32 %v21187_v3, 16  ;;  %v917_v15 = vor.u32 %v916_v5, %v913_v4 }
  0xad   : > { %v2801_v10 = vor.u32 %v2800_v2, %v2796_v1  ;;  %v926_v16 = vrot.slane %v924_v8, 4  ;;  %v2809_v17 = vshrl.u32 %v2739_v12, 16  ;;  %v2812_v18 = vshll.u32 %v2739_v12, 16  ;;  %v823_v27 = vld [vmem:[#allocation2 + $0x18] sm:$0xf]  ;;  %v20182_v63 = vld [vmem:[#allocation6 + $0x8] sm:$0xff]  }
  0xae   : > { %v2792_v19 = vrot.slane %v2791_v9, 4  ;;  %v2818_v21 = vshll.u32 %v21189_v13, 16  ;;  %v2822_v22 = vshrl.u32 %v21189_v13, 16  ;;  %v918_v23 = vrot.slane %v917_v15, 4  ;;  %v824_v36 = vld [vmem:[#allocation2 + $0x1c] sm:$0xf] }
  0xaf   : > { %v2802_v20 = vrot.slane %v2801_v10, 4  ;;  %v927_v24 = vor.u32 %v926_v16, %v922_v7  ;;  %v2811_v25 = vrot.slane %v2809_v17, 4  ;;  %v2814_v26 = vrot.slane %v2812_v18, 5  ;;  %v2742_v56 = vld [vmem:[#allocation2 + $0x24] sm:$0xf] }
  0xb0   : > { %v2797_v29 = vsel %vm21116_vm5, %v2792_v19, %v2796_v1  ;;  %v2820_v31 = vrot.slane %v2818_v21, 5  ;;  %v2824_v32 = vrot.slane %v2822_v22, 4  ;;  %v923_v38 = vsel %vm21116_vm5, %v918_v23, %v922_v7  ;;  %v21202_v62 = vld [vmem:[#allocation2 + $0x28] sm:$0xf]  ;;  %v20181_v1 = vld [vmem:[#allocation6 + $0x148] sm:$0xff]  }
  0xb1   : > { %v2807_v30 = vsel %vm21116_vm5, %v2802_v20, %v2806_v59  ;;  %v928_v39 = vrot.slane %v927_v24, 4  ;;  %v2815_v41 = vor.u32 %v2814_v26, %v2811_v25  ;;  %v2830_v43 = vrot.slane %v2828_v14, 5  ;;  %v21208_v9 = vld [vmem:[#allocation2 + $0x2c] sm:$0x1]  ;;  %v825_v12 = vld [vmem:[#allocation2 + $0x24] sm:$0xf] }
  0xb2   : > { %v16565_v37 = vcombine.low %v2797_v29, %v2807_v30  ;;  %v2825_v42 = vor.u32 %v2824_v32, %v2820_v31  ;;  %v935_v48 = vshrl.u32 %v823_v27, 16  ;;  %v938_v49 = vshll.u32 %v823_v27, 16  ;;  %v20185_v14 = vld [vmem:[#allocation6 + $0x10] sm:$0xff]   ;;  %v2745_v25 = vld [vmem:[#allocation2 + $0x30] sm:$0xf] }
  0xb3   : > { %v933_v50 = vsel %vm21116_vm5, %v928_v39, %v932_v11  ;;  %v2816_v53 = vrot.slane %v2815_v41, 4  ;;  %v944_v54 = vshll.u32 %v824_v36, 16  ;;  %v948_v55 = vshrl.u32 %v824_v36, 16  ;;  %v826_v19 = vld [vmem:[#allocation2 + $0x28] sm:$0xf] }
  0xb4   : > { %18207 = vmatprep.mubr.bf16.mxu0 %v16565_v37  ;;  %v16454_v57 = vcombine.low %v923_v38, %v933_v50  ;;  %v2826_v59 = vrot.slane %v2825_v42, 4  ;;  %v937_v60 = vrot.slane %v935_v48, 4  ;;  %v940_v61 = vrot.slane %v938_v49, 5  ;;  %v870_v24 = vld [vmem:[#allocation2 + $0x2c] sm:$0x1] }
  0xb5   : > { %v2821_v0 = vsel %vm21116_vm5, %v2816_v53, %v2820_v31  ;;  %v946_v2 = vrot.slane %v944_v54, 5  ;;  %v950_v4 = vrot.slane %v948_v55, 4  ;;  %v954_v5 = vshll.u32 %v869_v46, 16  ;;  %v21217_v38 = vld [vmem:[#allocation2 + $0x34] sm:$0xf] }
  0xb6   : > { %18016 = vmatmul.mubr.bf16.vlgmr.msra.gmra.mrb[0].mxu1 %v16454_v57  ;;  %v2831_v7 = vsel %vm21116_vm5, %v2826_v59, %v2830_v43  ;;  %v941_v8 = vor.u32 %v940_v61, %v937_v60  ;;  %v2833_v10 = vshrl.u32 %v2742_v56, 16  ;;  %v2836_v11 = vshll.u32 %v2742_v56, 16  ;;  %v20188_v46 = vld [vmem:[#allocation6 + $0x18] sm:$0xff]   ;;  %v21221_v53 = vld [vmem:[#allocation2 + $0x38] sm:$0x1] }
  0xb7   : > { %v16566_v15 = vcombine.low %v2821_v0, %v2831_v7  ;;  %18048 = vmatpush3.bf16.msra.mxu1 %v21137_v58  ;;  %v951_v16 = vor.u32 %v950_v4, %v946_v2  ;;  %v956_v17 = vrot.slane %v954_v5, 5  ;;  %v2842_v18 = vshll.u32 %v21202_v62, 16  ;;  %v20183_v58 = vld [vmem:[#allocation6 + $0x150] sm:$0xff]   ;;  %v20184_v59 = vld [vmem:[#allocation6 + $0x158] sm:$0xff]  }
  0xb8   : > { %v942_v20 = vrot.slane %v941_v8, 4  ;;  %v2835_v21 = vrot.slane %v2833_v10, 4  ;;  %v2838_v22 = vrot.slane %v2836_v11, 5  ;;  %v2846_v23 = vshrl.u32 %v21202_v62, 16  ;;  %18049 = vmatprep.subr.bf16.mxu1 %v20182_v63  ;;  %v828_v4 = vld [vmem:[#allocation2 + $0x34] sm:$0xf] }
  0xb9   : > { %18208 = vmatmul.mubr.bf16.vlgmr.msra.gmra.mrb[0].mxu0 %v16566_v15  ;;  %v952_v26 = vrot.slane %v951_v16, 4  ;;  %v2844_v27 = vrot.slane %v2842_v18, 5  ;;  %v2852_v29 = vshll.u32 %v21208_v9, 16  ;;  %v959_v30 = vshrl.u32 %v825_v12, 16 }
  0xba   : > { %18240 = vmatpush3.bf16.msra.mxu0 %v21144_v6  ;;  %v947_v31 = vsel %vm21116_vm5, %v942_v20, %v946_v2  ;;  %v2839_v32 = vor.u32 %v2838_v22, %v2835_v21  ;;  %v2848_v36 = vrot.slane %v2846_v23, 4  ;;  %v962_v37 = vshll.u32 %v825_v12, 16  ;;  %v827_v2 = vld [vmem:[#allocation2 + $0x30] sm:$0xf]  ;;  %v20191_v20 = vld [vmem:[#allocation6 + $0x20] sm:$0xff]  }
  0xbb   : > { %18241 = vmatprep.subr.bf16.mxu0 %v20181_v1  ;;  %v957_v39 = vsel %vm21116_vm5, %v952_v26, %v956_v17  ;;  %v2854_v41 = vrot.slane %v2852_v29, 5  ;;  %v961_v42 = vrot.slane %v959_v30, 4  ;;  %v968_v43 = vshll.u32 %v826_v19, 16  ;;  %18050 = vmatpush3.bf16.msra.mxu1 %v20182_v63  ;;  %v20186_v30 = vld [vmem:[#allocation6 + $0x160] sm:$0xff]  }
  0xbc   : > { %v16455_v48 = vcombine.low %v947_v31, %v957_v39  ;;  %v2840_v49 = vrot.slane %v2839_v32, 4  ;;  %v2849_v6 = vor.u32 %v2848_v36, %v2844_v27  ;;  %v964_v50 = vrot.slane %v962_v37, 5  ;;  %18051 = vmatprep.subr.bf16.mxu1 %v20185_v14 }
  0xbd   : > { %v970_v54 = vrot.slane %v968_v43, 5  ;;  %v972_v55 = vshrl.u32 %v826_v19, 16  ;;  %v978_v56 = vshll.u32 %v870_v24, 16  ;;  %v2857_v57 = vshrl.u32 %v2745_v25, 16  ;;  %v20193_v43 = vld [vmem:[#allocation6 + $0x28] sm:$0xff]  }
  0xbe   : > { %18242 = vmatpush3.bf16.msra.mxu0 %v20181_v1  ;;  %18019 = vmatprep.mubr.bf16.mxu1 %v16455_v48  ;;  %v2845_v60 = vsel %vm21116_vm5, %v2840_v49, %v2844_v27  ;;  %v2850_v61 = vrot.slane %v2849_v6, 4  ;;  %v965_v63 = vor.u32 %v964_v50, %v961_v42  ;;  %v2860_v0 = vshll.u32 %v2745_v25, 16 }
  0xbf   : > { %v974_v5 = vrot.slane %v972_v55, 4  ;;  %v980_v7 = vrot.slane %v978_v56, 5  ;;  %v2859_v8 = vrot.slane %v2857_v57, 4  ;;  %v2866_v10 = vshll.u32 %v21217_v38, 16  ;;  %18243 = vmatprep.subr.bf16.mxu0 %v20183_v58  ;;  %18052 = vmatpush3.bf16.msra.mxu1 %v20185_v14  ;;  %v871_v14 = vld [vmem:[#allocation2 + $0x38] sm:$0x1] }
  0xc0   : > { %v2855_v11 = vsel %vm21116_vm5, %v2850_v61, %v2854_v41  ;;  %v966_v1 = vrot.slane %v965_v63, 4  ;;  %v2862_v12 = vrot.slane %v2860_v0, 5  ;;  %v2870_v15 = vshrl.u32 %v21217_v38, 16  ;;  %18053 = vmatprep.subr.bf16.mxu1 %v20188_v46  ;;  %v20187_v57 = vld [vmem:[#allocation6 + $0x168] sm:$0xff]   ;;  %v364_v61 = vld [vmem:[%s21095_s20 + $0x78] sm:$0xff] }
  0xc1   : > { %v16567_v16 = vcombine.low %v2845_v60, %v2855_v11  ;;  %v975_v17 = vor.u32 %v974_v5, %v970_v54  ;;  %v2868_v18 = vrot.slane %v2866_v10, 5  ;;  %v2876_v19 = vshll.u32 %v21221_v53, 16  ;;  %v363_v60 = vld [vmem:[%s21095_s20 + $0x70] sm:$0xff] }
  0xc2   : > { %v971_v21 = vsel %vm21116_vm5, %v966_v1, %v970_v54  ;;  %v2863_v22 = vor.u32 %v2862_v12, %v2859_v8  ;;  %v2872_v23 = vrot.slane %v2870_v15, 4  ;;  %18244 = vmatpush3.bf16.msra.mxu0 %v20183_v58  ;;  %v983_v24 = vshrl.u32 %v827_v2, 16  ;;  %v20189_v8 = vld [vmem:[#allocation6 + $0x170] sm:$0xff]  }
  0xc3   : > { %18211 = vmatprep.mubr.bf16.mxu0 %v16567_v16  ;;  %v976_v25 = vrot.slane %v975_v17, 4  ;;  %v2878_v26 = vrot.slane %v2876_v19, 5  ;;  %18245 = vmatprep.subr.bf16.mxu0 %v20184_v59  ;;  %v986_v27 = vshll.u32 %v827_v2, 16  ;;  %v992_v29 = vshll.u32 %v828_v4, 16  ;;  %v20195_v12 = vld [vmem:[#allocation6 + $0x30] sm:$0xff]  }
  0xc4   : > { %v2864_v31 = vrot.slane %v2863_v22, 4  ;;  %v2873_v32 = vor.u32 %v2872_v23, %v2868_v18  ;;  %v985_v36 = vrot.slane %v983_v24, 4  ;;  %v996_v37 = vshrl.u32 %v828_v4, 16  ;;  %18054 = vmatpush3.bf16.msra.mxu1 %v20188_v46  ;;  %v20190_v22 = vld [vmem:[#allocation6 + $0x178] sm:$0xff]  }
  0xc5   : > { %v981_v39 = vsel %vm21116_vm5, %v976_v25, %v980_v7  ;;  %v988_v41 = vrot.slane %v986_v27, 5  ;;  %v994_v58 = vrot.slane %v992_v29, 5  ;;  %v1002_v42 = vshll.u32 %v871_v14, 16  ;;  %18055 = vmatprep.subr.bf16.mxu1 %v20191_v20 }
  0xc6   : > { %v16456_v48 = vcombine.low %v971_v21, %v981_v39  ;;  %v2869_v49 = vsel %vm21116_vm5, %v2864_v31, %v2868_v18  ;;  %v2874_v6 = vrot.slane %v2873_v32, 4  ;;  %18246 = vmatpush3.bf16.msra.mxu0 %v20184_v59  ;;  %v998_v50 = vrot.slane %v996_v37, 4 }
  0xc7   : > { %v989_v54 = vor.u32 %v988_v41, %v985_v36  ;;  %v1004_v46 = vrot.slane %v1002_v42, 5  ;;  %v566_v55 = vsel %vm21123_vm6, 0, %v21181_v51  ;;  %v582_v56 = vsel %vm21123_vm6, %v21170_v40, 0  ;;  %18247 = vmatprep.subr.bf16.mxu0 %v20186_v30  ;;  %v20201_v41 = vld [vmem:[#allocation6 + $0x80] sm:$0xff]  }
  0xc8   : > { %18020 = vmatmul.mubr.bf16.gmra.mrb[4].mxu1 %v16456_v48  ;;  %v2879_v63 = vsel %vm21116_vm5, %v2874_v6, %v2878_v26  ;;  %v999_v59 = vor.u32 %v998_v50, %v994_v58  ;;  %v16417_v0 = vcombine.low %v566_v55, %v566_v55  ;;  %v16418_v2 = vcombine.high %v566_v55, %v566_v55  ;;  %v20197_v26 = vld [vmem:[#allocation6 + $0x38] sm:$0xff]   ;;  %v21284_v48 = vld [vmem:[#allocation6 + $0x180] sm:$0xff]  }
  0xc9   : > { %v16568_v4 = vcombine.low %v2869_v49, %v2879_v63  ;;  %v990_v5 = vrot.slane %v989_v54, 4  ;;  %v16419_v7 = vcombine.low %v582_v56, %v582_v56  ;;  %v461_v51 = vshrl.u32 %v21176_v44, 16  ;;  %18056 = vmatpush3.bf16.msra.mxu1 %v20191_v20  ;;  %v21291_v55 = vld [vmem:[%s21095_s20 + $0x80] sm:$0xff]  ;;  %v21294_v56 = vld [vmem:[%s21095_s20 + $0x88] sm:$0xff] }
  0xca   : > { %v1000_v10 = vrot.slane %v999_v59, 4  ;;  %783 = vst [vmem:[#allocation2 + $0x3c] sm:$0xf] %v16417_v0  ;;  %784 = vst [vmem:[#allocation2 + $0x40] sm:$0xf] %v16418_v2  ;;  %v464_v40 = vshll.u32 %v21176_v44, 16  ;;  %18248 = vmatpush3.bf16.msra.mxu0 %v20186_v30  ;;  %v388_v1 = vpack.c.bf16 %v364_v61, %v363_v60  ;;  %18057 = vmatprep.subr.bf16.mxu1 %v20193_v43 }
  0xcb   : > { %v21252_v11 = vsel %vm397_vm3, %v387_v52, 0  ;;  %18212 = vmatmul.mubr.bf16.gmra.mrb[4].mxu0 %v16568_v4  ;;  %v995_v15 = vsel %vm21116_vm5, %v990_v5, %v994_v58  ;;  %785 = vst [vmem:[#allocation2 + $0x44] sm:$0x1] %v16419_v7  ;;  %v463_v16 = vrot.slane %v461_v51, 7  ;;  %18249 = vmatprep.subr.bf16.mxu0 %v20187_v57  ;;  %v3490_v44 = vld [vmem:[#allocation2 + $0xc] sm:$0xe] }
  0xcc   : > { %v467_v17 = vshrl.u32 %v21252_v11, 16  ;;  %v1005_v18 = vsel %vm21116_vm5, %v1000_v10, %v1004_v46  ;;  %v21260_v28 = vsel %vm397_vm3, %v388_v1, 0  ;;  %v3556_v33 = vrot.slane %v21178_v47, 5  ;;  %v21304_v51 = vld [vmem:[%s21095_s20 + $0x90] sm:$0xff] }
  0xcd   : > { %v16457_v52 = vcombine.low %v995_v15, %v1005_v18  ;;  %v466_v19 = vor.u32 %v464_v40, %v463_v16  ;;  %v583_v20 = vsel %vm21123_vm6, %v463_v16, 0  ;;  %18058 = vmatpush3.bf16.msra.mxu1 %v20193_v43  ;;  %v470_v14 = vshll.u32 %v21252_v11, 16 }
  0xce   : > { %v469_v21 = vrot.slane %v467_v17, 7  ;;  %v16422_v23 = vcombine.low %v583_v20, %v583_v20  ;;  %18250 = vmatpush3.bf16.msra.mxu0 %v20187_v57  ;;  %v473_v24 = vshrl.u32 %v21260_v28, 16  ;;  %v16589_v25 = vrot.slane %v3490_v44, 9  ;;  %18059 = vmatprep.subr.bf16.mxu1 %v20195_v12 }
  0xcf   : > { %18023 = vmatprep.mubr.bf16.mxu1 %v16457_v52  ;;  %v567_v47 = vsel %vm21123_vm6, 0, %v466_v19  ;;  %v476_v29 = vshll.u32 %v21260_v28, 16  ;;  %18251 = vmatprep.subr.bf16.mxu0 %v20189_v8  ;;  %v21278_v31 = vrot.slane %v3556_v33, 4  ;;  %v389_v19 = vpack.c.bf16 %v21294_v56, %v21291_v55 }
  0xd0   : > { %v584_v27 = vsel %vm21123_vm6, %v469_v21, 0  ;;  %v16420_v32 = vcombine.low %v567_v47, %v567_v47  ;;  %v16421_v36 = vcombine.high %v567_v47, %v567_v47  ;;  %788 = vst [vmem:[#allocation2 + $0x50] sm:$0x1] %v16422_v23  ;;  %v21280_v39 = vrot.slane %v473_v24, 7 }
  0xd1   : > { %v16425_v37 = vcombine.low %v584_v27, %v584_v27  ;;  %v2748_v58 = vld [vmem:[#allocation2 + $0x3c] sm:$0xf]  ;;  %v21282_v42 = vld [vmem:[#allocation2 + $0x40] sm:$0xf]  ;;  %18060 = vmatpush3.bf16.msra.mxu1 %v20195_v12  ;;  %v21297_v59 = vor.u32 %v470_v14, %v469_v21  ;;  %v21301_v0 = vsel %vm21274_vm9, %v16589_v25, %v3556_v33 }
  0xd2   : > { %v829_v43 = vld [vmem:[#allocation2 + $0x3c] sm:$0xf]  ;;  %v21286_v49 = vld [vmem:[#allocation2 + $0x44] sm:$0x1]  ;;  %v2881_v6 = vshrl.u32 %v2748_v58, 16  ;;  %v2884_v50 = vshll.u32 %v2748_v58, 16  ;;  %18252 = vmatpush3.bf16.msra.mxu0 %v20189_v8  ;;  %18061 = vmatprep.subr.bf16.mxu1 %v20197_v26 }
  0xd3   : > { %v2890_v54 = vshll.u32 %v21282_v42, 16  ;;  %v2894_v46 = vshrl.u32 %v21282_v42, 16  ;;  %786 = vst [vmem:[#allocation2 + $0x48] sm:$0xf] %v16420_v32  ;;  %787 = vst [vmem:[#allocation2 + $0x4c] sm:$0xf] %v16421_v36  ;;  %18253 = vmatprep.subr.bf16.mxu0 %v20190_v22  ;;  %v478_v32 = vor.u32 %v476_v29, %v21280_v39 }
  0xd4   : > { %791 = vst [vmem:[#allocation2 + $0x5c] sm:$0x1] %v16425_v37  ;;  %v2900_v57 = vshll.u32 %v21286_v49, 16  ;;  %v830_v60 = vld [vmem:[#allocation2 + $0x40] sm:$0xf]  ;;  %v1007_v63 = vshrl.u32 %v829_v43, 16 }
  0xd5   : > { %v872_v61 = vld [vmem:[#allocation2 + $0x44] sm:$0x1]  ;;  %v2883_v2 = vrot.slane %v2881_v6, 4  ;;  %v2886_v4 = vrot.slane %v2884_v50, 5  ;;  %v2892_v5 = vrot.slane %v2890_v54, 5  ;;  %v2896_v7 = vrot.slane %v2894_v46, 4  ;;  %18062 = vmatpush3.bf16.msra.mxu1 %v20197_v26 }
  0xd6   : > { %v21307_v8 = vld [vmem:[%s21095_s20 + $0x98] sm:$0xff]  ;;  %v2902_v10 = vrot.slane %v2900_v57, 5  ;;  %v1009_v40 = vrot.slane %v1007_v63, 4  ;;  %v1010_v11 = vshll.u32 %v829_v43, 16  ;;  %v1016_v1 = vshll.u32 %v830_v60, 16  ;;  %18254 = vmatpush3.bf16.msra.mxu0 %v20190_v22  ;;  %18095 = vmatprep.subr.bf16.mxu1 %v20201_v41 }
  0xd7   : > { %v2887_v12 = vor.u32 %v2886_v4, %v2883_v2  ;;  %v2897_v15 = vor.u32 %v2896_v7, %v2892_v5  ;;  %v1020_v16 = vshrl.u32 %v830_v60, 16  ;;  %v1026_v17 = vshll.u32 %v872_v61, 16  ;;  %v21309_v33 = vld [vmem:[#allocation2 + $0x50] sm:$0x1]  ;;  %18287 = vmatprep.subr.bf16.mxu0 %v21284_v48 }
  0xd8   : > { %v1012_v44 = vrot.slane %v1010_v11, 5  ;;  %v1018_v18 = vrot.slane %v1016_v1, 5  ;;  %v873_v52 = vld [vmem:[#allocation2 + $0x50] sm:$0x1]  ;;  %v390_v20 = vpack.c.bf16 %v21307_v8, %v21304_v51  ;;  %v2924_v47 = vshll.u32 %v21309_v33, 16 }
  0xd9   : > { %v2888_v21 = vrot.slane %v2887_v12, 4  ;;  %v2898_v23 = vrot.slane %v2897_v15, 4  ;;  %v1022_v14 = vrot.slane %v1020_v16, 4  ;;  %v1028_v24 = vrot.slane %v1026_v17, 5 }
  0xda   : > { %v1013_v25 = vor.u32 %v1012_v44, %v1009_v40  ;;  %v2751_v22 = vld [vmem:[#allocation2 + $0x48] sm:$0xf]  ;;  %v21316_v26 = vld [vmem:[#allocation2 + $0x4c] sm:$0xf]  ;;  %v1050_v27 = vshll.u32 %v873_v52, 16  ;;  %v2926_v29 = vrot.slane %v2924_v47, 5 }
  0xdb   : > { %v2893_v36 = vsel %vm21116_vm5, %v2888_v21, %v2892_v5  ;;  %v2903_v37 = vsel %vm21116_vm5, %v2898_v23, %v2902_v10  ;;  %v1023_v41 = vor.u32 %v1022_v14, %v1018_v18  ;;  %v2905_v58 = vshrl.u32 %v2751_v22, 16  ;;  %v831_v43 = vld [vmem:[#allocation2 + $0x48] sm:$0xf]  ;;  %v832_v57 = vld [vmem:[#allocation2 + $0x4c] sm:$0xf] }
  0xdc   : > { %v16569_v6 = vcombine.low %v2893_v36, %v2903_v37  ;;  %v1014_v50 = vrot.slane %v1013_v25, 4  ;;  %v2908_v54 = vshll.u32 %v2751_v22, 16  ;;  %v2914_v46 = vshll.u32 %v21316_v26, 16  ;;  %v21330_v7 = vld [vmem:[#allocation2 + $0x5c] sm:$0x1] }
  0xdd   : > { %v1024_v60 = vrot.slane %v1023_v41, 4  ;;  %v2907_v61 = vrot.slane %v2905_v58, 4  ;;  %v2918_v28 = vshrl.u32 %v21316_v26, 16  ;;  %v1031_v5 = vshrl.u32 %v831_v43, 16  ;;  %v874_v12 = vld [vmem:[#allocation2 + $0x5c] sm:$0x1] }
  0xde   : > { %18215 = vmatprep.mubr.bf16.mxu0 %v16569_v6  ;;  %v1019_v63 = vsel %vm21116_vm5, %v1014_v50, %v1018_v18  ;;  %v2910_v2 = vrot.slane %v2908_v54, 5  ;;  %v2916_v4 = vrot.slane %v2914_v46, 5  ;;  %v1034_v11 = vshll.u32 %v831_v43, 16 }
  0xdf   : > { %v1029_v10 = vsel %vm21116_vm5, %v1024_v60, %v1028_v24  ;;  %v2920_v40 = vrot.slane %v2918_v28, 4  ;;  %v1040_v1 = vshll.u32 %v832_v57, 16  ;;  %v1033_v17 = vrot.slane %v1031_v5, 4  ;;  %v21350_v60 = vld [vmem:[%s21095_s20 + $0xa0] sm:$0xff]  ;;  %v21360_v5 = vld [vmem:[%s21095_s20 + $0xb0] sm:$0xff] }
  0xe0   : > { %v16458_v15 = vcombine.low %v1019_v63, %v1029_v10  ;;  %v2911_v16 = vor.u32 %v2910_v2, %v2907_v61  ;;  %v1044_v44 = vshrl.u32 %v832_v57, 16  ;;  %v1036_v21 = vrot.slane %v1034_v11, 5  ;;  %v3491_v57 = vld [vmem:[#allocation2 + $0x18] sm:$0xe]  ;;  %v21353_v61 = vld [vmem:[%s21095_s20 + $0xa8] sm:$0xff] }
  0xe1   : > { %v2921_v52 = vor.u32 %v2920_v40, %v2916_v4  ;;  %v1042_v23 = vrot.slane %v1040_v1, 5  ;;  %v1052_v18 = vrot.slane %v1050_v27, 5  ;;  %v568_v22 = vsel %vm21123_vm6, 0, %v21297_v59  ;;  %v21369_v1 = vld [vmem:[%s21095_s20 + $0xc0] sm:$0xff] }
  0xe2   : > { %18024 = vmatmul.mubr.bf16.gmra.mrb[8].mxu1 %v16458_v15  ;;  %v2912_v14 = vrot.slane %v2911_v16, 4  ;;  %v1046_v25 = vrot.slane %v1044_v44, 4  ;;  %v2948_v24 = vshll.u32 %v21330_v7, 16  ;;  %v1037_v36 = vor.u32 %v1036_v21, %v1033_v17  ;;  %v21381_v44 = vld [vmem:[%s21095_s20 + $0xc8] sm:$0xff] }
  0xe3   : > { %v2922_v47 = vrot.slane %v2921_v52, 4  ;;  %v16423_v37 = vcombine.low %v568_v22, %v568_v22  ;;  %v16424_v41 = vcombine.high %v568_v22, %v568_v22  ;;  %v1074_v6 = vshll.u32 %v874_v12, 16 }
  0xe4   : > { %v2917_v58 = vsel %vm21116_vm5, %v2912_v14, %v2916_v4  ;;  %v1047_v43 = vor.u32 %v1046_v25, %v1042_v23  ;;  %v21340_v27 = vrot.slane %v2948_v24, 5  ;;  %v1038_v50 = vrot.slane %v1037_v36, 4  ;;  %v21357_v4 = vld [vmem:[#allocation2 + $0x24] sm:$0xe] }
  0xe5   : > { %v2927_v59 = vsel %vm21116_vm5, %v2922_v47, %v2926_v29  ;;  %789 = vst [vmem:[#allocation2 + $0x54] sm:$0xf] %v16423_v37  ;;  %790 = vst [vmem:[#allocation2 + $0x58] sm:$0xf] %v16424_v41  ;;  %v569_v54 = vsel %vm21123_vm6, 0, %v478_v32  ;;  %v585_v46 = vsel %vm21123_vm6, %v21280_v39, 0  ;;  %v393_v8 = vpack.c.bf16 %v21381_v44, %v21369_v1 }
  0xe6   : > { %v16570_v28 = vcombine.low %v2917_v58, %v2927_v59  ;;  %v1048_v63 = vrot.slane %v1047_v43, 4  ;;  %v21355_v2 = vrot.slane %v1074_v6, 5  ;;  %v16426_v29 = vcombine.low %v569_v54, %v569_v54  ;;  %v21363_v32 = vld [vmem:[%s21095_s20 + $0xb8] sm:$0xff] }
  0xe7   : > { %v1043_v39 = vsel %vm21116_vm5, %v1038_v50, %v1042_v23  ;;  %v16427_v10 = vcombine.high %v569_v54, %v569_v54  ;;  %v16428_v40 = vcombine.low %v585_v46, %v585_v46  ;;  %v3559_v11 = vrot.slane %v21168_v35, 5 }
  0xe8   : > { %18216 = vmatmul.mubr.bf16.gmra.mrb[8].mxu0 %v16570_v28  ;;  %v1053_v12 = vsel %vm21116_vm5, %v1048_v63, %v1052_v18  ;;  %792 = vst [vmem:[#allocation2 + $0x60] sm:$0xf] %v16426_v29  ;;  %v21377_v15 = vsel %vm397_vm3, %v389_v19, 0  ;;  %v16590_v16 = vrot.slane %v3491_v57, 9  ;;  %v3563_v17 = vrot.slane %v21189_v13, 5 }
  0xe9   : > { %v16459_v52 = vcombine.low %v1043_v39, %v1053_v12  ;;  %793 = vst [vmem:[#allocation2 + $0x64] sm:$0xf] %v16427_v10  ;;  %794 = vst [vmem:[#allocation2 + $0x68] sm:$0x1] %v16428_v40  ;;  %v21386_v35 = vsel %vm21274_vm9, %v21278_v31, %v3559_v11  ;;  %v479_v21 = vshrl.u32 %v21377_v15, 16  ;;  %v482_v55 = vshll.u32 %v21377_v15, 16 }
  0xea   : > { %v3565_v56 = vrot.slane %v3563_v17, 4  ;;  %v3566_v19 = vrot.slane %v21187_v3, 5  ;;  %v391_v13 = vpack.c.bf16 %v21353_v61, %v21350_v60  ;;  %v392_v23 = vpack.c.bf16 %v21363_v32, %v21360_v5  ;;  %v20194_v60 = vld [vmem:[#allocation6 + $0x188] sm:$0xff]  }
  0xeb   : > { %18027 = vmatprep.mubr.bf16.mxu1 %v16459_v52  ;;  %v21395_v18 = vrot.slane %v479_v21, 7  ;;  %v21401_v31 = vsel %vm397_vm3, %v390_v20, 0  ;;  %v16591_v14 = vrot.slane %v21357_v4, 9  ;;  %v3570_v25 = vrot.slane %v21202_v62, 5 }
  0xec   : > { %v2754_v3 = vld [vmem:[#allocation2 + $0x54] sm:$0xf]  ;;  %v21405_v22 = vld [vmem:[#allocation2 + $0x58] sm:$0xf]  ;;  %v16605_v47 = vcombine.low %v21301_v0, %v21386_v35  ;;  %v21411_v36 = vsel %vm21274_vm9, %v16590_v16, %v3563_v17  ;;  %v21415_v51 = vsel %vm21274_vm9, %v3565_v56, %v3566_v19  ;;  %v420_v0 = vsel %vm397_vm3, %v391_v13, 0 }
  0xed   : > { %v833_v24 = vld [vmem:[#allocation2 + $0x54] sm:$0xf]  ;;  %v2929_v20 = vshrl.u32 %v2754_v3, 16  ;;  %v2932_v37 = vshll.u32 %v2754_v3, 16  ;;  %v2938_v41 = vshll.u32 %v21405_v22, 16  ;;  %v2942_v58 = vshrl.u32 %v21405_v22, 16 }
  0xee   : > { %v834_v43 = vld [vmem:[#allocation2 + $0x58] sm:$0xf]  ;;  %v1055_v6 = vshrl.u32 %v833_v24, 16  ;;  %v1058_v59 = vshll.u32 %v833_v24, 16  ;;  %v491_v62 = vshrl.u32 %v420_v0, 16 }
  0xef   : > { %v1064_v50 = vshll.u32 %v834_v43, 16  ;;  %v1068_v54 = vshrl.u32 %v834_v43, 16  ;;  %v2931_v46 = vrot.slane %v2929_v20, 4  ;;  %v2934_v57 = vrot.slane %v2932_v37, 5  ;;  %v2757_v29 = vld [vmem:[#allocation2 + $0x60] sm:$0xf] }
  0xf0   : > { %v2940_v28 = vrot.slane %v2938_v41, 5  ;;  %v2944_v63 = vrot.slane %v2942_v58, 4  ;;  %v1057_v39 = vrot.slane %v1055_v6, 4  ;;  %v1060_v10 = vrot.slane %v1058_v59, 5  ;;  %v21421_v12 = vld [vmem:[#allocation2 + $0x64] sm:$0xf] }
  0xf1   : > { %v1066_v40 = vrot.slane %v1064_v50, 5  ;;  %v1070_v11 = vrot.slane %v1068_v54, 4  ;;  %v2935_v16 = vor.u32 %v2934_v57, %v2931_v46  ;;  %v2953_v52 = vshrl.u32 %v2757_v29, 16  ;;  %v21423_v3 = vld [vmem:[#allocation2 + $0x68] sm:$0x1] }
  0xf2   : > { %v2945_v17 = vor.u32 %v2944_v63, %v2940_v28  ;;  %v2956_v21 = vshll.u32 %v2757_v29, 16  ;;  %v1061_v56 = vor.u32 %v1060_v10, %v1057_v39  ;;  %v2962_v24 = vshll.u32 %v21421_v12, 16  ;;  %v835_v46 = vld [vmem:[#allocation2 + $0x60] sm:$0xf]  ;;  %v836_v10 = vld [vmem:[#allocation2 + $0x64] sm:$0xf] }
  0xf3   : > { %v1071_v19 = vor.u32 %v1070_v11, %v1066_v40  ;;  %v2966_v20 = vshrl.u32 %v21421_v12, 16  ;;  %v2936_v37 = vrot.slane %v2935_v16, 4  ;;  %v2955_v58 = vrot.slane %v2953_v52, 4 }
  0xf4   : > { %v2946_v41 = vrot.slane %v2945_v17, 4  ;;  %v2958_v43 = vrot.slane %v2956_v21, 5  ;;  %v1062_v6 = vrot.slane %v1061_v56, 4  ;;  %v2964_v50 = vrot.slane %v2962_v24, 5  ;;  %v875_v21 = vld [vmem:[#allocation2 + $0x68] sm:$0x1] }
  0xf5   : > { %v1072_v59 = vrot.slane %v1071_v19, 4  ;;  %v2968_v54 = vrot.slane %v2966_v20, 4  ;;  %v2941_v57 = vsel %vm21116_vm5, %v2936_v37, %v2940_v28  ;;  %v2972_v39 = vshll.u32 %v21423_v3, 16 }
  0xf6   : > { %v2951_v63 = vsel %vm21116_vm5, %v2946_v41, %v21340_v27  ;;  %v2959_v29 = vor.u32 %v2958_v43, %v2955_v58  ;;  %v1067_v16 = vsel %vm21116_vm5, %v1062_v6, %v1066_v40  ;;  %v1079_v24 = vshrl.u32 %v835_v46, 16 }
  0xf7   : > { %v16571_v11 = vcombine.low %v2941_v57, %v2951_v63  ;;  %v1077_v17 = vsel %vm21116_vm5, %v1072_v59, %v21355_v2  ;;  %v2969_v52 = vor.u32 %v2968_v54, %v2964_v50  ;;  %v2974_v19 = vrot.slane %v2972_v39, 5  ;;  %v3493_v63 = vld [vmem:[#allocation2 + $0x30] sm:$0xe] }
  0xf8   : > { %v16460_v56 = vcombine.low %v1067_v16, %v1077_v17  ;;  %v2960_v28 = vrot.slane %v2959_v29, 4  ;;  %v1082_v20 = vshll.u32 %v835_v46, 16  ;;  %v1088_v37 = vshll.u32 %v836_v10, 16 }
  0xf9   : > { %18219 = vmatprep.mubr.bf16.mxu0 %v16571_v11  ;;  %v2970_v27 = vrot.slane %v2969_v52, 4  ;;  %v1092_v41 = vshrl.u32 %v836_v10, 16  ;;  %v1081_v40 = vrot.slane %v1079_v24, 4  ;;  %v1098_v43 = vshll.u32 %v875_v21, 16 }
  0xfa   : > { %18028 = vmatmul.mubr.bf16.gmra.mrb[12].mxu1 %v16460_v56  ;;  %v2965_v58 = vsel %vm21116_vm5, %v2960_v28, %v2964_v50  ;;  %v484_v2 = vor.u32 %v482_v55, %v21395_v18  ;;  %v1084_v59 = vrot.slane %v1082_v20, 5  ;;  %v1090_v54 = vrot.slane %v1088_v37, 5 }
  0xfb   : > { %v2975_v6 = vsel %vm21116_vm5, %v2970_v27, %v2974_v19  ;;  %v1094_v57 = vrot.slane %v1092_v41, 4  ;;  %v1100_v29 = vrot.slane %v1098_v43, 5  ;;  %v586_v50 = vsel %vm21123_vm6, %v21395_v18, 0 }
  0xfc   : > { %v16572_v46 = vcombine.low %v2965_v58, %v2975_v6  ;;  %v570_v39 = vsel %vm21123_vm6, 0, %v484_v2  ;;  %v1085_v10 = vor.u32 %v1084_v59, %v1081_v40  ;;  %v16431_v16 = vcombine.low %v586_v50, %v586_v50 }
  0xfd   : > { %v1095_v11 = vor.u32 %v1094_v57, %v1090_v54  ;;  %v16429_v15 = vcombine.low %v570_v39, %v570_v39  ;;  %v16430_v55 = vcombine.high %v570_v39, %v570_v39  ;;  %v16606_v17 = vcombine.low %v21411_v36, %v21415_v51  ;;  %v21465_v51 = vld [vmem:[#allocation2 + $0x3c] sm:$0xe] }
  0xfe   : > { %18220 = vmatmul.mubr.bf16.gmra.mrb[12].mxu0 %v16572_v46  ;;  %v485_v52 = vshrl.u32 %v21401_v31, 16  ;;  %v488_v21 = vshll.u32 %v21401_v31, 16  ;;  %v1086_v56 = vrot.slane %v1085_v10, 4  ;;  %v3571_v18 = vsel %vm21274_vm9, %v16591_v14, %v3570_v25  ;;  %797 = vst [vmem:[#allocation2 + $0x74] sm:$0x1] %v16431_v16  ;;  %v20196_v16 = vld [vmem:[#allocation6 + $0x190] sm:$0xff]  }
  0xff   : > { %v1096_v28 = vrot.slane %v1095_v11, 4  ;;  %18255 = vmatprep.mubr.bf16.mxu0 %v16605_v47  ;;  %795 = vst [vmem:[#allocation2 + $0x6c] sm:$0xf] %v16429_v15  ;;  %796 = vst [vmem:[#allocation2 + $0x70] sm:$0xf] %v16430_v55  ;;  %v3572_v36 = vrot.slane %v3570_v25, 4 }
 0x100   : > { %v487_v31 = vrot.slane %v485_v52, 7  ;;  %v3573_v19 = vrot.slane %v21208_v9, 5  ;;  %v16592_v35 = vrot.slane %v3493_v63, 9  ;;  %v1091_v4 = vsel %vm21116_vm5, %v1086_v56, %v1090_v54 }
 0x101   : > { %v1101_v14 = vsel %vm21116_vm5, %v1096_v28, %v1100_v29  ;;  %v494_v25 = vshll.u32 %v420_v0, 16  ;;  %v493_v20 = vrot.slane %v491_v62, 7  ;;  %v3577_v37 = vrot.slane %v21217_v38, 5 }
 0x102   : > { %v16461_v47 = vcombine.low %v1091_v4, %v1101_v14  ;;  %v490_v24 = vor.u32 %v488_v21, %v487_v31  ;;  %v587_v27 = vsel %vm21123_vm6, %v487_v31, 0  ;;  %v3574_v9 = vsel %vm21274_vm9, %v3572_v36, %v3573_v19 }
 0x103   : > { %v16434_v61 = vcombine.low %v587_v27, %v587_v27  ;;  %v16607_v13 = vcombine.low %v3571_v18, %v3574_v9  ;;  %v3580_v58 = vrot.slane %v21221_v53, 5  ;;  %v422_v40 = vsel %vm397_vm3, %v392_v23, 0 }
 0x104   : > { %18031 = vmatprep.mubr.bf16.mxu1 %v16461_v47  ;;  %v571_v41 = vsel %vm21123_vm6, 0, %v490_v24  ;;  %v16593_v43 = vrot.slane %v21465_v51, 9  ;;  %v496_v59 = vor.u32 %v494_v25, %v493_v20  ;;  %v588_v38 = vsel %vm21123_vm6, %v493_v20, 0  ;;  %v20198_v24 = vld [vmem:[#allocation6 + $0x198] sm:$0xff]  }
 0x105   : > { %v16432_v2 = vcombine.low %v571_v41, %v571_v41  ;;  %v16433_v6 = vcombine.high %v571_v41, %v571_v41  ;;  %800 = vst [vmem:[#allocation2 + $0x80] sm:$0x1] %v16434_v61  ;;  %v16437_v53 = vcombine.low %v588_v38, %v588_v38  ;;  %v3578_v5 = vsel %vm21274_vm9, %v16592_v35, %v3577_v37  ;;  %v876_v63 = vld [vmem:[#allocation2 + $0x74] sm:$0x1] }
 0x106   : > { %v21491_v54 = vld [vmem:[#allocation2 + $0x6c] sm:$0xf]  ;;  %v21493_v57 = vld [vmem:[#allocation2 + $0x70] sm:$0xf]  ;;  %18256 = vmatmul.mubr.bf16.vlgmr.msra.gmra.mrb[0].mxu0 %v16606_v17  ;;  %v3579_v32 = vrot.slane %v3577_v37, 4  ;;  %v497_v23 = vshrl.u32 %v422_v40, 16 }
 0x107   : > { %v1103_v46 = vshrl.u32 %v21491_v54, 16  ;;  %v1106_v29 = vshll.u32 %v21491_v54, 16  ;;  %v1112_v39 = vshll.u32 %v21493_v57, 16  ;;  %v1116_v50 = vshrl.u32 %v21493_v57, 16  ;;  %18288 = vmatpush3.bf16.msra.mxu0 %v21284_v48  ;;  %798 = vst [vmem:[#allocation2 + $0x78] sm:$0xf] %v16432_v2  ;;  %18259 = vmatprep.mubr.bf16.mxu0 %v16607_v13 }
 0x108   : > { %799 = vst [vmem:[#allocation2 + $0x7c] sm:$0xf] %v16433_v6  ;;  %v1122_v10 = vshll.u32 %v876_v63, 16  ;;  %v572_v11 = vsel %vm21123_vm6, 0, %v496_v59  ;;  %803 = vst [vmem:[#allocation2 + $0x8c] sm:$0x1] %v16437_v53  ;;  %v3581_v15 = vsel %vm21274_vm9, %v3579_v32, %v3580_v58  ;;  %18289 = vmatprep.subr.bf16.mxu0 %v20194_v60 }
 0x109   : > { %v499_v55 = vrot.slane %v497_v23, 7  ;;  %v1105_v17 = vrot.slane %v1103_v46, 4  ;;  %v1108_v52 = vrot.slane %v1106_v29, 5  ;;  %v1114_v21 = vrot.slane %v1112_v39, 5  ;;  %v20202_v59 = vld [vmem:[#allocation6 + $0x1a0] sm:$0xff]  }
 0x10a   : > { %v1118_v56 = vrot.slane %v1116_v50, 4  ;;  %v1124_v28 = vrot.slane %v1122_v10, 5  ;;  %v16435_v48 = vcombine.low %v572_v11, %v572_v11  ;;  %v16436_v18 = vcombine.high %v572_v11, %v572_v11 }
 0x10b   : > { %v16608_v36 = vcombine.low %v3578_v5, %v3581_v15  ;;  %v1109_v31 = vor.u32 %v1108_v52, %v1105_v17  ;;  %18290 = vmatpush3.bf16.msra.mxu0 %v20194_v60  ;;  %v500_v0 = vshll.u32 %v422_v40, 16  ;;  %v589_v35 = vsel %vm21123_vm6, %v499_v55, 0  ;;  %v20206_v52 = vld [vmem:[#allocation6 + $0x1a8] sm:$0xff]  }
 0x10c   : > { %v1119_v19 = vor.u32 %v1118_v56, %v1114_v21  ;;  %v877_v4 = vld [vmem:[#allocation2 + $0x80] sm:$0x1]  ;;  %801 = vst [vmem:[#allocation2 + $0x84] sm:$0xf] %v16435_v48  ;;  %802 = vst [vmem:[#allocation2 + $0x88] sm:$0xf] %v16436_v18  ;;  %v16440_v14 = vcombine.low %v589_v35, %v589_v35  ;;  %18291 = vmatprep.subr.bf16.mxu0 %v20196_v16 }
 0x10d   : > { %v3584_v62 = vrot.slane %v21282_v42, 5  ;;  %v3587_v25 = vrot.slane %v21286_v49, 5  ;;  %v21514_v47 = vsel %vm397_vm3, %v393_v8, 0  ;;  %v1110_v27 = vrot.slane %v1109_v31, 4  ;;  %v3495_v35 = vld [vmem:[#allocation2 + $0x48] sm:$0xe] }
 0x10e   : > { %v1120_v9 = vrot.slane %v1119_v19, 4  ;;  %v1146_v60 = vshll.u32 %v877_v4, 16  ;;  %v502_v61 = vor.u32 %v500_v0, %v499_v55  ;;  %v21516_v13 = vld [vmem:[#allocation2 + $0x78] sm:$0xf]  ;;  %18260 = vmatmul.mubr.bf16.gmra.mrb[4].mxu0 %v16608_v36  ;;  %806 = vst [vmem:[#allocation2 + $0x98] sm:$0x1] %v16440_v14 }
 0x10f   : > { %v21518_v20 = vld [vmem:[#allocation2 + $0x7c] sm:$0xf]  ;;  %v3586_v42 = vrot.slane %v3584_v62, 4  ;;  %v503_v49 = vshrl.u32 %v21514_v47, 16  ;;  %v1115_v1 = vsel %vm21116_vm5, %v1110_v27, %v1114_v21  ;;  %v1127_v8 = vshrl.u32 %v21516_v13, 16  ;;  %18292 = vmatpush3.bf16.msra.mxu0 %v20196_v16  ;;  %v375_v4 = vld [vmem:[%s21095_s20 + $0xd0] sm:$0xff] }
 0x110   : > { %v1125_v44 = vsel %vm21116_vm5, %v1120_v9, %v1124_v28  ;;  %v1130_v37 = vshll.u32 %v21516_v13, 16  ;;  %v1136_v58 = vshll.u32 %v21518_v20, 16  ;;  %v1140_v40 = vshrl.u32 %v21518_v20, 16  ;;  %v878_v2 = vld [vmem:[#allocation2 + $0x8c] sm:$0x1]  ;;  %18293 = vmatprep.subr.bf16.mxu0 %v20198_v24  ;;  %v376_v27 = vld [vmem:[%s21095_s20 + $0xd8] sm:$0xff] }
 0x111   : > { %v16462_v41 = vcombine.low %v1115_v1, %v1125_v44  ;;  %v3585_v6 = vsel %vm21274_vm9, %v16593_v43, %v3584_v62  ;;  %v1129_v38 = vrot.slane %v1127_v8, 4  ;;  %v1148_v5 = vrot.slane %v1146_v60, 5  ;;  %v21553_v9 = vld [vmem:[%s21095_s20 + $0xe0] sm:$0xff]  ;;  %v20210_v1 = vld [vmem:[#allocation6 + $0x1b0] sm:$0xff]  }
 0x112   : > { %v1132_v53 = vrot.slane %v1130_v37, 5  ;;  %v573_v32 = vsel %vm21123_vm6, 0, %v502_v61  ;;  %v1138_v23 = vrot.slane %v1136_v58, 5  ;;  %v1142_v63 = vrot.slane %v1140_v40, 4  ;;  %v1875_v45 = vld [vmem:[#allocation2 + $0x78] sm:$0xe] }
 0x113   : > { %18032 = vmatmul.mubr.bf16.gmra.mrb[16].mxu1 %v16462_v41  ;;  %v16438_v46 = vcombine.low %v573_v32, %v573_v32  ;;  %v16439_v29 = vcombine.high %v573_v32, %v573_v32  ;;  %v21535_v50 = vld [vmem:[#allocation2 + $0x84] sm:$0xf]  ;;  %v21537_v51 = vld [vmem:[#allocation2 + $0x88] sm:$0xf]  ;;  %v1170_v10 = vshll.u32 %v878_v2, 16  ;;  %v3588_v43 = vsel %vm21274_vm9, %v3586_v42, %v3587_v25  ;;  %18294 = vmatpush3.bf16.msra.mxu0 %v20198_v24 }
 0x114   : > { %v1133_v39 = vor.u32 %v1132_v53, %v1129_v38  ;;  %v505_v11 = vrot.slane %v503_v49, 7  ;;  %v1143_v15 = vor.u32 %v1142_v63, %v1138_v23  ;;  %v1151_v55 = vshrl.u32 %v21535_v50, 16  ;;  %18295 = vmatprep.subr.bf16.mxu0 %v20202_v59  ;;  %v378_v49 = vld [vmem:[%s21095_s20 + $0xe8] sm:$0xff] }
 0x115   : > { %v1154_v16 = vshll.u32 %v21535_v50, 16  ;;  %v1160_v17 = vshll.u32 %v21537_v51, 16  ;;  %804 = vst [vmem:[#allocation2 + $0x90] sm:$0xf] %v16438_v46  ;;  %805 = vst [vmem:[#allocation2 + $0x94] sm:$0xf] %v16439_v29  ;;  %v16609_v48 = vcombine.low %v3585_v6, %v3588_v43  ;;  %v394_v32 = vpack.c.bf16 %v376_v27, %v375_v4 }
 0x116   : > { %v1134_v21 = vrot.slane %v1133_v39, 4  ;;  %v1164_v56 = vshrl.u32 %v21537_v51, 16  ;;  %v21545_v28 = vld [vmem:[#allocation2 + $0x98] sm:$0x1]  ;;  %v506_v18 = vshll.u32 %v21514_v47, 16  ;;  %v1144_v36 = vrot.slane %v1143_v15, 4 }
 0x117   : > { %v1153_v31 = vrot.slane %v1151_v55, 4  ;;  %v1156_v19 = vrot.slane %v1154_v16, 5  ;;  %v1162_v0 = vrot.slane %v1160_v17, 5  ;;  %v1172_v25 = vrot.slane %v1170_v10, 5  ;;  %18263 = vmatprep.mubr.bf16.mxu0 %v16609_v48  ;;  %18296 = vmatpush3.bf16.msra.mxu0 %v20202_v59  ;;  %v3496_v10 = vld [vmem:[#allocation2 + $0x54] sm:$0xe] }
 0x118   : > { %v1139_v14 = vsel %vm21116_vm5, %v1134_v21, %v1138_v23  ;;  %v1166_v62 = vrot.slane %v1164_v56, 4  ;;  %v508_v24 = vor.u32 %v506_v18, %v505_v11  ;;  %v1149_v47 = vsel %vm21116_vm5, %v1144_v36, %v1148_v5  ;;  %18297 = vmatprep.subr.bf16.mxu0 %v20206_v52  ;;  %v20214_v43 = vld [vmem:[#allocation6 + $0x1b8] sm:$0xff]  }
 0x119   : > { %v1157_v60 = vor.u32 %v1156_v19, %v1153_v31  ;;  %v1194_v61 = vshll.u32 %v21545_v28, 16  ;;  %v590_v42 = vsel %vm21123_vm6, %v505_v11, 0  ;;  %v16463_v44 = vcombine.low %v1139_v14, %v1149_v47 }
 0x11a   : > { %v1167_v8 = vor.u32 %v1166_v62, %v1162_v0  ;;  %v574_v37 = vsel %vm21123_vm6, 0, %v508_v24  ;;  %v16594_v41 = vrot.slane %v3495_v35, 9  ;;  %v16443_v6 = vcombine.low %v590_v42, %v590_v42  ;;  %v21582_v35 = vld [vmem:[#allocation6 + $0x1c0] sm:$0xff]  }
 0x11b   : > { %v1158_v58 = vrot.slane %v1157_v60, 4  ;;  %v16441_v40 = vcombine.low %v574_v37, %v574_v37  ;;  %v16442_v2 = vcombine.high %v574_v37, %v574_v37  ;;  %18035 = vmatprep.mubr.bf16.mxu1 %v16463_v44  ;;  %v3591_v5 = vrot.slane %v21316_v26, 5  ;;  %18298 = vmatpush3.bf16.msra.mxu0 %v20206_v52 }
 0x11c   : > { %v1168_v59 = vrot.slane %v1167_v8, 4  ;;  %v21563_v38 = vld [vmem:[#allocation2 + $0x90] sm:$0xf]  ;;  %v21565_v53 = vld [vmem:[#allocation2 + $0x94] sm:$0xf]  ;;  %v395_v23 = vpack.c.bf16 %v378_v49, %v21553_v9  ;;  %18299 = vmatprep.subr.bf16.mxu0 %v20210_v1  ;;  %v3594_v28 = vrot.slane %v21309_v33, 5 }
 0x11d   : > { %v1163_v63 = vsel %vm21116_vm5, %v1158_v58, %v1162_v0  ;;  %v1175_v46 = vshrl.u32 %v21563_v38, 16  ;;  %v1178_v29 = vshll.u32 %v21563_v38, 16  ;;  %v1184_v39 = vshll.u32 %v21565_v53, 16  ;;  %807 = vst [vmem:[#allocation2 + $0x9c] sm:$0xf] %v16441_v40 }
 0x11e   : > { %808 = vst [vmem:[#allocation2 + $0xa0] sm:$0xf] %v16442_v2  ;;  %809 = vst [vmem:[#allocation2 + $0xa4] sm:$0x1] %v16443_v6  ;;  %v1173_v26 = vsel %vm21116_vm5, %v1168_v59, %v1172_v25  ;;  %v1188_v11 = vshrl.u32 %v21565_v53, 16  ;;  %v3592_v15 = vsel %vm21274_vm9, %v16594_v41, %v3591_v5  ;;  %v3593_v55 = vrot.slane %v3591_v5, 4 }
 0x11f   : > { %v16464_v16 = vcombine.low %v1163_v63, %v1173_v26  ;;  %v1177_v17 = vrot.slane %v1175_v46, 4  ;;  %v1180_v52 = vrot.slane %v1178_v29, 5  ;;  %v1186_v21 = vrot.slane %v1184_v39, 5  ;;  %18300 = vmatpush3.bf16.msra.mxu0 %v20210_v1  ;;  %v3497_v2 = vld [vmem:[#allocation2 + $0x60] sm:$0xe] }
 0x120   : > { %v1190_v56 = vrot.slane %v1188_v11, 4  ;;  %v426_v48 = vsel %vm397_vm3, %v394_v32, 0  ;;  %v16595_v18 = vrot.slane %v3496_v10, 9  ;;  %v1196_v31 = vrot.slane %v1194_v61, 5  ;;  %18301 = vmatprep.subr.bf16.mxu0 %v20214_v43 }
 0x121   : > { %18036 = vmatmul.mubr.bf16.gmra.mrb[20].mxu1 %v16464_v16  ;;  %v1181_v36 = vor.u32 %v1180_v52, %v1177_v17  ;;  %v509_v19 = vshrl.u32 %v426_v48, 16  ;;  %v3598_v0 = vrot.slane %v21405_v22, 5  ;;  %v3595_v14 = vsel %vm21274_vm9, %v3593_v55, %v3594_v28  ;;  %v2761_v52 = vld [vmem:[#allocation2 + $0x70] sm:$0xf] }
 0x122   : > { %v1191_v4 = vor.u32 %v1190_v56, %v1186_v21  ;;  %v512_v62 = vshll.u32 %v426_v48, 16  ;;  %v3601_v33 = vrot.slane %v21330_v7, 5  ;;  %v16610_v24 = vcombine.low %v3592_v15, %v3595_v14  ;;  %v3499_v14 = vld [vmem:[#allocation2 + $0x78] sm:$0xe] }
 0x123   : > { %v1182_v25 = vrot.slane %v1181_v36, 4  ;;  %v511_v27 = vrot.slane %v509_v19, 7  ;;  %v428_v9 = vsel %vm397_vm3, %v395_v23, 0  ;;  %v3599_v22 = vsel %vm21274_vm9, %v16595_v18, %v3598_v0  ;;  %18302 = vmatpush3.bf16.msra.mxu0 %v20214_v43  ;;  %v3498_v23 = vld [vmem:[#allocation2 + $0x6c] sm:$0xe] }
 0x124   : > { %v1192_v47 = vrot.slane %v1191_v4, 4  ;;  %v21588_v60 = vld [vmem:[#allocation2 + $0x9c] sm:$0xf]  ;;  %v3600_v42 = vrot.slane %v3598_v0, 4  ;;  %18264 = vmatmul.mubr.bf16.gmra.mrb[8].mxu0 %v16610_v24  ;;  %18335 = vmatprep.subr.bf16.mxu0 %v21582_v35  ;;  %v515_v16 = vshrl.u32 %v428_v9, 16  ;;  %v518_v17 = vshll.u32 %v428_v9, 16 }
 0x125   : > { %v21590_v61 = vld [vmem:[#allocation2 + $0xa0] sm:$0xf]  ;;  %v1187_v49 = vsel %vm21116_vm5, %v1182_v25, %v1186_v21  ;;  %v880_v1 = vld [vmem:[#allocation2 + $0xa4] sm:$0x1]  ;;  %v1199_v7 = vshrl.u32 %v21588_v60, 16  ;;  %v1202_v44 = vshll.u32 %v21588_v60, 16  ;;  %v514_v40 = vor.u32 %v512_v62, %v511_v27 }
 0x126   : > { %v1208_v8 = vshll.u32 %v21590_v61, 16  ;;  %v1197_v37 = vsel %vm21116_vm5, %v1192_v47, %v1196_v31  ;;  %v1212_v41 = vshrl.u32 %v21590_v61, 16  ;;  %v1218_v58 = vshll.u32 %v880_v1, 16  ;;  %v2762_v18 = vld [vmem:[#allocation2 + $0x74] sm:$0x1] }
 0x127   : > { %v16465_v6 = vcombine.low %v1187_v49, %v1197_v37  ;;  %v1201_v59 = vrot.slane %v1199_v7, 4  ;;  %v1204_v5 = vrot.slane %v1202_v44, 5  ;;  %v575_v29 = vsel %vm21123_vm6, 0, %v514_v40  ;;  %v2764_v4 = vld [vmem:[#allocation2 + $0x7c] sm:$0xf]  ;;  %v21622_v49 = vld [vmem:[%s21095_s20 + $0xf0] sm:$0xff] }
 0x128   : > { %v1210_v32 = vrot.slane %v1208_v8, 5  ;;  %v1214_v63 = vrot.slane %v1212_v41, 4  ;;  %v1220_v46 = vrot.slane %v1218_v58, 5  ;;  %v591_v39 = vsel %vm21123_vm6, %v511_v27, 0  ;;  %v21625_v1 = vld [vmem:[%s21095_s20 + $0xf8] sm:$0xff]  ;;  %s20844_s20 = smov [#allocation11]  }
 0x129   : > { %18039 = vmatprep.mubr.bf16.mxu1 %v16465_v6  ;;  %v1205_v10 = vor.u32 %v1204_v5, %v1201_v59  ;;  %v16444_v43 = vcombine.low %v575_v29, %v575_v29  ;;  %v16445_v26 = vcombine.high %v575_v29, %v575_v29  ;;  %v16446_v11 = vcombine.low %v591_v39, %v591_v39  ;;  %v21631_v40 = vld [vmem:[#allocation2 + $0x80] sm:$0x1]  ;;  %v2767_v59 = vld [vmem:[#allocation2 + $0x88] sm:$0xf]  ;;  %s20763_s30 = sshll.u32 %s20844_s20, 4  ;;  %s20764_s30 = int_to_ptr.vmem [resolvable:$false] %s20763_s30 }
 0x12a   : > { %v1215_v15 = vor.u32 %v1214_v63, %v1210_v32  ;;  %v3602_v55 = vsel %vm21274_vm9, %v3600_v42, %v3601_v33  ;;  %v16596_v28 = vrot.slane %v3497_v2, 9  ;;  %v3605_v48 = vrot.slane %v21421_v12, 5  ;;  %25963 = vst [vmem:[#allocation18_spill] sm:$0xff] %v21631_v40  ;;  %s20765_s9 = scalar_lea.vmem %s20764_s30, 8192  ;;  %p20766_p12 = scmp.lt.s32.totalorder %s25726_s12, %s20764_s30 }
 0x12b   : > { %v1206_v21 = vrot.slane %v1205_v10, 4  ;;  %810 = vst [vmem:[#allocation2 + $0xa8] sm:$0xf] %v16444_v43  ;;  %811 = vst [vmem:[#allocation2 + $0xac] sm:$0xf] %v16445_v26  ;;  %v16611_v56 = vcombine.low %v3599_v22, %v3602_v55  ;;  %v517_v31 = vrot.slane %v515_v16, 7  ;;  %v396_v29 = vpack.c.bf16 %v21625_v1, %v21622_v49  ;;  %p20767_p1 = scmp.lt.s32.totalorder %s20765_s9, %s20759_s13 }
 0x12c   : > { %812 = vst [vmem:[#allocation2 + $0xb0] sm:$0x1] %v16446_v11  ;;  %v1216_v36 = vrot.slane %v1215_v15, 4  ;;  %v3608_v19 = vrot.slane %v21423_v3, 5  ;;  %v16597_v0 = vrot.slane %v3498_v23, 9  ;;  %v3606_v33 = vsel %vm21274_vm9, %v16596_v28, %v3605_v48 }
 0x12d   : > { %v1211_v62 = vsel %vm21116_vm5, %v1206_v21, %v1210_v32  ;;  %18267 = vmatprep.mubr.bf16.mxu0 %v16611_v56  ;;  %v3607_v25 = vrot.slane %v3605_v48, 4  ;;  %v3612_v24 = vrot.slane %v2761_v52, 5  ;;  %v520_v27 = vor.u32 %v518_v17, %v517_v31  ;;  %v3500_v11 = vld [vmem:[#allocation2 + $0x84] sm:$0xe]  ;;  %v2770_v52 = vld [vmem:[#allocation2 + $0x94] sm:$0xf]  ;;  %p20768_p2 = por %p20767_p1, %p20766_p12 }
 0x12e   : > { %v1221_v12 = vsel %vm21116_vm5, %v1216_v36, %v1220_v46  ;;  %v592_v3 = vsel %vm21123_vm6, %v517_v31, 0  ;;  %v3615_v9 = vrot.slane %v2762_v18, 5  ;;  %v16598_v2 = vrot.slane %v3499_v14, 9  ;;  %v2768_v46 = vld [vmem:[#allocation2 + $0x8c] sm:$0x1] }
 0x12f   : > { %v16466_v47 = vcombine.low %v1211_v62, %v1221_v12  ;;  %v16449_v22 = vcombine.low %v592_v3, %v592_v3  ;;  %v3609_v42 = vsel %vm21274_vm9, %v3607_v25, %v3608_v19  ;;  %v576_v7 = vsel %vm21123_vm6, 0, %v520_v27  ;;  %v3501_v21 = vld [vmem:[#allocation2 + $0x90] sm:$0xe]  ;;  %p20769_p4 = pnand %p20768_p2, %p20762_p7 }
 0x130   : > { %v16612_v44 = vcombine.low %v3606_v33, %v3609_v42  ;;  %v3613_v8 = vsel %vm21274_vm9, %v16597_v0, %v3612_v24  ;;  %v3614_v37 = vrot.slane %v3612_v24, 4  ;;  %v16447_v41 = vcombine.low %v576_v7, %v576_v7  ;;  %v2771_v33 = vld [vmem:[#allocation2 + $0x98] sm:$0x1] }
 0x131   : > { %18040 = vmatmul.mubr.bf16.gmra.mrb[24].mxu1 %v16466_v47  ;;  %v16448_v58 = vcombine.high %v576_v7, %v576_v7  ;;  %815 = vst [vmem:[#allocation2 + $0xbc] sm:$0x1] %v16449_v22  ;;  %v3619_v6 = vrot.slane %v2764_v4, 5  ;;  %v3622_v31 = vrot.slane %v21631_v40, 5  ;;  %v16599_v19 = vrot.slane %v3500_v11, 9 }
 0x132   : > { %v21633_v5 = vld [vmem:[#allocation2 + $0xa8] sm:$0xf]  ;;  %v21635_v32 = vld [vmem:[#allocation2 + $0xac] sm:$0xf]  ;;  %18268 = vmatmul.mubr.bf16.gmra.mrb[12].mxu0 %v16612_v44  ;;  %v3616_v63 = vsel %vm21274_vm9, %v3614_v37, %v3615_v9  ;;  %813 = vst [vmem:[#allocation2 + $0xb4] sm:$0xf] %v16447_v41 }
 0x133   : > { %v881_v23 = vld [vmem:[#allocation2 + $0xb0] sm:$0x1]  ;;  %v1223_v39 = vshrl.u32 %v21633_v5, 16  ;;  %v1226_v10 = vshll.u32 %v21633_v5, 16  ;;  %v1232_v43 = vshll.u32 %v21635_v32, 16  ;;  %v1236_v26 = vshrl.u32 %v21635_v32, 16 }
 0x134   : > { %814 = vst [vmem:[#allocation2 + $0xb8] sm:$0xf] %v16448_v58  ;;  %v1242_v15 = vshll.u32 %v881_v23, 16  ;;  %v16613_v55 = vcombine.low %v3613_v8, %v3616_v63  ;;  %v3620_v16 = vsel %vm21274_vm9, %v16598_v2, %v3619_v6  ;;  %v3621_v17 = vrot.slane %v3619_v6, 4  ;;  %v3502_v44 = vld [vmem:[#allocation2 + $0x9c] sm:$0xe] }
 0x135   : > { %v1225_v56 = vrot.slane %v1223_v39, 4  ;;  %v1228_v28 = vrot.slane %v1226_v10, 5  ;;  %v1234_v48 = vrot.slane %v1232_v43, 5  ;;  %v1238_v18 = vrot.slane %v1236_v26, 4  ;;  %v2774_v23 = vld [vmem:[#allocation2 + $0xa4] sm:$0x1] }
 0x136   : > { %v1244_v36 = vrot.slane %v1242_v15, 5  ;;  %18271 = vmatprep.mubr.bf16.mxu0 %v16613_v55  ;;  %v3626_v0 = vrot.slane %v2767_v59, 5  ;;  %v3629_v62 = vrot.slane %v2768_v46, 5  ;;  %v16600_v25 = vrot.slane %v3501_v21, 9  ;;  %v2773_v59 = vld [vmem:[#allocation2 + $0xa0] sm:$0xf] }
 0x137   : > { %v1229_v4 = vor.u32 %v1228_v28, %v1225_v56  ;;  %v1239_v14 = vor.u32 %v1238_v18, %v1234_v48  ;;  %v3623_v12 = vsel %vm21274_vm9, %v3621_v17, %v3622_v31  ;;  %v3633_v9 = vrot.slane %v2770_v52, 5  ;;  %v2776_v43 = vld [vmem:[#allocation2 + $0xac] sm:$0xf]  ;;  %v2777_v26 = vld [vmem:[#allocation2 + $0xb0] sm:$0x1] }
 0x138   : > { %v882_v24 = vld [vmem:[#allocation2 + $0xbc] sm:$0x1]  ;;  %v3627_v27 = vsel %vm21274_vm9, %v16599_v19, %v3626_v0  ;;  %v3628_v3 = vrot.slane %v3626_v0, 4  ;;  %v16614_v7 = vcombine.low %v3620_v16, %v3623_v12  ;;  %v3636_v6 = vrot.slane %v2771_v33, 5  ;;  %v3503_v11 = vld [vmem:[#allocation2 + $0xa8] sm:$0xe] }
 0x139   : > { %v1230_v47 = vrot.slane %v1229_v4, 4  ;;  %v1240_v22 = vrot.slane %v1239_v14, 4  ;;  %v1266_v42 = vshll.u32 %v882_v24, 16  ;;  %v21652_v8 = vld [vmem:[#allocation2 + $0xb4] sm:$0xf]  ;;  %v3634_v58 = vsel %vm21274_vm9, %v16600_v25, %v3633_v9 }
 0x13a   : > { %v3630_v41 = vsel %vm21274_vm9, %v3628_v3, %v3629_v62  ;;  %v3635_v2 = vrot.slane %v3633_v9, 4  ;;  %v1247_v39 = vshrl.u32 %v21652_v8, 16  ;;  %v1250_v10 = vshll.u32 %v21652_v8, 16  ;;  %18272 = vmatmul.mubr.bf16.gmra.mrb[16].mxu0 %v16614_v7  ;;  %v3504_v15 = vld [vmem:[#allocation2 + $0xb4] sm:$0xe] }
 0x13b   : > { %v21654_v37 = vld [vmem:[#allocation2 + $0xb8] sm:$0xf]  ;;  %v1235_v63 = vsel %vm21116_vm5, %v1230_v47, %v1234_v48  ;;  %v1245_v46 = vsel %vm21116_vm5, %v1240_v22, %v1244_v36  ;;  %v1268_v52 = vrot.slane %v1266_v42, 5  ;;  %v16615_v28 = vcombine.low %v3627_v27, %v3630_v41  ;;  %v2780_v25 = vld [vmem:[#allocation2 + $0xbc] sm:$0x1] }
 0x13c   : > { %v16467_v55 = vcombine.low %v1235_v63, %v1245_v46  ;;  %v1256_v16 = vshll.u32 %v21654_v37, 16  ;;  %v1260_v17 = vshrl.u32 %v21654_v37, 16  ;;  %v1249_v21 = vrot.slane %v1247_v39, 4  ;;  %v2779_v0 = vld [vmem:[#allocation2 + $0xb8] sm:$0xf] }
 0x13d   : > { %v1252_v56 = vrot.slane %v1250_v10, 5  ;;  %v3637_v48 = vsel %vm21274_vm9, %v3635_v2, %v3636_v6  ;;  %v16601_v19 = vrot.slane %v3502_v44, 9  ;;  %18275 = vmatprep.mubr.bf16.mxu0 %v16615_v28  ;;  %v3640_v14 = vrot.slane %v2773_v59, 5  ;;  %v20523_v41 = vld [vmem:[#allocation2] sm:$0xf] }
 0x13e   : > { %18043 = vmatprep.mubr.bf16.mxu1 %v16467_v55  ;;  %v1258_v18 = vrot.slane %v1256_v16, 5  ;;  %v1262_v36 = vrot.slane %v1260_v17, 4  ;;  %v16616_v31 = vcombine.low %v3634_v58, %v3637_v48  ;;  %v3643_v62 = vrot.slane %v2774_v23, 5  ;;  %v21672_v44 = vld [vmem:[#allocation2 + $0x4] sm:$0xf] }
 0x13f   : > { %v1253_v4 = vor.u32 %v1252_v56, %v1249_v21  ;;  %v16602_v33 = vrot.slane %v3503_v11, 9  ;;  %v3647_v12 = vrot.slane %v2776_v43, 5  ;;  %v3650_v3 = vrot.slane %v2777_v26, 5  ;;  %v21695_v48 = vld [vmem:[#allocation2 + $0x10] sm:$0xf] }
 0x140   : > { %v1263_v24 = vor.u32 %v1262_v36, %v1258_v18  ;;  %v16603_v9 = vrot.slane %v3504_v15, 9  ;;  %v3641_v47 = vsel %vm21274_vm9, %v16601_v19, %v3640_v14  ;;  %v3642_v22 = vrot.slane %v3640_v14, 4  ;;  %v21700_v19 = vld [vmem:[#allocation2 + $0x1c] sm:$0xf] }
 0x141   : > { %v1254_v27 = vrot.slane %v1253_v4, 4  ;;  %v3654_v42 = vrot.slane %v2779_v0, 5  ;;  %v16477_v58 = vcombine.low %v20523_v41, %v21672_v44  ;;  %v3649_v2 = vrot.slane %v3647_v12, 4  ;;  %v20213_v41 = vld [vmem:[#allocation6 + $0x98] sm:$0xff]  }
 0x142   : > { %v1264_v7 = vrot.slane %v1263_v24, 4  ;;  %v3657_v6 = vrot.slane %v2780_v25, 5  ;;  %18276 = vmatmul.mubr.bf16.gmra.mrb[20].mxu0 %v16616_v31  ;;  %v3644_v23 = vsel %vm21274_vm9, %v3642_v22, %v3643_v62  ;;  %v3648_v63 = vsel %vm21274_vm9, %v16602_v33, %v3647_v12  ;;  %v20527_v31 = vld [vmem:[#allocation2 + $0x18] sm:$0xf]  ;;  %v20205_v62 = vld [vmem:[#allocation6 + $0x88] sm:$0xff]   ;;  %v20209_v25 = vld [vmem:[#allocation6 + $0x90] sm:$0xff]  }
 0x143   : > { %v1259_v59 = vsel %vm21116_vm5, %v1254_v27, %v1258_v18  ;;  %v3656_v46 = vrot.slane %v3654_v42, 4  ;;  %v16617_v10 = vcombine.low %v3641_v47, %v3644_v23  ;;  %v3651_v43 = vsel %vm21274_vm9, %v3649_v2, %v3650_v3  ;;  %v20529_v33 = vld [vmem:[#allocation6 + $0x80] sm:$0xff]   ;;  %v21703_v24 = vld [vmem:[#allocation2 + $0x8] sm:$0x1]  ;;  %v20531_v3 = vld [vmem:[#allocation2 + $0x24] sm:$0xf] }
 0x144   : > { %v1269_v39 = vsel %vm21116_vm5, %v1264_v7, %v1268_v52  ;;  %v430_v26 = vsel %vm397_vm3, %v396_v29, 0  ;;  %v3655_v15 = vsel %vm21274_vm9, %v16603_v9, %v3654_v42  ;;  %v16618_v52 = vcombine.low %v3648_v63, %v3651_v43  ;;  %v20525_v29 = vld [vmem:[#allocation2 + $0xc] sm:$0xf]  ;;  %v21706_v9 = vld [vmem:[#allocation2 + $0x28] sm:$0xf] }
 0x145   : > { %v16468_v11 = vcombine.low %v1259_v59, %v1269_v39  ;;  %v3658_v55 = vsel %vm21274_vm9, %v3656_v46, %v3657_v6  ;;  %v521_v16 = vshrl.u32 %v430_v26, 16  ;;  %18279 = vmatprep.mubr.bf16.mxu0 %v16617_v10  ;;  %v524_v17 = vshll.u32 %v430_v26, 16  ;;  %v20533_v22 = vld [vmem:[#allocation2 + $0x30] sm:$0xf]  ;;  %v21709_v42 = vld [vmem:[#allocation2 + $0x34] sm:$0xf] }
 0x146   : > { %v16619_v56 = vcombine.low %v3655_v15, %v3658_v55  ;;  %v16478_v18 = vcombine.low %v20525_v29, %v21695_v48  ;;  %v16479_v0 = vcombine.low %v20527_v31, %v21700_v19  ;;  %v1921_v12 = vrot.slane %v21703_v24, 5  ;;  %v21715_v6 = vld [vmem:[#allocation2 + $0xc] sm:$0xe]  ;;  %v21717_v59 = vld [vmem:[#allocation2 + $0x3c] sm:$0xf] }
 0x147   : > { %18044 = vmatmul.mubr.bf16.gmra.mrb[28].mxu1 %v16468_v11  ;;  %v523_v21 = vrot.slane %v521_v16, 7  ;;  %v16480_v27 = vcombine.low %v20531_v3, %v21706_v9  ;;  %v16481_v7 = vcombine.low %v20533_v22, %v21709_v42  ;;  %v1918_v2 = vrot.slane %v21672_v44, 5  ;;  %v21719_v23 = vld [vmem:[#allocation2 + $0x40] sm:$0xf]  ;;  %v21724_v26 = vld [vmem:[#allocation2 + $0x48] sm:$0xf] }
 0x148   : > { %18063 = vmatprep.mubr.bf16.mxu1 %v16477_v58  ;;  %v21712_v58 = vld [vmem:[#allocation2] sm:$0xe]  ;;  %v16482_v63 = vcombine.low %v21717_v59, %v21719_v23  ;;  %v1925_v43 = vrot.slane %v21695_v48, 5  ;;  %v21726_v11 = vld [vmem:[#allocation2 + $0x4c] sm:$0xf]  ;;  %v1932_v48 = vrot.slane %v21700_v19, 5 }
 0x149   : > { %v526_v28 = vor.u32 %v524_v17, %v523_v21  ;;  %v593_v49 = vsel %vm21123_vm6, %v523_v21, 0  ;;  %v16483_v44 = vcombine.low %v21724_v26, %v21726_v11  ;;  %v21730_v15 = vld [vmem:[#allocation2 + $0x54] sm:$0xf]  ;;  %v21732_v55 = vld [vmem:[#allocation2 + $0x58] sm:$0xf]  ;;  %v1920_v22 = vrot.slane %v1918_v2, 4 }
 0x14a   : > { %v16452_v1 = vcombine.low %v593_v49, %v593_v49  ;;  %18280 = vmatmul.mubr.bf16.gmra.mrb[24].mxu0 %v16618_v52  ;;  %v16484_v16 = vcombine.low %v21730_v15, %v21732_v55  ;;  %v21736_v21 = vld [vmem:[#allocation2 + $0x60] sm:$0xf]  ;;  %v1867_v29 = vld [vmem:[#allocation2 + $0x18] sm:$0xe]  ;;  %v1868_v3 = vld [vmem:[#allocation2 + $0x24] sm:$0xe] }
 0x14b   : > { %v577_v36 = vsel %vm21123_vm6, 0, %v526_v28  ;;  %18283 = vmatprep.mubr.bf16.mxu0 %v16619_v56  ;;  %v21738_v56 = vld [vmem:[#allocation2 + $0x64] sm:$0xf]  ;;  %v20218_v31 = vld [vmem:[#allocation6 + $0xa0] sm:$0xff]   ;;  %v21809_v26 = vld [vmem:[#allocation2 + $0x54] sm:$0xe] }
 0x14c   : > { %v16450_v4 = vcombine.low %v577_v36, %v577_v36  ;;  %v16451_v14 = vcombine.high %v577_v36, %v577_v36  ;;  %818 = vst [vmem:[#allocation2 + $0xc8] sm:$0x1] %v16452_v1  ;;  %v16485_v28 = vcombine.low %v21736_v21, %v21738_v56  ;;  %v4376_v24 = vld [vmem:[#allocation2 + $0x1c] sm:$0xf]  ;;  %v4379_v1 = vld [vmem:[#allocation2 + $0x28] sm:$0xf] }
 0x14d   : > { %v1974_v21 = vrot.slane %v21738_v56, 5  ;;  %v20238_v15 = vld [vmem:[#allocation6 + $0x1d8] sm:$0xff]  }
 0x14e   : > { %816 = vst [vmem:[#allocation2 + $0xc0] sm:$0xf] %v16450_v4  ;;  %817 = vst [vmem:[#allocation2 + $0xc4] sm:$0xf] %v16451_v14  ;;  %v16501_v14 = vrot.slane %v21712_v58, 9  ;;  %v1934_v58 = vrot.slane %v1932_v48, 4 }
 0x14f   : > { %18064 = vmatmul.mubr.bf16.vlgmr.msra.gmra.mrb[0].mxu1 %v16478_v18  ;;  %v20544_v4 = vld [vmem:[#allocation2 + $0x20] sm:$0x1]  ;;  %v1976_v56 = vrot.slane %v1974_v21, 4 }
 0x150   : > { %18096 = vmatpush3.bf16.msra.mxu1 %v20529_v33  ;;  %18067 = vmatprep.mubr.bf16.mxu1 %v16479_v0  ;;  %v20543_v33 = vld [vmem:[#allocation2 + $0x14] sm:$0x1]  ;;  %v1870_v0 = vld [vmem:[#allocation2 + $0x3c] sm:$0xe] }
 0x151   : > { %18097 = vmatprep.subr.bf16.mxu1 %v20205_v62  ;;  %v1928_v19 = vrot.slane %v20543_v33, 5 }
 0x153   : > { %v2783_v47 = vld [vmem:[#allocation2 + $0xc8] sm:$0x1] }
 0x154   : > { %18098 = vmatpush3.bf16.msra.mxu1 %v20205_v62  ;;  %v3664_v10 = vrot.slane %v2783_v47, 5  ;;  %v16502_v62 = vrot.slane %v21715_v6, 9  ;;  %v20216_v47 = vld [vmem:[#allocation2 + $0x18] sm:$0xff]   ;;  %v1935_v6 = vrot.slane %v20544_v4, 5  ;;  %v20545_v4 = vld [vmem:[#allocation2 + $0x2c] sm:$0x1] }
 0x155   : > { %18099 = vmatprep.subr.bf16.mxu1 %v20209_v25  ;;  %v2782_v46 = vld [vmem:[#allocation2 + $0xc4] sm:$0xf]  ;;  %v3505_v39 = vld [vmem:[#allocation2 + $0xc0] sm:$0xe] }
 0x156   : > { %v16604_v17 = vrot.slane %v3505_v39, 9  ;;  %v3661_v52 = vrot.slane %v2782_v46, 5  ;;  %v16503_v46 = vrot.slane %v1867_v29, 9  ;;  %v1869_v39 = vld [vmem:[#allocation2 + $0x30] sm:$0xe]  ;;  %v20224_v29 = vld [vmem:[#allocation6 + $0xa8] sm:$0xff]  }
 0x157   : > { %18068 = vmatmul.mubr.bf16.gmra.mrb[4].mxu1 %v16480_v27 }
 0x158   : > { %18071 = vmatprep.mubr.bf16.mxu1 %v16481_v7  ;;  %18100 = vmatpush3.bf16.msra.mxu1 %v20209_v25  ;;  %v3662_v18 = vsel %vm21274_vm9, %v16604_v17, %v3661_v52  ;;  %v3663_v36 = vrot.slane %v3661_v52, 4  ;;  %v1939_v25 = vrot.slane %v21706_v9, 5  ;;  %v1927_v7 = vrot.slane %v1925_v43, 4  ;;  %v20548_v9 = vld [vmem:[#allocation2 + $0x50] sm:$0x1] }
 0x159   : > { %18101 = vmatprep.subr.bf16.mxu1 %v20213_v41  ;;  %v1953_v52 = vrot.slane %v21719_v23, 5  ;;  %v20547_v23 = vld [vmem:[#allocation2 + $0x44] sm:$0x1]  ;;  %v1963_v33 = vrot.slane %v20548_v9, 5 }
 0x15a   : > { %v3665_v27 = vsel %vm21274_vm9, %v3663_v36, %v3664_v10  ;;  %v16504_v10 = vrot.slane %v1868_v3, 9  ;;  %v1946_v36 = vrot.slane %v21709_v42, 5  ;;  %v21774_v3 = vsel %vm21274_vm9, %v1920_v22, %v1921_v12  ;;  %v20219_v12 = vld [vmem:[#allocation2 + $0x24] sm:$0xff]  }
 0x15b   : > { %v16620_v17 = vcombine.low %v3662_v18, %v3665_v27  ;;  %v21767_v18 = vsel %vm21274_vm9, %v16501_v14, %v1918_v2  ;;  %v1941_v27 = vrot.slane %v1939_v25, 4  ;;  %v21778_v42 = vsel %vm21274_vm9, %v16502_v62, %v1925_v43 }
 0x15c   : > { %18102 = vmatpush3.bf16.msra.mxu1 %v20213_v41  ;;  %v1942_v41 = vrot.slane %v20545_v4, 5  ;;  %v21782_v2 = vsel %vm21274_vm9, %v1927_v7, %v1928_v19  ;;  %v21786_v14 = vsel %vm21274_vm9, %v16503_v46, %v1932_v48  ;;  %v21795_v43 = vsel %vm21274_vm9, %v1934_v58, %v1935_v6  ;;  %v20546_v19 = vld [vmem:[#allocation2 + $0x38] sm:$0x1]  ;;  %v20222_v48 = vld [vmem:[#allocation2 + $0x30] sm:$0xff]  }
 0x15d   : > { %18284 = vmatmul.mubr.bf16.gmra.mrb[28].mxu0 %v16620_v17  ;;  %18103 = vmatprep.subr.bf16.mxu1 %v20218_v31  ;;  %v21788_v17 = vld [vmem:[#allocation2 + $0x48] sm:$0xe]  ;;  %v16505_v62 = vrot.slane %v1869_v39, 9  ;;  %v1949_v22 = vrot.slane %v20546_v19, 5  ;;  %v16506_v7 = vrot.slane %v1870_v0, 9  ;;  %v21802_v46 = vsel %vm21274_vm9, %v16504_v10, %v1939_v25 }
 0x15e   : > { %18303 = vmatprep.mubr.bf16.mxu0 %v20216_v47  ;;  %v4375_v47 = vld [vmem:[#allocation2 + $0x18] sm:$0xf]  ;;  %v1948_v59 = vrot.slane %v1946_v36, 4  ;;  %v1960_v58 = vrot.slane %v21726_v11, 5  ;;  %v20230_v39 = vld [vmem:[#allocation6 + $0xb0] sm:$0xff]   ;;  %v21807_v0 = vsel %vm21274_vm9, %v1941_v27, %v1942_v41  ;;  %v1955_v6 = vrot.slane %v1953_v52, 4 }
 0x15f   : > { %18072 = vmatmul.mubr.bf16.gmra.mrb[8].mxu1 %v16482_v63  ;;  %v1956_v63 = vrot.slane %v20547_v23, 5  ;;  %v4433_v4 = vshll.u32 %v4376_v24, 16  ;;  %v4437_v19 = vshrl.u32 %v4376_v24, 16  ;;  %v4378_v11 = vld [vmem:[#allocation2 + $0x24] sm:$0xf]  ;;  %v21819_v27 = vsel %vm21274_vm9, %v16505_v62, %v1946_v36  ;;  %v20236_v36 = vld [vmem:[#allocation6 + $0xb8] sm:$0xff]  }
 0x160   : > { %18075 = vmatprep.mubr.bf16.mxu1 %v16483_v44  ;;  %18104 = vmatpush3.bf16.msra.mxu1 %v20218_v31  ;;  %v4424_v44 = vshrl.u32 %v4375_v47, 16  ;;  %v4427_v31 = vshll.u32 %v4375_v47, 16  ;;  %v20226_v23 = vld [vmem:[#allocation6 + $0x1c8] sm:$0xff]   ;;  %v21823_v41 = vsel %vm21274_vm9, %v16506_v7, %v1953_v52  ;;  %v16507_v47 = vrot.slane %v21788_v17, 9 }
 0x161   : > { %18105 = vmatprep.subr.bf16.mxu1 %v20224_v29  ;;  %25964 = vst [vmem:[#allocation19_spill] sm:$0xff] %v21823_v41  ;;  %v21830_v24 = vsel %vm21274_vm9, %v1948_v59, %v1949_v22  ;;  %v1962_v25 = vrot.slane %v1960_v58, 4  ;;  %v21834_v52 = vsel %vm21274_vm9, %v1955_v6, %v1956_v63  ;;  %v1873_v17 = vld [vmem:[#allocation2 + $0x60] sm:$0xe]  ;;  %v4377_v22 = vld [vmem:[#allocation2 + $0x20] sm:$0x1] }
 0x162   : > { %25965 = vst [vmem:[#allocation20_spill] sm:$0xff] %v21830_v24  ;;  %25966 = vst [vmem:[#allocation21_spill] sm:$0xff] %v21834_v52  ;;  %v21837_v62 = vrot.slane %v4424_v44, 4  ;;  %v21839_v7 = vrot.slane %v4427_v31, 5  ;;  %v21842_v9 = vrot.slane %v4433_v4, 5  ;;  %v4448_v59 = vshrl.u32 %v4378_v11, 16 }
 0x163   : > { %v4451_v10 = vshll.u32 %v4378_v11, 16  ;;  %v20232_v63 = vld [vmem:[#allocation6 + $0x1d0] sm:$0xff]   ;;  %v20225_v44 = vld [vmem:[#allocation2 + $0x3c] sm:$0xff]   ;;  %v1967_v4 = vrot.slane %v21732_v55, 5  ;;  %v21869_v52 = vld [vmem:[#allocation2 + $0x30] sm:$0xf] }
 0x164   : > { %18106 = vmatpush3.bf16.msra.mxu1 %v20224_v29  ;;  %v16508_v29 = vrot.slane %v21809_v26, 9  ;;  %v21851_v26 = vsel %vm21274_vm9, %v16507_v47, %v1960_v58  ;;  %v20228_v31 = vld [vmem:[#allocation2 + $0x48] sm:$0xff]   ;;  %v16509_v58 = vrot.slane %v1873_v17, 9  ;;  %v4450_v17 = vrot.slane %v4448_v59, 4 }
 0x165   : > { %18304 = vmatmul.mubr.bf16.vlgmr.msra.gmra.mrb[0].mxu0 %v20219_v12  ;;  %18107 = vmatprep.subr.bf16.mxu1 %v20230_v39  ;;  %v4439_v12 = vrot.slane %v4437_v19, 4  ;;  %25967 = vst [vmem:[#allocation22_spill] sm:$0xff] %v21851_v26  ;;  %v21863_v19 = vld [vmem:[#allocation6 + $0xc0] sm:$0xff]   ;;  %v1874_v47 = vld [vmem:[#allocation2 + $0x6c] sm:$0xe]  ;;  %v4453_v49 = vrot.slane %v4451_v10, 5 }
 0x166   : > { %18336 = vmatpush3.bf16.msra.mxu0 %v21582_v35  ;;  %18307 = vmatprep.mubr.bf16.mxu0 %v20222_v48  ;;  %v4457_v35 = vshll.u32 %v4379_v1, 16  ;;  %v4461_v48 = vshrl.u32 %v4379_v1, 16  ;;  %v20549_v1 = vld [vmem:[#allocation2 + $0x5c] sm:$0x1]  ;;  %v4380_v55 = vld [vmem:[#allocation2 + $0x2c] sm:$0x1]  ;;  %v21881_v10 = vsel %vm21274_vm9, %v16509_v58, %v1974_v21  ;;  %v25969_v58 = vcombine.low %v21491_v54, %v21493_v57 }
 0x167   : > { %18076 = vmatmul.mubr.bf16.gmra.mrb[12].mxu1 %v16484_v16  ;;  %18337 = vmatprep.subr.bf16.mxu0 %v20226_v23  ;;  %v21860_v16 = vsel %vm21274_vm9, %v1962_v25, %v1963_v33  ;;  %v1970_v11 = vrot.slane %v20549_v1, 5  ;;  %v4440_v33 = vor.u32 %v4439_v12, %v21842_v9  ;;  %v20550_v25 = vld [vmem:[#allocation2 + $0x70] sm:$0xf]  ;;  %v1969_v12 = vrot.slane %v1967_v4, 4  ;;  %v20551_v59 = vld [vmem:[#allocation2 + $0x68] sm:$0x1] }
 0x168   : > { %18079 = vmatprep.mubr.bf16.mxu1 %v16485_v28  ;;  %18108 = vmatpush3.bf16.msra.mxu1 %v20230_v39  ;;  %25968 = vst [vmem:[#allocation23_spill] sm:$0xff] %v21860_v16  ;;  %v4430_v28 = vor.u32 %v21839_v7, %v21837_v62  ;;  %v4443_v39 = vshll.u32 %v4377_v22, 16  ;;  %v1981_v6 = vrot.slane %v20550_v25, 5  ;;  %v21875_v62 = vsel %vm21274_vm9, %v16508_v29, %v1967_v4  ;;  %v4382_v22 = vld [vmem:[#allocation2 + $0x34] sm:$0xf] }
 0x169   : > { %18109 = vmatprep.subr.bf16.mxu1 %v20236_v36  ;;  %v4463_v7 = vrot.slane %v4461_v48, 4  ;;  %v1977_v1 = vrot.slane %v20551_v59, 5  ;;  %v20552_v25 = vld [vmem:[#allocation2 + $0x7c] sm:$0xf]  ;;  %v16510_v16 = vrot.slane %v1874_v47, 9  ;;  %v4441_v48 = vrot.slane %v4440_v33, 4 }
 0x16a   : > { %18338 = vmatpush3.bf16.msra.mxu0 %v20226_v23  ;;  %v21877_v23 = vrot.slane %v4457_v35, 5  ;;  %v1988_v41 = vrot.slane %v20552_v25, 5  ;;  %v4445_v29 = vrot.slane %v4443_v39, 5  ;;  %v20553_v35 = vld [vmem:[#allocation2 + $0x74] sm:$0x1]  ;;  %v1983_v4 = vrot.slane %v1981_v6, 4 }
 0x16b   : > { %18339 = vmatprep.subr.bf16.mxu0 %v20232_v63  ;;  %v1984_v26 = vrot.slane %v20553_v35, 5  ;;  %v4454_v24 = vor.u32 %v4453_v49, %v4450_v17  ;;  %v20242_v59 = vld [vmem:[#allocation6 + $0x1e0] sm:$0xff]   ;;  %v4467_v25 = vshll.u32 %v4380_v55, 16  ;;  %v16511_v21 = vrot.slane %v1875_v45, 9  ;;  %v20234_v17 = vld [vmem:[#allocation2 + $0x60] sm:$0xff]  }
 0x16c   : > { %18110 = vmatpush3.bf16.msra.mxu1 %v20236_v36  ;;  %v4431_v36 = vrot.slane %v4430_v28, 4  ;;  %v4472_v39 = vshrl.u32 %v21869_v52, 16  ;;  %v20554_v28 = vld [vmem:[#allocation2 + $0x80] sm:$0x1]  ;;  %v4475_v49 = vshll.u32 %v21869_v52, 16  ;;  %v4481_v33 = vshll.u32 %v4382_v22, 16 }
 0x16d   : > { %18308 = vmatmul.mubr.bf16.gmra.mrb[4].mxu0 %v20225_v44  ;;  %18143 = vmatprep.subr.bf16.mxu1 %v21863_v19  ;;  %v4464_v44 = vor.u32 %v4463_v7, %v21877_v23  ;;  %v1991_v47 = vrot.slane %v20554_v28, 5  ;;  %v20231_v54 = vld [vmem:[#allocation2 + $0x54] sm:$0xff]   ;;  %v21895_v57 = vsel %vm21274_vm9, %v1969_v12, %v1970_v11  ;;  %v21899_v45 = vsel %vm21274_vm9, %v1976_v56, %v1977_v1  ;;  %v1876_v1 = vld [vmem:[#allocation2 + $0x84] sm:$0xe]  ;;  %v4387_v28 = vld [vmem:[#allocation2 + $0x48] sm:$0xf] }
 0x16e   : > { %18311 = vmatprep.mubr.bf16.mxu0 %v20228_v31  ;;  %18340 = vmatpush3.bf16.msra.mxu0 %v20232_v63  ;;  %v25970_v31 = vcombine.low %v21516_v13, %v21518_v20  ;;  %v1990_v63 = vrot.slane %v1988_v41, 4  ;;  %v21903_v55 = vsel %vm21274_vm9, %v16510_v16, %v1981_v6  ;;  %v21905_v13 = vld [vmem:[#allocation2 + $0x38] sm:$0x1]  ;;  %v4485_v20 = vshrl.u32 %v4382_v22, 16  ;;  %v4384_v6 = vld [vmem:[#allocation2 + $0x3c] sm:$0xf] }
 0x16f   : > { %18080 = vmatmul.mubr.bf16.gmra.mrb[16].mxu1 %v25969_v58  ;;  %18341 = vmatprep.subr.bf16.mxu0 %v20238_v15  ;;  %25971 = vst [vmem:[#allocation24_spill] sm:$0xff] %v21905_v13  ;;  %v4436_v52 = vsel %vm21116_vm5, %v4431_v36, %v21842_v9  ;;  %v4446_v11 = vsel %vm21116_vm5, %v4441_v48, %v4445_v29  ;;  %v21916_v7 = vrot.slane %v4454_v24, 4  ;;  %v20246_v16 = vld [vmem:[#allocation6 + $0x1e8] sm:$0xff]   ;;  %v21918_v12 = vrot.slane %v4464_v44, 4  ;;  %v20555_v58 = vld [vmem:[#allocation2 + $0x88] sm:$0xf] }
 0x170   : > { %18083 = vmatprep.mubr.bf16.mxu1 %v25970_v31  ;;  %v21914_v56 = vsel %vm21274_vm9, %v1983_v4, %v1984_v26  ;;  %v21920_v22 = vrot.slane %v4467_v25, 5  ;;  %v4474_v9 = vrot.slane %v4472_v39, 4  ;;  %v21926_v29 = vld [vmem:[#allocation2 + $0x40] sm:$0xf]  ;;  %v21930_v26 = vsel %vm21274_vm9, %v1990_v63, %v1991_v47  ;;  %v21973_v48 = vld [vmem:[#allocation2 + $0x50] sm:$0x1] }
 0x171   : > { %25972 = vst [vmem:[#allocation25_spill] sm:$0xff] %v21926_v29  ;;  %v4477_v24 = vrot.slane %v4475_v49, 5  ;;  %v21932_v35 = vrot.slane %v4481_v33, 5  ;;  %v4491_v36 = vshll.u32 %v21905_v13, 16  ;;  %v4487_v4 = vrot.slane %v4485_v20, 4  ;;  %v20237_v49 = vld [vmem:[#allocation2 + $0x6c] sm:$0xff]  }
 0x172   : > { %18342 = vmatpush3.bf16.msra.mxu0 %v20238_v15  ;;  %v21924_v15 = vsel %vm21274_vm9, %v16511_v21, %v1988_v41  ;;  %v1995_v44 = vrot.slane %v20555_v58, 5  ;;  %v20250_v21 = vld [vmem:[#allocation6 + $0x1f0] sm:$0xff]   ;;  %v21940_v39 = vcombine.low %v4436_v52, %v4446_v11  ;;  %v4460_v63 = vsel %vm21116_vm5, %v21916_v7, %v21877_v23  ;;  %v4390_v23 = vld [vmem:[#allocation2 + $0x54] sm:$0xf]  ;;  %25978 = vst [vmem:[#allocation29_spill] sm:$0xff] %v21973_v48 }
 0x173   : > { %18343 = vmatprep.subr.bf16.mxu0 %v20242_v59  ;;  %v25973_v47 = vcombine.low %v21535_v50, %v21537_v51  ;;  %v4499_v20 = vshll.u32 %v4384_v6, 16  ;;  %v25975_v52 = vcombine.low %v21563_v38, %v21565_v53  ;;  %v20239_v50 = vld [vmem:[#allocation2 + $0x78] sm:$0xff]   ;;  %v4478_v51 = vor.u32 %v4477_v24, %v4474_v9  ;;  %v20556_v33 = vld [vmem:[#allocation2 + $0x8c] sm:$0x1]  ;;  %v21969_v38 = vld [vmem:[#allocation2 + $0x44] sm:$0x1] }
 0x174   : > { %v16512_v11 = vrot.slane %v1876_v1, 9  ;;  %v4505_v7 = vshll.u32 %v21926_v29, 16  ;;  %v4509_v58 = vshrl.u32 %v21926_v29, 16  ;;  %v1997_v25 = vrot.slane %v1995_v44, 4  ;;  %25977 = vst [vmem:[#allocation28_spill] sm:$0xff] %v21969_v38 }
 0x175   : > { %18312 = vmatmul.mubr.bf16.gmra.mrb[8].mxu0 %v20231_v54  ;;  %v4496_v54 = vshrl.u32 %v4384_v6, 16  ;;  %v21967_v6 = vrot.slane %v4491_v36, 5  ;;  %v1998_v31 = vrot.slane %v20556_v33, 5  ;;  %v4520_v53 = vshrl.u32 %v4387_v28, 16 }
 0x176   : > { %18315 = vmatprep.mubr.bf16.mxu0 %v20234_v17  ;;  %18344 = vmatpush3.bf16.msra.mxu0 %v20242_v59  ;;  %v4470_v59 = vsel %vm21116_vm5, %v21918_v12, %v21920_v22  ;;  %v21957_v17 = vld [vmem:[#allocation2 + $0x4c] sm:$0xf]  ;;  %v21964_v12 = vld [vmem:[#allocation2 + $0x58] sm:$0xf]  ;;  %v20254_v22 = vld [vmem:[#allocation6 + $0x1f8] sm:$0xff]   ;;  %v4523_v9 = vshll.u32 %v4387_v28, 16 }
 0x177   : > { %18084 = vmatmul.mubr.bf16.gmra.mrb[20].mxu1 %v25973_v47  ;;  %18345 = vmatprep.subr.bf16.mxu0 %v20246_v16  ;;  %25974 = vst [vmem:[#allocation26_spill] sm:$0xff] %v21957_v17  ;;  %25976 = vst [vmem:[#allocation27_spill] sm:$0xff] %v21964_v12  ;;  %v4488_v47 = vor.u32 %v4487_v4, %v21932_v35  ;;  %v4529_v1 = vshll.u32 %v21957_v17, 16  ;;  %v4533_v24 = vshrl.u32 %v21957_v17, 16  ;;  %v4501_v41 = vrot.slane %v4499_v20, 5 }
 0x178   : > { %18087 = vmatprep.mubr.bf16.mxu1 %v25975_v52  ;;  %v4498_v52 = vrot.slane %v4496_v54, 4  ;;  %v4544_v4 = vshrl.u32 %v4390_v23, 16  ;;  %v4547_v36 = vshll.u32 %v4390_v23, 16  ;;  %v21975_v40 = vrot.slane %v4478_v51, 4  ;;  %v1877_v51 = vld [vmem:[#allocation2 + $0x90] sm:$0xe] }
 0x179   : > { %v21981_v33 = vrot.slane %v4505_v7, 5  ;;  %v4511_v28 = vrot.slane %v4509_v58, 4  ;;  %v21983_v13 = vrot.slane %v4488_v47, 4  ;;  %v21987_v54 = vsel %vm21274_vm9, %v1997_v25, %v1998_v31  ;;  %v20241_v58 = vld [vmem:[#allocation2 + $0x84] sm:$0xff]   ;;  %v21996_v25 = vld [vmem:[#allocation6 + $0x200] sm:$0xff]  }
 0x17a   : > { %18346 = vmatpush3.bf16.msra.mxu0 %v20246_v16  ;;  %v21979_v16 = vsel %vm21274_vm9, %v16512_v11, %v1995_v44  ;;  %25980 = vst [vmem:[#allocation31_spill] sm:$0xff] %v21987_v54  ;;  %v4553_v20 = vshll.u32 %v21964_v12, 16  ;;  %v4557_v23 = vshrl.u32 %v21964_v12, 16  ;;  %v4522_v17 = vrot.slane %v4520_v53, 4 }
 0x17b   : > { %18347 = vmatprep.subr.bf16.mxu0 %v20250_v21  ;;  %25979 = vst [vmem:[#allocation30_spill] sm:$0xff] %v21979_v16  ;;  %v4525_v44 = vrot.slane %v4523_v9, 5  ;;  %v21991_v11 = vrot.slane %v4529_v1, 5  ;;  %v4535_v7 = vrot.slane %v4533_v24, 4  ;;  %v4502_v31 = vor.u32 %v4501_v41, %v4498_v52  ;;  %v20557_v1 = vld [vmem:[#allocation2 + $0x94] sm:$0xf] }
 0x17c   : > { %v4515_v47 = vshll.u32 %v21969_v38, 16  ;;  %v4546_v12 = vrot.slane %v4544_v4, 4  ;;  %v22002_v53 = vcombine.low %v4460_v63, %v4470_v59  ;;  %v4512_v9 = vor.u32 %v4511_v28, %v21981_v33  ;;  %v1878_v24 = vld [vmem:[#allocation2 + $0x9c] sm:$0xe]  ;;  %v20243_v52 = vld [vmem:[#allocation2 + $0x90] sm:$0xff]  }
 0x17d   : > { %18316 = vmatmul.mubr.bf16.gmra.mrb[12].mxu0 %v20237_v49  ;;  %v25981_v49 = vcombine.low %v21588_v60, %v21590_v61  ;;  %v2002_v60 = vrot.slane %v20557_v1, 5  ;;  %v4539_v61 = vshll.u32 %v21973_v48, 16  ;;  %v4484_v41 = vsel %vm21116_vm5, %v21975_v40, %v21932_v35  ;;  %v1879_v48 = vld [vmem:[#allocation2 + $0xa8] sm:$0xe] }
 0x17e   : > { %18319 = vmatprep.mubr.bf16.mxu0 %v20239_v50  ;;  %18348 = vmatpush3.bf16.msra.mxu0 %v20250_v21  ;;  %v4549_v50 = vrot.slane %v4547_v36, 5  ;;  %v25982_v21 = vcombine.low %v21633_v5, %v21635_v32  ;;  %v4494_v5 = vsel %vm21116_vm5, %v21983_v13, %v21967_v6  ;;  %v22016_v63 = vrot.slane %v4553_v20, 5  ;;  %v4393_v20 = vld [vmem:[#allocation2 + $0x60] sm:$0xf] }
 0x17f   : > { %18088 = vmatmul.mubr.bf16.gmra.mrb[24].mxu1 %v25981_v49  ;;  %18349 = vmatprep.subr.bf16.mxu0 %v20254_v22  ;;  %v22006_v49 = vld [vmem:[#allocation2 + $0x5c] sm:$0x1]  ;;  %v4559_v59 = vrot.slane %v4557_v23, 4  ;;  %v4526_v36 = vor.u32 %v4525_v44, %v4522_v17  ;;  %v4536_v28 = vor.u32 %v4535_v7, %v21991_v11  ;;  %v22022_v40 = vrot.slane %v4502_v31, 4  ;;  %v22025_v17 = vld [vmem:[#allocation2 + $0x64] sm:$0xf] }
 0x180   : > { %18091 = vmatprep.mubr.bf16.mxu1 %v25982_v21  ;;  %25983 = vst [vmem:[#allocation32_spill] sm:$0xff] %v22006_v49  ;;  %v20558_v21 = vld [vmem:[#allocation2 + $0xa0] sm:$0xf]  ;;  %v4517_v35 = vrot.slane %v4515_v47, 5  ;;  %v16513_v13 = vrot.slane %v1877_v51, 9  ;;  %v4550_v6 = vor.u32 %v4549_v50, %v4546_v12  ;;  %v4513_v23 = vrot.slane %v4512_v9, 4 }
 0x181   : > { %v2009_v1 = vrot.slane %v20558_v21, 5  ;;  %v2004_v38 = vrot.slane %v2002_v60, 4  ;;  %v2016_v4 = vrot.slane %v21635_v32, 5  ;;  %25984 = vst [vmem:[#allocation33_spill] sm:$0xff] %v22025_v17  ;;  %v4541_v44 = vrot.slane %v4539_v61, 5 }
 0x182   : > { %18350 = vmatpush3.bf16.msra.mxu0 %v20254_v22  ;;  %v20559_v22 = vld [vmem:[#allocation2 + $0x98] sm:$0x1]  ;;  %v16514_v7 = vrot.slane %v1878_v24, 9  ;;  %v4560_v21 = vor.u32 %v4559_v59, %v22016_v63  ;;  %v4563_v31 = vshll.u32 %v22006_v49, 16  ;;  %v4527_v47 = vrot.slane %v4526_v36, 4 }
 0x183   : > { %18383 = vmatprep.subr.bf16.mxu0 %v21996_v25  ;;  %v2005_v29 = vrot.slane %v20559_v22, 5  ;;  %v4537_v51 = vrot.slane %v4536_v28, 4  ;;  %v2011_v12 = vrot.slane %v2009_v1, 4  ;;  %v20560_v50 = vld [vmem:[#allocation2 + $0xa4] sm:$0x1]  ;;  %v25985_v22 = vcombine.low %v21652_v8, %v21654_v37 }
 0x184   : > { %v2012_v9 = vrot.slane %v20560_v50, 5  ;;  %v22032_v32 = vcombine.low %v4484_v41, %v4494_v5  ;;  %v4551_v61 = vrot.slane %v4550_v6, 4  ;;  %v16515_v24 = vrot.slane %v1879_v48, 9  ;;  %v20561_v28 = vld [vmem:[#allocation2 + $0xb0] sm:$0x1] }
 0x185   : > { %18320 = vmatmul.mubr.bf16.gmra.mrb[16].mxu0 %v20241_v58  ;;  %v22036_v58 = vsel %vm21274_vm9, %v16513_v13, %v2002_v60  ;;  %v25987_v59 = vcombine.low %v21767_v18, %v21774_v3  ;;  %v2018_v36 = vrot.slane %v2016_v4, 4  ;;  %v2019_v50 = vrot.slane %v20561_v28, 5  ;;  %v20247_v60 = vld [vmem:[#allocation2 + $0xa8] sm:$0xff]  }
 0x186   : > { %18323 = vmatprep.mubr.bf16.mxu0 %v20243_v52  ;;  %25986 = vst [vmem:[#allocation34_spill] sm:$0xff] %v22036_v58  ;;  %v20245_v52 = vld [vmem:[#allocation2 + $0x9c] sm:$0xff]   ;;  %v4568_v49 = vshrl.u32 %v4393_v20, 16  ;;  %v4571_v54 = vshll.u32 %v4393_v20, 16  ;;  %v4561_v8 = vrot.slane %v4560_v21, 4  ;;  %v4565_v37 = vrot.slane %v4563_v31, 5 }
 0x187   : > { %18092 = vmatmul.mubr.bf16.gmra.mrb[28].mxu1 %v25985_v22  ;;  %v4577_v41 = vshll.u32 %v22025_v17, 16  ;;  %v4581_v5 = vshrl.u32 %v22025_v17, 16  ;;  %v4508_v48 = vsel %vm21116_vm5, %v22022_v40, %v21981_v33  ;;  %v4518_v18 = vsel %vm21116_vm5, %v4513_v23, %v4517_v35  ;;  %v22057_v6 = vld [vmem:[#allocation2 + $0x68] sm:$0x1]  ;;  %v20244_v21 = vld [vmem:[#allocation6 + $0xc8] sm:$0xff]  }
 0x188   : > { %18111 = vmatprep.mubr.bf16.mxu1 %v25987_v59  ;;  %v22051_v3 = vsel %vm21274_vm9, %v2004_v38, %v2005_v29  ;;  %v22055_v13 = vsel %vm21274_vm9, %v16514_v7, %v2009_v1  ;;  %25990 = vst [vmem:[#allocation37_spill] sm:$0xff] %v22057_v6  ;;  %v4532_v20 = vsel %vm21116_vm5, %v4527_v47, %v21991_v11  ;;  %v22072_v38 = vld [vmem:[#allocation2 + $0xb4] sm:$0xe]  ;;  %v4396_v1 = vld [vmem:[#allocation2 + $0x6c] sm:$0xf]  ;;  %v4570_v23 = vrot.slane %v4568_v49, 4 }
 0x189   : > { %25988 = vst [vmem:[#allocation35_spill] sm:$0xff] %v22051_v3  ;;  %25989 = vst [vmem:[#allocation36_spill] sm:$0xff] %v22055_v13  ;;  %v4542_v33 = vsel %vm21116_vm5, %v4537_v51, %v4541_v44  ;;  %v22066_v40 = vsel %vm21274_vm9, %v2011_v12, %v2012_v9  ;;  %v22070_v29 = vsel %vm21274_vm9, %v16515_v24, %v2016_v4  ;;  %v4573_v44 = vrot.slane %v4571_v54, 5  ;;  %v22081_v7 = vld [vmem:[#allocation2 + $0x70] sm:$0xf]  ;;  %v20248_v22 = vld [vmem:[#allocation6 + $0xd0] sm:$0xff]  }
 0x18a   : > { %25991 = vst [vmem:[#allocation38_spill] sm:$0xff] %v22066_v40  ;;  %25992 = vst [vmem:[#allocation39_spill] sm:$0xff] %v22070_v29  ;;  %v4556_v35 = vsel %vm21116_vm5, %v4551_v61, %v22016_v63  ;;  %v22079_v11 = vsel %vm21274_vm9, %v2018_v36, %v2019_v50  ;;  %v4566_v4 = vsel %vm21116_vm5, %v4561_v8, %v4565_v37  ;;  %v22085_v31 = vrot.slane %v4577_v41, 5  ;;  %v4399_v36 = vld [vmem:[#allocation2 + $0x78] sm:$0xf]  ;;  %v26015_v3 = vld [vmem:[#allocation22_spill] sm:$0xff] }
 0x18b   : > { %25993 = vst [vmem:[#allocation40_spill] sm:$0xff] %v22079_v11  ;;  %25994 = vst [vmem:[#allocation41_spill] sm:$0xff] %v22081_v7  ;;  %v22087_v47 = vrot.slane %v4581_v5, 4  ;;  %v4587_v51 = vshll.u32 %v22057_v6, 16  ;;  %v22090_v63 = vcombine.low %v4508_v48, %v4518_v18  ;;  %v4592_v54 = vshrl.u32 %v4396_v1, 16  ;;  %v20249_v50 = vld [vmem:[#allocation2 + $0xb4] sm:$0xff]  }
 0x18c   : > { %v4595_v12 = vshll.u32 %v4396_v1, 16  ;;  %v25995_v9 = vcombine.low %v21778_v42, %v21782_v2  ;;  %v22097_v61 = vcombine.low %v4532_v20, %v4542_v33  ;;  %v4601_v59 = vshll.u32 %v22081_v7, 16  ;;  %v22112_v41 = vld [vmem:[#allocation2 + $0x74] sm:$0x1]  ;;  %v22114_v5 = vld [vmem:[#allocation2 + $0x7c] sm:$0xf] }
 0x18d   : > { %18324 = vmatmul.mubr.bf16.gmra.mrb[20].mxu0 %v20245_v52  ;;  %v4605_v52 = vshrl.u32 %v22081_v7, 16  ;;  %v25996_v28 = vcombine.low %v21786_v14, %v21795_v43  ;;  %v22107_v42 = vcombine.low %v4556_v35, %v4566_v4  ;;  %v4574_v8 = vor.u32 %v4573_v44, %v4570_v23  ;;  %25998 = vst [vmem:[#allocation43_spill] sm:$0xff] %v22112_v41  ;;  %v22120_v48 = vld [vmem:[#allocation2 + $0xb8] sm:$0xf]  ;;  %v22123_v20 = vld [vmem:[#allocation2 + $0xbc] sm:$0x1] }
 0x18e   : > { %18327 = vmatprep.mubr.bf16.mxu0 %v20247_v60  ;;  %25999 = vst [vmem:[#allocation44_spill] sm:$0xff] %v22114_v5  ;;  %v4402_v60 = vld [vmem:[#allocation2 + $0x84] sm:$0xf]  ;;  %v4584_v14 = vor.u32 %v22087_v47, %v22085_v31  ;;  %v22118_v43 = vrot.slane %v4587_v51, 5  ;;  %v22126_v1 = vld [vmem:[#allocation2 + $0x88] sm:$0xf] }
 0x18f   : > { %18112 = vmatmul.mubr.bf16.vlgmr.msra.gmra.mrb[0].mxu1 %v25995_v9  ;;  %25997 = vst [vmem:[#allocation42_spill] sm:$0xff] %v22107_v42  ;;  %26000 = vst [vmem:[#allocation45_spill] sm:$0xff] %v22126_v1  ;;  %v4594_v35 = vrot.slane %v4592_v54, 4  ;;  %v4597_v23 = vrot.slane %v4595_v12, 5  ;;  %v4616_v44 = vshrl.u32 %v4399_v36, 16  ;;  %v4619_v4 = vshll.u32 %v4399_v36, 16 }
 0x190   : > { %18144 = vmatpush3.bf16.msra.mxu1 %v21863_v19  ;;  %18115 = vmatprep.mubr.bf16.mxu1 %v25996_v28  ;;  %v20251_v19 = vld [vmem:[#allocation2 + $0xc0] sm:$0xff]   ;;  %v4405_v9 = vld [vmem:[#allocation2 + $0x90] sm:$0xf]  ;;  %v22128_v28 = vrot.slane %v4601_v59, 5  ;;  %v4607_v47 = vrot.slane %v4605_v52, 4  ;;  %v4625_v51 = vshll.u32 %v22114_v5, 16 }
 0x191   : > { %18145 = vmatprep.subr.bf16.mxu1 %v20244_v21  ;;  %v4629_v2 = vshrl.u32 %v22114_v5, 16  ;;  %v22132_v24 = vld [vmem:[#allocation2 + $0x94] sm:$0xf]  ;;  %v4640_v49 = vshrl.u32 %v4402_v60, 16  ;;  %v4643_v37 = vshll.u32 %v4402_v60, 16  ;;  %v4649_v33 = vshll.u32 %v22126_v1, 16 }
 0x192   : > { %26001 = vst [vmem:[#allocation46_spill] sm:$0xff] %v22132_v24  ;;  %v4653_v54 = vshrl.u32 %v22126_v1, 16  ;;  %v20252_v12 = vld [vmem:[#allocation6 + $0xd8] sm:$0xff]   ;;  %v22136_v36 = vrot.slane %v4574_v8, 4  ;;  %v4611_v59 = vshll.u32 %v22112_v41, 16  ;;  %v4664_v52 = vshrl.u32 %v4405_v9, 16 }
 0x193   : > { %v4667_v18 = vshll.u32 %v4405_v9, 16  ;;  %v22139_v5 = vld [vmem:[#allocation2 + $0x80] sm:$0x1]  ;;  %v4618_v7 = vrot.slane %v4616_v44, 4  ;;  %v4673_v60 = vshll.u32 %v22132_v24, 16  ;;  %v4677_v6 = vshrl.u32 %v22132_v24, 16 }
 0x194   : > { %18146 = vmatpush3.bf16.msra.mxu1 %v20244_v21  ;;  %26002 = vst [vmem:[#allocation47_spill] sm:$0xff] %v22139_v5  ;;  %v4621_v21 = vrot.slane %v4619_v4, 5  ;;  %v26003_v1 = vcombine.low %v21802_v46, %v21807_v0  ;;  %v20255_v8 = vld [vmem:[#allocation6 + $0xe0] sm:$0xff]   ;;  %v4598_v11 = vor.u32 %v4597_v23, %v4594_v35  ;;  %v4608_v41 = vor.u32 %v4607_v47, %v22128_v28  ;;  %v22149_v9 = vld [vmem:[#allocation2 + $0x8c] sm:$0x1]  ;;  %v26006_v4 = vld [vmem:[#allocation20_spill] sm:$0xff] }
 0x195   : > { %18147 = vmatprep.subr.bf16.mxu1 %v20248_v22  ;;  %18328 = vmatmul.mubr.bf16.gmra.mrb[24].mxu0 %v20249_v50  ;;  %v20253_v50 = vld [vmem:[#allocation2 + $0xcc] sm:$0xff]   ;;  %v22147_v29 = vrot.slane %v4625_v51, 5  ;;  %26004 = vst [vmem:[#allocation48_spill] sm:$0xff] %v22149_v9  ;;  %v22151_v44 = vld [vmem:[#allocation2 + $0x98] sm:$0x1]  ;;  %v26007_v40 = vcombine.low %v21819_v27, %v26006_v4  ;;  %v4642_v24 = vrot.slane %v4640_v49, 4 }
 0x196   : > { %18331 = vmatprep.mubr.bf16.mxu0 %v20251_v19  ;;  %v4631_v19 = vrot.slane %v4629_v2, 4  ;;  %26005 = vst [vmem:[#allocation49_spill] sm:$0xff] %v22151_v44  ;;  %v4645_v46 = vrot.slane %v4643_v37, 5  ;;  %v22156_v0 = vrot.slane %v4649_v33, 5  ;;  %v4408_v35 = vld [vmem:[#allocation2 + $0x9c] sm:$0xf]  ;;  %v4622_v27 = vor.u32 %v4621_v21, %v4618_v7 }
 0x197   : > { %18116 = vmatmul.mubr.bf16.gmra.mrb[4].mxu1 %v26003_v1  ;;  %v4655_v1 = vrot.slane %v4653_v54, 4  ;;  %v22158_v23 = vrot.slane %v4584_v14, 4  ;;  %v26008_v2 = vrot.slane %v22120_v48, 5  ;;  %v4666_v51 = vrot.slane %v4664_v52, 4  ;;  %v22164_v17 = vld [vmem:[#allocation2 + $0xa0] sm:$0xf] }
 0x198   : > { %18119 = vmatprep.mubr.bf16.mxu1 %v26007_v40  ;;  %18148 = vmatpush3.bf16.msra.mxu1 %v20248_v22  ;;  %v4669_v13 = vrot.slane %v4667_v18, 5  ;;  %26009 = vst [vmem:[#allocation20_spill] sm:$0xff] %v22164_v17  ;;  %v4635_v40 = vshll.u32 %v22139_v5, 16  ;;  %v22167_v49 = vrot.slane %v4673_v60, 5  ;;  %v4679_v22 = vrot.slane %v4677_v6, 4  ;;  %v20257_v6 = vld [vmem:[#allocation6 + $0xe8] sm:$0xff]  }
 0x199   : > { %18149 = vmatprep.subr.bf16.mxu1 %v20252_v12  ;;  %v22162_v47 = vrot.slane %v26008_v2, 4  ;;  %v22169_v37 = vld [vmem:[#allocation2 + $0xa4] sm:$0x1]  ;;  %v4411_v33 = vld [vmem:[#allocation2 + $0xa8] sm:$0xf]  ;;  %v22171_v54 = vrot.slane %v4598_v11, 4  ;;  %v4632_v52 = vor.u32 %v4631_v19, %v22147_v29  ;;  %v4646_v18 = vor.u32 %v4645_v46, %v4642_v24 }
 0x19a   : > { %26010 = vst [vmem:[#allocation50_spill] sm:$0xff] %v22169_v37  ;;  %v22173_v14 = vrot.slane %v4608_v41, 4  ;;  %v22175_v4 = vrot.slane %v4611_v59, 5  ;;  %v4656_v7 = vor.u32 %v4655_v1, %v22156_v0  ;;  %v4659_v21 = vshll.u32 %v22149_v9, 16  ;;  %v22189_v46 = vld [vmem:[#allocation2 + $0xac] sm:$0xf] }
 0x19b   : > { %v4683_v60 = vshll.u32 %v22151_v44, 16  ;;  %v4670_v2 = vor.u32 %v4669_v13, %v4666_v51  ;;  %v4688_v11 = vshrl.u32 %v4408_v35, 16  ;;  %v4691_v5 = vshll.u32 %v4408_v35, 16  ;;  %v26012_v1 = vld [vmem:[#allocation21_spill] sm:$0xff]  ;;  %v20259_v13 = vld [vmem:[#allocation6 + $0xf0] sm:$0xff]  }
 0x19c   : > { %18150 = vmatpush3.bf16.msra.mxu1 %v20252_v12  ;;  %v4697_v41 = vshll.u32 %v22164_v17, 16  ;;  %v22183_v59 = vrot.slane %v4622_v27, 4  ;;  %v22185_v12 = vrot.slane %v4635_v40, 5  ;;  %v4680_v24 = vor.u32 %v4679_v22, %v22167_v49  ;;  %v4414_v9 = vld [vmem:[#allocation2 + $0xb4] sm:$0xf]  ;;  %v26016_v22 = vld [vmem:[#allocation23_spill] sm:$0xff] }
 0x19d   : > { %18332 = vmatmul.mubr.bf16.gmra.mrb[28].mxu0 %v20253_v50  ;;  %18151 = vmatprep.subr.bf16.mxu1 %v20255_v8  ;;  %v4701_v19 = vshrl.u32 %v22164_v17, 16  ;;  %v26011_v50 = vld [vmem:[#allocation19_spill] sm:$0xff]  ;;  %v22194_v35 = vrot.slane %v4632_v52, 4  ;;  %v4707_v51 = vshll.u32 %v22169_v37, 16  ;;  %v4715_v27 = vshll.u32 %v4411_v33, 16 }
 0x19e   : > { %18351 = vmatprep.mubr.bf16.mxu0 %v21940_v39  ;;  %v26013_v44 = vcombine.low %v26011_v50, %v26012_v1  ;;  %v4712_v39 = vshrl.u32 %v4411_v33, 16  ;;  %v22197_v40 = vld [vmem:[#allocation2 + $0xb8] sm:$0xf]  ;;  %v26017_v58 = vcombine.low %v26015_v3, %v26016_v22  ;;  %v22202_v17 = vrot.slane %v4646_v18, 4  ;;  %v4417_v50 = vld [vmem:[#allocation2 + $0xc0] sm:$0xf] }
 0x19f   : > { %26014 = vst [vmem:[#allocation19_spill] sm:$0xff] %v22197_v40  ;;  %v22204_v16 = vrot.slane %v4656_v7, 4  ;;  %v22208_v52 = vrot.slane %v4683_v60, 5  ;;  %v20258_v1 = vld [vmem:[#allocation6 + $0x208] sm:$0xff]   ;;  %v22210_v33 = vrot.slane %v4670_v2, 4  ;;  %v22212_v37 = vrot.slane %v4688_v11, 4 }
 0x1a0   : > { %18120 = vmatmul.mubr.bf16.gmra.mrb[8].mxu1 %v26013_v44  ;;  %v22206_v44 = vrot.slane %v4659_v21, 5  ;;  %v22214_v42 = vrot.slane %v4691_v5, 5  ;;  %v22216_v3 = vrot.slane %v4697_v41, 5  ;;  %v26020_v18 = vrot.slane %v22120_v48, 5  ;;  %v22234_v2 = vld [vmem:[#allocation2 + $0xb0] sm:$0x1] }
 0x1a1   : > { %18123 = vmatprep.mubr.bf16.mxu1 %v26017_v58  ;;  %18152 = vmatpush3.bf16.msra.mxu1 %v20255_v8  ;;  %26018 = vst [vmem:[#allocation21_spill] sm:$0xff] %v22208_v52  ;;  %v22218_v58 = vld [vmem:[#allocation2 + $0xc4] sm:$0xf]  ;;  %v4580_v8 = vsel %vm21116_vm5, %v22136_v36, %v22085_v31  ;;  %v26021_v7 = vrot.slane %v22072_v38, 9  ;;  %v22232_v60 = vrot.slane %v4680_v24, 4  ;;  %v4703_v5 = vrot.slane %v4701_v19, 4 }
 0x1a2   : > { %18153 = vmatprep.subr.bf16.mxu1 %v20257_v6  ;;  %26019 = vst [vmem:[#allocation22_spill] sm:$0xff] %v22218_v58  ;;  %26022 = vst [vmem:[#allocation23_spill] sm:$0xff] %v22234_v2  ;;  %v20261_v11 = vld [vmem:[#allocation6 + $0xf8] sm:$0xff]   ;;  %v22236_v41 = vrot.slane %v4707_v51, 5  ;;  %v22238_v22 = vrot.slane %v4712_v39, 4  ;;  %v22240_v52 = vrot.slane %v4715_v27, 5  ;;  %v4590_v19 = vsel %vm21116_vm5, %v22158_v23, %v22118_v43 }
 0x1a3   : > { %v22230_v21 = vsel %vm21274_vm9, %v26021_v7, %v26020_v18  ;;  %v4721_v31 = vshll.u32 %v22189_v46, 16  ;;  %v4725_v38 = vshrl.u32 %v22189_v46, 16  ;;  %v4736_v48 = vshrl.u32 %v4414_v9, 16  ;;  %v4420_v27 = vld [vmem:[#allocation2 + $0xcc] sm:$0xf] }
 0x1a4   : > { %v4739_v36 = vshll.u32 %v4414_v9, 16  ;;  %v4745_v24 = vshll.u32 %v22197_v40, 16  ;;  %v26023_v51 = vrot.slane %v22123_v20, 5  ;;  %v4749_v39 = vshrl.u32 %v22197_v40, 16 }
 0x1a5   : > { %18154 = vmatpush3.bf16.msra.mxu1 %v20257_v6  ;;  %18352 = vmatmul.mubr.bf16.vlgmr.msra.gmra.mrb[0].mxu0 %v22002_v53  ;;  %v4760_v9 = vshrl.u32 %v4417_v50, 16  ;;  %v4604_v53 = vsel %vm21116_vm5, %v22171_v54, %v22128_v28  ;;  %v4694_v43 = vor.u32 %v22214_v42, %v22212_v37  ;;  %v4763_v20 = vshll.u32 %v4417_v50, 16  ;;  %v22280_v50 = vld [vmem:[#allocation2 + $0xbc] sm:$0x1] }
 0x1a6   : > { %18155 = vmatprep.subr.bf16.mxu1 %v20259_v13  ;;  %v22255_v6 = vsel %vm21274_vm9, %v22162_v47, %v26023_v51  ;;  %18384 = vmatpush3.bf16.msra.mxu0 %v21996_v25  ;;  %v4769_v23 = vshll.u32 %v22218_v58, 16  ;;  %v22267_v47 = vld [vmem:[#allocation2 + $0xd0] sm:$0xf]  ;;  %v26025_v18 = vcombine.low %v21875_v62, %v21895_v57  ;;  %v20260_v25 = vld [vmem:[#allocation6 + $0x210] sm:$0xff]   ;;  %v22273_v7 = vrot.slane %v4721_v31, 5  ;;  %26027 = vst [vmem:[#allocation52_spill] sm:$0xff] %v22280_v50 }
 0x1a7   : > { %18355 = vmatprep.mubr.bf16.mxu0 %v22032_v32  ;;  %26024 = vst [vmem:[#allocation51_spill] sm:$0xff] %v22267_v47  ;;  %18385 = vmatprep.subr.bf16.mxu0 %v20258_v1  ;;  %v4704_v32 = vor.u32 %v4703_v5, %v22216_v3  ;;  %v4731_v28 = vshll.u32 %v22234_v2, 16  ;;  %v4773_v54 = vshrl.u32 %v22218_v58, 16  ;;  %v26026_v42 = vcombine.low %v21881_v10, %v21899_v45  ;;  %v20262_v31 = vld [vmem:[#allocation6 + $0x218] sm:$0xff]   ;;  %v26054_v2 = vld [vmem:[#allocation33_spill] sm:$0xff] }
 0x1a8   : > { %18124 = vmatmul.mubr.bf16.gmra.mrb[12].mxu1 %v26025_v18  ;;  %v4727_v37 = vrot.slane %v4725_v38, 4  ;;  %v4738_v62 = vrot.slane %v4736_v48, 4  ;;  %v4741_v57 = vrot.slane %v4739_v36, 5  ;;  %v22282_v51 = vrot.slane %v4745_v24, 5  ;;  %v22298_v58 = vld [vmem:[#allocation2 + $0xd4] sm:$0x1] }
 0x1a9   : > { %18127 = vmatprep.mubr.bf16.mxu1 %v26026_v42  ;;  %18156 = vmatpush3.bf16.msra.mxu1 %v20259_v13  ;;  %v4614_v5 = vsel %vm21116_vm5, %v22173_v14, %v22175_v4  ;;  %v4718_v18 = vor.u32 %v22240_v52, %v22238_v22  ;;  %v4751_v10 = vrot.slane %v4749_v39, 4  ;;  %v4762_v45 = vrot.slane %v4760_v9, 4  ;;  %v22290_v13 = vld [vmem:[#allocation2 + $0xc8] sm:$0x1]  ;;  %26029 = vst [vmem:[#allocation54_spill] sm:$0xff] %v22298_v58 }
 0x1aa   : > { %18157 = vmatprep.subr.bf16.mxu1 %v20261_v11  ;;  %18386 = vmatpush3.bf16.msra.mxu0 %v20258_v1  ;;  %26028 = vst [vmem:[#allocation53_spill] sm:$0xff] %v22290_v13  ;;  %v4765_v38 = vrot.slane %v4763_v20, 5  ;;  %v22292_v48 = vrot.slane %v4769_v23, 5  ;;  %v4784_v36 = vshrl.u32 %v4420_v27, 16  ;;  %v4787_v24 = vshll.u32 %v4420_v27, 16  ;;  %v20265_v27 = vld [vmem:[#allocation6 + $0x220] sm:$0xff]  }
 0x1ab   : > { %18387 = vmatprep.subr.bf16.mxu0 %v20260_v25  ;;  %v22294_v42 = vcombine.low %v4580_v8, %v4590_v19  ;;  %v4775_v4 = vrot.slane %v4773_v54, 4  ;;  %v4793_v52 = vshll.u32 %v22267_v47, 16  ;;  %v22301_v1 = vrot.slane %v4694_v43, 4  ;;  %v22311_v19 = vld [vmem:[#allocation6 + $0x100] sm:$0xff]  }
 0x1ac   : > { %v22303_v22 = vrot.slane %v4704_v32, 4  ;;  %v22305_v39 = vrot.slane %v4731_v28, 5  ;;  %v4797_v9 = vshrl.u32 %v22267_v47, 16  ;;  %v22309_v8 = vcombine.low %v4604_v53, %v4614_v5  ;;  %v22327_v14 = vld [vmem:[#allocation2 + $0x18] sm:$0xe] }
 0x1ad   : > { %18158 = vmatpush3.bf16.msra.mxu1 %v20261_v11  ;;  %18356 = vmatmul.mubr.bf16.gmra.mrb[4].mxu0 %v22090_v63  ;;  %v22314_v20 = vrot.slane %v4718_v18, 4  ;;  %v4728_v11 = vor.u32 %v4727_v37, %v22273_v7  ;;  %v4755_v43 = vshll.u32 %v22280_v50, 16  ;;  %v4742_v23 = vor.u32 %v4741_v57, %v4738_v62 }
 0x1ae   : > { %19295 = vmatprep.subr.bf16.mxu1 %v22311_v19  ;;  %18359 = vmatprep.mubr.bf16.mxu0 %v22097_v61  ;;  %v4752_v32 = vor.u32 %v4751_v10, %v22282_v51  ;;  %v4786_v63 = vrot.slane %v4784_v36, 4  ;;  %v4789_v53 = vrot.slane %v4787_v24, 5  ;;  %v26030_v28 = vcombine.low %v21903_v55, %v21914_v56  ;;  %v22353_v10 = vld [vmem:[#allocation2 + $0x24] sm:$0xe]  ;;  %v26032_v24 = vld [vmem:[#allocation21_spill] sm:$0xff] }
 0x1af   : > { %18388 = vmatpush3.bf16.msra.mxu0 %v20260_v25  ;;  %v4766_v54 = vor.u32 %v4765_v38, %v4762_v45  ;;  %v4776_v5 = vor.u32 %v4775_v4, %v22292_v48  ;;  %v4779_v37 = vshll.u32 %v22290_v13, 16  ;;  %v22325_v18 = vrot.slane %v4793_v52, 5  ;;  %v26055_v13 = vld [vmem:[#allocation36_spill] sm:$0xff] }
 0x1b0   : > { %18128 = vmatmul.mubr.bf16.gmra.mrb[16].mxu1 %v26030_v28  ;;  %18389 = vmatprep.subr.bf16.mxu0 %v20262_v31  ;;  %v26031_v61 = vcombine.low %v21924_v15, %v21930_v26  ;;  %v4628_v55 = vsel %vm21116_vm5, %v22183_v59, %v22147_v29  ;;  %v4638_v56 = vsel %vm21116_vm5, %v22194_v35, %v22185_v12  ;;  %v4799_v25 = vrot.slane %v4797_v9, 4  ;;  %v20268_v26 = vld [vmem:[#allocation6 + $0x228] sm:$0xff]   ;;  %v2760_v28 = vld [vmem:[#allocation2 + $0x6c] sm:$0xf] }
 0x1b1   : > { %v4803_v62 = vshll.u32 %v22298_v58, 16  ;;  %v4652_v57 = vsel %vm21116_vm5, %v22202_v17, %v22156_v0  ;;  %v4662_v15 = vsel %vm21116_vm5, %v22204_v16, %v22206_v44  ;;  %v22349_v29 = vrot.slane %v4728_v11, 4  ;;  %v22361_v0 = vld [vmem:[#allocation2 + $0x1c] sm:$0xf]  ;;  %v22364_v44 = vld [vmem:[#allocation2 + $0x30] sm:$0xe] }
 0x1b2   : > { %18131 = vmatprep.mubr.bf16.mxu1 %v26031_v61  ;;  %v22351_v59 = vrot.slane %v4755_v43, 5  ;;  %v4676_v12 = vsel %vm21116_vm5, %v22210_v33, %v22167_v49  ;;  %v22359_v35 = vrot.slane %v4742_v23, 4  ;;  %v4790_v17 = vor.u32 %v4789_v53, %v4786_v63  ;;  %v26033_v9 = vld [vmem:[#allocation42_spill] sm:$0xff]  ;;  %v20271_v23 = vld [vmem:[#allocation6 + $0x230] sm:$0xff]   ;;  %v22394_v63 = vld [vmem:[#allocation2 + $0x34] sm:$0xf] }
 0x1b3   : > { %18390 = vmatpush3.bf16.msra.mxu0 %v20262_v31  ;;  %v25842_v16 = vrot.slane %v22361_v0, 5  ;;  %v22366_v45 = vrot.slane %v4752_v32, 4  ;;  %v22368_v38 = vrot.slane %v4766_v54, 4  ;;  %v22370_v31 = vrot.slane %v4776_v5, 4  ;;  %v22408_v5 = vld [vmem:[#allocation2 + $0x3c] sm:$0xe] }
 0x1b4   : > { %18391 = vmatprep.subr.bf16.mxu0 %v20265_v27  ;;  %v22372_v36 = vrot.slane %v4779_v37, 5  ;;  %v4686_v49 = vsel %vm21116_vm5, %v22232_v60, %v26032_v24  ;;  %v4800_v33 = vor.u32 %v4799_v25, %v22325_v18  ;;  %v22379_v4 = vrot.slane %v4803_v62, 5  ;;  %v22391_v60 = vld [vmem:[#allocation2 + $0x28] sm:$0xf]  ;;  %26034 = vst [vmem:[#allocation21_spill] sm:$0xff] %v22408_v5  ;;  %v26035_v37 = vld [vmem:[#allocation30_spill] sm:$0xff] }
 0x1b5   : > { %18360 = vmatmul.mubr.bf16.gmra.mrb[8].mxu0 %v26033_v9  ;;  %v4700_v11 = vsel %vm21116_vm5, %v22301_v1, %v22216_v3  ;;  %v4710_v43 = vsel %vm21116_vm5, %v22303_v22, %v22236_v41  ;;  %v25844_v32 = vrot.slane %v22391_v60, 5  ;;  %v25843_v53 = vrot.slane %v22394_v63, 5  ;;  %v22404_v41 = vld [vmem:[#allocation2 + $0x20] sm:$0x1]  ;;  %v26036_v61 = vld [vmem:[#allocation31_spill] sm:$0xff] }
 0x1b6   : > { %18363 = vmatprep.mubr.bf16.mxu0 %v22294_v42  ;;  %v22398_v54 = vrot.slane %v4790_v17, 4  ;;  %v22402_v3 = vrot.slane %v25842_v16, 4  ;;  %v26037_v25 = vcombine.low %v26035_v37, %v26036_v61  ;;  %v16661_v42 = vcombine.low %v4628_v55, %v4638_v56  ;;  %v22415_v62 = vld [vmem:[#allocation2 + $0x2c] sm:$0x1]  ;;  %v22419_v9 = vld [vmem:[#allocation2 + $0x48] sm:$0xe] }
 0x1b7   : > { %18392 = vmatpush3.bf16.msra.mxu0 %v20265_v27  ;;  %v22413_v27 = vcombine.low %v4652_v57, %v4662_v15  ;;  %26038 = vst [vmem:[#allocation42_spill] sm:$0xff] %v22419_v9  ;;  %v26039_v1 = vld [vmem:[#allocation34_spill] sm:$0xff]  ;;  %v26040_v22 = vld [vmem:[#allocation35_spill] sm:$0xff]  ;;  %v22424_v16 = vcombine.low %v4676_v12, %v4686_v49  ;;  %v22426_v37 = vcombine.low %v4700_v11, %v4710_v43  ;;  %v22428_v55 = vrot.slane %v4800_v33, 4  ;;  %v26042_v56 = vld [vmem:[#allocation25_spill] sm:$0xff] }
 0x1b8   : > { %18132 = vmatmul.mubr.bf16.gmra.mrb[20].mxu1 %v26037_v25  ;;  %18393 = vmatprep.subr.bf16.mxu0 %v20268_v26  ;;  %v26041_v52 = vcombine.low %v26039_v1, %v26040_v22  ;;  %v22431_v15 = vld [vmem:[#allocation2 + $0x54] sm:$0xe]  ;;  %v22435_v25 = vrot.slane %v25844_v32, 4  ;;  %v22439_v17 = vrot.slane %v25843_v53, 4  ;;  %v26045_v49 = vld [vmem:[#allocation26_spill] sm:$0xff]  ;;  %v2977_v1 = vshrl.u32 %v2760_v28, 16 }
 0x1b9   : > { %26043 = vst [vmem:[#allocation30_spill] sm:$0xff] %v22431_v15  ;;  %v20274_v61 = vld [vmem:[#allocation6 + $0x238] sm:$0xff]   ;;  %v2980_v22 = vshll.u32 %v2760_v28, 16  ;;  %v2763_v24 = vld [vmem:[#allocation2 + $0x78] sm:$0xf]  ;;  %v26048_v33 = vrot.slane %v26042_v56, 5  ;;  %v4748_v50 = vsel %vm21116_vm5, %v22359_v35, %v22282_v51 }
 0x1ba   : > { %18135 = vmatprep.mubr.bf16.mxu1 %v26041_v52  ;;  %v26044_v52 = vld [vmem:[#allocation24_spill] sm:$0xff]  ;;  %v22453_v11 = vld [vmem:[#allocation2 + $0x60] sm:$0xe]  ;;  %v26050_v28 = vld [vmem:[#allocation27_spill] sm:$0xff]  ;;  %v26051_v53 = vrot.slane %v26045_v49, 5  ;;  %v3001_v5 = vshrl.u32 %v2763_v24, 16 }
 0x1bb   : > { %18394 = vmatpush3.bf16.msra.mxu0 %v20268_v26  ;;  %26047 = vst [vmem:[#allocation31_spill] sm:$0xff] %v22453_v11  ;;  %v20570_v26 = vld [vmem:[#allocation2 + $0x70] sm:$0xf]  ;;  %v22457_v47 = vrot.slane %v26048_v33, 4  ;;  %v22470_v33 = vld [vmem:[#allocation2 + $0x6c] sm:$0xe] }
 0x1bc   : > { %18395 = vmatprep.subr.bf16.mxu0 %v20271_v23  ;;  %v2986_v57 = vshll.u32 %v20570_v26, 16  ;;  %v2990_v58 = vshrl.u32 %v20570_v26, 16  ;;  %v22465_v32 = vrot.slane %v26051_v53, 4  ;;  %v2979_v53 = vrot.slane %v2977_v1, 4  ;;  %v26056_v26 = vld [vmem:[#allocation38_spill] sm:$0xff]  ;;  %v26059_v51 = vld [vmem:[#allocation39_spill] sm:$0xff] }
 0x1bd   : > { %18364 = vmatmul.mubr.bf16.gmra.mrb[12].mxu0 %v22309_v8  ;;  %v4758_v8 = vsel %vm21116_vm5, %v22366_v45, %v22351_v59  ;;  %v2982_v12 = vrot.slane %v2980_v22, 5  ;;  %v26057_v40 = vcombine.low %v26055_v13, %v26056_v26  ;;  %v3004_v15 = vshll.u32 %v2763_v24, 16  ;;  %v26060_v35 = vld [vmem:[#allocation40_spill] sm:$0xff]  ;;  %v20572_v1 = vld [vmem:[#allocation2 + $0x7c] sm:$0xf] }
 0x1be   : > { %26052 = vst [vmem:[#allocation34_spill] sm:$0xff] %v22465_v32  ;;  %18367 = vmatprep.mubr.bf16.mxu0 %v16661_v42  ;;  %v22483_v56 = vrot.slane %v2986_v57, 5  ;;  %v2992_v42 = vrot.slane %v2990_v58, 4  ;;  %v2766_v32 = vld [vmem:[#allocation2 + $0x84] sm:$0xf]  ;;  %v26061_v43 = vcombine.low %v26059_v51, %v26060_v35  ;;  %v26062_v59 = vrot.slane %v26050_v28, 5 }
 0x1bf   : > { %18396 = vmatpush3.bf16.msra.mxu0 %v20271_v23  ;;  %v22495_v57 = vld [vmem:[#allocation2 + $0x78] sm:$0xe]  ;;  %v4772_v58 = vsel %vm21116_vm5, %v22368_v38, %v22292_v48  ;;  %v4782_v24 = vsel %vm21116_vm5, %v22370_v31, %v22372_v36  ;;  %v26066_v51 = vld [vmem:[#allocation44_spill] sm:$0xff]  ;;  %v26067_v13 = vrot.slane %v26054_v2, 5  ;;  %v3010_v11 = vshll.u32 %v20572_v1, 16  ;;  %v26070_v35 = vld [vmem:[#allocation43_spill] sm:$0xff] }
 0x1c0   : > { %18136 = vmatmul.mubr.bf16.gmra.mrb[24].mxu1 %v26057_v40  ;;  %18397 = vmatprep.subr.bf16.mxu0 %v20274_v61  ;;  %26058 = vst [vmem:[#allocation35_spill] sm:$0xff] %v22483_v56  ;;  %v22490_v45 = vrot.slane %v26062_v59, 4  ;;  %v26065_v40 = vld [vmem:[#allocation41_spill] sm:$0xff]  ;;  %v20263_v59 = vld [vmem:[#allocation2 + $0xc] sm:$0xff]   ;;  %v3014_v48 = vshrl.u32 %v20572_v1, 16  ;;  %v2983_v38 = vor.u32 %v2982_v12, %v2979_v53  ;;  %v3003_v28 = vrot.slane %v3001_v5, 4 }
 0x1c1   : > { %18139 = vmatprep.mubr.bf16.mxu1 %v26061_v43  ;;  %v20571_v43 = vld [vmem:[#allocation2 + $0x74] sm:$0x1]  ;;  %v22508_v23 = vrot.slane %v26067_v13, 4  ;;  %v3006_v31 = vrot.slane %v3004_v15, 5  ;;  %v26069_v36 = vrot.slane %v26065_v40, 5  ;;  %v3025_v13 = vshrl.u32 %v2766_v32, 16 }
 0x1c2   : > { %26063 = vst [vmem:[#allocation24_spill] sm:$0xff] %v22490_v45  ;;  %v2996_v26 = vshll.u32 %v20571_v43, 16  ;;  %v2993_v45 = vor.u32 %v2992_v42, %v22483_v56  ;;  %v22517_v9 = vld [vmem:[#allocation2 + $0x84] sm:$0xe]  ;;  %v2769_v2 = vld [vmem:[#allocation2 + $0x90] sm:$0xf]  ;;  %v22548_v42 = vcombine.low %v4748_v50, %v4758_v8 }
 0x1c3   : > { %18398 = vmatpush3.bf16.msra.mxu0 %v20274_v61  ;;  %26068 = vst [vmem:[#allocation26_spill] sm:$0xff] %v22508_v23  ;;  %v22514_v43 = vrot.slane %v26069_v36, 4  ;;  %v3028_v23 = vshll.u32 %v2766_v32, 16  ;;  %v26072_v5 = vrot.slane %v26066_v51, 5  ;;  %v26073_v53 = vld [vmem:[#allocation47_spill] sm:$0xff]  ;;  %v22529_v1 = vrot.slane %v3010_v11, 5 }
 0x1c4   : > { %v22520_v22 = vrot.slane %v2996_v26, 5  ;;  %v3016_v36 = vrot.slane %v3014_v48, 4  ;;  %v20573_v61 = vld [vmem:[#allocation2 + $0x88] sm:$0xf]  ;;  %v26076_v26 = vsel %vm21116_vm5, %v22349_v29, %v22305_v39  ;;  %v22546_v48 = vrot.slane %v2993_v45, 4  ;;  %v20264_v12 = vld [vmem:[#allocation2 + $0x18] sm:$0xff]  }
 0x1c5   : > { %18368 = vmatmul.mubr.bf16.gmra.mrb[16].mxu0 %v22413_v27  ;;  %v22525_v15 = vrot.slane %v26072_v5, 4  ;;  %26074 = vst [vmem:[#allocation38_spill] sm:$0xff] %v22529_v1  ;;  %v3034_v32 = vshll.u32 %v20573_v61, 16  ;;  %v3038_v56 = vshrl.u32 %v20573_v61, 16  ;;  %v26075_v27 = vcombine.low %v22230_v21, %v22255_v6  ;;  %v26079_v39 = vld [vmem:[#allocation18_spill] sm:$0xff] }
 0x1c6   : > { %26071 = vst [vmem:[#allocation36_spill] sm:$0xff] %v22520_v22  ;;  %18371 = vmatprep.mubr.bf16.mxu0 %v22424_v16  ;;  %v26077_v16 = vsel %vm21116_vm5, %v22314_v20, %v22273_v7  ;;  %v22544_v5 = vrot.slane %v2983_v38, 4  ;;  %26078 = vst [vmem:[#allocation39_spill] sm:$0xff] %v22546_v48  ;;  %v3007_v61 = vor.u32 %v3006_v31, %v3003_v28  ;;  %v3027_v6 = vrot.slane %v3025_v13, 4  ;;  %v26082_v28 = vld [vmem:[#allocation45_spill] sm:$0xff]  ;;  %v26085_v31 = vld [vmem:[#allocation48_spill] sm:$0xff] }
 0x1c7   : > { %v16665_v11 = vcombine.low %v26077_v16, %v26076_v26  ;;  %v22550_v21 = vcombine.low %v4772_v58, %v4782_v24  ;;  %v26080_v29 = vshll.u32 %v26079_v39, 16  ;;  %v3049_v20 = vshrl.u32 %v2769_v2, 16  ;;  %v20266_v26 = vld [vmem:[#allocation2 + $0x24] sm:$0xff]   ;;  %v22561_v58 = vld [vmem:[#allocation2 + $0x90] sm:$0xe] }
 0x1c8   : > { %18140 = vmatmul.mubr.bf16.gmra.mrb[28].mxu1 %v26075_v27  ;;  %v3030_v27 = vrot.slane %v3028_v23, 5  ;;  %v3052_v38 = vshll.u32 %v2769_v2, 16  ;;  %v3017_v45 = vor.u32 %v3016_v36, %v22529_v1  ;;  %v22559_v50 = vrot.slane %v3034_v32, 5  ;;  %v2772_v23 = vld [vmem:[#allocation2 + $0x9c] sm:$0xf] }
 0x1c9   : > { %18159 = vmatprep.mubr.bf16.mxu1 %v20263_v59  ;;  %v22554_v22 = vrot.slane %v26080_v29, 5  ;;  %v3040_v8 = vrot.slane %v3038_v56, 4  ;;  %v22563_v24 = vrot.slane %v3007_v61, 4  ;;  %v20574_v16 = vld [vmem:[#allocation2 + $0x8c] sm:$0x1]  ;;  %v26086_v29 = vld [vmem:[#allocation46_spill] sm:$0xff] }
 0x1ca   : > { %26083 = vst [vmem:[#allocation41_spill] sm:$0xff] %v22559_v50  ;;  %v3044_v39 = vshll.u32 %v20574_v16, 16  ;;  %v25865_v7 = vrot.slane %v26086_v29, 5  ;;  %v26087_v2 = vrot.slane %v22361_v0, 5  ;;  %v26088_v36 = vrot.slane %v22327_v14, 9 }
 0x1cb   : > { %26081 = vst [vmem:[#allocation40_spill] sm:$0xff] %v22554_v22  ;;  %26084 = vst [vmem:[#allocation44_spill] sm:$0xff] %v22563_v24  ;;  %v3031_v56 = vor.u32 %v3030_v27, %v3027_v6  ;;  %v3051_v59 = vrot.slane %v3049_v20, 4  ;;  %v20575_v22 = vld [vmem:[#allocation2 + $0x94] sm:$0xf]  ;;  %v26089_v16 = vrot.slane %v22404_v41, 5  ;;  %v3041_v20 = vor.u32 %v3040_v8, %v22559_v50 }
 0x1cc   : > { %v22573_v32 = vsel %vm21274_vm9, %v26088_v36, %v26087_v2  ;;  %v3058_v1 = vshll.u32 %v20575_v22, 16  ;;  %v3054_v0 = vrot.slane %v3052_v38, 5  ;;  %v3062_v2 = vshrl.u32 %v20575_v22, 16  ;;  %v20576_v36 = vld [vmem:[#allocation2 + $0x98] sm:$0x1] }
 0x1cd   : > { %18372 = vmatmul.mubr.bf16.gmra.mrb[20].mxu0 %v22426_v37  ;;  %v22585_v14 = vsel %vm21274_vm9, %v22402_v3, %v26089_v16  ;;  %v22587_v6 = vrot.slane %v3017_v45, 4  ;;  %v26091_v27 = vrot.slane %v26082_v28, 5  ;;  %v3068_v13 = vshll.u32 %v20576_v36, 16  ;;  %v22594_v61 = vld [vmem:[#allocation2 + $0x9c] sm:$0xe] }
 0x1ce   : > { %18375 = vmatprep.mubr.bf16.mxu0 %v16665_v11  ;;  %v22596_v41 = vrot.slane %v3044_v39, 5  ;;  %v26093_v38 = vld [vmem:[#allocation49_spill] sm:$0xff]  ;;  %v3073_v11 = vshrl.u32 %v2772_v23, 16  ;;  %v22601_v45 = vrot.slane %v3031_v56, 4  ;;  %v22605_v8 = vrot.slane %v25865_v7, 4  ;;  %v20267_v39 = vld [vmem:[#allocation2 + $0x30] sm:$0xff]  }
 0x1cf   : > { %26090 = vst [vmem:[#allocation43_spill] sm:$0xff] %v22587_v6  ;;  %v22591_v37 = vrot.slane %v26091_v27, 4  ;;  %v3076_v16 = vshll.u32 %v2772_v23, 16  ;;  %v20577_v27 = vld [vmem:[#allocation2 + $0xa0] sm:$0xf]  ;;  %v3055_v3 = vor.u32 %v3054_v0, %v3051_v59  ;;  %v22607_v50 = vrot.slane %v3058_v1, 5 }
 0x1d0   : > { %18160 = vmatmul.mubr.bf16.vlgmr.msra.gmra.mrb[0].mxu1 %v20264_v12  ;;  %26092 = vst [vmem:[#allocation47_spill] sm:$0xff] %v22596_v41  ;;  %26094 = vst [vmem:[#allocation18_spill] sm:$0xff] %v22601_v45  ;;  %v3082_v36 = vshll.u32 %v20577_v27, 16  ;;  %v2775_v12 = vld [vmem:[#allocation2 + $0xa8] sm:$0xf]  ;;  %v20578_v41 = vld [vmem:[#allocation6 + $0x108] sm:$0xff]  }
 0x1d1   : > { %19303 = vmatpush3.bf16.msra.mxu1 %v22311_v19  ;;  %18163 = vmatprep.mubr.bf16.mxu1 %v20266_v26  ;;  %v3064_v22 = vrot.slane %v3062_v2, 4  ;;  %v3086_v6 = vshrl.u32 %v20577_v27, 16  ;;  %v20269_v19 = vld [vmem:[#allocation2 + $0x3c] sm:$0xff]   ;;  %v22609_v26 = vrot.slane %v3041_v20, 4  ;;  %v22611_v56 = vrot.slane %v3068_v13, 5  ;;  %v26098_v0 = vld [vmem:[#allocation20_spill] sm:$0xff] }
 0x1d2   : > { %19296 = vmatprep.subr.bf16.mxu1 %v20578_v41  ;;  %v3075_v45 = vrot.slane %v3073_v11, 4  ;;  %v3078_v7 = vrot.slane %v3076_v16, 5  ;;  %v26096_v24 = vrot.slane %v22391_v60, 5  ;;  %v26097_v48 = vrot.slane %v22353_v10, 9  ;;  %v20579_v11 = vld [vmem:[#allocation6 + $0x110] sm:$0xff]  }
 0x1d3   : > { %26095 = vst [vmem:[#allocation45_spill] sm:$0xff] %v22611_v56  ;;  %v4806_v13 = vsel %vm21116_vm5, %v22428_v55, %v22379_v4  ;;  %v26099_v20 = vrot.slane %v22394_v63, 5  ;;  %v26100_v60 = vrot.slane %v22364_v44, 9  ;;  %v3065_v16 = vor.u32 %v3064_v22, %v22607_v50  ;;  %v22643_v4 = vld [vmem:[#allocation2 + $0xa8] sm:$0xe]  ;;  %v26103_v44 = vld [vmem:[#allocation50_spill] sm:$0xff] }
 0x1d4   : > { %v22621_v1 = vsel %vm21274_vm9, %v26097_v48, %v26096_v24  ;;  %v22637_v48 = vrot.slane %v3082_v36, 5  ;;  %v3088_v24 = vrot.slane %v3086_v6, 4  ;;  %v3097_v63 = vshrl.u32 %v2775_v12, 16  ;;  %v20580_v36 = vld [vmem:[#allocation2 + $0xa4] sm:$0x1] }
 0x1d5   : > { %19304 = vmatpush3.bf16.msra.mxu1 %v20578_v41  ;;  %v22635_v10 = vsel %vm21274_vm9, %v26100_v60, %v26099_v20  ;;  %18376 = vmatmul.mubr.bf16.gmra.mrb[24].mxu0 %v22548_v42  ;;  %v22640_v41 = vrot.slane %v3055_v3, 4  ;;  %v3100_v55 = vshll.u32 %v2775_v12, 16  ;;  %v3079_v20 = vor.u32 %v3078_v7, %v3075_v45  ;;  %v20581_v6 = vld [vmem:[#allocation2 + $0xac] sm:$0xf]  ;;  %v2778_v23 = vld [vmem:[#allocation2 + $0xb4] sm:$0xf] }
 0x1d6   : > { %26101 = vst [vmem:[#allocation48_spill] sm:$0xff] %v22637_v48  ;;  %19297 = vmatprep.subr.bf16.mxu1 %v20579_v11  ;;  %18379 = vmatprep.mubr.bf16.mxu0 %v22550_v21  ;;  %v3092_v60 = vshll.u32 %v20580_v36, 16  ;;  %v3106_v59 = vshll.u32 %v20581_v6, 16  ;;  %v3099_v3 = vrot.slane %v3097_v63, 4  ;;  %v3110_v22 = vshrl.u32 %v20581_v6, 16 }
 0x1d7   : > { %26102 = vst [vmem:[#allocation46_spill] sm:$0xff] %v22640_v41  ;;  %v3102_v2 = vrot.slane %v3100_v55, 5  ;;  %v26104_v12 = vrot.slane %v22415_v62, 5  ;;  %v26105_v7 = vrot.slane %v26098_v0, 5  ;;  %v22662_v63 = vld [vmem:[#allocation2 + $0xb4] sm:$0xe]  ;;  %v26107_v62 = vsel %vm21116_vm5, %v22398_v54, %v22325_v18 }
 0x1d8   : > { %18164 = vmatmul.mubr.bf16.gmra.mrb[4].mxu1 %v20267_v39  ;;  %v3089_v39 = vor.u32 %v3088_v24, %v22637_v48  ;;  %v22660_v36 = vrot.slane %v3106_v59, 5  ;;  %v20270_v55 = vld [vmem:[#allocation2 + $0x48] sm:$0xff]   ;;  %v3112_v59 = vrot.slane %v3110_v22, 4  ;;  %v20583_v24 = vld [vmem:[#allocation2 + $0xb0] sm:$0x1]  ;;  %v22676_v27 = vrot.slane %v3065_v16, 4 }
 0x1d9   : > { %18167 = vmatprep.mubr.bf16.mxu1 %v20269_v19  ;;  %19305 = vmatpush3.bf16.msra.mxu1 %v20579_v11  ;;  %v22653_v21 = vsel %vm21274_vm9, %v22435_v25, %v26104_v12  ;;  %v22657_v45 = vrot.slane %v26105_v7, 4  ;;  %v20582_v19 = vld [vmem:[#allocation6 + $0x118] sm:$0xff]   ;;  %v16668_v25 = vcombine.low %v26107_v62, %v4806_v13  ;;  %v26108_v11 = vrot.slane %v26044_v52, 5  ;;  %v26113_v13 = vld [vmem:[#allocation23_spill] sm:$0xff] }
 0x1da   : > { %26106 = vst [vmem:[#allocation49_spill] sm:$0xff] %v22660_v36  ;;  %19298 = vmatprep.subr.bf16.mxu1 %v20582_v19  ;;  %v3116_v12 = vshll.u32 %v20583_v24, 16  ;;  %v20272_v7 = vld [vmem:[#allocation2 + $0x54] sm:$0xff]   ;;  %26109 = vst [vmem:[#allocation20_spill] sm:$0xff] %v22676_v27  ;;  %v22678_v42 = vrot.slane %v3092_v60, 5  ;;  %v3103_v56 = vor.u32 %v3102_v2, %v3099_v3  ;;  %v22681_v18 = vrot.slane %v3079_v20, 4 }
 0x1db   : > { %v22674_v6 = vsel %vm21274_vm9, %v22439_v17, %v26108_v11  ;;  %v26112_v54 = vrot.slane %v22189_v46, 5  ;;  %v3121_v62 = vshrl.u32 %v2778_v23, 16  ;;  %v22688_v22 = vrot.slane %v3089_v39, 4  ;;  %v26115_v11 = vld [vmem:[#allocation19_spill] sm:$0xff]  ;;  %v20584_v60 = vld [vmem:[#allocation2 + $0xb8] sm:$0xf] }
 0x1dc   : > { %26110 = vst [vmem:[#allocation50_spill] sm:$0xff] %v22678_v42  ;;  %26111 = vst [vmem:[#allocation55_spill] sm:$0xff] %v22681_v18  ;;  %v3124_v24 = vshll.u32 %v2778_v23, 16  ;;  %v3130_v42 = vshll.u32 %v20584_v60, 16  ;;  %v22691_v27 = vld [vmem:[#allocation2 + $0xc0] sm:$0xe]  ;;  %v3113_v3 = vor.u32 %v3112_v59, %v22660_v36  ;;  %v26117_v39 = vcombine.low %v22573_v32, %v22585_v14 }
 0x1dd   : > { %v22685_v52 = vrot.slane %v26112_v54, 4  ;;  %19306 = vmatpush3.bf16.msra.mxu1 %v20582_v19  ;;  %26114 = vst [vmem:[#allocation23_spill] sm:$0xff] %v22688_v22  ;;  %v2781_v2 = vld [vmem:[#allocation2 + $0xc0] sm:$0xf]  ;;  %18380 = vmatmul.mubr.bf16.gmra.mrb[28].mxu0 %v16668_v25  ;;  %v20585_v20 = vld [vmem:[#allocation6 + $0x120] sm:$0xff]   ;;  %v22694_v54 = vrot.slane %v3116_v12, 5  ;;  %v16694_v59 = vcombine.low %v22621_v1, %v22653_v21  ;;  %v16695_v12 = vcombine.low %v22635_v10, %v22674_v6 }
 0x1de   : > { %19299 = vmatprep.subr.bf16.mxu1 %v20585_v20  ;;  %v3134_v19 = vshrl.u32 %v20584_v60, 16  ;;  %18399 = vmatprep.mubr.bf16.mxu0 %v26117_v39  ;;  %v22700_v23 = vrot.slane %v3103_v56, 4  ;;  %v3123_v48 = vrot.slane %v3121_v62, 4  ;;  %v3126_v16 = vrot.slane %v3124_v24, 5  ;;  %v20586_v22 = vld [vmem:[#allocation2 + $0xbc] sm:$0x1] }
 0x1df   : > { %26116 = vst [vmem:[#allocation19_spill] sm:$0xff] %v22694_v54  ;;  %v3140_v18 = vshll.u32 %v20586_v22, 16  ;;  %v22702_v25 = vrot.slane %v3130_v42, 5  ;;  %v26120_v32 = vrot.slane %v26115_v11, 5  ;;  %v26121_v56 = vld [vmem:[#allocation52_spill] sm:$0xff]  ;;  %v20587_v24 = vld [vmem:[#allocation6 + $0x128] sm:$0xff]  }
 0x1e0   : > { %26118 = vst [vmem:[#allocation56_spill] sm:$0xff] %v22700_v23  ;;  %18168 = vmatmul.mubr.bf16.gmra.mrb[8].mxu1 %v20270_v55  ;;  %v3136_v41 = vrot.slane %v3134_v19, 4  ;;  %v22713_v55 = vrot.slane %v3113_v3, 4  ;;  %v3148_v22 = vshll.u32 %v2781_v2, 16  ;;  %v5144_v60 = vld [vmem:[#allocation2 + $0xcc] sm:$0xe]  ;;  %v3127_v21 = vor.u32 %v3126_v16, %v3123_v48 }
 0x1e1   : > { %26119 = vst [vmem:[#allocation57_spill] sm:$0xff] %v22702_v25  ;;  %18171 = vmatprep.mubr.bf16.mxu1 %v20272_v7  ;;  %19307 = vmatpush3.bf16.msra.mxu1 %v20585_v20  ;;  %v22710_v14 = vrot.slane %v26120_v32, 4  ;;  %v3145_v7 = vshrl.u32 %v2781_v2, 16  ;;  %v20273_v1 = vld [vmem:[#allocation2 + $0x60] sm:$0xff]   ;;  %v22716_v20 = vrot.slane %v3140_v18, 5  ;;  %v20275_v32 = vld [vmem:[#allocation2 + $0x6c] sm:$0xff]  }
 0x1e2   : > { %19300 = vmatprep.subr.bf16.mxu1 %v20587_v24  ;;  %26122 = vst [vmem:[#allocation52_spill] sm:$0xff] %v22713_v55  ;;  %v26124_v10 = vld [vmem:[#allocation22_spill] sm:$0xff]  ;;  %v3137_v62 = vor.u32 %v3136_v41, %v22702_v25  ;;  %v3150_v54 = vrot.slane %v3148_v22, 5  ;;  %v26125_v55 = vld [vmem:[#allocation25_spill] sm:$0xff]  ;;  %v26129_v48 = vld [vmem:[#allocation28_spill] sm:$0xff]  ;;  %v26131_v22 = vrot.slane %v26045_v49, 5 }
 0x1e3   : > { %26123 = vst [vmem:[#allocation58_spill] sm:$0xff] %v22716_v20  ;;  %v20588_v19 = vld [vmem:[#allocation2 + $0xc4] sm:$0xf]  ;;  %v3147_v17 = vrot.slane %v3145_v7, 4  ;;  %v26126_v23 = vrot.slane %v26125_v55, 5  ;;  %v26127_v42 = vld [vmem:[#allocation21_spill] sm:$0xff] }
 0x1e4   : > { %v3154_v39 = vshll.u32 %v20588_v19, 16  ;;  %v3158_v3 = vshrl.u32 %v20588_v19, 16  ;;  %v26128_v36 = vrot.slane %v26127_v42, 9  ;;  %v26130_v18 = vrot.slane %v26129_v48, 5  ;;  %v20589_v41 = vld [vmem:[#allocation2 + $0xc8] sm:$0x1] }
 0x1e5   : > { %19308 = vmatpush3.bf16.msra.mxu1 %v20587_v24  ;;  %v3164_v7 = vshll.u32 %v20589_v41, 16  ;;  %18400 = vmatmul.mubr.bf16.vlgmr.msra.gmra.mrb[0].mxu0 %v16694_v59  ;;  %v26132_v55 = vld [vmem:[#allocation42_spill] sm:$0xff]  ;;  %v3151_v20 = vor.u32 %v3150_v54, %v3147_v17  ;;  %v26135_v24 = vrot.slane %v26124_v10, 5  ;;  %v16692_v59 = vrot.slane %v5144_v60, 9  ;;  %v26136_v49 = vld [vmem:[#allocation51_spill] sm:$0xff]  ;;  %v26137_v41 = vld [vmem:[#allocation29_spill] sm:$0xff] }
 0x1e6   : > { %v5217_v2 = vsel %vm21274_vm9, %v26128_v36, %v26126_v23  ;;  %v5220_v16 = vsel %vm21274_vm9, %v22457_v47, %v26130_v18  ;;  %v22731_v6 = vrot.slane %v3154_v39, 5  ;;  %v26133_v19 = vrot.slane %v26132_v55, 9  ;;  %v20590_v36 = vld [vmem:[#allocation6 + $0x130] sm:$0xff]   ;;  %v26134_v23 = vld [vmem:[#allocation53_spill] sm:$0xff]  ;;  %18403 = vmatprep.mubr.bf16.mxu0 %v16695_v12  ;;  %v26140_v54 = vld [vmem:[#allocation54_spill] sm:$0xff] }
 0x1e7   : > { %19301 = vmatprep.subr.bf16.mxu1 %v20590_v36  ;;  %v3160_v25 = vrot.slane %v3158_v3, 4  ;;  %v22740_v47 = vrot.slane %v3127_v21, 4  ;;  %v22744_v39 = vrot.slane %v26135_v24, 4  ;;  %v5300_v18 = vrot.slane %v26136_v49, 5  ;;  %v20276_v3 = vld [vmem:[#allocation2 + $0x78] sm:$0xff]   ;;  %v20591_v49 = vld [vmem:[#allocation6 + $0x138] sm:$0xff]  }
 0x1e8   : > { %v5224_v42 = vsel %vm21274_vm9, %v26133_v19, %v26131_v22  ;;  %18172 = vmatmul.mubr.bf16.gmra.mrb[12].mxu1 %v20273_v1  ;;  %v26138_v55 = vrot.slane %v26137_v41, 5  ;;  %v26139_v22 = vld [vmem:[#allocation34_spill] sm:$0xff]  ;;  %v22752_v48 = vrot.slane %v3137_v62, 4  ;;  %v5303_v12 = vrot.slane %v26140_v54, 5 }
 0x1e9   : > { %v3161_v17 = vor.u32 %v3160_v25, %v22731_v6  ;;  %18175 = vmatprep.mubr.bf16.mxu1 %v20275_v32  ;;  %19309 = vmatpush3.bf16.msra.mxu1 %v20590_v36  ;;  %v22756_v21 = vrot.slane %v3164_v7, 5  ;;  %v22760_v60 = vsel %vm21274_vm9, %v16692_v59, %v5300_v18  ;;  %v5302_v1 = vrot.slane %v5300_v18, 4  ;;  %v20277_v25 = vld [vmem:[#allocation2 + $0x84] sm:$0xff]   ;;  %v26145_v18 = vld [vmem:[#allocation32_spill] sm:$0xff] }
 0x1ea   : > { %v5227_v19 = vsel %vm21274_vm9, %v26139_v22, %v26138_v55  ;;  %v16696_v24 = vcombine.low %v5217_v2, %v5220_v16  ;;  %19302 = vmatprep.subr.bf16.mxu1 %v20591_v49  ;;  %v22762_v41 = vrot.slane %v3151_v20, 4  ;;  %v26141_v36 = vld [vmem:[#allocation27_spill] sm:$0xff]  ;;  %v26143_v16 = vld [vmem:[#allocation30_spill] sm:$0xff]  ;;  %v26146_v22 = vrot.slane %v26145_v18, 5 }
 0x1eb   : > { %v22764_v62 = vrot.slane %v3161_v17, 4  ;;  %v16697_v55 = vcombine.low %v5224_v42, %v5227_v19  ;;  %v22768_v32 = vsel %vm21274_vm9, %v5302_v1, %v5303_v12  ;;  %v26142_v2 = vrot.slane %v26141_v36, 5  ;;  %v26147_v42 = vld [vmem:[#allocation24_spill] sm:$0xff]  ;;  %v26148_v17 = vld [vmem:[#allocation33_spill] sm:$0xff]  ;;  %v26150_v12 = vld [vmem:[#allocation31_spill] sm:$0xff] }
 0x1ec   : > { %v26144_v59 = vrot.slane %v26143_v16, 9  ;;  %v5234_v19 = vsel %vm21274_vm9, %v26147_v42, %v26146_v22  ;;  %v26149_v54 = vrot.slane %v26148_v17, 5  ;;  %v26151_v1 = vrot.slane %v26150_v12, 9  ;;  %v26154_v36 = vld [vmem:[#allocation26_spill] sm:$0xff]  ;;  %v20278_v16 = vld [vmem:[#allocation2 + $0x90] sm:$0xff]  }
 0x1ed   : > { %19310 = vmatpush3.bf16.msra.mxu1 %v20591_v49  ;;  %18404 = vmatmul.mubr.bf16.gmra.mrb[4].mxu0 %v16696_v24  ;;  %v26152_v49 = vld [vmem:[#allocation37_spill] sm:$0xff]  ;;  %v26156_v22 = vrot.slane %v22470_v33, 9  ;;  %v26157_v17 = vrot.slane %v26070_v35, 5  ;;  %v20280_v35 = vld [vmem:[#allocation2 + $0xa8] sm:$0xff]  }
 0x1ee   : > { %18407 = vmatprep.mubr.bf16.mxu0 %v16697_v55  ;;  %v5231_v20 = vsel %vm21274_vm9, %v26144_v59, %v26142_v2  ;;  %v5238_v24 = vsel %vm21274_vm9, %v26151_v1, %v26149_v54  ;;  %v26153_v55 = vrot.slane %v26152_v49, 5  ;;  %v20279_v18 = vld [vmem:[#allocation2 + $0x9c] sm:$0xff]   ;;  %v20281_v12 = vld [vmem:[#allocation2 + $0xb4] sm:$0xff]   ;;  %v26165_v49 = vrot.slane %v22561_v58, 9 }
 0x1ef   : > { %v16698_v59 = vcombine.low %v5231_v20, %v5234_v19  ;;  %v5248_v54 = vsel %vm21274_vm9, %v22514_v43, %v26157_v17  ;;  %v26159_v20 = vrot.slane %v22495_v57, 9  ;;  %v26162_v57 = vrot.slane %v22517_v9, 9 }
 0x1f0   : > { %18176 = vmatmul.mubr.bf16.gmra.mrb[16].mxu1 %v20276_v3  ;;  %v5241_v2 = vsel %vm21274_vm9, %v26154_v36, %v26153_v55  ;;  %v26155_v3 = vrot.slane %v26065_v40, 5  ;;  %v26160_v40 = vrot.slane %v26073_v53, 5  ;;  %v26163_v53 = vrot.slane %v26085_v31, 5  ;;  %v20282_v31 = vld [vmem:[#allocation2 + $0xc0] sm:$0xff]   ;;  %v26167_v36 = vld [vmem:[#allocation35_spill] sm:$0xff] }
 0x1f1   : > { %18179 = vmatprep.mubr.bf16.mxu1 %v20277_v25  ;;  %v16699_v7 = vcombine.low %v5238_v24, %v5241_v2  ;;  %v26158_v25 = vrot.slane %v26066_v51, 5  ;;  %v26161_v51 = vrot.slane %v26082_v28, 5  ;;  %v26164_v24 = vrot.slane %v26086_v29, 5  ;;  %v26168_v2 = vld [vmem:[#allocation36_spill] sm:$0xff]  ;;  %v26169_v29 = vld [vmem:[#allocation39_spill] sm:$0xff] }
 0x1f2   : > { %v5245_v42 = vsel %vm21274_vm9, %v26156_v22, %v26155_v3  ;;  %v5255_v33 = vsel %vm21274_vm9, %v22525_v15, %v26160_v40  ;;  %v5262_v15 = vsel %vm21274_vm9, %v22591_v37, %v26163_v53  ;;  %v26166_v28 = vrot.slane %v26093_v38, 5  ;;  %v26181_v40 = vld [vmem:[#allocation18_spill] sm:$0xff] }
 0x1f3   : > { %v16700_v19 = vcombine.low %v5245_v42, %v5248_v54  ;;  %v5259_v43 = vsel %vm21274_vm9, %v26162_v57, %v26161_v51  ;;  %v5266_v55 = vsel %vm21274_vm9, %v26165_v49, %v26164_v24  ;;  %v2989_v37 = vsel %vm21116_vm5, %v22544_v5, %v26167_v36  ;;  %v26195_v36 = vld [vmem:[#allocation23_spill] sm:$0xff] }
 0x1f4   : > { %v5269_v9 = vsel %vm21274_vm9, %v22605_v8, %v26166_v28  ;;  %v2999_v58 = vsel %vm21116_vm5, %v26169_v29, %v26168_v2  ;;  %v26170_v38 = vrot.slane %v26098_v0, 5  ;;  %v26171_v8 = vrot.slane %v22594_v61, 9  ;;  %v26191_v28 = vld [vmem:[#allocation20_spill] sm:$0xff] }
 0x1f5   : > { %18408 = vmatmul.mubr.bf16.gmra.mrb[8].mxu0 %v16698_v59  ;;  %v16703_v59 = vcombine.low %v5266_v55, %v5269_v9  ;;  %v26172_v22 = vrot.slane %v26103_v44, 5  ;;  %v26173_v42 = vrot.slane %v22189_v46, 5  ;;  %v26174_v17 = vrot.slane %v22643_v4, 9  ;;  %v26176_v44 = vld [vmem:[#allocation38_spill] sm:$0xff]  ;;  %v26180_v4 = vld [vmem:[#allocation41_spill] sm:$0xff]  ;;  %v26193_v9 = vld [vmem:[#allocation55_spill] sm:$0xff] }
 0x1f6   : > { %18411 = vmatprep.mubr.bf16.mxu0 %v16699_v7  ;;  %v5252_v7 = vsel %vm21274_vm9, %v26159_v20, %v26158_v25  ;;  %v5273_v3 = vsel %vm21274_vm9, %v26171_v8, %v26170_v38  ;;  %v26175_v0 = vrot.slane %v26113_v13, 5  ;;  %v26177_v25 = vld [vmem:[#allocation44_spill] sm:$0xff]  ;;  %v3037_v13 = vsel %vm21116_vm5, %v26181_v40, %v26180_v4  ;;  %v26190_v55 = vld [vmem:[#allocation45_spill] sm:$0xff]  ;;  %v20289_v4 = vld [vmem:[#allocation8 + $0x70] sm:$0xff]  }
 0x1f7   : > { %v16701_v1 = vcombine.low %v5252_v7, %v5255_v33  ;;  %v5276_v5 = vsel %vm21274_vm9, %v22657_v45, %v26172_v22  ;;  %v5280_v54 = vsel %vm21274_vm9, %v26174_v17, %v26173_v42  ;;  %v3013_v45 = vsel %vm21116_vm5, %v26177_v25, %v26176_v44  ;;  %v26178_v20 = vld [vmem:[#allocation40_spill] sm:$0xff]  ;;  %v26179_v7 = vld [vmem:[#allocation43_spill] sm:$0xff]  ;;  %v20284_v25 = vld [vmem:[#allocation8 + $0x48] sm:$0xff]  }
 0x1f8   : > { %18180 = vmatmul.mubr.bf16.gmra.mrb[20].mxu1 %v20278_v16  ;;  %v16702_v16 = vcombine.low %v5259_v43, %v5262_v15  ;;  %v5283_v61 = vsel %vm21274_vm9, %v22685_v52, %v26175_v0  ;;  %v3023_v46 = vsel %vm21116_vm5, %v26179_v7, %v26178_v20  ;;  %v26182_v33 = vld [vmem:[#allocation47_spill] sm:$0xff]  ;;  %v26183_v51 = vrot.slane %v26115_v11, 5  ;;  %v26199_v38 = vld [vmem:[#allocation52_spill] sm:$0xff] }
 0x1f9   : > { %18183 = vmatprep.mubr.bf16.mxu1 %v20279_v18  ;;  %v16573_v18 = vcombine.low %v2989_v37, %v2999_v58  ;;  %v3047_v52 = vsel %vm21116_vm5, %v22609_v26, %v26182_v33  ;;  %v26184_v57 = vrot.slane %v22662_v63, 9  ;;  %v26185_v53 = vrot.slane %v26121_v56, 5  ;;  %v26189_v56 = vld [vmem:[#allocation46_spill] sm:$0xff] }
 0x1fa   : > { %v26186_v26 = vrot.slane %v26124_v10, 5  ;;  %v26187_v24 = vrot.slane %v22691_v27, 9  ;;  %v26188_v11 = vrot.slane %v26134_v23, 5  ;;  %v3071_v27 = vsel %vm21116_vm5, %v26191_v28, %v26190_v55  ;;  %v26192_v10 = vld [vmem:[#allocation48_spill] sm:$0xff] }
 0x1fb   : > { %v5287_v43 = vsel %vm21274_vm9, %v26184_v57, %v26183_v51  ;;  %v5290_v15 = vsel %vm21274_vm9, %v22710_v14, %v26185_v53  ;;  %v3061_v14 = vsel %vm21116_vm5, %v26189_v56, %v22607_v50  ;;  %v3085_v23 = vsel %vm21116_vm5, %v26193_v9, %v26192_v10  ;;  %v26196_v50 = vld [vmem:[#allocation49_spill] sm:$0xff]  ;;  %v20290_v51 = vld [vmem:[#allocation8 + $0x78] sm:$0xff]  }
 0x1fc   : > { %v5294_v49 = vsel %vm21274_vm9, %v26187_v24, %v26186_v26  ;;  %v5297_v63 = vsel %vm21274_vm9, %v22744_v39, %v26188_v11  ;;  %v16706_v37 = vcombine.low %v5287_v43, %v5290_v15  ;;  %v16576_v29 = vcombine.low %v3061_v14, %v3071_v27 }
 0x1fd   : > { %18412 = vmatmul.mubr.bf16.gmra.mrb[12].mxu0 %v16700_v19  ;;  %v16705_v19 = vcombine.low %v5280_v54, %v5283_v61  ;;  %v16707_v2 = vcombine.low %v5294_v49, %v5297_v63  ;;  %v26202_v0 = vcombine.low %v22760_v60, %v22768_v32  ;;  %v3157_v61 = vsel %vm21116_vm5, %v22762_v41, %v22731_v6  ;;  %v20285_v60 = vld [vmem:[#allocation8 + $0x50] sm:$0xff]   ;;  %v20286_v32 = vld [vmem:[#allocation8 + $0x58] sm:$0xff]   ;;  %v20287_v6 = vld [vmem:[#allocation8 + $0x60] sm:$0xff]  }
 0x1fe   : > { %18415 = vmatprep.mubr.bf16.mxu0 %v16701_v1  ;;  %v16575_v1 = vcombine.low %v3037_v13, %v3047_v52  ;;  %v20288_v41 = vld [vmem:[#allocation8 + $0x68] sm:$0xff]   ;;  %v22953_v49 = vld [vmem:[#allocation8] sm:$0xff]  }
 0x200   : > { %18184 = vmatmul.mubr.bf16.gmra.mrb[24].mxu1 %v20280_v35  ;;  %v16704_v35 = vcombine.low %v5273_v3, %v5276_v5  ;;  %v26200_v3 = vld [vmem:[#allocation57_spill] sm:$0xff]  ;;  %v26201_v5 = vld [vmem:[#allocation58_spill] sm:$0xff] }
 0x201   : > { %18187 = vmatprep.mubr.bf16.mxu1 %v20281_v12  ;;  %v16574_v12 = vcombine.low %v3013_v45, %v3023_v46  ;;  %v3133_v22 = vsel %vm21116_vm5, %v22740_v47, %v26200_v3  ;;  %v3143_v42 = vsel %vm21116_vm5, %v22752_v48, %v26201_v5  ;;  %v3167_v47 = vsel %vm21116_vm5, %v22764_v62, %v22756_v21  ;;  %v20283_v48 = vld [vmem:[#allocation8 + $0x40] sm:$0xff]   ;;  %v6114_v21 = vld [vmem:[#allocation2] sm:$0xf]  ;;  %v6115_v62 = vld [vmem:[#allocation2 + $0x4] sm:$0xf] }
 0x202   : > { %v16579_v54 = vcombine.low %v3133_v22, %v3143_v42  ;;  %v16580_v44 = vcombine.low %v3157_v61, %v3167_v47  ;;  %18431 = vmatprep.subr.bf16.mxu1 %v20283_v48  ;;  %v6179_v45 = vshrl.u32 %v6114_v21, 16  ;;  %v6182_v20 = vshll.u32 %v6114_v21, 16 }
 0x203   : > { %v6188_v7 = vshll.u32 %v6115_v62, 16  ;;  %v6192_v46 = vshrl.u32 %v6115_v62, 16 }
 0x204   : > { %v6181_v40 = vrot.slane %v6179_v45, 4  ;;  %v6184_v13 = vrot.slane %v6182_v20, 5 }
 0x205   : > { %18416 = vmatmul.mubr.bf16.gmra.mrb[16].mxu0 %v16702_v16  ;;  %v26197_v16 = vld [vmem:[#allocation56_spill] sm:$0xff]  ;;  %v6190_v33 = vrot.slane %v6188_v7, 5  ;;  %v6194_v52 = vrot.slane %v6192_v46, 4 }
 0x206   : > { %18419 = vmatprep.mubr.bf16.mxu0 %v16703_v59  ;;  %v3109_v59 = vsel %vm21116_vm5, %v26197_v16, %v26196_v50 }
 0x208   : > { %18188 = vmatmul.mubr.bf16.gmra.mrb[28].mxu1 %v20282_v31  ;;  %v26194_v31 = vld [vmem:[#allocation50_spill] sm:$0xff] }
 0x209   : > { %18223 = vmatprep.mubr.bf16.mxu1 %v16573_v18  ;;  %v3095_v39 = vsel %vm21116_vm5, %v26195_v36, %v26194_v31  ;;  %v26198_v18 = vld [vmem:[#allocation19_spill] sm:$0xff] }
 0x20a   : > { %v16577_v58 = vcombine.low %v3085_v23, %v3095_v39  ;;  %v3119_v8 = vsel %vm21116_vm5, %v26199_v38, %v26198_v18 }
 0x20b   : > { %v16578_v17 = vcombine.low %v3109_v59, %v3119_v8 }
 0x20d   : > { %18420 = vmatmul.mubr.bf16.gmra.mrb[20].mxu0 %v16704_v35  ;;  %v6162_v35 = vld [vmem:[#allocation2 + $0x8] sm:$0x1] }
 0x20e   : > { %18423 = vmatprep.mubr.bf16.mxu0 %v16705_v19  ;;  %v6185_v19 = vor.u32 %v6184_v13, %v6181_v40 }
 0x210   : > { %18224 = vmatmul.mubr.bf16.vlgmr.msra.gmra.mrb[16].mxu1 %v16574_v12  ;;  %v6195_v12 = vor.u32 %v6194_v52, %v6190_v33  ;;  %v6186_v57 = vrot.slane %v6185_v19, 4 }
 0x211   : > { %18227 = vmatprep.mubr.bf16.mxu1 %v16575_v1  ;;  %18432 = vmatpush3.bf16.msra.mxu1 %v20283_v48  ;;  %v6198_v1 = vshll.u32 %v6162_v35, 16 }
 0x212   : > { %18433 = vmatprep.subr.bf16.mxu1 %v20284_v25  ;;  %v6196_v43 = vrot.slane %v6195_v12, 4  ;;  %v6191_v15 = vsel %vm21116_vm5, %v6186_v57, %v6190_v33 }
 0x213   : > { %v6200_v53 = vrot.slane %v6198_v1, 5 }
 0x215   : > { %18424 = vmatmul.mubr.bf16.gmra.mrb[24].mxu0 %v16706_v37  ;;  %18434 = vmatpush3.bf16.msra.mxu1 %v20284_v25  ;;  %v6201_v26 = vsel %vm21116_vm5, %v6196_v43, %v6200_v53  ;;  %v22965_v37 = vld [vmem:[%s25776_s2] ss:$0 sm:$0xff] }
 0x216   : > { %18427 = vmatprep.mubr.bf16.mxu0 %v16707_v2  ;;  %18435 = vmatprep.subr.bf16.mxu1 %v20285_v60  ;;  %v16766_v24 = vcombine.low %v6191_v15, %v6201_v26 }
 0x218   : > { %18228 = vmatmul.mubr.bf16.gmra.mrb[20].mxu1 %v16576_v29 }
 0x219   : > { %18231 = vmatprep.mubr.bf16.mxu1 %v16577_v58  ;;  %18436 = vmatpush3.bf16.msra.mxu1 %v20285_v60 }
 0x21a   : > { %18437 = vmatprep.subr.bf16.mxu1 %v20286_v32 }
 0x21d   : > { %18428 = vmatmul.mubr.bf16.gmra.mrb[28].mxu0 %v26202_v0  ;;  %18438 = vmatpush3.bf16.msra.mxu1 %v20286_v32 }
 0x21e   : > { %18439 = vmatprep.subr.bf16.mxu1 %v20287_v6 }
 0x220   : > { %18232 = vmatmul.mubr.bf16.gmra.mrb[24].mxu1 %v16578_v17 }
 0x221   : > { %18235 = vmatprep.mubr.bf16.mxu1 %v16579_v54  ;;  %18440 = vmatpush3.bf16.msra.mxu1 %v20287_v6 }
 0x222   : > { %18441 = vmatprep.subr.bf16.mxu1 %v20288_v41 }
 0x225   : > { %18442 = vmatpush3.bf16.msra.mxu1 %v20288_v41 }
 0x226   : > { %18443 = vmatprep.subr.bf16.mxu1 %v20289_v4 }
 0x228   : > { %18236 = vmatmul.mubr.bf16.gmra.mrb[28].mxu1 %v16580_v44 }
 0x229   : > { %18444 = vmatpush3.bf16.msra.mxu1 %v20289_v4  ;;  %18447 = vmatprep.mubr.bf16.mxu1 %v16766_v24 }
 0x22a   : > { %18445 = vmatprep.subr.bf16.mxu1 %v20290_v51 }
 0x22d   : > { %18446 = vmatpush3.bf16.msra.mxu1 %v20290_v51 }
 0x22e   : > { %18479 = vmatprep.subr.bf16.mxu1 %v22953_v49 }
 0x2a3   : > { %v18161_v11 = vpop.f32.mrb[0].mxu1 }
 0x2a4   : > { %v2577_v63 = vpop.f32.mrb[1].mxu1 }
 0x2a5   : > { %v18162_v56 = vpop.f32.mrb[2].mxu1 }
 0x2a6   : > { %v2580_v14 = vpop.f32.mrb[3].mxu1 }
 0x2ab   : > { %v18165_v55 = vpop.f32.mrb[4].mxu1 }
 0x2ac   : > { %v2593_v28 = vpop.f32.mrb[5].mxu1 }
 0x2ad   : > { %v18166_v27 = vpop.f32.mrb[6].mxu1 }
 0x2ae   : > { %v2596_v10 = vpop.f32.mrb[7].mxu1 }
 0x2b3   : > { %v18169_v9 = vpop.f32.mrb[8].mxu1 }
 0x2b4   : > { %v22956_v23 = vpop.f32.mrb[9].mxu1 }
 0x2b5   : > { %v22958_v31 = vpop.f32.mrb[10].mxu1 }
 0x2b6   : > { %v22960_v36 = vpop.f32.mrb[11].mxu1 }
 0x2b8   : > { %v18401_v39 = vpop.f32.mrb[0].mxu0 }
 0x2b9   : > { %v19311_v2 = vadd.f32 %v18401_v39, %v18161_v11  ;;  %v5468_v29 = vpop.f32.mrb[1].mxu0 }
 0x2ba   : > { %v19312_v50 = vadd.f32 %v5468_v29, %v2577_v63  ;;  %v18402_v16 = vpop.f32.mrb[2].mxu0 }
 0x2bb   : > { %v22967_v58 = vpop.f32.mrb[12].mxu1  ;;  %v5636_v18 = vadd.f32 %v19311_v2, %v22965_v37  ;;  %v19313_v38 = vadd.f32 %v18402_v16, %v18162_v56  ;;  %v5471_v8 = vpop.f32.mrb[3].mxu0 }
 0x2bc   : > { %v22969_v59 = vpop.f32.mrb[13].mxu1  ;;  %v5634_v22 = vadd.f32 %v19312_v50, %v22965_v37  ;;  %v19314_v5 = vadd.f32 %v5471_v8, %v2580_v14 }
 0x2bd   : > { %v22972_v3 = vpop.f32.mrb[14].mxu1  ;;  %v5637_v17 = vadd.f32 %v19313_v38, %v22965_v37  ;;  %v5668_v0 = vmax.f32 %v5636_v18, 0.0 }
 0x2be   : > { %v22975_v42 = vpop.f32.mrb[15].mxu1  ;;  %v5635_v54 = vadd.f32 %v19314_v5, %v22965_v37  ;;  %v5666_v47 = vmax.f32 %v5634_v22, 0.0 }
 0x2bf   : > { %v5669_v61 = vmax.f32 %v5637_v17, 0.0 }
 0x2c0   : > { %v5667_v44 = vmax.f32 %v5635_v54, 0.0  ;;  %v18405_v48 = vpop.f32.mrb[4].mxu0 }
 0x2c1   : > { %v5699_v25 = vpack.c.bf16 %v5669_v61, %v5668_v0  ;;  %v19315_v60 = vadd.f32 %v18405_v48, %v18165_v55  ;;  %v5484_v32 = vpop.f32.mrb[5].mxu0 }
 0x2c2   : > { %v5698_v6 = vpack.c.bf16 %v5667_v44, %v5666_v47  ;;  %v19316_v41 = vadd.f32 %v5484_v32, %v2593_v28  ;;  %v18406_v21 = vpop.f32.mrb[6].mxu0 }
 0x2c3   : > { %v5722_v62 = vshrl.u32 %v5699_v25, 16  ;;  %v5640_v45 = vadd.f32 %v19315_v60, %v22965_v37  ;;  %v19317_v20 = vadd.f32 %v18406_v21, %v18166_v27  ;;  %v5487_v7 = vpop.f32.mrb[7].mxu0  ;;  %v5725_v33 = vshll.u32 %v5699_v25, 16 }
 0x2c4   : > { %v5715_v46 = vshrl.u32 %v5698_v6, 16  ;;  %v5638_v4 = vadd.f32 %v19316_v41, %v22965_v37  ;;  %v19318_v40 = vadd.f32 %v5487_v7, %v2596_v10  ;;  %v5718_v19 = vshll.u32 %v5698_v6, 16 }
 0x2c5   : > { %v5724_v13 = vrot.slane %v5722_v62, 7  ;;  %v5641_v52 = vadd.f32 %v19317_v20, %v22965_v37  ;;  %v5672_v12 = vmax.f32 %v5640_v45, 0.0 }
 0x2c6   : > { %v5717_v35 = vrot.slane %v5715_v46, 7  ;;  %v5639_v1 = vadd.f32 %v19318_v40, %v22965_v37  ;;  %v5670_v53 = vmax.f32 %v5638_v4, 0.0 }
 0x2c7   : > { %v5727_v51 = vor.u32 %v5725_v33, %v5724_v13  ;;  %v5875_v43 = vsel %vm21123_vm6, %v5724_v13, 0  ;;  %v5673_v15 = vmax.f32 %v5641_v52, 0.0 }
 0x2c8   : > { %v16723_v26 = vcombine.low %v5875_v43, %v5875_v43  ;;  %v5720_v24 = vor.u32 %v5718_v19, %v5717_v35  ;;  %v5874_v11 = vsel %vm21123_vm6, %v5717_v35, 0  ;;  %v5671_v63 = vmax.f32 %v5639_v1, 0.0  ;;  %v18409_v56 = vpop.f32.mrb[8].mxu0 }
 0x2c9   : > { %v5859_v14 = vsel %vm21123_vm6, 0, %v5727_v51  ;;  %v16720_v55 = vcombine.low %v5874_v11, %v5874_v11  ;;  %v5701_v28 = vpack.c.bf16 %v5673_v15, %v5672_v12  ;;  %v19319_v27 = vadd.f32 %v18409_v56, %v18169_v9  ;;  %v5500_v10 = vpop.f32.mrb[9].mxu0 }
 0x2ca   : > { %v16721_v39 = vcombine.low %v5859_v14, %v5859_v14  ;;  %v16722_v2 = vcombine.high %v5859_v14, %v5859_v14  ;;  %6071 = vst [vmem:[#allocation2 + $0x20] sm:$0x1] %v16723_v26  ;;  %v5858_v29 = vsel %vm21123_vm6, 0, %v5720_v24  ;;  %v5700_v50 = vpack.c.bf16 %v5671_v63, %v5670_v53  ;;  %v18410_v16 = vpop.f32.mrb[10].mxu0 }
 0x2cb   : > { %v16718_v18 = vcombine.low %v5858_v29, %v5858_v29  ;;  %v16719_v38 = vcombine.high %v5858_v29, %v5858_v29  ;;  %6068 = vst [vmem:[#allocation2 + $0x14] sm:$0x1] %v16720_v55  ;;  %v5736_v8 = vshrl.u32 %v5701_v28, 16  ;;  %v5503_v22 = vpop.f32.mrb[11].mxu0  ;;  %v5644_v17 = vadd.f32 %v19319_v27, %v22965_v37 }
 0x2cc   : > { %6070 = vst [vmem:[#allocation2 + $0x1c] sm:$0xf] %v16722_v2  ;;  %6069 = vst [vmem:[#allocation2 + $0x18] sm:$0xf] %v16721_v39  ;;  %v5729_v5 = vshrl.u32 %v5700_v50, 16  ;;  %v19320_v9 = vadd.f32 %v5500_v10, %v22956_v23  ;;  %v5739_v0 = vshll.u32 %v5701_v28, 16  ;;  %v19321_v61 = vadd.f32 %v18410_v16, %v22958_v31 }
 0x2cd   : > { %6066 = vst [vmem:[#allocation2 + $0xc] sm:$0xf] %v16718_v18  ;;  %6067 = vst [vmem:[#allocation2 + $0x10] sm:$0xf] %v16719_v38  ;;  %v5738_v54 = vrot.slane %v5736_v8, 7  ;;  %v19322_v47 = vadd.f32 %v5503_v22, %v22960_v36  ;;  %v5732_v48 = vshll.u32 %v5700_v50, 16 }
 0x2ce   : > { %v5731_v44 = vrot.slane %v5729_v5, 7  ;;  %v5676_v25 = vmax.f32 %v5644_v17, 0.0  ;;  %v5642_v60 = vadd.f32 %v19320_v9, %v22965_v37  ;;  %v5645_v41 = vadd.f32 %v19321_v61, %v22965_v37 }
 0x2cf   : > { %v5741_v32 = vor.u32 %v5739_v0, %v5738_v54  ;;  %v5877_v6 = vsel %vm21123_vm6, %v5738_v54, 0  ;;  %v5643_v23 = vadd.f32 %v19322_v47, %v22965_v37 }
 0x2d0   : > { %v16729_v21 = vcombine.low %v5877_v6, %v5877_v6  ;;  %v5734_v62 = vor.u32 %v5732_v48, %v5731_v44  ;;  %v5876_v31 = vsel %vm21123_vm6, %v5731_v44, 0  ;;  %v5674_v45 = vmax.f32 %v5642_v60, 0.0  ;;  %v18413_v36 = vpop.f32.mrb[12].mxu0 }
 0x2d1   : > { %v5861_v20 = vsel %vm21123_vm6, 0, %v5741_v32  ;;  %v16726_v7 = vcombine.low %v5876_v31, %v5876_v31  ;;  %v5677_v46 = vmax.f32 %v5645_v41, 0.0  ;;  %v5675_v4 = vmax.f32 %v5643_v23, 0.0  ;;  %v5516_v40 = vpop.f32.mrb[13].mxu0 }
 0x2d2   : > { %v16727_v13 = vcombine.low %v5861_v20, %v5861_v20  ;;  %v16728_v33 = vcombine.high %v5861_v20, %v5861_v20  ;;  %6077 = vst [vmem:[#allocation2 + $0x38] sm:$0x1] %v16729_v21  ;;  %v5860_v52 = vsel %vm21123_vm6, 0, %v5734_v62  ;;  %v19323_v35 = vadd.f32 %v18413_v36, %v22967_v58  ;;  %v18414_v19 = vpop.f32.mrb[14].mxu0 }
 0x2d3   : > { %v16724_v12 = vcombine.low %v5860_v52, %v5860_v52  ;;  %v16725_v1 = vcombine.high %v5860_v52, %v5860_v52  ;;  %6074 = vst [vmem:[#allocation2 + $0x2c] sm:$0x1] %v16726_v7  ;;  %v5703_v51 = vpack.c.bf16 %v5677_v46, %v5676_v25  ;;  %v5702_v43 = vpack.c.bf16 %v5675_v4, %v5674_v45  ;;  %v5519_v53 = vpop.f32.mrb[15].mxu0  ;;  %v6163_v25 = vld [vmem:[#allocation2 + $0x14] sm:$0x1] }
 0x2d4   : > { %6076 = vst [vmem:[#allocation2 + $0x34] sm:$0xf] %v16728_v33  ;;  %6075 = vst [vmem:[#allocation2 + $0x30] sm:$0xf] %v16727_v13  ;;  %v5648_v15 = vadd.f32 %v19323_v35, %v22965_v37  ;;  %v19324_v26 = vadd.f32 %v5516_v40, %v22969_v59  ;;  %v19325_v24 = vadd.f32 %v18414_v19, %v22972_v3  ;;  %v6116_v63 = vld [vmem:[#allocation2 + $0xc] sm:$0xf] }
 0x2d5   : > { %v19326_v11 = vadd.f32 %v5519_v53, %v22975_v42  ;;  %6073 = vst [vmem:[#allocation2 + $0x28] sm:$0xf] %v16725_v1  ;;  %6072 = vst [vmem:[#allocation2 + $0x24] sm:$0xf] %v16724_v12  ;;  %v5750_v58 = vshrl.u32 %v5703_v51, 16  ;;  %v5753_v56 = vshll.u32 %v5703_v51, 16 }
 0x2d6   : > { %v5743_v14 = vshrl.u32 %v5702_v43, 16  ;;  %v5746_v55 = vshll.u32 %v5702_v43, 16  ;;  %v6117_v28 = vld [vmem:[#allocation2 + $0x10] sm:$0xf]  ;;  %v5680_v27 = vmax.f32 %v5648_v15, 0.0  ;;  %v5646_v10 = vadd.f32 %v19324_v26, %v22965_v37 }
 0x2d7   : > { %v5649_v39 = vadd.f32 %v19325_v24, %v22965_v37  ;;  %v5647_v2 = vadd.f32 %v19326_v11, %v22965_v37  ;;  %v5752_v59 = vrot.slane %v5750_v58, 7  ;;  %v6203_v3 = vshrl.u32 %v6116_v63, 16  ;;  %v6118_v36 = vld [vmem:[#allocation2 + $0x18] sm:$0xf]  ;;  %v23026_v40 = vld [vmem:[#allocation2 + $0x1c] sm:$0xf] }
 0x2d8   : > { %v5745_v29 = vrot.slane %v5743_v14, 7  ;;  %v6206_v50 = vshll.u32 %v6116_v63, 16  ;;  %v5678_v42 = vmax.f32 %v5646_v10, 0.0  ;;  %v18417_v38 = vpop.f32.mrb[16].mxu0  ;;  %v6212_v8 = vshll.u32 %v6117_v28, 16 }
 0x2d9   : > { %v5681_v16 = vmax.f32 %v5649_v39, 0.0  ;;  %v5679_v18 = vmax.f32 %v5647_v2, 0.0  ;;  %v5755_v22 = vor.u32 %v5753_v56, %v5752_v59  ;;  %v5879_v5 = vsel %vm21123_vm6, %v5752_v59, 0  ;;  %v23018_v54 = vpop.f32.mrb[17].mxu0 }
 0x2da   : > { %v5748_v17 = vor.u32 %v5746_v55, %v5745_v29  ;;  %v5878_v9 = vsel %vm21123_vm6, %v5745_v29, 0  ;;  %v16735_v0 = vcombine.low %v5879_v5, %v5879_v5  ;;  %v18418_v48 = vpop.f32.mrb[18].mxu0  ;;  %v6205_v41 = vrot.slane %v6203_v3, 4 }
 0x2db   : > { %v16732_v61 = vcombine.low %v5878_v9, %v5878_v9  ;;  %v5705_v47 = vpack.c.bf16 %v5681_v16, %v5680_v27  ;;  %v5704_v44 = vpack.c.bf16 %v5679_v18, %v5678_v42  ;;  %v5863_v60 = vsel %vm21123_vm6, 0, %v5755_v22  ;;  %v23024_v6 = vpop.f32.mrb[19].mxu0 }
 0x2dc   : > { %v5862_v32 = vsel %vm21123_vm6, 0, %v5748_v17  ;;  %v6208_v23 = vrot.slane %v6206_v50, 5  ;;  %v16733_v21 = vcombine.low %v5863_v60, %v5863_v60  ;;  %v16734_v62 = vcombine.high %v5863_v60, %v5863_v60  ;;  %6083 = vst [vmem:[#allocation2 + $0x50] sm:$0x1] %v16735_v0 }
 0x2dd   : > { %v16730_v31 = vcombine.low %v5862_v32, %v5862_v32  ;;  %v16731_v45 = vcombine.high %v5862_v32, %v5862_v32  ;;  %6080 = vst [vmem:[#allocation2 + $0x44] sm:$0x1] %v16732_v61  ;;  %v5764_v20 = vshrl.u32 %v5705_v47, 16  ;;  %v5767_v7 = vshll.u32 %v5705_v47, 16 }
 0x2de   : > { %v5757_v46 = vshrl.u32 %v5704_v44, 16  ;;  %v5760_v4 = vshll.u32 %v5704_v44, 16  ;;  %6082 = vst [vmem:[#allocation2 + $0x4c] sm:$0xf] %v16734_v62  ;;  %6081 = vst [vmem:[#allocation2 + $0x48] sm:$0xf] %v16733_v21  ;;  %v6209_v13 = vor.u32 %v6208_v23, %v6205_v41 }
 0x2df   : > { %6079 = vst [vmem:[#allocation2 + $0x40] sm:$0xf] %v16731_v45  ;;  %6078 = vst [vmem:[#allocation2 + $0x3c] sm:$0xf] %v16730_v31  ;;  %v6214_v33 = vrot.slane %v6212_v8, 5  ;;  %v6216_v52 = vshrl.u32 %v6117_v28, 16 }
 0x2e0   : > { %v6222_v35 = vshll.u32 %v6163_v25, 16  ;;  %v5766_v19 = vrot.slane %v5764_v20, 7  ;;  %v5759_v12 = vrot.slane %v5757_v46, 7  ;;  %v6227_v1 = vshrl.u32 %v6118_v36, 16  ;;  %v23028_v43 = vpop.f32.mrb[20].mxu0 }
 0x2e1   : > { %v6230_v51 = vshll.u32 %v6118_v36, 16  ;;  %v6210_v53 = vrot.slane %v6209_v13, 4  ;;  %v6218_v15 = vrot.slane %v6216_v52, 4  ;;  %v6236_v24 = vshll.u32 %v23026_v40, 16  ;;  %v23035_v14 = vpop.f32.mrb[21].mxu0 }
 0x2e2   : > { %v6224_v26 = vrot.slane %v6222_v35, 5  ;;  %v5769_v11 = vor.u32 %v5767_v7, %v5766_v19  ;;  %v5881_v63 = vsel %vm21123_vm6, %v5766_v19, 0  ;;  %v5762_v58 = vor.u32 %v5760_v4, %v5759_v12  ;;  %v23039_v2 = vpop.f32.mrb[22].mxu0  ;;  %v6164_v25 = vld [vmem:[#allocation2 + $0x20] sm:$0x1] }
 0x2e3   : > { %v5880_v56 = vsel %vm21123_vm6, %v5759_v12, 0  ;;  %v16741_v55 = vcombine.low %v5881_v63, %v5881_v63  ;;  %v18225_v27 = vpop.f32.mrb[16].mxu1  ;;  %v6215_v10 = vsel %vm21116_vm5, %v6210_v53, %v6214_v33  ;;  %v6219_v39 = vor.u32 %v6218_v15, %v6214_v33  ;;  %v23045_v16 = vpop.f32.mrb[23].mxu0  ;;  %v6120_v23 = vld [vmem:[#allocation2 + $0x24] sm:$0xf] }
 0x2e4   : > { %v16738_v28 = vcombine.low %v5880_v56, %v5880_v56  ;;  %v5865_v59 = vsel %vm21123_vm6, 0, %v5769_v11  ;;  %v5864_v29 = vsel %vm21123_vm6, 0, %v5762_v58  ;;  %v19327_v3 = vadd.f32 %v18417_v38, %v18225_v27  ;;  %v3395_v50 = vpop.f32.mrb[17].mxu1 }
 0x2e5   : > { %v6229_v42 = vrot.slane %v6227_v1, 4  ;;  %v16739_v18 = vcombine.low %v5865_v59, %v5865_v59  ;;  %v16740_v8 = vcombine.high %v5865_v59, %v5865_v59  ;;  %6089 = vst [vmem:[#allocation2 + $0x68] sm:$0x1] %v16741_v55  ;;  %v16736_v22 = vcombine.low %v5864_v29, %v5864_v29  ;;  %v18226_v17 = vpop.f32.mrb[18].mxu1 }
 0x2e6   : > { %v16737_v5 = vcombine.high %v5864_v29, %v5864_v29  ;;  %6086 = vst [vmem:[#allocation2 + $0x5c] sm:$0x1] %v16738_v28  ;;  %v5652_v9 = vadd.f32 %v19327_v3, %v22965_v37  ;;  %v19328_v0 = vadd.f32 %v23018_v54, %v3395_v50  ;;  %v19329_v61 = vadd.f32 %v18418_v48, %v18226_v17  ;;  %v3398_v47 = vpop.f32.mrb[19].mxu1 }
 0x2e7   : > { %v6220_v44 = vrot.slane %v6219_v39, 4  ;;  %6088 = vst [vmem:[#allocation2 + $0x64] sm:$0xf] %v16740_v8  ;;  %6087 = vst [vmem:[#allocation2 + $0x60] sm:$0xf] %v16739_v18  ;;  %v19330_v38 = vadd.f32 %v23024_v6, %v3398_v47  ;;  %v6232_v60 = vrot.slane %v6230_v51, 5 }
 0x2e8   : > { %6085 = vst [vmem:[#allocation2 + $0x58] sm:$0xf] %v16737_v5  ;;  %6084 = vst [vmem:[#allocation2 + $0x54] sm:$0xf] %v16736_v22  ;;  %v6238_v32 = vrot.slane %v6236_v24, 5  ;;  %v6240_v41 = vshrl.u32 %v23026_v40, 16  ;;  %v5650_v62 = vadd.f32 %v19328_v0, %v22965_v37  ;;  %v5653_v54 = vadd.f32 %v19329_v61, %v22965_v37 }
 0x2e9   : > { %v5684_v21 = vmax.f32 %v5652_v9, 0.0  ;;  %v6225_v48 = vsel %vm21116_vm5, %v6220_v44, %v6224_v26  ;;  %v5651_v31 = vadd.f32 %v19330_v38, %v22965_v37  ;;  %v6233_v36 = vor.u32 %v6232_v60, %v6229_v42  ;;  %v23056_v7 = vpop.f32.mrb[24].mxu0  ;;  %v20292_v6 = vld [vmem:[#allocation8 + $0x8] sm:$0xff]   ;;  %v23076_v18 = vld [vmem:[#allocation2 + $0x28] sm:$0xf]  ;;  %v20294_v44 = vld [vmem:[#allocation8 + $0x18] sm:$0xff]  }
 0x2ea   : > { %v16767_v45 = vcombine.low %v6215_v10, %v6225_v48  ;;  %v6242_v20 = vrot.slane %v6240_v41, 4  ;;  %v5682_v46 = vmax.f32 %v5650_v62, 0.0  ;;  %v5685_v4 = vmax.f32 %v5653_v54, 0.0  ;;  %v23058_v33 = vpop.f32.mrb[25].mxu0  ;;  %v20293_v10 = vld [vmem:[#allocation8 + $0x10] sm:$0xff]  }
 0x2eb   : > { %v6246_v40 = vshll.u32 %v6164_v25, 16  ;;  %v6251_v13 = vshrl.u32 %v6120_v23, 16  ;;  %v5683_v52 = vmax.f32 %v5651_v31, 0.0  ;;  %v18229_v35 = vpop.f32.mrb[20].mxu1  ;;  %v6234_v19 = vrot.slane %v6233_v36, 4  ;;  %v23060_v51 = vpop.f32.mrb[26].mxu0 }
 0x2ec   : > { %18448 = vmatmul.mubr.bf16.vlgmr.msra.gmra.mrb[32].mxu1 %v16767_v45  ;;  %v6243_v12 = vor.u32 %v6242_v20, %v6238_v32  ;;  %v6254_v1 = vshll.u32 %v6120_v23, 16  ;;  %v5707_v53 = vpack.c.bf16 %v5685_v4, %v5684_v21  ;;  %v19331_v15 = vadd.f32 %v23028_v43, %v18229_v35  ;;  %v3411_v26 = vpop.f32.mrb[21].mxu1  ;;  %v23066_v63 = vpop.f32.mrb[27].mxu0  ;;  %v6165_v48 = vld [vmem:[#allocation2 + $0x2c] sm:$0x1] }
 0x2ed   : > { %v6248_v24 = vrot.slane %v6246_v40, 5  ;;  %18480 = vmatpush3.bf16.msra.mxu1 %v22953_v49  ;;  %v23064_v11 = vrot.slane %v6251_v13, 4  ;;  %v5706_v58 = vpack.c.bf16 %v5683_v52, %v5682_v46  ;;  %v19332_v56 = vadd.f32 %v23035_v14, %v3411_v26  ;;  %v18230_v27 = vpop.f32.mrb[22].mxu1 }
 0x2ee   : > { %v6239_v55 = vsel %vm21116_vm5, %v6234_v19, %v6238_v32  ;;  %v6244_v28 = vrot.slane %v6243_v12, 4  ;;  %18481 = vmatprep.subr.bf16.mxu1 %v20292_v6  ;;  %v5778_v39 = vshrl.u32 %v5707_v53, 16  ;;  %v5781_v43 = vshll.u32 %v5707_v53, 16  ;;  %v3414_v29 = vpop.f32.mrb[23].mxu1  ;;  %v20295_v12 = vld [vmem:[#allocation8 + $0x20] sm:$0xff]  }
 0x2ef   : > { %v5656_v59 = vadd.f32 %v19331_v15, %v22965_v37  ;;  %v19333_v49 = vadd.f32 %v23039_v2, %v18230_v27  ;;  %v5771_v3 = vshrl.u32 %v5706_v58, 16  ;;  %v5774_v50 = vshll.u32 %v5706_v58, 16 }
 0x2f0   : > { %v5654_v42 = vadd.f32 %v19332_v56, %v22965_v37  ;;  %v6249_v14 = vsel %vm21116_vm5, %v6244_v28, %v6248_v24  ;;  %v5780_v8 = vrot.slane %v5778_v39, 7  ;;  %v19334_v2 = vadd.f32 %v23045_v16, %v3414_v29  ;;  %v23080_v47 = vpop.f32.mrb[28].mxu0  ;;  %v23107_v28 = vld [vmem:[#allocation2 + $0x30] sm:$0xf] }
 0x2f1   : > { %v5688_v22 = vmax.f32 %v5656_v59, 0.0  ;;  %v16768_v5 = vcombine.low %v6239_v55, %v6249_v14  ;;  %v5657_v17 = vadd.f32 %v19333_v49, %v22965_v37  ;;  %18482 = vmatpush3.bf16.msra.mxu1 %v20292_v6  ;;  %v5773_v9 = vrot.slane %v5771_v3, 7  ;;  %v23085_v41 = vpop.f32.mrb[29].mxu0  ;;  %v20296_v59 = vld [vmem:[#allocation8 + $0x28] sm:$0xff]  }
 0x2f2   : > { %v5686_v0 = vmax.f32 %v5654_v42, 0.0  ;;  %v6256_v61 = vrot.slane %v6254_v1, 5  ;;  %18483 = vmatprep.subr.bf16.mxu1 %v20293_v10  ;;  %v5783_v25 = vor.u32 %v5781_v43, %v5780_v8  ;;  %v5883_v38 = vsel %vm21123_vm6, %v5780_v8, 0  ;;  %v23090_v31 = vpop.f32.mrb[30].mxu0 }
 0x2f3   : > { %18451 = vmatprep.mubr.bf16.mxu1 %v16768_v5  ;;  %v5689_v60 = vmax.f32 %v5657_v17, 0.0  ;;  %v6260_v32 = vshll.u32 %v23076_v18, 16  ;;  %v16747_v23 = vcombine.low %v5883_v38, %v5883_v38  ;;  %v5776_v21 = vor.u32 %v5774_v50, %v5773_v9  ;;  %v18233_v54 = vpop.f32.mrb[24].mxu1  ;;  %v23095_v4 = vpop.f32.mrb[31].mxu0 }
 0x2f4   : > { %v5882_v16 = vsel %vm21123_vm6, %v5773_v9, 0  ;;  %v5655_v62 = vadd.f32 %v19334_v2, %v22965_v37  ;;  %v5867_v45 = vsel %vm21123_vm6, 0, %v5783_v25  ;;  %v19335_v6 = vadd.f32 %v23056_v7, %v18233_v54  ;;  %v3427_v46 = vpop.f32.mrb[25].mxu1  ;;  %v20297_v54 = vld [vmem:[#allocation8 + $0x30] sm:$0xff]  }
 0x2f5   : > { %v16744_v36 = vcombine.low %v5882_v16, %v5882_v16  ;;  %v5709_v20 = vpack.c.bf16 %v5689_v60, %v5688_v22  ;;  %18484 = vmatpush3.bf16.msra.mxu1 %v20293_v10  ;;  %v16745_v40 = vcombine.low %v5867_v45, %v5867_v45  ;;  %v16746_v13 = vcombine.high %v5867_v45, %v5867_v45  ;;  %v23099_v19 = vpop.f32.mrb[26].mxu1  ;;  %v23129_v16 = vld [vmem:[#allocation2 + $0x38] sm:$0x1] }
 0x2f6   : > { %6095 = vst [vmem:[#allocation2 + $0x80] sm:$0x1] %v16747_v23  ;;  %v5866_v52 = vsel %vm21123_vm6, 0, %v5776_v21  ;;  %v5687_v35 = vmax.f32 %v5655_v62, 0.0  ;;  %18485 = vmatprep.subr.bf16.mxu1 %v20294_v44  ;;  %v23101_v26 = vpop.f32.mrb[27].mxu1  ;;  %v23104_v58 = vadd.f32 %v19335_v6, %v22965_v37  ;;  %v6257_v56 = vor.u32 %v6256_v61, %v23064_v11 }
 0x2f7   : > { %v16742_v1 = vcombine.low %v5866_v52, %v5866_v52  ;;  %v16743_v53 = vcombine.high %v5866_v52, %v5866_v52  ;;  %6092 = vst [vmem:[#allocation2 + $0x74] sm:$0x1] %v16744_v36  ;;  %v5792_v15 = vshrl.u32 %v5709_v20, 16  ;;  %v5795_v7 = vshll.u32 %v5709_v20, 16  ;;  %6094 = vst [vmem:[#allocation2 + $0x7c] sm:$0xf] %v16746_v13 }
 0x2f8   : > { %6093 = vst [vmem:[#allocation2 + $0x78] sm:$0xf] %v16745_v40  ;;  %v5708_v24 = vpack.c.bf16 %v5687_v35, %v5686_v0  ;;  %v6262_v55 = vrot.slane %v6260_v32, 5  ;;  %v6264_v10 = vshrl.u32 %v23076_v18, 16  ;;  %v6270_v39 = vshll.u32 %v6165_v48, 16 }
 0x2f9   : > { %6091 = vst [vmem:[#allocation2 + $0x70] sm:$0xf] %v16743_v53  ;;  %6090 = vst [vmem:[#allocation2 + $0x6c] sm:$0xf] %v16742_v1  ;;  %v5794_v27 = vrot.slane %v5792_v15, 7  ;;  %v19336_v43 = vadd.f32 %v23058_v33, %v3427_v46  ;;  %18486 = vmatpush3.bf16.msra.mxu1 %v20294_v44  ;;  %v5692_v3 = vmax.f32 %v23104_v58, 0.0 }
 0x2fa   : > { %v5785_v49 = vshrl.u32 %v5708_v24, 16  ;;  %v5788_v29 = vshll.u32 %v5708_v24, 16  ;;  %v6258_v50 = vrot.slane %v6257_v56, 4  ;;  %18487 = vmatprep.subr.bf16.mxu1 %v20295_v12  ;;  %v6266_v14 = vrot.slane %v6264_v10, 4  ;;  %v23121_v61 = vld [vmem:[#allocation2 + $0x34] sm:$0xf] }
 0x2fb   : > { %v5797_v11 = vor.u32 %v5795_v7, %v5794_v27  ;;  %v5885_v42 = vsel %vm21123_vm6, %v5794_v27, 0  ;;  %v6272_v8 = vrot.slane %v6270_v39, 5  ;;  %v23117_v33 = vadd.f32 %v19336_v43, %v22965_v37  ;;  %v18237_v9 = vpop.f32.mrb[28].mxu1  ;;  %v23143_v15 = vld [vmem:[#allocation2 + $0x3c] sm:$0xf]  ;;  %v20298_v10 = vld [vmem:[#allocation8 + $0x38] sm:$0xff]  }
 0x2fc   : > { %v16753_v22 = vcombine.low %v5885_v42, %v5885_v42  ;;  %v5787_v5 = vrot.slane %v5785_v49, 7  ;;  %v6263_v17 = vsel %vm21116_vm5, %v6258_v50, %v6262_v55  ;;  %v6267_v2 = vor.u32 %v6266_v14, %v6262_v55  ;;  %v23125_v38 = vpop.f32.mrb[29].mxu1  ;;  %v23145_v27 = vld [vmem:[#allocation2 + $0x40] sm:$0xf] }
 0x2fd   : > { %v5869_v0 = vsel %vm21123_vm6, 0, %v5797_v11  ;;  %v6275_v44 = vshrl.u32 %v23107_v28, 16  ;;  %v6278_v25 = vshll.u32 %v23107_v28, 16  ;;  %18488 = vmatpush3.bf16.msra.mxu1 %v20295_v12  ;;  %v23131_v62 = vpop.f32.mrb[30].mxu1  ;;  %v5690_v36 = vmax.f32 %v23117_v33, 0.0 }
 0x2fe   : > { %v16751_v60 = vcombine.low %v5869_v0, %v5869_v0  ;;  %v16752_v32 = vcombine.high %v5869_v0, %v5869_v0  ;;  %6101 = vst [vmem:[#allocation2 + $0x98] sm:$0x1] %v16753_v22  ;;  %v5790_v23 = vor.u32 %v5788_v29, %v5787_v5  ;;  %v5884_v21 = vsel %vm21123_vm6, %v5787_v5, 0  ;;  %18489 = vmatprep.subr.bf16.mxu1 %v20296_v59  ;;  %v23134_v6 = vpop.f32.mrb[31].mxu1 }
 0x2ff   : > { %v16750_v48 = vcombine.low %v5884_v21, %v5884_v21  ;;  %v6268_v45 = vrot.slane %v6267_v2, 4  ;;  %v6277_v20 = vrot.slane %v6275_v44, 4  ;;  %v6280_v40 = vrot.slane %v6278_v25, 5  ;;  %v23167_v44 = vld [vmem:[#allocation2 + $0x48] sm:$0xf] }
 0x300   : > { %6100 = vst [vmem:[#allocation2 + $0x94] sm:$0xf] %v16752_v32  ;;  %6099 = vst [vmem:[#allocation2 + $0x90] sm:$0xf] %v16751_v60  ;;  %v5868_v46 = vsel %vm21123_vm6, 0, %v5790_v23  ;;  %v6284_v13 = vshll.u32 %v23121_v61, 16  ;;  %v19337_v43 = vadd.f32 %v23060_v51, %v23099_v19  ;;  %v19338_v49 = vadd.f32 %v23066_v63, %v23101_v26 }
 0x301   : > { %v6288_v52 = vshrl.u32 %v23121_v61, 16  ;;  %v16748_v35 = vcombine.low %v5868_v46, %v5868_v46  ;;  %v16749_v12 = vcombine.high %v5868_v46, %v5868_v46  ;;  %6098 = vst [vmem:[#allocation2 + $0x8c] sm:$0x1] %v16750_v48  ;;  %v6273_v1 = vsel %vm21116_vm5, %v6268_v45, %v6272_v8  ;;  %18490 = vmatpush3.bf16.msra.mxu1 %v20296_v59  ;;  %v23159_v51 = vld [vmem:[#allocation2 + $0x44] sm:$0x1] }
 0x302   : > { %v6294_v53 = vshll.u32 %v23129_v16, 16  ;;  %v16769_v7 = vcombine.low %v6263_v17, %v6273_v1  ;;  %v6281_v24 = vor.u32 %v6280_v40, %v6277_v20  ;;  %v6286_v56 = vrot.slane %v6284_v13, 5  ;;  %18491 = vmatprep.subr.bf16.mxu1 %v20297_v54  ;;  %v23164_v17 = vld [vmem:[#allocation8 + $0x80] sm:$0xff]   ;;  %v23177_v13 = vld [vmem:[#allocation2 + $0x4c] sm:$0xf] }
 0x303   : > { %v6290_v55 = vrot.slane %v6288_v52, 4  ;;  %6097 = vst [vmem:[#allocation2 + $0x88] sm:$0xf] %v16749_v12  ;;  %6096 = vst [vmem:[#allocation2 + $0x84] sm:$0xf] %v16748_v35  ;;  %v19339_v29 = vadd.f32 %v23080_v47, %v18237_v9  ;;  %v6299_v11 = vshrl.u32 %v23143_v15, 16  ;;  %v5661_v14 = vadd.f32 %v19337_v43, %v22965_v37 }
 0x304   : > { %v6296_v39 = vrot.slane %v6294_v53, 5  ;;  %18452 = vmatmul.mubr.bf16.gmra.mrb[36].mxu1 %v16769_v7  ;;  %v6282_v59 = vrot.slane %v6281_v24, 4  ;;  %v6302_v42 = vshll.u32 %v23143_v15, 16  ;;  %v5659_v8 = vadd.f32 %v19338_v49, %v22965_v37 }
 0x305   : > { %v6291_v50 = vor.u32 %v6290_v55, %v6286_v56  ;;  %v23157_v22 = vadd.f32 %v19339_v29, %v22965_v37  ;;  %v6308_v63 = vshll.u32 %v23145_v27, 16  ;;  %18492 = vmatpush3.bf16.msra.mxu1 %v20297_v54  ;;  %v6301_v26 = vrot.slane %v6299_v11, 4 }
 0x306   : > { %v6287_v47 = vsel %vm21116_vm5, %v6282_v59, %v6286_v56  ;;  %v6304_v5 = vrot.slane %v6302_v42, 5  ;;  %18493 = vmatprep.subr.bf16.mxu1 %v20298_v10  ;;  %v5693_v33 = vmax.f32 %v5661_v14, 0.0  ;;  %v5691_v9 = vmax.f32 %v5659_v8, 0.0 }
 0x307   : > { %v6292_v19 = vrot.slane %v6291_v50, 4  ;;  %v5696_v0 = vmax.f32 %v23157_v22, 0.0  ;;  %v6310_v2 = vrot.slane %v6308_v63, 5  ;;  %v6312_v32 = vshrl.u32 %v23145_v27, 16 }
 0x308   : > { %v6305_v60 = vor.u32 %v6304_v5, %v6301_v26  ;;  %v6318_v23 = vshll.u32 %v23159_v51, 16  ;;  %v5711_v54 = vpack.c.bf16 %v5693_v33, %v5692_v3  ;;  %v5710_v48 = vpack.c.bf16 %v5691_v9, %v5690_v36  ;;  %v23181_v3 = vld [vmem:[#allocation2 + $0x50] sm:$0x1]  ;;  %v23205_v9 = vld [vmem:[#allocation2 + $0x58] sm:$0xf] }
 0x309   : > { %v6297_v25 = vsel %vm21116_vm5, %v6292_v19, %v6296_v39  ;;  %v19340_v45 = vadd.f32 %v23085_v41, %v23125_v38  ;;  %18494 = vmatpush3.bf16.msra.mxu1 %v20298_v10  ;;  %v6314_v46 = vrot.slane %v6312_v32, 4  ;;  %v6323_v52 = vshrl.u32 %v23167_v44, 16 }
 0x30a   : > { %v16770_v21 = vcombine.low %v6287_v47, %v6297_v25  ;;  %v6306_v20 = vrot.slane %v6305_v60, 4  ;;  %v6320_v40 = vrot.slane %v6318_v23, 5  ;;  %18527 = vmatprep.subr.bf16.mxu1 %v23164_v17  ;;  %v5806_v35 = vshrl.u32 %v5711_v54, 16  ;;  %v23199_v47 = vld [vmem:[#allocation2 + $0x54] sm:$0xf] }
 0x30b   : > { %v5809_v12 = vshll.u32 %v5711_v54, 16  ;;  %v5799_v1 = vshrl.u32 %v5710_v48, 16  ;;  %v5802_v58 = vshll.u32 %v5710_v48, 16  ;;  %v6315_v38 = vor.u32 %v6314_v46, %v6310_v2 }
 0x30c   : > { %18455 = vmatprep.mubr.bf16.mxu1 %v16770_v21  ;;  %v6311_v41 = vsel %vm21116_vm5, %v6306_v20, %v6310_v2  ;;  %v23186_v36 = vadd.f32 %v19340_v45, %v22965_v37  ;;  %v6325_v53 = vrot.slane %v6323_v52, 4  ;;  %v5808_v7 = vrot.slane %v5806_v35, 7 }
 0x30d   : > { %v5801_v24 = vrot.slane %v5799_v1, 7  ;;  %v6326_v56 = vshll.u32 %v23167_v44, 16  ;;  %v6332_v55 = vshll.u32 %v23177_v13, 16  ;;  %v6316_v10 = vrot.slane %v6315_v38, 4  ;;  %v23215_v1 = vld [vmem:[#allocation2 + $0x5c] sm:$0x1] }
 0x30e   : > { %v5694_v39 = vmax.f32 %v23186_v36, 0.0  ;;  %v6336_v43 = vshrl.u32 %v23177_v13, 16  ;;  %v6342_v49 = vshll.u32 %v23181_v3, 16  ;;  %v5811_v29 = vor.u32 %v5809_v12, %v5808_v7 }
 0x30f   : > { %v5887_v59 = vsel %vm21123_vm6, %v5808_v7, 0  ;;  %v5804_v50 = vor.u32 %v5802_v58, %v5801_v24  ;;  %v5886_v11 = vsel %vm21123_vm6, %v5801_v24, 0  ;;  %v6321_v8 = vsel %vm21116_vm5, %v6316_v10, %v6320_v40 }
 0x310   : > { %v16759_v42 = vcombine.low %v5887_v59, %v5887_v59  ;;  %v16756_v14 = vcombine.low %v5886_v11, %v5886_v11  ;;  %v6328_v63 = vrot.slane %v6326_v56, 5  ;;  %v5871_v19 = vsel %vm21123_vm6, 0, %v5811_v29 }
 0x311   : > { %v5870_v26 = vsel %vm21123_vm6, 0, %v5804_v50  ;;  %v16771_v5 = vcombine.low %v6311_v41, %v6321_v8  ;;  %v6334_v33 = vrot.slane %v6332_v55, 5  ;;  %v16757_v2 = vcombine.low %v5871_v19, %v5871_v19 }
 0x312   : > { %v16758_v25 = vcombine.high %v5871_v19, %v5871_v19  ;;  %6107 = vst [vmem:[#allocation2 + $0xb0] sm:$0x1] %v16759_v42  ;;  %v16754_v60 = vcombine.low %v5870_v26, %v5870_v26  ;;  %v16755_v32 = vcombine.high %v5870_v26, %v5870_v26  ;;  %6104 = vst [vmem:[#allocation2 + $0xa4] sm:$0x1] %v16756_v14  ;;  %v6338_v21 = vrot.slane %v6336_v43, 4 }
 0x313   : > { %18456 = vmatmul.mubr.bf16.gmra.mrb[40].mxu1 %v16771_v5  ;;  %v6329_v23 = vor.u32 %v6328_v63, %v6325_v53  ;;  %v6344_v54 = vrot.slane %v6342_v49, 5  ;;  %v19341_v48 = vadd.f32 %v23090_v31, %v23131_v62  ;;  %6105 = vst [vmem:[#allocation2 + $0xa8] sm:$0xf] %v16757_v2  ;;  %v19342_v45 = vadd.f32 %v23095_v4, %v23134_v6  ;;  %v23218_v62 = vld [vmem:[#allocation2 + $0x60] sm:$0xf] }
 0x314   : > { %6106 = vst [vmem:[#allocation2 + $0xac] sm:$0xf] %v16758_v25  ;;  %6103 = vst [vmem:[#allocation2 + $0xa0] sm:$0xf] %v16755_v32  ;;  %v6347_v20 = vshrl.u32 %v23199_v47, 16  ;;  %v6350_v46 = vshll.u32 %v23199_v47, 16  ;;  %v6339_v35 = vor.u32 %v6338_v21, %v6334_v33 }
 0x315   : > { %6102 = vst [vmem:[#allocation2 + $0x9c] sm:$0xf] %v16754_v60  ;;  %v6356_v40 = vshll.u32 %v23205_v9, 16  ;;  %v6330_v52 = vrot.slane %v6329_v23, 4  ;;  %v5665_v12 = vadd.f32 %v19341_v48, %v22965_v37  ;;  %v6360_v31 = vshrl.u32 %v23205_v9, 16 }
 0x316   : > { %v5663_v58 = vadd.f32 %v19342_v45, %v22965_v37  ;;  %v6349_v41 = vrot.slane %v6347_v20, 4  ;;  %v6352_v4 = vrot.slane %v6350_v46, 5  ;;  %v6340_v36 = vrot.slane %v6339_v35, 4  ;;  %v23230_v14 = vld [vmem:[#allocation2 + $0x64] sm:$0xf] }
 0x317   : > { %v6358_v6 = vrot.slane %v6356_v40, 5  ;;  %v6335_v38 = vsel %vm21116_vm5, %v6330_v52, %v6334_v33  ;;  %v5697_v53 = vmax.f32 %v5665_v12, 0.0  ;;  %v6362_v7 = vrot.slane %v6360_v31, 4  ;;  %v23232_v26 = vld [vmem:[#allocation2 + $0x68] sm:$0x1] }
 0x318   : > { %v5695_v24 = vmax.f32 %v5663_v58, 0.0  ;;  %v6353_v56 = vor.u32 %v6352_v4, %v6349_v41  ;;  %v6366_v55 = vshll.u32 %v23215_v1, 16  ;;  %v6371_v10 = vshrl.u32 %v23218_v62, 16  ;;  %v23243_v52 = vld [vmem:[#allocation2 + $0x6c] sm:$0xf] }
 0x319   : > { %v6345_v43 = vsel %vm21116_vm5, %v6340_v36, %v6344_v54  ;;  %v5713_v37 = vpack.c.bf16 %v5697_v53, %v5696_v0  ;;  %v6363_v49 = vor.u32 %v6362_v7, %v6358_v6  ;;  %v6374_v29 = vshll.u32 %v23218_v62, 16  ;;  %v23245_v35 = vld [vmem:[#allocation2 + $0x74] sm:$0x1]  ;;  %v23251_v53 = vld [vmem:[#allocation2 + $0x70] sm:$0xf] }
 0x31a   : > { %v16772_v59 = vcombine.low %v6335_v38, %v6345_v43  ;;  %v5712_v50 = vpack.c.bf16 %v5695_v24, %v5694_v39  ;;  %v6354_v11 = vrot.slane %v6353_v56, 4  ;;  %v6368_v42 = vrot.slane %v6366_v55, 5 }
 0x31b   : > { %v5820_v8 = vshrl.u32 %v5713_v37, 16  ;;  %v5823_v63 = vshll.u32 %v5713_v37, 16  ;;  %v6364_v19 = vrot.slane %v6363_v49, 4  ;;  %v6373_v5 = vrot.slane %v6371_v10, 4  ;;  %v23257_v10 = vld [vmem:[#allocation2 + $0x78] sm:$0xf] }
 0x31c   : > { %18459 = vmatprep.mubr.bf16.mxu1 %v16772_v59  ;;  %v5813_v33 = vshrl.u32 %v5712_v50, 16  ;;  %v5816_v2 = vshll.u32 %v5712_v50, 16  ;;  %v6359_v22 = vsel %vm21116_vm5, %v6354_v11, %v6358_v6  ;;  %v6376_v0 = vrot.slane %v6374_v29, 5 }
 0x31d   : > { %v5822_v25 = vrot.slane %v5820_v8, 7  ;;  %v6369_v39 = vsel %vm21116_vm5, %v6364_v19, %v6368_v42  ;;  %v6380_v60 = vshll.u32 %v23230_v14, 16  ;;  %v6384_v32 = vshrl.u32 %v23230_v14, 16  ;;  %v23264_v8 = vld [vmem:[#allocation2 + $0x7c] sm:$0xf] }
 0x31e   : > { %v5815_v23 = vrot.slane %v5813_v33, 7  ;;  %v16773_v21 = vcombine.low %v6359_v22, %v6369_v39  ;;  %v6377_v54 = vor.u32 %v6376_v0, %v6373_v5  ;;  %v6390_v48 = vshll.u32 %v23232_v26, 16  ;;  %v23268_v5 = vld [vmem:[#allocation2 + $0x80] sm:$0x1] }
 0x31f   : > { %v5825_v45 = vor.u32 %v5823_v63, %v5822_v25  ;;  %v5889_v20 = vsel %vm21123_vm6, %v5822_v25, 0  ;;  %v6382_v46 = vrot.slane %v6380_v60, 5  ;;  %v6386_v40 = vrot.slane %v6384_v32, 4  ;;  %v23272_v60 = vld [vmem:[#allocation2 + $0x84] sm:$0xf] }
 0x320   : > { %v16765_v12 = vcombine.low %v5889_v20, %v5889_v20  ;;  %v5818_v31 = vor.u32 %v5816_v2, %v5815_v23  ;;  %v5888_v58 = vsel %vm21123_vm6, %v5815_v23, 0  ;;  %18460 = vmatmul.mubr.bf16.gmra.mrb[44].mxu1 %v16773_v21  ;;  %v6378_v41 = vrot.slane %v6377_v54, 4 }
 0x321   : > { %v5873_v4 = vsel %vm21123_vm6, 0, %v5825_v45  ;;  %v16762_v6 = vcombine.low %v5888_v58, %v5888_v58  ;;  %v6387_v38 = vor.u32 %v6386_v40, %v6382_v46  ;;  %v6392_v36 = vrot.slane %v6390_v48, 5  ;;  %v23277_v40 = vld [vmem:[#allocation2 + $0x88] sm:$0xf] }
 0x322   : > { %v16763_v7 = vcombine.low %v5873_v4, %v5873_v4  ;;  %v16764_v24 = vcombine.high %v5873_v4, %v5873_v4  ;;  %6113 = vst [vmem:[#allocation2 + $0xc8] sm:$0x1] %v16765_v12  ;;  %v5872_v56 = vsel %vm21123_vm6, 0, %v5818_v31  ;;  %v6383_v55 = vsel %vm21116_vm5, %v6378_v41, %v6382_v46  ;;  %v23281_v4 = vld [vmem:[#allocation2 + $0x90] sm:$0xf] }
 0x323   : > { %v16760_v43 = vcombine.low %v5872_v56, %v5872_v56  ;;  %v16761_v37 = vcombine.high %v5872_v56, %v5872_v56  ;;  %6110 = vst [vmem:[#allocation2 + $0xbc] sm:$0x1] %v16762_v6  ;;  %v6388_v49 = vrot.slane %v6387_v38, 4  ;;  %v6395_v29 = vshrl.u32 %v23243_v52, 16 }
 0x324   : > { %6112 = vst [vmem:[#allocation2 + $0xc4] sm:$0xf] %v16764_v24  ;;  %6111 = vst [vmem:[#allocation2 + $0xc0] sm:$0xf] %v16763_v7  ;;  %v6398_v59 = vshll.u32 %v23243_v52, 16  ;;  %v6404_v50 = vshll.u32 %v23251_v53, 16 }
 0x325   : > { %v6408_v11 = vshrl.u32 %v23251_v53, 16  ;;  %v6414_v42 = vshll.u32 %v23245_v35, 16  ;;  %6109 = vst [vmem:[#allocation2 + $0xb8] sm:$0xf] %v16761_v37  ;;  %6108 = vst [vmem:[#allocation2 + $0xb4] sm:$0xf] %v16760_v43  ;;  %v6393_v63 = vsel %vm21116_vm5, %v6388_v49, %v6392_v36 }
 0x326   : > { %v6397_v19 = vrot.slane %v6395_v29, 4  ;;  %v6419_v33 = vshrl.u32 %v23257_v10, 16  ;;  %v6422_v2 = vshll.u32 %v23257_v10, 16  ;;  %v16774_v22 = vcombine.low %v6383_v55, %v6393_v63  ;;  %v23283_v24 = vld [vmem:[#allocation2 + $0x8c] sm:$0x1] }
 0x327   : > { %v6400_v0 = vrot.slane %v6398_v59, 5  ;;  %v6406_v25 = vrot.slane %v6404_v50, 5  ;;  %v6410_v39 = vrot.slane %v6408_v11, 4  ;;  %v6416_v32 = vrot.slane %v6414_v42, 5  ;;  %v23291_v11 = vld [vmem:[#allocation2 + $0x94] sm:$0xf] }
 0x328   : > { %v6421_v23 = vrot.slane %v6419_v33, 4  ;;  %v6424_v21 = vrot.slane %v6422_v2, 5  ;;  %v6428_v54 = vshll.u32 %v23264_v8, 16  ;;  %18463 = vmatprep.mubr.bf16.mxu1 %v16774_v22  ;;  %v6432_v20 = vshrl.u32 %v23264_v8, 16  ;;  %v23295_v2 = vld [vmem:[#allocation2 + $0x98] sm:$0x1] }
 0x329   : > { %v6401_v48 = vor.u32 %v6400_v0, %v6397_v19  ;;  %v6411_v45 = vor.u32 %v6410_v39, %v6406_v25  ;;  %v6438_v46 = vshll.u32 %v23268_v5, 16  ;;  %v6443_v58 = vshrl.u32 %v23272_v60, 16  ;;  %v23297_v22 = vld [vmem:[#allocation2 + $0x9c] sm:$0xf] }
 0x32a   : > { %v6425_v12 = vor.u32 %v6424_v21, %v6421_v23  ;;  %v6430_v31 = vrot.slane %v6428_v54, 5  ;;  %v6446_v41 = vshll.u32 %v23272_v60, 16  ;;  %v6434_v36 = vrot.slane %v6432_v20, 4 }
 0x32b   : > { %v6402_v6 = vrot.slane %v6401_v48, 4  ;;  %v6412_v38 = vrot.slane %v6411_v45, 4  ;;  %v6440_v7 = vrot.slane %v6438_v46, 5  ;;  %v6445_v55 = vrot.slane %v6443_v58, 4 }
 0x32c   : > { %v6426_v56 = vrot.slane %v6425_v12, 4  ;;  %v6448_v43 = vrot.slane %v6446_v41, 5  ;;  %v6452_v37 = vshll.u32 %v23277_v40, 16  ;;  %v6435_v59 = vor.u32 %v6434_v36, %v6430_v31 }
 0x32d   : > { %v6407_v49 = vsel %vm21116_vm5, %v6402_v6, %v6406_v25  ;;  %v6417_v29 = vsel %vm21116_vm5, %v6412_v38, %v6416_v32  ;;  %v6456_v50 = vshrl.u32 %v23277_v40, 16  ;;  %v6462_v39 = vshll.u32 %v23283_v24, 16 }
 0x32e   : > { %v16775_v42 = vcombine.low %v6407_v49, %v6417_v29  ;;  %v6431_v63 = vsel %vm21116_vm5, %v6426_v56, %v6430_v31  ;;  %v6449_v19 = vor.u32 %v6448_v43, %v6445_v55  ;;  %v6454_v33 = vrot.slane %v6452_v37, 5  ;;  %v23306_v31 = vld [vmem:[#allocation2 + $0xa0] sm:$0xf]  ;;  %v23311_v43 = vld [vmem:[#allocation2 + $0xa4] sm:$0x1] }
 0x32f   : > { %v6436_v0 = vrot.slane %v6435_v59, 4  ;;  %v6458_v25 = vrot.slane %v6456_v50, 4  ;;  %v6467_v32 = vshrl.u32 %v23281_v4, 16  ;;  %v6470_v21 = vshll.u32 %v23281_v4, 16  ;;  %v23317_v50 = vld [vmem:[#allocation2 + $0xa8] sm:$0xf] }
 0x330   : > { %18464 = vmatmul.mubr.bf16.gmra.mrb[48].mxu1 %v16775_v42  ;;  %v6450_v23 = vrot.slane %v6449_v19, 4  ;;  %v6476_v54 = vshll.u32 %v23291_v11, 16  ;;  %v6480_v48 = vshrl.u32 %v23291_v11, 16  ;;  %v6464_v46 = vrot.slane %v6462_v39, 5 }
 0x331   : > { %v6441_v45 = vsel %vm21116_vm5, %v6436_v0, %v6440_v7  ;;  %v6459_v20 = vor.u32 %v6458_v25, %v6454_v33  ;;  %v6469_v12 = vrot.slane %v6467_v32, 4  ;;  %v6472_v6 = vrot.slane %v6470_v21, 5  ;;  %v23321_v0 = vld [vmem:[#allocation2 + $0xac] sm:$0xf] }
 0x332   : > { %v16776_v58 = vcombine.low %v6431_v63, %v6441_v45  ;;  %v6455_v41 = vsel %vm21116_vm5, %v6450_v23, %v6454_v33  ;;  %v6478_v38 = vrot.slane %v6476_v54, 5  ;;  %v6482_v56 = vrot.slane %v6480_v48, 4 }
 0x333   : > { %v6460_v36 = vrot.slane %v6459_v20, 4  ;;  %v6486_v55 = vshll.u32 %v23295_v2, 16  ;;  %v6491_v37 = vshrl.u32 %v23297_v22, 16  ;;  %v6473_v7 = vor.u32 %v6472_v6, %v6469_v12  ;;  %v23327_v12 = vld [vmem:[#allocation2 + $0xb0] sm:$0x1] }
 0x334   : > { %18467 = vmatprep.mubr.bf16.mxu1 %v16776_v58  ;;  %v6494_v49 = vshll.u32 %v23297_v22, 16  ;;  %v6500_v29 = vshll.u32 %v23306_v31, 16  ;;  %v6504_v59 = vshrl.u32 %v23306_v31, 16  ;;  %v6483_v63 = vor.u32 %v6482_v56, %v6478_v38  ;;  %v23331_v6 = vld [vmem:[#allocation2 + $0xb4] sm:$0xf] }
 0x335   : > { %v6465_v42 = vsel %vm21116_vm5, %v6460_v36, %v6464_v46  ;;  %v6488_v19 = vrot.slane %v6486_v55, 5  ;;  %v6493_v33 = vrot.slane %v6491_v37, 4  ;;  %v6474_v39 = vrot.slane %v6473_v7, 4  ;;  %v23335_v7 = vld [vmem:[#allocation2 + $0xb8] sm:$0xf] }
 0x336   : > { %v16777_v25 = vcombine.low %v6455_v41, %v6465_v42  ;;  %v6496_v32 = vrot.slane %v6494_v49, 5  ;;  %v6502_v23 = vrot.slane %v6500_v29, 5  ;;  %v6484_v21 = vrot.slane %v6483_v63, 4 }
 0x337   : > { %v6506_v54 = vrot.slane %v6504_v59, 4  ;;  %v6510_v48 = vshll.u32 %v23311_v43, 16  ;;  %v6515_v45 = vshrl.u32 %v23317_v50, 16  ;;  %v6479_v20 = vsel %vm21116_vm5, %v6474_v39, %v6478_v38 }
 0x338   : > { %18468 = vmatmul.mubr.bf16.gmra.mrb[52].mxu1 %v16777_v25  ;;  %v6497_v46 = vor.u32 %v6496_v32, %v6493_v33  ;;  %v6518_v58 = vshll.u32 %v23317_v50, 16  ;;  %v6524_v41 = vshll.u32 %v23321_v0, 16  ;;  %v6489_v36 = vsel %vm21116_vm5, %v6484_v21, %v6488_v19 }
 0x339   : > { %v6507_v56 = vor.u32 %v6506_v54, %v6502_v23  ;;  %v6512_v55 = vrot.slane %v6510_v48, 5  ;;  %v6517_v37 = vrot.slane %v6515_v45, 4  ;;  %v16778_v49 = vcombine.low %v6479_v20, %v6489_v36 }
 0x33a   : > { %v6498_v29 = vrot.slane %v6497_v46, 4  ;;  %v6520_v38 = vrot.slane %v6518_v58, 5  ;;  %v6526_v59 = vrot.slane %v6524_v41, 5  ;;  %v6528_v63 = vshrl.u32 %v23321_v0, 16  ;;  %v23346_v58 = vld [vmem:[#allocation2 + $0xbc] sm:$0x1] }
 0x33b   : > { %v6508_v42 = vrot.slane %v6507_v56, 4  ;;  %v6534_v33 = vshll.u32 %v23327_v12, 16  ;;  %v6539_v25 = vshrl.u32 %v23331_v6, 16  ;;  %18471 = vmatprep.mubr.bf16.mxu1 %v16778_v49  ;;  %v6542_v32 = vshll.u32 %v23331_v6, 16 }
 0x33c   : > { %v6503_v19 = vsel %vm21116_vm5, %v6498_v29, %v6502_v23  ;;  %v6521_v39 = vor.u32 %v6520_v38, %v6517_v37  ;;  %v6548_v21 = vshll.u32 %v23335_v7, 16  ;;  %v6530_v48 = vrot.slane %v6528_v63, 4 }
 0x33d   : > { %v6513_v54 = vsel %vm21116_vm5, %v6508_v42, %v6512_v55  ;;  %v6541_v45 = vrot.slane %v6539_v25, 4  ;;  %v6544_v41 = vrot.slane %v6542_v32, 5  ;;  %v6552_v49 = vshrl.u32 %v23335_v7, 16 }
 0x33e   : > { %v16779_v20 = vcombine.low %v6503_v19, %v6513_v54  ;;  %v6522_v46 = vrot.slane %v6521_v39, 4  ;;  %v6531_v36 = vor.u32 %v6530_v48, %v6526_v59  ;;  %v6550_v56 = vrot.slane %v6548_v21, 5  ;;  %v23358_v54 = vld [vmem:[#allocation2 + $0x4] sm:$0xf] }
 0x33f   : > { %v6536_v23 = vrot.slane %v6534_v33, 5  ;;  %v6545_v37 = vor.u32 %v6544_v41, %v6541_v45  ;;  %v6554_v57 = vrot.slane %v6552_v49, 4  ;;  %v6558_v55 = vshll.u32 %v23346_v58, 16  ;;  %v20304_v41 = vld [vmem:[#allocation8 + $0x88] sm:$0xff]  }
 0x340   : > { %18472 = vmatmul.mubr.bf16.gmra.mrb[56].mxu1 %v16779_v20  ;;  %v6527_v29 = vsel %vm21116_vm5, %v6522_v46, %v6526_v59  ;;  %v6532_v38 = vrot.slane %v6531_v36, 4  ;;  %v20592_v59 = vld [vmem:[#allocation2] sm:$0xf]  ;;  %v20594_v20 = vld [vmem:[#allocation2 + $0xc] sm:$0xf] }
 0x341   : > { %v6546_v42 = vrot.slane %v6545_v37, 4  ;;  %v6555_v25 = vor.u32 %v6554_v57, %v6550_v56  ;;  %v6560_v21 = vrot.slane %v6558_v55, 5  ;;  %v16790_v48 = vcombine.low %v20592_v59, %v23358_v54  ;;  %v23361_v57 = vld [vmem:[#allocation2 + $0x10] sm:$0xf]  ;;  %v20596_v36 = vld [vmem:[#allocation2 + $0x18] sm:$0xf] }
 0x342   : > { %v6537_v63 = vsel %vm21116_vm5, %v6532_v38, %v6536_v23  ;;  %v16791_v46 = vcombine.low %v20594_v20, %v23361_v57  ;;  %v20307_v23 = vld [vmem:[#allocation8 + $0x90] sm:$0xff]   ;;  %v20598_v37 = vld [vmem:[#allocation2 + $0x24] sm:$0xf]  ;;  %v20310_v38 = vld [vmem:[#allocation8 + $0x98] sm:$0xff]   ;;  %v16794_v55 = vcombine.low %v23107_v28, %v23121_v61  ;;  %v16797_v28 = vcombine.low %v23199_v47, %v23205_v9 }
 0x343   : > { %v16780_v19 = vcombine.low %v6527_v29, %v6537_v63  ;;  %v6551_v39 = vsel %vm21116_vm5, %v6546_v42, %v6550_v56  ;;  %v6556_v32 = vrot.slane %v6555_v25, 4  ;;  %v23364_v56 = vld [vmem:[#allocation2 + $0x1c] sm:$0xf]  ;;  %v16793_v29 = vcombine.low %v20598_v37, %v23076_v18  ;;  %v20316_v63 = vld [vmem:[#allocation8 + $0xa8] sm:$0xff]   ;;  %v20319_v18 = vld [vmem:[#allocation8 + $0xb0] sm:$0xff]  }
 0x344   : > { %v16792_v49 = vcombine.low %v20596_v36, %v23364_v56  ;;  %v20313_v42 = vld [vmem:[#allocation8 + $0xa0] sm:$0xff]   ;;  %v16796_v25 = vcombine.low %v23167_v44, %v23177_v13  ;;  %v16799_v44 = vcombine.low %v23243_v52, %v23251_v53  ;;  %v16801_v47 = vcombine.low %v23272_v60, %v23277_v40  ;;  %v7158_v36 = vld [vmem:[#allocation2 + $0xc] sm:$0xe] }
 0x345   : > { %18475 = vmatprep.mubr.bf16.mxu1 %v16780_v19  ;;  %v6561_v33 = vsel %vm21116_vm5, %v6556_v32, %v6560_v21  ;;  %v20322_v19 = vld [vmem:[#allocation8 + $0xb8] sm:$0xff]   ;;  %v16800_v32 = vcombine.low %v23257_v10, %v23264_v8  ;;  %v7207_v21 = vrot.slane %v23358_v54, 5  ;;  %v16803_v52 = vcombine.low %v23297_v22, %v23306_v31 }
 0x346   : > { %v16781_v45 = vcombine.low %v6551_v39, %v6561_v33  ;;  %v16798_v39 = vcombine.low %v23218_v62, %v23230_v14  ;;  %v16802_v62 = vcombine.low %v23281_v4, %v23291_v11  ;;  %v7157_v33 = vld [vmem:[#allocation2] sm:$0xe]  ;;  %v16804_v20 = vcombine.low %v23317_v50, %v23321_v0 }
 0x347   : > { %v16814_v59 = vrot.slane %v7157_v33, 9  ;;  %v7214_v54 = vrot.slane %v23361_v57, 5  ;;  %v16815_v37 = vrot.slane %v7158_v36, 9 }
 0x348   : > { %18476 = vmatmul.mubr.bf16.gmra.mrb[60].mxu1 %v16781_v45  ;;  %v20599_v45 = vld [vmem:[#allocation2 + $0x8] sm:$0x1] }
 0x349   : > { %18495 = vmatprep.mubr.bf16.mxu1 %v16790_v48  ;;  %v7209_v48 = vrot.slane %v7207_v21, 4  ;;  %v7210_v10 = vrot.slane %v20599_v45, 5  ;;  %v7208_v60 = vsel %vm21274_vm9, %v16814_v59, %v7207_v21  ;;  %v20325_v45 = vld [vmem:[#allocation8 + $0xd0] sm:$0xff]  }
 0x34b   : > { %v7211_v4 = vsel %vm21274_vm9, %v7209_v48, %v7210_v10  ;;  %v7238_v48 = vrot.slane %v23129_v16, 5  ;;  %v7162_v16 = vld [vmem:[#allocation2 + $0x3c] sm:$0xe] }
 0x34c   : > { %v16830_v22 = vcombine.low %v7208_v60, %v7211_v4  ;;  %v7249_v4 = vrot.slane %v23177_v13, 5  ;;  %v7245_v13 = vrot.slane %v23159_v51, 5 }
 0x350   : > { %18496 = vmatmul.mubr.bf16.vlgmr.msra.gmra.mrb[32].mxu1 %v16791_v46  ;;  %v7221_v46 = vrot.slane %v23364_v56, 5  ;;  %v20602_v56 = vld [vmem:[#allocation2 + $0x28] sm:$0xf] }
 0x351   : > { %18499 = vmatprep.mubr.bf16.mxu1 %v16792_v49  ;;  %18528 = vmatpush3.bf16.msra.mxu1 %v23164_v17  ;;  %v16795_v17 = vcombine.low %v23143_v15, %v23145_v27  ;;  %v20323_v15 = vld [vmem:[#allocation8 + $0xc0] sm:$0xff]   ;;  %v7216_v49 = vrot.slane %v7214_v54, 4 }
 0x352   : > { %18529 = vmatprep.subr.bf16.mxu1 %v20304_v41  ;;  %v7223_v50 = vrot.slane %v7221_v46, 4 }
 0x355   : > { %18530 = vmatpush3.bf16.msra.mxu1 %v20304_v41  ;;  %v16805_v41 = vcombine.low %v23331_v6, %v23335_v7 }
 0x356   : > { %18531 = vmatprep.subr.bf16.mxu1 %v20307_v23 }
 0x358   : > { %18500 = vmatmul.mubr.bf16.gmra.mrb[36].mxu1 %v16793_v29  ;;  %v20600_v29 = vld [vmem:[#allocation2 + $0x14] sm:$0x1] }
 0x359   : > { %18503 = vmatprep.mubr.bf16.mxu1 %v16794_v55  ;;  %18532 = vmatpush3.bf16.msra.mxu1 %v20307_v23  ;;  %v7159_v23 = vld [vmem:[#allocation2 + $0x18] sm:$0xe] }
 0x35a   : > { %18533 = vmatprep.subr.bf16.mxu1 %v20310_v38  ;;  %v16816_v55 = vrot.slane %v7159_v23, 9  ;;  %v16819_v23 = vrot.slane %v7162_v16, 9  ;;  %v7291_v16 = vrot.slane %v23291_v11, 5 }
 0x35d   : > { %18534 = vmatpush3.bf16.msra.mxu1 %v20310_v38  ;;  %v7217_v38 = vrot.slane %v20600_v29, 5  ;;  %v20327_v29 = vld [vmem:[#allocation8 + $0xe0] sm:$0xff]  }
 0x35e   : > { %18535 = vmatprep.subr.bf16.mxu1 %v20313_v42 }
 0x35f   : > { %v7218_v57 = vsel %vm21274_vm9, %v7216_v49, %v7217_v38  ;;  %v7163_v49 = vld [vmem:[#allocation2 + $0x48] sm:$0xe] }
 0x360   : > { %18504 = vmatmul.mubr.bf16.gmra.mrb[40].mxu1 %v16795_v17 }
 0x361   : > { %18507 = vmatprep.mubr.bf16.mxu1 %v16796_v25  ;;  %18536 = vmatpush3.bf16.msra.mxu1 %v20313_v42  ;;  %v20601_v42 = vld [vmem:[#allocation2 + $0x20] sm:$0x1]  ;;  %v7235_v25 = vrot.slane %v23121_v61, 5 }
 0x362   : > { %18537 = vmatprep.subr.bf16.mxu1 %v20316_v63  ;;  %v7224_v17 = vrot.slane %v20601_v42, 5 }
 0x363   : > { %v7237_v21 = vrot.slane %v7235_v25, 4 }
 0x364   : > { %v7225_v6 = vsel %vm21274_vm9, %v7223_v50, %v7224_v17  ;;  %v16820_v50 = vrot.slane %v7163_v49, 9  ;;  %v7263_v17 = vrot.slane %v23230_v14, 5  ;;  %v7259_v14 = vrot.slane %v23215_v1, 5 }
 0x365   : > { %18538 = vmatpush3.bf16.msra.mxu1 %v20316_v63  ;;  %v7228_v63 = vrot.slane %v20602_v56, 5  ;;  %v7239_v60 = vsel %vm21274_vm9, %v7237_v21, %v7238_v48  ;;  %v7164_v56 = vld [vmem:[#allocation2 + $0x54] sm:$0xe]  ;;  %v7277_v21 = vrot.slane %v23264_v8, 5  ;;  %v7273_v8 = vrot.slane %v23245_v35, 5 }
 0x366   : > { %18539 = vmatprep.subr.bf16.mxu1 %v20319_v18 }
 0x368   : > { %18508 = vmatmul.mubr.bf16.gmra.mrb[44].mxu1 %v16797_v28 }
 0x369   : > { %18511 = vmatprep.mubr.bf16.mxu1 %v16798_v39  ;;  %18540 = vmatpush3.bf16.msra.mxu1 %v20319_v18  ;;  %v7215_v18 = vsel %vm21274_vm9, %v16815_v37, %v7214_v54  ;;  %v7160_v39 = vld [vmem:[#allocation2 + $0x24] sm:$0xe]  ;;  %v7252_v37 = vrot.slane %v23181_v3, 5  ;;  %v7250_v3 = vsel %vm21274_vm9, %v16820_v50, %v7249_v4  ;;  %v7294_v50 = vrot.slane %v23295_v2, 5 }
 0x36a   : > { %18541 = vmatprep.subr.bf16.mxu1 %v20322_v19  ;;  %v16831_v28 = vcombine.low %v7215_v18, %v7218_v57  ;;  %v16817_v33 = vrot.slane %v7160_v39, 9  ;;  %v7165_v18 = vld [vmem:[#allocation2 + $0x60] sm:$0xe]  ;;  %v7266_v39 = vrot.slane %v23232_v26, 5 }
 0x36d   : > { %18542 = vmatpush3.bf16.msra.mxu1 %v20322_v19  ;;  %v7222_v19 = vsel %vm21274_vm9, %v16816_v55, %v7221_v46  ;;  %v7256_v55 = vrot.slane %v23205_v9, 5  ;;  %v7265_v9 = vrot.slane %v7263_v17, 4 }
 0x36e   : > { %18575 = vmatprep.subr.bf16.mxu1 %v20323_v15 }
 0x370   : > { %18512 = vmatmul.mubr.bf16.gmra.mrb[48].mxu1 %v16799_v44  ;;  %v20324_v44 = vld [vmem:[#allocation8 + $0xc8] sm:$0xff]  }
 0x371   : > { %18515 = vmatprep.mubr.bf16.mxu1 %v16800_v32  ;;  %v16832_v32 = vcombine.low %v7222_v19, %v7225_v6  ;;  %v16822_v19 = vrot.slane %v7165_v18, 9  ;;  %v7312_v18 = vrot.slane %v23335_v7, 5 }
 0x373   : > { %v7264_v26 = vsel %vm21274_vm9, %v16822_v19, %v7263_v17 }
 0x378   : > { %18516 = vmatmul.mubr.bf16.gmra.mrb[52].mxu1 %v16801_v47  ;;  %v7230_v47 = vrot.slane %v7228_v63, 4 }
 0x379   : > { %18519 = vmatprep.mubr.bf16.mxu1 %v16802_v62  ;;  %v7161_v62 = vld [vmem:[#allocation2 + $0x30] sm:$0xe] }
 0x37a   : > { %v16818_v61 = vrot.slane %v7161_v62, 9  ;;  %v7267_v62 = vsel %vm21274_vm9, %v7265_v9, %v7266_v39  ;;  %v7172_v39 = vld [vmem:[#allocation2 + $0xb4] sm:$0xe] }
 0x37c   : > { %v7236_v46 = vsel %vm21274_vm9, %v16818_v61, %v7235_v25  ;;  %v7258_v25 = vrot.slane %v7256_v55, 4  ;;  %v16838_v61 = vcombine.low %v7264_v26, %v7267_v62  ;;  %v20334_v26 = vld [vmem:[#allocation2 + $0x24] sm:$0xff]  }
 0x380   : > { %18520 = vmatmul.mubr.bf16.gmra.mrb[56].mxu1 %v16803_v52  ;;  %v20603_v52 = vld [vmem:[#allocation2 + $0x2c] sm:$0x1] }
 0x381   : > { %18523 = vmatprep.mubr.bf16.mxu1 %v16804_v20  ;;  %v7231_v59 = vrot.slane %v20603_v52, 5  ;;  %v7242_v20 = vrot.slane %v23145_v27, 5  ;;  %v7251_v27 = vrot.slane %v7249_v4, 4  ;;  %v7166_v52 = vld [vmem:[#allocation2 + $0x6c] sm:$0xe]  ;;  %v20333_v4 = vld [vmem:[#allocation8 + $0x100] sm:$0xff]  }
 0x383   : > { %v7232_v10 = vsel %vm21274_vm9, %v7230_v47, %v7231_v59  ;;  %v7244_v36 = vrot.slane %v7242_v20, 4  ;;  %v7253_v42 = vsel %vm21274_vm9, %v7251_v27, %v7252_v37  ;;  %v7243_v57 = vsel %vm21274_vm9, %v16819_v23, %v7242_v20  ;;  %v20330_v59 = vld [vmem:[#allocation8 + $0xf8] sm:$0xff]  }
 0x384   : > { %v16836_v6 = vcombine.low %v7250_v3, %v7253_v42  ;;  %v7270_v47 = vrot.slane %v23251_v53, 5  ;;  %v7279_v53 = vrot.slane %v7277_v21, 4  ;;  %v7169_v27 = vld [vmem:[#allocation2 + $0x90] sm:$0xe]  ;;  %v7171_v3 = vld [vmem:[#allocation2 + $0xa8] sm:$0xe] }
 0x385   : > { %v7246_v38 = vsel %vm21274_vm9, %v7244_v36, %v7245_v13  ;;  %v7287_v13 = vrot.slane %v23283_v24, 5  ;;  %v16826_v11 = vrot.slane %v7169_v27, 9 }
 0x386   : > { %v16835_v51 = vcombine.low %v7243_v57, %v7246_v38  ;;  %v7272_v48 = vrot.slane %v7270_v47, 4  ;;  %v7170_v57 = vld [vmem:[#allocation2 + $0x9c] sm:$0xe] }
 0x387   : > { %v7292_v24 = vsel %vm21274_vm9, %v16826_v11, %v7291_v16 }
 0x388   : > { %18524 = vmatmul.mubr.bf16.gmra.mrb[60].mxu1 %v16805_v41  ;;  %v16834_v41 = vcombine.low %v7236_v46, %v7239_v60  ;;  %v7280_v60 = vrot.slane %v23268_v5, 5 }
 0x389   : > { %18543 = vmatprep.mubr.bf16.mxu1 %v16830_v22  ;;  %v20326_v22 = vld [vmem:[#allocation8 + $0xd8] sm:$0xff]  }
 0x38a   : > { %v7281_v46 = vsel %vm21274_vm9, %v7279_v53, %v7280_v60  ;;  %v20348_v53 = vld [vmem:[#allocation8 + $0x128] sm:$0xff]   ;;  %v20354_v60 = vld [vmem:[#allocation8 + $0x138] sm:$0xff]  }
 0x390   : > { %18544 = vmatmul.mubr.bf16.vlgmr.msra.gmra.mrb[32].mxu1 %v16831_v28  ;;  %v16821_v28 = vrot.slane %v7164_v56, 9 }
 0x391   : > { %18547 = vmatprep.mubr.bf16.mxu1 %v16832_v32  ;;  %18576 = vmatpush3.bf16.msra.mxu1 %v20323_v15  ;;  %v7229_v15 = vsel %vm21274_vm9, %v16817_v33, %v7228_v63  ;;  %v20328_v63 = vld [vmem:[#allocation8 + $0xe8] sm:$0xff]   ;;  %v7260_v32 = vsel %vm21274_vm9, %v7258_v25, %v7259_v14 }
 0x392   : > { %18577 = vmatprep.subr.bf16.mxu1 %v20324_v44  ;;  %v16833_v54 = vcombine.low %v7229_v15, %v7232_v10  ;;  %v7257_v33 = vsel %vm21274_vm9, %v16821_v28, %v7256_v55  ;;  %v16823_v10 = vrot.slane %v7166_v52, 9  ;;  %v7274_v15 = vsel %vm21274_vm9, %v7272_v48, %v7273_v8  ;;  %v20339_v52 = vld [vmem:[#allocation8 + $0x110] sm:$0xff]   ;;  %v20345_v48 = vld [vmem:[#allocation8 + $0x120] sm:$0xff]  }
 0x393   : > { %v16837_v1 = vcombine.low %v7257_v33, %v7260_v32  ;;  %v7305_v55 = vrot.slane %v23321_v0, 5  ;;  %v7308_v0 = vrot.slane %v23327_v12, 5  ;;  %v16829_v12 = vrot.slane %v7172_v39, 9  ;;  %v20332_v33 = vld [vmem:[#allocation2 + $0x18] sm:$0xff]   ;;  %v20351_v8 = vld [vmem:[#allocation8 + $0x130] sm:$0xff]  }
 0x394   : > { %v7315_v32 = vrot.slane %v23346_v58, 5  ;;  %v20335_v58 = vld [vmem:[#allocation2 + $0x30] sm:$0xff]  }
 0x395   : > { %18578 = vmatpush3.bf16.msra.mxu1 %v20324_v44  ;;  %v20329_v44 = vld [vmem:[#allocation8 + $0xf0] sm:$0xff]   ;;  %v7307_v56 = vrot.slane %v7305_v55, 4 }
 0x396   : > { %18579 = vmatprep.subr.bf16.mxu1 %v20325_v45 }
 0x397   : > { %v7309_v9 = vsel %vm21274_vm9, %v7307_v56, %v7308_v0  ;;  %v23503_v0 = vld [vmem:[#allocation2 + $0x34] sm:$0xf] }
 0x398   : > { %18548 = vmatmul.mubr.bf16.gmra.mrb[36].mxu1 %v16833_v54  ;;  %v7284_v54 = vrot.slane %v23277_v40, 5  ;;  %v7293_v40 = vrot.slane %v7291_v16, 4  ;;  %v20346_v16 = vld [vmem:[#allocation2 + $0x84] sm:$0xff]  }
 0x399   : > { %18551 = vmatprep.mubr.bf16.mxu1 %v16834_v41  ;;  %18580 = vmatpush3.bf16.msra.mxu1 %v20325_v45  ;;  %v7167_v45 = vld [vmem:[#allocation2 + $0x78] sm:$0xe]  ;;  %v7168_v41 = vld [vmem:[#allocation2 + $0x84] sm:$0xe] }
 0x39a   : > { %18581 = vmatprep.subr.bf16.mxu1 %v20326_v22  ;;  %v16824_v20 = vrot.slane %v7167_v45, 9  ;;  %v7286_v49 = vrot.slane %v7284_v54, 4  ;;  %v16825_v23 = vrot.slane %v7168_v41, 9  ;;  %v7295_v38 = vsel %vm21274_vm9, %v7293_v40, %v7294_v50  ;;  %v20338_v45 = vld [vmem:[#allocation2 + $0x48] sm:$0xff]   ;;  %v8031_v50 = vld [vmem:[#allocation2 + $0x24] sm:$0xf] }
 0x39c   : > { %v7278_v5 = vsel %vm21274_vm9, %v16824_v20, %v7277_v21  ;;  %v7288_v37 = vsel %vm21274_vm9, %v7286_v49, %v7287_v13  ;;  %v7285_v42 = vsel %vm21274_vm9, %v16825_v23, %v7284_v54  ;;  %v20331_v21 = vld [vmem:[#allocation2 + $0xc] sm:$0xff]   ;;  %v20341_v20 = vld [vmem:[#allocation2 + $0x60] sm:$0xff]   ;;  %v20344_v54 = vld [vmem:[#allocation2 + $0x78] sm:$0xff]  }
 0x39d   : > { %18582 = vmatpush3.bf16.msra.mxu1 %v20326_v22  ;;  %v7271_v22 = vsel %vm21274_vm9, %v16823_v10, %v7270_v47  ;;  %v16840_v36 = vcombine.low %v7278_v5, %v7281_v46  ;;  %v16841_v17 = vcombine.low %v7285_v42, %v7288_v37  ;;  %v7313_v47 = vsel %vm21274_vm9, %v16829_v12, %v7312_v18  ;;  %v20340_v10 = vld [vmem:[#allocation2 + $0x54] sm:$0xff]   ;;  %v8025_v46 = vld [vmem:[#allocation2 + $0xc] sm:$0xf]  ;;  %v23489_v5 = vld [vmem:[#allocation2 + $0x1c] sm:$0xf] }
 0x39e   : > { %18583 = vmatprep.subr.bf16.mxu1 %v20327_v29  ;;  %v16839_v35 = vcombine.low %v7271_v22, %v7274_v15  ;;  %v23484_v15 = vld [vmem:[#allocation8 + $0x140] sm:$0xff]   ;;  %v23487_v22 = vld [vmem:[#allocation2 + $0x10] sm:$0xf]  ;;  %v8074_v41 = vshrl.u32 %v8025_v46, 16  ;;  %v8107_v13 = vshll.u32 %v23489_v5, 16  ;;  %v8111_v11 = vshrl.u32 %v23489_v5, 16 }
 0x39f   : > { %v8083_v49 = vshll.u32 %v23487_v22, 16  ;;  %v8087_v27 = vshrl.u32 %v23487_v22, 16  ;;  %v20347_v37 = vld [vmem:[#allocation2 + $0x90] sm:$0xff]   ;;  %v23497_v42 = vld [vmem:[#allocation2 + $0x28] sm:$0xf] }
 0x3a0   : > { %18552 = vmatmul.mubr.bf16.gmra.mrb[40].mxu1 %v16835_v51  ;;  %v16842_v51 = vcombine.low %v7292_v24, %v7295_v38  ;;  %v8076_v38 = vrot.slane %v8074_v41, 4  ;;  %v23501_v56 = vrot.slane %v8107_v13, 5 }
 0x3a1   : > { %18555 = vmatprep.mubr.bf16.mxu1 %v16836_v6  ;;  %18584 = vmatpush3.bf16.msra.mxu1 %v20327_v29  ;;  %v7298_v29 = vrot.slane %v23306_v31, 5  ;;  %v16827_v31 = vrot.slane %v7170_v57, 9  ;;  %v16828_v6 = vrot.slane %v7171_v3, 9  ;;  %v8089_v24 = vrot.slane %v8087_v27, 4  ;;  %v20349_v3 = vld [vmem:[#allocation2 + $0x9c] sm:$0xff]  }
 0x3a2   : > { %18585 = vmatprep.subr.bf16.mxu1 %v20328_v63 }
 0x3a3   : > { %v7300_v2 = vrot.slane %v7298_v29, 4  ;;  %v7299_v28 = vsel %vm21274_vm9, %v16827_v31, %v7298_v29  ;;  %v7306_v19 = vsel %vm21274_vm9, %v16828_v6, %v7305_v55  ;;  %v23495_v29 = vld [vmem:[#allocation2 + $0x14] sm:$0x1]  ;;  %v8113_v31 = vrot.slane %v8111_v11, 4 }
 0x3a4   : > { %v8125_v6 = vshll.u32 %v8031_v50, 16 }
 0x3a5   : > { %18586 = vmatpush3.bf16.msra.mxu1 %v20328_v63  ;;  %v7301_v63 = vrot.slane %v23311_v43, 5  ;;  %v16844_v43 = vcombine.low %v7306_v19, %v7309_v9  ;;  %v8135_v9 = vshrl.u32 %v23497_v42, 16  ;;  %v8114_v12 = vor.u32 %v8113_v31, %v23501_v56 }
 0x3a6   : > { %18587 = vmatprep.subr.bf16.mxu1 %v20329_v44 }
 0x3a7   : > { %v7302_v25 = vsel %vm21274_vm9, %v7300_v2, %v7301_v63  ;;  %v8034_v2 = vld [vmem:[#allocation2 + $0x30] sm:$0xf]  ;;  %v8122_v63 = vshrl.u32 %v8031_v50, 16  ;;  %v23532_v50 = vld [vmem:[#allocation2 + $0x38] sm:$0x1] }
 0x3a8   : > { %18556 = vmatmul.mubr.bf16.gmra.mrb[44].mxu1 %v16837_v1  ;;  %v16843_v14 = vcombine.low %v7299_v28, %v7302_v25  ;;  %v20336_v1 = vld [vmem:[#allocation8 + $0x108] sm:$0xff]   ;;  %v8146_v28 = vshrl.u32 %v8034_v2, 16 }
 0x3a9   : > { %18559 = vmatprep.mubr.bf16.mxu1 %v16838_v61  ;;  %18588 = vmatpush3.bf16.msra.mxu1 %v20329_v44  ;;  %v7314_v44 = vrot.slane %v7312_v18, 4  ;;  %v20337_v61 = vld [vmem:[#allocation2 + $0x3c] sm:$0xff]   ;;  %v8131_v18 = vshll.u32 %v23497_v42, 16 }
 0x3aa   : > { %18589 = vmatprep.subr.bf16.mxu1 %v20330_v59  ;;  %v23505_v25 = vld [vmem:[#allocation2 + $0x20] sm:$0x1] }
 0x3ab   : > { %v7316_v7 = vsel %vm21274_vm9, %v7314_v44, %v7315_v32  ;;  %v8124_v32 = vrot.slane %v8122_v63, 4  ;;  %v8043_v63 = vld [vmem:[#allocation2 + $0x54] sm:$0xf] }
 0x3ac   : > { %v16845_v62 = vcombine.low %v7313_v47, %v7316_v7  ;;  %v8127_v7 = vrot.slane %v8125_v6, 5  ;;  %v8155_v47 = vshll.u32 %v23503_v0, 16 }
 0x3ad   : > { %18590 = vmatpush3.bf16.msra.mxu1 %v20330_v59  ;;  %v20342_v59 = vld [vmem:[#allocation8 + $0x118] sm:$0xff]  }
 0x3ae   : > { %18623 = vmatprep.subr.bf16.mxu1 %v20333_v4 }
 0x3b0   : > { %18560 = vmatmul.mubr.bf16.gmra.mrb[48].mxu1 %v16839_v35  ;;  %v8028_v35 = vld [vmem:[#allocation2 + $0x18] sm:$0xf] }
 0x3b1   : > { %18563 = vmatprep.mubr.bf16.mxu1 %v16840_v36  ;;  %v8077_v36 = vshll.u32 %v8025_v46, 16  ;;  %v8098_v40 = vshrl.u32 %v8028_v35, 16  ;;  %v8101_v23 = vshll.u32 %v8028_v35, 16 }
 0x3b3   : > { %v8079_v55 = vrot.slane %v8077_v36, 5  ;;  %v8100_v57 = vrot.slane %v8098_v40, 4 }
 0x3b5   : > { %v8080_v19 = vor.u32 %v8079_v55, %v8076_v38 }
 0x3b8   : > { %18564 = vmatmul.mubr.bf16.gmra.mrb[52].mxu1 %v16841_v17  ;;  %v23499_v17 = vrot.slane %v8083_v49, 5 }
 0x3b9   : > { %18567 = vmatprep.mubr.bf16.mxu1 %v16842_v51  ;;  %v8103_v51 = vrot.slane %v8101_v23, 5 }
 0x3ba   : > { %v8090_v39 = vor.u32 %v8089_v24, %v23499_v17 }
 0x3bb   : > { %v8104_v44 = vor.u32 %v8103_v51, %v8100_v57  ;;  %v8040_v57 = vld [vmem:[#allocation2 + $0x48] sm:$0xf]  ;;  %v23539_v51 = vld [vmem:[#allocation2 + $0x4c] sm:$0xf] }
 0x3c0   : > { %18568 = vmatmul.mubr.bf16.gmra.mrb[56].mxu1 %v16843_v14  ;;  %v8149_v14 = vshll.u32 %v8034_v2, 16 }
 0x3c1   : > { %18571 = vmatprep.mubr.bf16.mxu1 %v16844_v43  ;;  %v8093_v43 = vshll.u32 %v23495_v29, 16 }
 0x3c8   : > { %18572 = vmatmul.mubr.bf16.gmra.mrb[60].mxu1 %v16845_v62  ;;  %v8117_v62 = vshll.u32 %v23505_v25, 16 }
 0x3c9   : > { %18591 = vmatprep.mubr.bf16.mxu1 %v20331_v21  ;;  %v8159_v21 = vshrl.u32 %v23503_v0, 16 }
 0x3ca   : > { %v8119_v49 = vrot.slane %v8117_v62, 5  ;;  %v8221_v62 = vshll.u32 %v8043_v63, 16 }
 0x3d0   : > { %18592 = vmatmul.mubr.bf16.vlgmr.msra.gmra.mrb[32].mxu1 %v20332_v33  ;;  %v8037_v33 = vld [vmem:[#allocation2 + $0x3c] sm:$0xf] }
 0x3d1   : > { %18595 = vmatprep.mubr.bf16.mxu1 %v20334_v26  ;;  %18624 = vmatpush3.bf16.msra.mxu1 %v20333_v4  ;;  %v20343_v4 = vld [vmem:[#allocation2 + $0x6c] sm:$0xff]   ;;  %v8137_v26 = vrot.slane %v8135_v9, 4  ;;  %v8170_v46 = vshrl.u32 %v8037_v33, 16  ;;  %v8173_v35 = vshll.u32 %v8037_v33, 16 }
 0x3d2   : > { %18625 = vmatprep.subr.bf16.mxu1 %v20336_v1 }
 0x3d3   : > { %v8172_v24 = vrot.slane %v8170_v46, 4  ;;  %v8175_v2 = vrot.slane %v8173_v35, 5  ;;  %v23565_v46 = vld [vmem:[#allocation2 + $0x64] sm:$0xf] }
 0x3d5   : > { %18626 = vmatpush3.bf16.msra.mxu1 %v20336_v1  ;;  %v23515_v1 = vrot.slane %v8131_v18, 5 }
 0x3d6   : > { %18627 = vmatprep.subr.bf16.mxu1 %v20339_v52 }
 0x3d7   : > { %v8138_v27 = vor.u32 %v8137_v26, %v23515_v1  ;;  %v8176_v26 = vor.u32 %v8175_v2, %v8172_v24 }
 0x3d8   : > { %18596 = vmatmul.mubr.bf16.gmra.mrb[36].mxu1 %v20335_v58  ;;  %v8151_v58 = vrot.slane %v8149_v14, 5 }
 0x3d9   : > { %18599 = vmatprep.mubr.bf16.mxu1 %v20337_v61  ;;  %18628 = vmatpush3.bf16.msra.mxu1 %v20339_v52  ;;  %v8148_v52 = vrot.slane %v8146_v28, 4  ;;  %v20350_v61 = vld [vmem:[#allocation2 + $0xa8] sm:$0xff]   ;;  %v8139_v18 = vrot.slane %v8138_v27, 4  ;;  %v20353_v28 = vld [vmem:[#allocation2 + $0xc0] sm:$0xff]  }
 0x3da   : > { %18629 = vmatprep.subr.bf16.mxu1 %v20342_v59 }
 0x3db   : > { %v8152_v40 = vor.u32 %v8151_v58, %v8148_v52 }
 0x3dd   : > { %18630 = vmatpush3.bf16.msra.mxu1 %v20342_v59  ;;  %v23517_v59 = vld [vmem:[#allocation2 + $0x40] sm:$0xf]  ;;  %v8153_v9 = vrot.slane %v8152_v40, 4 }
 0x3de   : > { %18631 = vmatprep.subr.bf16.mxu1 %v20345_v48  ;;  %v8179_v41 = vshll.u32 %v23517_v59, 16  ;;  %v8183_v36 = vshrl.u32 %v23517_v59, 16 }
 0x3e0   : > { %18600 = vmatmul.mubr.bf16.gmra.mrb[40].mxu1 %v20338_v45  ;;  %v8091_v45 = vrot.slane %v8090_v39, 4  ;;  %v8185_v31 = vrot.slane %v8183_v36, 4  ;;  %v23545_v39 = vld [vmem:[#allocation2 + $0x44] sm:$0x1]  ;;  %v8223_v36 = vrot.slane %v8221_v62, 5  ;;  %v20357_v62 = vld [vmem:[#allocation8 + $0x150] sm:$0xff]  }
 0x3e1   : > { %18603 = vmatprep.mubr.bf16.mxu1 %v20340_v10  ;;  %18632 = vmatpush3.bf16.msra.mxu1 %v20345_v48  ;;  %v8081_v48 = vrot.slane %v8080_v19, 4  ;;  %v8105_v10 = vrot.slane %v8104_v44, 4  ;;  %v8197_v44 = vshll.u32 %v8040_v57, 16 }
 0x3e2   : > { %18633 = vmatprep.subr.bf16.mxu1 %v20348_v53 }
 0x3e3   : > { %v8086_v23 = vsel %vm21116_vm5, %v8081_v48, %v23499_v17 }
 0x3e5   : > { %18634 = vmatpush3.bf16.msra.mxu1 %v20348_v53  ;;  %v8095_v53 = vrot.slane %v8093_v43, 5  ;;  %v8194_v43 = vshrl.u32 %v8040_v57, 16 }
 0x3e6   : > { %18635 = vmatprep.subr.bf16.mxu1 %v20351_v8 }
 0x3e7   : > { %v8096_v13 = vsel %vm21116_vm5, %v8091_v45, %v8095_v53  ;;  %v8189_v45 = vshll.u32 %v23545_v39, 16  ;;  %v23561_v53 = vld [vmem:[#allocation2 + $0x50] sm:$0x1] }
 0x3e8   : > { %18604 = vmatmul.mubr.bf16.gmra.mrb[44].mxu1 %v20341_v20  ;;  %v8115_v20 = vrot.slane %v8114_v12, 4  ;;  %v16878_v6 = vcombine.low %v8086_v23, %v8096_v13  ;;  %v8203_v12 = vshll.u32 %v23539_v51, 16  ;;  %v8213_v40 = vshll.u32 %v23561_v53, 16 }
 0x3e9   : > { %18607 = vmatprep.mubr.bf16.mxu1 %v20343_v4  ;;  %18636 = vmatpush3.bf16.msra.mxu1 %v20351_v8  ;;  %v20352_v8 = vld [vmem:[#allocation2 + $0xb4] sm:$0xff]   ;;  %v8128_v4 = vor.u32 %v8127_v7, %v8124_v32  ;;  %v8207_v32 = vshrl.u32 %v23539_v51, 16 }
 0x3ea   : > { %18637 = vmatprep.subr.bf16.mxu1 %v20354_v60  ;;  %v8120_v38 = vsel %vm21116_vm5, %v8115_v20, %v8119_v49  ;;  %v23549_v7 = vld [vmem:[#allocation2 + $0x58] sm:$0xf]  ;;  %v8177_v49 = vrot.slane %v8176_v26, 4 }
 0x3eb   : > { %v8129_v55 = vrot.slane %v8128_v4, 4  ;;  %v8227_v20 = vshll.u32 %v23549_v7, 16  ;;  %v8231_v4 = vshrl.u32 %v23549_v7, 16  ;;  %v8209_v35 = vrot.slane %v8207_v32, 4 }
 0x3ed   : > { %18638 = vmatpush3.bf16.msra.mxu1 %v20354_v60  ;;  %v23519_v60 = vld [vmem:[#allocation2 + $0x2c] sm:$0x1]  ;;  %v23574_v57 = vrot.slane %v8227_v20, 5 }
 0x3ee   : > { %18671 = vmatprep.subr.bf16.mxu1 %v23484_v15  ;;  %v8141_v11 = vshll.u32 %v23519_v60, 16 }
 0x3f0   : > { %18608 = vmatmul.mubr.bf16.gmra.mrb[48].mxu1 %v20344_v54  ;;  %v23521_v54 = vrot.slane %v8155_v47, 5  ;;  %v8143_v19 = vrot.slane %v8141_v11, 5  ;;  %v8218_v47 = vshrl.u32 %v8043_v63, 16  ;;  %v8251_v11 = vshll.u32 %v23565_v46, 16 }
 0x3f1   : > { %18611 = vmatprep.mubr.bf16.mxu1 %v20346_v16  ;;  %v8161_v16 = vrot.slane %v8159_v21, 4  ;;  %v8134_v21 = vsel %vm21116_vm5, %v8129_v55, %v23515_v1  ;;  %v8199_v1 = vrot.slane %v8197_v44, 5  ;;  %v8191_v55 = vrot.slane %v8189_v45, 5  ;;  %v23595_v45 = vld [vmem:[#allocation2 + $0x68] sm:$0x1] }
 0x3f2   : > { %v8144_v58 = vsel %vm21116_vm5, %v8139_v18, %v8143_v19  ;;  %v23584_v19 = vld [vmem:[#allocation2 + $0x5c] sm:$0x1] }
 0x3f3   : > { %v8162_v17 = vor.u32 %v8161_v16, %v23521_v54  ;;  %v23567_v16 = vrot.slane %v8203_v12, 5  ;;  %v16880_v2 = vcombine.low %v8134_v21, %v8144_v58 }
 0x3f5   : > { %v8163_v33 = vrot.slane %v8162_v17, 4  ;;  %v8233_v17 = vrot.slane %v8231_v4, 4 }
 0x3f7   : > { %v8234_v21 = vor.u32 %v8233_v17, %v23574_v57 }
 0x3f8   : > { %18612 = vmatmul.mubr.bf16.gmra.mrb[52].mxu1 %v20347_v37  ;;  %v8110_v37 = vsel %vm21116_vm5, %v8105_v10, %v23501_v56  ;;  %v8165_v56 = vshll.u32 %v23532_v50, 16  ;;  %v8046_v10 = vld [vmem:[#allocation2 + $0x60] sm:$0xf] }
 0x3f9   : > { %18615 = vmatprep.mubr.bf16.mxu1 %v20349_v3  ;;  %v23542_v3 = vrot.slane %v8179_v41, 5  ;;  %v16879_v14 = vcombine.low %v8110_v37, %v8120_v38  ;;  %v8220_v41 = vrot.slane %v8218_v47, 4  ;;  %v8242_v23 = vshrl.u32 %v8046_v10, 16  ;;  %v20356_v38 = vld [vmem:[#allocation8 + $0x148] sm:$0xff]   ;;  %v8052_v47 = vld [vmem:[#allocation2 + $0x78] sm:$0xf] }
 0x3fa   : > { %v8167_v48 = vrot.slane %v8165_v56, 5  ;;  %v8245_v13 = vshll.u32 %v8046_v10, 16  ;;  %v8255_v37 = vshrl.u32 %v23565_v46, 16  ;;  %v8293_v20 = vshll.u32 %v8052_v47, 16 }
 0x3fb   : > { %v8186_v52 = vor.u32 %v8185_v31, %v23542_v3  ;;  %v8210_v31 = vor.u32 %v8209_v35, %v23567_v16  ;;  %v8224_v63 = vor.u32 %v8223_v36, %v8220_v41  ;;  %v8244_v44 = vrot.slane %v8242_v23, 4 }
 0x3fc   : > { %v8247_v12 = vrot.slane %v8245_v13, 5  ;;  %v8257_v32 = vrot.slane %v8255_v37, 4 }
 0x3fd   : > { %v8187_v27 = vrot.slane %v8186_v52, 4  ;;  %v23592_v52 = vld [vmem:[#allocation2 + $0x7c] sm:$0xf] }
 0x3fe   : > { %v8248_v4 = vor.u32 %v8247_v12, %v8244_v44  ;;  %v8299_v41 = vshll.u32 %v23592_v52, 16  ;;  %v8303_v36 = vshrl.u32 %v23592_v52, 16 }
 0x3ff   : > { %v8192_v56 = vsel %vm21116_vm5, %v8187_v27, %v8191_v55  ;;  %v20358_v27 = vld [vmem:[#allocation8 + $0x158] sm:$0xff]  }
 0x400   : > { %18616 = vmatmul.mubr.bf16.gmra.mrb[56].mxu1 %v20350_v61  ;;  %v8158_v61 = vsel %vm21116_vm5, %v8153_v9, %v23521_v54  ;;  %v8168_v54 = vsel %vm21116_vm5, %v8163_v33, %v8167_v48  ;;  %v8182_v9 = vsel %vm21116_vm5, %v8177_v49, %v23542_v3  ;;  %v8225_v48 = vrot.slane %v8224_v63, 4  ;;  %v23612_v55 = vld [vmem:[#allocation2 + $0x74] sm:$0x1] }
 0x401   : > { %18619 = vmatprep.mubr.bf16.mxu1 %v20352_v8  ;;  %v8196_v8 = vrot.slane %v8194_v43, 4  ;;  %v16881_v18 = vcombine.low %v8158_v61, %v8168_v54  ;;  %v23586_v43 = vld [vmem:[#allocation2 + $0x70] sm:$0xf]  ;;  %v16882_v58 = vcombine.low %v8182_v9, %v8192_v56  ;;  %v8211_v61 = vrot.slane %v8210_v31, 4 }
 0x402   : > { %v8275_v10 = vshll.u32 %v23586_v43, 16  ;;  %v8235_v54 = vrot.slane %v8234_v21, 4  ;;  %v8261_v49 = vshll.u32 %v23595_v45, 16  ;;  %v8230_v37 = vsel %vm21116_vm5, %v8225_v48, %v23574_v57 }
 0x403   : > { %v8200_v24 = vor.u32 %v8199_v1, %v8196_v8  ;;  %v8279_v8 = vshrl.u32 %v23586_v43, 16  ;;  %v8290_v1 = vshrl.u32 %v8052_v47, 16  ;;  %v8295_v63 = vrot.slane %v8293_v20, 5  ;;  %v23623_v47 = vld [vmem:[#allocation2 + $0x80] sm:$0x1] }
 0x404   : > { %v23614_v17 = vrot.slane %v8275_v10, 5  ;;  %v23618_v56 = vrot.slane %v8299_v41, 5  ;;  %v8263_v44 = vrot.slane %v8261_v49, 5  ;;  %v8285_v12 = vshll.u32 %v23612_v55, 16 }
 0x405   : > { %v8201_v3 = vrot.slane %v8200_v24, 4  ;;  %v8055_v24 = vld [vmem:[#allocation2 + $0x84] sm:$0xf]  ;;  %v8292_v31 = vrot.slane %v8290_v1, 4  ;;  %v23634_v1 = vld [vmem:[#allocation2 + $0x94] sm:$0xf] }
 0x406   : > { %v8317_v21 = vshll.u32 %v8055_v24, 16  ;;  %v8309_v41 = vshll.u32 %v23623_v47, 16 }
 0x407   : > { %v8206_v13 = vsel %vm21116_vm5, %v8201_v3, %v23567_v16  ;;  %v8249_v16 = vrot.slane %v8248_v4, 4  ;;  %v8314_v3 = vshrl.u32 %v8055_v24, 16 }
 0x408   : > { %18620 = vmatmul.mubr.bf16.gmra.mrb[60].mxu1 %v20353_v28  ;;  %v23582_v28 = vrot.slane %v8213_v40, 5 }
 0x409   : > { %18639 = vmatprep.mubr.bf16.mxu1 %v16878_v6  ;;  %v8049_v6 = vld [vmem:[#allocation2 + $0x6c] sm:$0xf]  ;;  %v8316_v49 = vrot.slane %v8314_v3, 4  ;;  %v8311_v3 = vrot.slane %v8309_v41, 5  ;;  %v20362_v41 = vld [vmem:[#allocation8 + $0x178] sm:$0xff]  }
 0x40a   : > { %v8266_v33 = vshrl.u32 %v8049_v6, 16  ;;  %v8269_v26 = vshll.u32 %v8049_v6, 16  ;;  %v23616_v6 = vld [vmem:[#allocation2 + $0x88] sm:$0xf] }
 0x40c   : > { %v8268_v40 = vrot.slane %v8266_v33, 4  ;;  %v8271_v23 = vrot.slane %v8269_v26, 5  ;;  %v8327_v33 = vshrl.u32 %v23616_v6, 16 }
 0x410   : > { %18640 = vmatmul.mubr.bf16.vlgmr.msra.gmra.mrb[32].mxu1 %v16879_v14  ;;  %v23589_v14 = vrot.slane %v8251_v11, 5  ;;  %v8216_v11 = vsel %vm21116_vm5, %v8211_v61, %v23582_v28  ;;  %v8305_v28 = vrot.slane %v8303_v36, 4  ;;  %v20360_v36 = vld [vmem:[#allocation8 + $0x168] sm:$0xff]  }
 0x411   : > { %18643 = vmatprep.mubr.bf16.mxu1 %v16880_v2  ;;  %18672 = vmatpush3.bf16.msra.mxu1 %v23484_v15  ;;  %v8237_v15 = vshll.u32 %v23584_v19, 16  ;;  %v8281_v2 = vrot.slane %v8279_v8, 4  ;;  %v16883_v61 = vcombine.low %v8206_v13, %v8216_v11  ;;  %v8058_v8 = vld [vmem:[#allocation2 + $0x90] sm:$0xf]  ;;  %v23639_v13 = vld [vmem:[#allocation2 + $0xa0] sm:$0xf] }
 0x412   : > { %18673 = vmatprep.subr.bf16.mxu1 %v20356_v38  ;;  %v8258_v35 = vor.u32 %v8257_v32, %v23589_v14  ;;  %v20359_v32 = vld [vmem:[#allocation8 + $0x160] sm:$0xff]   ;;  %v8254_v48 = vsel %vm21116_vm5, %v8249_v16, %v23589_v14  ;;  %v8306_v10 = vor.u32 %v8305_v28, %v23618_v56  ;;  %v8338_v24 = vshrl.u32 %v8058_v8, 16 }
 0x413   : > { %v8282_v26 = vor.u32 %v8281_v2, %v23614_v17  ;;  %v23641_v2 = vld [vmem:[#allocation2 + $0x8c] sm:$0x1]  ;;  %v8351_v16 = vshrl.u32 %v23634_v1, 16 }
 0x414   : > { %v8259_v9 = vrot.slane %v8258_v35, 4  ;;  %v8287_v35 = vrot.slane %v8285_v12, 5 }
 0x415   : > { %18674 = vmatpush3.bf16.msra.mxu1 %v20356_v38  ;;  %v8239_v38 = vrot.slane %v8237_v15, 5  ;;  %v8283_v11 = vrot.slane %v8282_v26, 4  ;;  %v8333_v26 = vshll.u32 %v23641_v2, 16 }
 0x416   : > { %18675 = vmatprep.subr.bf16.mxu1 %v20357_v62  ;;  %v8264_v15 = vsel %vm21116_vm5, %v8259_v9, %v8263_v44  ;;  %v8375_v44 = vshrl.u32 %v23639_v13, 16 }
 0x417   : > { %v8240_v57 = vsel %vm21116_vm5, %v8235_v54, %v8239_v38  ;;  %v8061_v54 = vld [vmem:[#allocation2 + $0x9c] sm:$0xf] }
 0x418   : > { %18644 = vmatmul.mubr.bf16.gmra.mrb[36].mxu1 %v16881_v18  ;;  %v8272_v18 = vor.u32 %v8271_v23, %v8268_v40  ;;  %v16884_v20 = vcombine.low %v8230_v37, %v8240_v57  ;;  %v8319_v40 = vrot.slane %v8317_v21, 5  ;;  %v8329_v23 = vrot.slane %v8327_v33, 4 }
 0x419   : > { %18647 = vmatprep.mubr.bf16.mxu1 %v16882_v58  ;;  %18676 = vmatpush3.bf16.msra.mxu1 %v20357_v62  ;;  %v8323_v62 = vshll.u32 %v23616_v6, 16  ;;  %v8296_v58 = vor.u32 %v8295_v63, %v8292_v31  ;;  %v8307_v37 = vrot.slane %v8306_v10, 4  ;;  %v8341_v31 = vshll.u32 %v8058_v8, 16  ;;  %v8064_v10 = vld [vmem:[#allocation2 + $0xa8] sm:$0xf] }
 0x41a   : > { %18677 = vmatprep.subr.bf16.mxu1 %v20358_v27  ;;  %v8273_v4 = vrot.slane %v8272_v18, 4  ;;  %v8347_v63 = vshll.u32 %v23634_v1, 16  ;;  %v8362_v9 = vshrl.u32 %v8061_v54, 16  ;;  %v8365_v28 = vshll.u32 %v8061_v54, 16  ;;  %v20361_v18 = vld [vmem:[#allocation8 + $0x170] sm:$0xff]  }
 0x41b   : > { %v23637_v14 = vrot.slane %v8323_v62, 5  ;;  %v8297_v38 = vrot.slane %v8296_v58, 4  ;;  %v8371_v57 = vshll.u32 %v23639_v13, 16  ;;  %v8320_v21 = vor.u32 %v8319_v40, %v8316_v49  ;;  %v23663_v40 = vld [vmem:[#allocation2 + $0xac] sm:$0xf] }
 0x41c   : > { %v8278_v12 = vsel %vm21116_vm5, %v8273_v4, %v23614_v17  ;;  %v8288_v62 = vsel %vm21116_vm5, %v8283_v11, %v8287_v35  ;;  %v8340_v58 = vrot.slane %v8338_v24, 4  ;;  %v8353_v17 = vrot.slane %v8351_v16, 4  ;;  %26204 = vst [vmem:[#allocation22_spill] sm:$0xff] %v23663_v40  ;;  %v23667_v24 = vld [vmem:[#allocation2 + $0xa4] sm:$0x1] }
 0x41d   : > { %18678 = vmatpush3.bf16.msra.mxu1 %v20358_v27  ;;  %v16885_v27 = vcombine.low %v8254_v48, %v8264_v15  ;;  %v8302_v33 = vsel %vm21116_vm5, %v8297_v38, %v23618_v56  ;;  %v8343_v48 = vrot.slane %v8341_v31, 5  ;;  %v23659_v15 = vrot.slane %v8347_v63, 5  ;;  %v23665_v38 = vld [vmem:[#allocation2 + $0x98] sm:$0x1]  ;;  %26205 = vst [vmem:[#allocation25_spill] sm:$0xff] %v23667_v24 }
 0x41e   : > { %18679 = vmatprep.subr.bf16.mxu1 %v20359_v32  ;;  %v8364_v8 = vrot.slane %v8362_v9, 4  ;;  %v23661_v4 = vrot.slane %v8371_v57, 5  ;;  %v8377_v35 = vrot.slane %v8375_v44, 4  ;;  %v16886_v56 = vcombine.low %v8278_v12, %v8288_v62  ;;  %v8067_v16 = vld [vmem:[#allocation2 + $0xb4] sm:$0xf]  ;;  %v23675_v12 = vld [vmem:[#allocation8 + $0x180] sm:$0xff]  }
 0x41f   : > { %v8321_v54 = vrot.slane %v8320_v21, 4  ;;  %v8335_v11 = vrot.slane %v8333_v26, 5  ;;  %v8386_v31 = vshrl.u32 %v8064_v10, 16  ;;  %v8389_v63 = vshll.u32 %v8064_v10, 16  ;;  %v23670_v9 = vld [vmem:[#allocation2 + $0xb8] sm:$0xf] }
 0x420   : > { %18648 = vmatmul.mubr.bf16.gmra.mrb[40].mxu1 %v16883_v61  ;;  %v8312_v61 = vsel %vm21116_vm5, %v8307_v37, %v8311_v3  ;;  %v8354_v37 = vor.u32 %v8353_v17, %v23659_v15  ;;  %26206 = vst [vmem:[#allocation21_spill] sm:$0xff] %v23670_v9  ;;  %v8378_v57 = vor.u32 %v8377_v35, %v23661_v4  ;;  %v8399_v44 = vshrl.u32 %v23663_v40, 16 }
 0x421   : > { %18651 = vmatprep.mubr.bf16.mxu1 %v16884_v20  ;;  %18680 = vmatpush3.bf16.msra.mxu1 %v20359_v32  ;;  %v8330_v32 = vor.u32 %v8329_v23, %v23637_v14  ;;  %v8367_v20 = vrot.slane %v8365_v28, 5  ;;  %v16887_v23 = vcombine.low %v8302_v33, %v8312_v61  ;;  %v8326_v3 = vsel %vm21116_vm5, %v8321_v54, %v23637_v14 }
 0x422   : > { %18681 = vmatprep.subr.bf16.mxu1 %v20360_v36  ;;  %v8410_v62 = vshrl.u32 %v8067_v16, 16  ;;  %v8413_v33 = vshll.u32 %v8067_v16, 16  ;;  %v8419_v26 = vshll.u32 %v23670_v9, 16  ;;  %v8388_v17 = vrot.slane %v8386_v31, 4 }
 0x423   : > { %v8331_v49 = vrot.slane %v8330_v32, 4  ;;  %v8368_v28 = vor.u32 %v8367_v20, %v8364_v8  ;;  %v8357_v32 = vshll.u32 %v23665_v38, 16  ;;  %v8391_v10 = vrot.slane %v8389_v63, 5  ;;  %v23699_v63 = vld [vmem:[#allocation2 + $0xb0] sm:$0x1] }
 0x424   : > { %v8379_v14 = vrot.slane %v8378_v57, 4  ;;  %v8401_v35 = vrot.slane %v8399_v44, 4  ;;  %v8412_v16 = vrot.slane %v8410_v62, 4 }
 0x425   : > { %18682 = vmatpush3.bf16.msra.mxu1 %v20360_v36  ;;  %v8344_v36 = vor.u32 %v8343_v48, %v8340_v58  ;;  %v8336_v21 = vsel %vm21116_vm5, %v8331_v49, %v8335_v11  ;;  %v8423_v58 = vshrl.u32 %v23670_v9, 16  ;;  %v8355_v48 = vrot.slane %v8354_v37, 4  ;;  %v8070_v11 = vld [vmem:[#allocation2 + $0xc0] sm:$0xf] }
 0x426   : > { %18683 = vmatprep.subr.bf16.mxu1 %v20361_v18  ;;  %v8369_v8 = vrot.slane %v8368_v28, 4  ;;  %v8359_v54 = vrot.slane %v8357_v32, 5  ;;  %v8392_v28 = vor.u32 %v8391_v10, %v8388_v17  ;;  %v8434_v44 = vshrl.u32 %v8070_v11, 16 }
 0x427   : > { %v8345_v61 = vrot.slane %v8344_v36, 4  ;;  %v8425_v9 = vrot.slane %v8423_v58, 4  ;;  %v23687_v36 = vld [vmem:[#allocation2 + $0xc4] sm:$0xf] }
 0x428   : > { %18652 = vmatmul.mubr.bf16.gmra.mrb[44].mxu1 %v16885_v27  ;;  %v8395_v27 = vshll.u32 %v23663_v40, 16  ;;  %v8415_v40 = vrot.slane %v8413_v33, 5  ;;  %v8360_v37 = vsel %vm21116_vm5, %v8355_v48, %v8359_v54  ;;  %v8374_v31 = vsel %vm21116_vm5, %v8369_v8, %v23661_v4 }
 0x429   : > { %18655 = vmatprep.mubr.bf16.mxu1 %v16886_v56  ;;  %18684 = vmatpush3.bf16.msra.mxu1 %v20361_v18  ;;  %v8381_v18 = vshll.u32 %v23667_v24, 16  ;;  %v16888_v56 = vcombine.low %v8326_v3, %v8336_v21  ;;  %v8421_v24 = vrot.slane %v8419_v26, 5  ;;  %v8437_v3 = vshll.u32 %v8070_v11, 16 }
 0x42a   : > { %18685 = vmatprep.subr.bf16.mxu1 %v20362_v41  ;;  %v8397_v20 = vrot.slane %v8395_v27, 5  ;;  %v23701_v27 = vld [vmem:[#allocation2 + $0xbc] sm:$0x1]  ;;  %v8447_v21 = vshrl.u32 %v23687_v36, 16  ;;  %v8416_v32 = vor.u32 %v8415_v40, %v8412_v16  ;;  %v8405_v4 = vshll.u32 %v23699_v63, 16 }
 0x42b   : > { %v8383_v49 = vrot.slane %v8381_v18, 5  ;;  %v8426_v18 = vor.u32 %v8425_v9, %v8421_v24  ;;  %v8393_v26 = vrot.slane %v8392_v28, 4  ;;  %v8436_v48 = vrot.slane %v8434_v44, 4  ;;  %v23707_v40 = vld [vmem:[#allocation2 + $0xc8] sm:$0x1] }
 0x42c   : > { %v8402_v57 = vor.u32 %v8401_v35, %v8397_v20  ;;  %v8439_v17 = vrot.slane %v8437_v3, 5  ;;  %v8449_v8 = vrot.slane %v8447_v21, 4 }
 0x42d   : > { %18686 = vmatpush3.bf16.msra.mxu1 %v20362_v41  ;;  %v8350_v41 = vsel %vm21116_vm5, %v8345_v61, %v23659_v15  ;;  %v8443_v15 = vshll.u32 %v23687_v36, 16  ;;  %v8429_v61 = vshll.u32 %v23701_v27, 16  ;;  %v8427_v35 = vrot.slane %v8426_v18, 4 }
 0x42e   : > { %18719 = vmatprep.subr.bf16.mxu1 %v23675_v12  ;;  %v16889_v62 = vcombine.low %v8350_v41, %v8360_v37  ;;  %v8403_v58 = vrot.slane %v8402_v57, 4  ;;  %v8398_v9 = vsel %vm21116_vm5, %v8393_v26, %v8397_v20  ;;  %v8440_v11 = vor.u32 %v8439_v17, %v8436_v48  ;;  %v8779_v20 = vld [vmem:[#allocation2 + $0xc] sm:$0xe]  ;;  %v8781_v17 = vld [vmem:[#allocation2 + $0x24] sm:$0xe] }
 0x42f   : > { %v8445_v10 = vrot.slane %v8443_v15, 5  ;;  %v8431_v54 = vrot.slane %v8429_v61, 5  ;;  %v8848_v18 = vrot.slane %v23495_v29, 5  ;;  %v8780_v61 = vld [vmem:[#allocation2 + $0x18] sm:$0xe] }
 0x430   : > { %18656 = vmatmul.mubr.bf16.gmra.mrb[48].mxu1 %v16887_v23  ;;  %v8384_v23 = vsel %vm21116_vm5, %v8379_v14, %v8383_v49  ;;  %v8417_v14 = vrot.slane %v8416_v32, 4  ;;  %v8441_v44 = vrot.slane %v8440_v11, 4  ;;  %v16902_v32 = vrot.slane %v8779_v20, 9 }
 0x431   : > { %18659 = vmatprep.mubr.bf16.mxu1 %v16888_v56  ;;  %v16890_v33 = vcombine.low %v8374_v31, %v8384_v23  ;;  %v8407_v56 = vrot.slane %v8405_v4, 5  ;;  %v8450_v16 = vor.u32 %v8449_v8, %v8445_v10  ;;  %v8432_v37 = vsel %vm21116_vm5, %v8427_v35, %v8431_v54 }
 0x432   : > { %v8422_v41 = vsel %vm21116_vm5, %v8417_v14, %v8421_v24  ;;  %v8845_v31 = vrot.slane %v23487_v22, 5  ;;  %v8453_v23 = vshll.u32 %v23707_v40, 16  ;;  %v8446_v24 = vsel %vm21116_vm5, %v8441_v44, %v8445_v10  ;;  %v20365_v44 = vld [vmem:[#allocation8 + $0x190] sm:$0xff]  }
 0x433   : > { %v8408_v49 = vsel %vm21116_vm5, %v8403_v58, %v8407_v56  ;;  %v16892_v57 = vcombine.low %v8422_v41, %v8432_v37  ;;  %v8451_v3 = vrot.slane %v8450_v16, 4  ;;  %v16903_v8 = vrot.slane %v8780_v61, 9  ;;  %v8782_v16 = vld [vmem:[#allocation2 + $0x30] sm:$0xe]  ;;  %v20364_v41 = vld [vmem:[#allocation8 + $0x188] sm:$0xff]  }
 0x434   : > { %v16891_v28 = vcombine.low %v8398_v9, %v8408_v49  ;;  %v8847_v15 = vrot.slane %v8845_v31, 4  ;;  %v8455_v21 = vrot.slane %v8453_v23, 5  ;;  %v8846_v58 = vsel %vm21274_vm9, %v16902_v32, %v8845_v31  ;;  %v8783_v31 = vld [vmem:[#allocation2 + $0x3c] sm:$0xe] }
 0x435   : > { %v8855_v14 = vrot.slane %v23505_v25, 5  ;;  %v8862_v35 = vrot.slane %v23519_v60, 5  ;;  %v8866_v56 = vrot.slane %v23503_v0, 5  ;;  %v8873_v9 = vrot.slane %v23517_v59, 5 }
 0x436   : > { %v8456_v22 = vsel %vm21116_vm5, %v8451_v3, %v8455_v21  ;;  %v8849_v4 = vsel %vm21274_vm9, %v8847_v15, %v8848_v18  ;;  %v16905_v0 = vrot.slane %v8782_v16, 9  ;;  %v8869_v59 = vrot.slane %v23532_v50, 5  ;;  %v20366_v18 = vld [vmem:[#allocation8 + $0x198] sm:$0xff]  }
 0x437   : > { %v16893_v26 = vcombine.low %v8446_v24, %v8456_v22  ;;  %v16918_v48 = vcombine.low %v8846_v58, %v8849_v4  ;;  %v8868_v37 = vrot.slane %v8866_v56, 4  ;;  %v8875_v23 = vrot.slane %v8873_v9, 4  ;;  %v20367_v58 = vld [vmem:[#allocation8 + $0x1a0] sm:$0xff]  }
 0x438   : > { %18660 = vmatmul.mubr.bf16.gmra.mrb[52].mxu1 %v16889_v62  ;;  %v8852_v62 = vrot.slane %v23489_v5, 5  ;;  %v16904_v5 = vrot.slane %v8781_v17, 9  ;;  %v8880_v20 = vrot.slane %v23539_v51, 5  ;;  %v8887_v21 = vrot.slane %v23549_v7, 5 }
 0x439   : > { %18663 = vmatprep.mubr.bf16.mxu1 %v16890_v33  ;;  %v8859_v33 = vrot.slane %v23497_v42, 5  ;;  %v8870_v3 = vsel %vm21274_vm9, %v8868_v37, %v8869_v59  ;;  %v8883_v7 = vrot.slane %v23561_v53, 5  ;;  %v8901_v17 = vrot.slane %v23586_v43, 5  ;;  %v8788_v37 = vld [vmem:[#allocation2 + $0x78] sm:$0xe] }
 0x43a   : > { %v8854_v29 = vrot.slane %v8852_v62, 4  ;;  %v8853_v49 = vsel %vm21274_vm9, %v16903_v8, %v8852_v62  ;;  %v8882_v22 = vrot.slane %v8880_v20, 4  ;;  %v8785_v62 = vld [vmem:[#allocation2 + $0x54] sm:$0xe]  ;;  %v8889_v51 = vrot.slane %v8887_v21, 4 }
 0x43b   : > { %v8861_v10 = vrot.slane %v8859_v33, 4  ;;  %v8860_v25 = vsel %vm21274_vm9, %v16904_v5, %v8859_v33  ;;  %v16908_v33 = vrot.slane %v8785_v62, 9  ;;  %v8786_v8 = vld [vmem:[#allocation2 + $0x60] sm:$0xe]  ;;  %v8897_v43 = vrot.slane %v23595_v45, 5 }
 0x43c   : > { %v8856_v42 = vsel %vm21274_vm9, %v8854_v29, %v8855_v14  ;;  %v8884_v61 = vsel %vm21274_vm9, %v8882_v22, %v8883_v7  ;;  %v20368_v14 = vld [vmem:[#allocation8 + $0x1a8] sm:$0xff]   ;;  %v8925_v62 = vrot.slane %v23665_v38, 5 }
 0x43d   : > { %v8863_v54 = vsel %vm21274_vm9, %v8861_v10, %v8862_v35  ;;  %v16919_v11 = vcombine.low %v8853_v49, %v8856_v42  ;;  %v8787_v42 = vld [vmem:[#allocation2 + $0x6c] sm:$0xe]  ;;  %v8789_v59 = vld [vmem:[#allocation2 + $0x84] sm:$0xe] }
 0x43e   : > { %v16920_v60 = vcombine.low %v8860_v25, %v8863_v54  ;;  %v16910_v54 = vrot.slane %v8787_v42, 9  ;;  %v20369_v49 = vld [vmem:[#allocation8 + $0x1b0] sm:$0xff]   ;;  %v8908_v25 = vrot.slane %v23592_v52, 5 }
 0x440   : > { %18664 = vmatmul.mubr.bf16.gmra.mrb[56].mxu1 %v16891_v28  ;;  %v16906_v28 = vrot.slane %v8783_v31, 9  ;;  %v20370_v31 = vld [vmem:[#allocation8 + $0x1b8] sm:$0xff]  }
 0x441   : > { %18667 = vmatprep.mubr.bf16.mxu1 %v16892_v57  ;;  %v8876_v57 = vrot.slane %v23545_v39, 5  ;;  %v8784_v39 = vld [vmem:[#allocation2 + $0x48] sm:$0xe] }
 0x442   : > { %v8874_v32 = vsel %vm21274_vm9, %v16906_v28, %v8873_v9  ;;  %v16907_v4 = vrot.slane %v8784_v39, 9  ;;  %v8904_v9 = vrot.slane %v23612_v55, 5  ;;  %v8902_v55 = vsel %vm21274_vm9, %v16910_v54, %v8901_v17 }
 0x443   : > { %v8877_v15 = vsel %vm21274_vm9, %v8875_v23, %v8876_v57  ;;  %v16911_v28 = vrot.slane %v8788_v37, 9  ;;  %v16912_v57 = vrot.slane %v8789_v59, 9  ;;  %v20372_v37 = vld [vmem:[#allocation2 + $0x24] sm:$0xff]   ;;  %v20382_v59 = vld [vmem:[#allocation8 + $0x1d8] sm:$0xff]  }
 0x444   : > { %v16922_v24 = vcombine.low %v8874_v32, %v8877_v15  ;;  %v8881_v10 = vsel %vm21274_vm9, %v16907_v4, %v8880_v20  ;;  %v8922_v15 = vrot.slane %v23634_v1, 5  ;;  %v8790_v32 = vld [vmem:[#allocation2 + $0x90] sm:$0xe] }
 0x445   : > { %v16923_v53 = vcombine.low %v8881_v10, %v8884_v61  ;;  %v16913_v22 = vrot.slane %v8790_v32, 9  ;;  %v26209_v61 = vld [vmem:[#allocation21_spill] sm:$0xff]  ;;  %v8792_v10 = vld [vmem:[#allocation2 + $0xa8] sm:$0xe] }
 0x448   : > { %18668 = vmatmul.mubr.bf16.gmra.mrb[60].mxu1 %v16893_v26  ;;  %v8890_v26 = vrot.slane %v23584_v19, 5  ;;  %v8888_v19 = vsel %vm21274_vm9, %v16908_v33, %v8887_v21  ;;  %v26208_v33 = vld [vmem:[#allocation22_spill] sm:$0xff] }
 0x449   : > { %18687 = vmatprep.mubr.bf16.mxu1 %v16918_v48  ;;  %v8894_v48 = vrot.slane %v23565_v46, 5  ;;  %v8903_v46 = vrot.slane %v8901_v17, 4 }
 0x44a   : > { %v8891_v29 = vsel %vm21274_vm9, %v8889_v51, %v8890_v26  ;;  %v26207_v51 = vld [vmem:[#allocation25_spill] sm:$0xff]  ;;  %v8936_v26 = vrot.slane %v26208_v33, 5 }
 0x44b   : > { %v16924_v5 = vcombine.low %v8888_v19, %v8891_v29  ;;  %v8896_v35 = vrot.slane %v8894_v48, 4  ;;  %v8905_v16 = vsel %vm21274_vm9, %v8903_v46, %v8904_v9  ;;  %v8932_v4 = vrot.slane %v26207_v51, 5 }
 0x44c   : > { %v16926_v23 = vcombine.low %v8902_v55, %v8905_v16  ;;  %v8923_v29 = vsel %vm21274_vm9, %v16913_v22, %v8922_v15  ;;  %v8938_v19 = vrot.slane %v8936_v26, 4  ;;  %v8946_v46 = vrot.slane %v23701_v27, 5  ;;  %v20371_v55 = vld [vmem:[#allocation2 + $0x18] sm:$0xff]   ;;  %v23825_v22 = vld [vmem:[#allocation2 + $0x28] sm:$0xf] }
 0x450   : > { %18688 = vmatmul.mubr.bf16.vlgmr.msra.gmra.mrb[32].mxu1 %v16919_v11  ;;  %v8898_v11 = vsel %vm21274_vm9, %v8896_v35, %v8897_v43  ;;  %v8939_v35 = vrot.slane %v23699_v63, 5  ;;  %v8950_v43 = vrot.slane %v23687_v36, 5 }
 0x451   : > { %18691 = vmatprep.mubr.bf16.mxu1 %v16920_v60  ;;  %18720 = vmatpush3.bf16.msra.mxu1 %v23675_v12  ;;  %v8867_v12 = vsel %vm21274_vm9, %v16905_v0, %v8866_v56  ;;  %v16909_v56 = vrot.slane %v8786_v8, 9  ;;  %v8910_v0 = vrot.slane %v8908_v25, 4  ;;  %v8793_v8 = vld [vmem:[#allocation2 + $0xb4] sm:$0xe] }
 0x452   : > { %18721 = vmatprep.subr.bf16.mxu1 %v20364_v41  ;;  %v16921_v50 = vcombine.low %v8867_v12, %v8870_v3  ;;  %v20373_v3 = vld [vmem:[#allocation8 + $0x1c0] sm:$0xff]   ;;  %v8929_v12 = vrot.slane %v23639_v13, 5  ;;  %v16916_v42 = vrot.slane %v8793_v8, 9  ;;  %v8952_v16 = vrot.slane %v8950_v43, 4 }
 0x453   : > { %v8895_v60 = vsel %vm21274_vm9, %v16909_v56, %v8894_v48  ;;  %v8943_v48 = vrot.slane %v26209_v61, 5  ;;  %v8940_v56 = vsel %vm21274_vm9, %v8938_v19, %v8939_v35  ;;  %v9749_v61 = vshrl.u32 %v23825_v22, 16  ;;  %v23835_v35 = vld [vmem:[#allocation2 + $0x2c] sm:$0x1] }
 0x454   : > { %v16925_v45 = vcombine.low %v8895_v60, %v8898_v11  ;;  %v8931_v1 = vrot.slane %v8929_v12, 4 }
 0x455   : > { %18722 = vmatpush3.bf16.msra.mxu1 %v20364_v41  ;;  %v8915_v41 = vrot.slane %v23616_v6, 5  ;;  %v8911_v6 = vrot.slane %v23623_v47, 5  ;;  %v8944_v11 = vsel %vm21274_vm9, %v16916_v42, %v8943_v48  ;;  %v9751_v8 = vrot.slane %v9749_v61, 4  ;;  %v23837_v42 = vld [vmem:[#allocation2 + $0x34] sm:$0xf] }
 0x456   : > { %18723 = vmatprep.subr.bf16.mxu1 %v20365_v44 }
 0x457   : > { %v8917_v52 = vrot.slane %v8915_v41, 4  ;;  %v8912_v20 = vsel %vm21274_vm9, %v8910_v0, %v8911_v6  ;;  %v20379_v0 = vld [vmem:[#allocation8 + $0x1d0] sm:$0xff]   ;;  %v20378_v6 = vld [vmem:[#allocation2 + $0x54] sm:$0xff]  }
 0x458   : > { %18692 = vmatmul.mubr.bf16.gmra.mrb[36].mxu1 %v16921_v50  ;;  %v8909_v50 = vsel %vm21274_vm9, %v16911_v28, %v8908_v25  ;;  %v8794_v25 = vld [vmem:[#allocation2 + $0xc0] sm:$0xe]  ;;  %v20385_v28 = vld [vmem:[#allocation8 + $0x1e0] sm:$0xff]  }
 0x459   : > { %18695 = vmatprep.mubr.bf16.mxu1 %v16922_v24  ;;  %18724 = vmatpush3.bf16.msra.mxu1 %v20365_v44  ;;  %v8918_v44 = vrot.slane %v23641_v2, 5  ;;  %v16927_v47 = vcombine.low %v8909_v50, %v8912_v20  ;;  %v8916_v2 = vsel %vm21274_vm9, %v16912_v57, %v8915_v41  ;;  %v8791_v24 = vld [vmem:[#allocation2 + $0x9c] sm:$0xe]  ;;  %v16917_v27 = vrot.slane %v8794_v25, 9  ;;  %v20388_v57 = vld [vmem:[#allocation8 + $0x1e8] sm:$0xff]   ;;  %v20381_v20 = vld [vmem:[#allocation2 + $0x6c] sm:$0xff]  }
 0x45a   : > { %18725 = vmatprep.subr.bf16.mxu1 %v20366_v18  ;;  %v16914_v13 = vrot.slane %v8791_v24, 9  ;;  %v8953_v41 = vrot.slane %v23707_v40, 5  ;;  %v20375_v40 = vld [vmem:[#allocation2 + $0x3c] sm:$0xff]   ;;  %v9666_v24 = vld [vmem:[#allocation2 + $0x24] sm:$0xf]  ;;  %v9755_v25 = vshll.u32 %v23835_v35, 16 }
 0x45b   : > { %v8919_v21 = vsel %vm21274_vm9, %v8917_v52, %v8918_v44  ;;  %v8951_v60 = vsel %vm21274_vm9, %v16917_v27, %v8950_v43  ;;  %v20377_v52 = vld [vmem:[#allocation2 + $0x48] sm:$0xff]   ;;  %v20380_v44 = vld [vmem:[#allocation2 + $0x60] sm:$0xff]   ;;  %v23819_v50 = vld [vmem:[#allocation2 + $0x1c] sm:$0xf]  ;;  %v9736_v33 = vshrl.u32 %v9666_v24, 16 }
 0x45c   : > { %v16928_v39 = vcombine.low %v8916_v2, %v8919_v21  ;;  %v8930_v38 = vsel %vm21274_vm9, %v16914_v13, %v8929_v12  ;;  %v8954_v36 = vsel %vm21274_vm9, %v8952_v16, %v8953_v41  ;;  %v20383_v21 = vld [vmem:[#allocation2 + $0x78] sm:$0xff]   ;;  %v9773_v16 = vshrl.u32 %v23837_v42, 16 }
 0x45d   : > { %18726 = vmatpush3.bf16.msra.mxu1 %v20366_v18  ;;  %v8924_v18 = vrot.slane %v8922_v15, 4  ;;  %v20394_v15 = vld [vmem:[#allocation8 + $0x1f8] sm:$0xff]   ;;  %v9663_v12 = vld [vmem:[#allocation2 + $0x18] sm:$0xf]  ;;  %v9672_v27 = vld [vmem:[#allocation2 + $0x3c] sm:$0xf] }
 0x45e   : > { %18727 = vmatprep.subr.bf16.mxu1 %v20367_v58  ;;  %v9712_v2 = vshrl.u32 %v9663_v12, 16  ;;  %v9715_v32 = vshll.u32 %v9663_v12, 16  ;;  %v20392_v12 = vld [vmem:[#allocation2 + $0xc0] sm:$0xff]  }
 0x45f   : > { %v8926_v7 = vsel %vm21274_vm9, %v8924_v18, %v8925_v62  ;;  %v9725_v18 = vshrl.u32 %v23819_v50, 16  ;;  %v20386_v62 = vld [vmem:[#allocation2 + $0x90] sm:$0xff]  }
 0x460   : > { %18696 = vmatmul.mubr.bf16.gmra.mrb[40].mxu1 %v16923_v53  ;;  %v16929_v17 = vcombine.low %v8923_v29, %v8926_v7  ;;  %v9714_v13 = vrot.slane %v9712_v2, 4  ;;  %v9717_v51 = vrot.slane %v9715_v32, 5 }
 0x461   : > { %18699 = vmatprep.mubr.bf16.mxu1 %v16924_v5  ;;  %18728 = vmatpush3.bf16.msra.mxu1 %v20367_v58  ;;  %v8933_v58 = vsel %vm21274_vm9, %v8931_v1, %v8932_v4  ;;  %v16915_v5 = vrot.slane %v8792_v10, 9  ;;  %v20384_v1 = vld [vmem:[#allocation2 + $0x84] sm:$0xff]   ;;  %v9727_v7 = vrot.slane %v9725_v18, 4 }
 0x462   : > { %18729 = vmatprep.subr.bf16.mxu1 %v20368_v14  ;;  %v16930_v53 = vcombine.low %v8930_v38, %v8933_v58  ;;  %v9745_v58 = vshll.u32 %v23825_v22, 16  ;;  %v9718_v29 = vor.u32 %v9717_v51, %v9714_v13  ;;  %v9738_v38 = vrot.slane %v9736_v33, 4  ;;  %v23863_v51 = vld [vmem:[#allocation2 + $0xd0] sm:$0xf] }
 0x463   : > { %v8937_v9 = vsel %vm21274_vm9, %v16915_v5, %v8936_v26  ;;  %v9739_v26 = vshll.u32 %v9666_v24, 16  ;;  %v10588_v61 = vrot.slane %v23863_v51, 5 }
 0x464   : > { %v23832_v19 = vrot.slane %v9745_v58, 5  ;;  %v10432_v58 = vld [vmem:[#allocation2 + $0xcc] sm:$0xe] }
 0x465   : > { %18730 = vmatpush3.bf16.msra.mxu1 %v20368_v14  ;;  %v8945_v14 = vrot.slane %v8943_v48, 4  ;;  %v23830_v48 = vld [vmem:[#allocation2 + $0x20] sm:$0x1]  ;;  %v9741_v10 = vrot.slane %v9739_v26, 5  ;;  %v9678_v26 = vld [vmem:[#allocation2 + $0x54] sm:$0xf] }
 0x466   : > { %18731 = vmatprep.subr.bf16.mxu1 %v20369_v49  ;;  %v9731_v5 = vshll.u32 %v23830_v48, 16 }
 0x467   : > { %v8947_v54 = vsel %vm21274_vm9, %v8945_v14, %v8946_v46  ;;  %v20387_v14 = vld [vmem:[#allocation2 + $0x9c] sm:$0xff]   ;;  %v20389_v46 = vld [vmem:[#allocation2 + $0xa8] sm:$0xff]  }
 0x468   : > { %18700 = vmatmul.mubr.bf16.gmra.mrb[44].mxu1 %v16925_v45  ;;  %v16932_v63 = vcombine.low %v8944_v11, %v8947_v54  ;;  %v16933_v45 = vcombine.low %v8951_v60, %v8954_v36  ;;  %v9752_v11 = vor.u32 %v9751_v8, %v23832_v19  ;;  %v9733_v41 = vrot.slane %v9731_v5, 5  ;;  %v23843_v36 = vld [vmem:[#allocation2 + $0x38] sm:$0x1]  ;;  %v23876_v8 = vld [vmem:[#allocation2 + $0x44] sm:$0x1] }
 0x469   : > { %18703 = vmatprep.mubr.bf16.mxu1 %v16926_v23  ;;  %18732 = vmatpush3.bf16.msra.mxu1 %v20369_v49  ;;  %v16931_v49 = vcombine.low %v8937_v9, %v8940_v56  ;;  %v20374_v23 = vld [vmem:[#allocation2 + $0x30] sm:$0xff]   ;;  %v9719_v56 = vrot.slane %v9718_v29, 4  ;;  %v9742_v9 = vor.u32 %v9741_v10, %v9738_v38 }
 0x46a   : > { %18733 = vmatprep.subr.bf16.mxu1 %v20370_v31 }
 0x46d   : > { %18734 = vmatpush3.bf16.msra.mxu1 %v20370_v31  ;;  %v20376_v31 = vld [vmem:[#allocation8 + $0x1c8] sm:$0xff]  }
 0x46e   : > { %18767 = vmatprep.subr.bf16.mxu1 %v20373_v3 }
 0x470   : > { %18704 = vmatmul.mubr.bf16.gmra.mrb[48].mxu1 %v16927_v47  ;;  %v23821_v47 = vld [vmem:[#allocation8 + $0x200] sm:$0xff]  }
 0x471   : > { %18707 = vmatprep.mubr.bf16.mxu1 %v16928_v39  ;;  %v9721_v39 = vshll.u32 %v23819_v50, 16 }
 0x473   : > { %v9723_v4 = vrot.slane %v9721_v39, 5 }
 0x475   : > { %v9724_v60 = vsel %vm21116_vm5, %v9719_v56, %v9723_v4  ;;  %v10590_v56 = vrot.slane %v10588_v61, 4 }
 0x478   : > { %18708 = vmatmul.mubr.bf16.gmra.mrb[52].mxu1 %v16929_v17  ;;  %v9728_v17 = vor.u32 %v9727_v7, %v9723_v4  ;;  %v23865_v4 = vld [vmem:[#allocation2 + $0xd4] sm:$0x1] }
 0x479   : > { %18711 = vmatprep.mubr.bf16.mxu1 %v16930_v53  ;;  %v9669_v53 = vld [vmem:[#allocation2 + $0x30] sm:$0xf]  ;;  %v10591_v29 = vrot.slane %v23865_v4, 5 }
 0x47a   : > { %v9760_v43 = vshrl.u32 %v9669_v53, 16  ;;  %v9729_v54 = vrot.slane %v9728_v17, 4 }
 0x480   : > { %18712 = vmatmul.mubr.bf16.gmra.mrb[56].mxu1 %v16931_v49  ;;  %v9763_v49 = vshll.u32 %v9669_v53, 16  ;;  %v23874_v53 = vld [vmem:[#allocation2 + $0x58] sm:$0xf] }
 0x481   : > { %18715 = vmatprep.mubr.bf16.mxu1 %v16932_v63  ;;  %v9769_v63 = vshll.u32 %v23837_v42, 16 }
 0x488   : > { %18716 = vmatmul.mubr.bf16.gmra.mrb[60].mxu1 %v16933_v45  ;;  %v9762_v45 = vrot.slane %v9760_v43, 4  ;;  %v20393_v43 = vld [vmem:[#allocation2 + $0xcc] sm:$0xff]  }
 0x489   : > { %18735 = vmatprep.mubr.bf16.mxu1 %v20371_v55  ;;  %v23847_v55 = vld [vmem:[#allocation2 + $0x40] sm:$0xf] }
 0x490   : > { %18736 = vmatmul.mubr.bf16.vlgmr.msra.gmra.mrb[32].mxu1 %v20372_v37  ;;  %v9675_v37 = vld [vmem:[#allocation2 + $0x48] sm:$0xf] }
 0x491   : > { %18739 = vmatprep.mubr.bf16.mxu1 %v20374_v23  ;;  %18768 = vmatpush3.bf16.msra.mxu1 %v20373_v3  ;;  %v20391_v3 = vld [vmem:[#allocation8 + $0x1f0] sm:$0xff]   ;;  %v9743_v23 = vrot.slane %v9742_v9, 4  ;;  %v9808_v32 = vshrl.u32 %v9675_v37, 16  ;;  %v9811_v39 = vshll.u32 %v9675_v37, 16  ;;  %v9803_v37 = vshll.u32 %v23876_v8, 16 }
 0x492   : > { %18769 = vmatprep.subr.bf16.mxu1 %v20376_v31 }
 0x493   : > { %v9748_v24 = vsel %vm21116_vm5, %v9743_v23, %v23832_v19  ;;  %v17005_v19 = vrot.slane %v10432_v58, 9  ;;  %v9813_v5 = vrot.slane %v9811_v39, 5 }
 0x495   : > { %18770 = vmatpush3.bf16.msra.mxu1 %v20376_v31  ;;  %v9734_v31 = vsel %vm21116_vm5, %v9729_v54, %v9733_v41  ;;  %v23880_v54 = vld [vmem:[#allocation2 + $0x50] sm:$0x1]  ;;  %v23890_v41 = vsel %vm21274_vm9, %v10590_v56, %v10591_v29 }
 0x496   : > { %18771 = vmatprep.subr.bf16.mxu1 %v20379_v0  ;;  %v16966_v2 = vcombine.low %v9724_v60, %v9734_v31  ;;  %26211 = vst [vmem:[#allocation42_spill] sm:$0xff] %v23890_v41  ;;  %v9681_v31 = vld [vmem:[#allocation2 + $0x60] sm:$0xf]  ;;  %v20402_v41 = vld [vmem:[#allocation8 + $0x238] sm:$0xff]  }
 0x498   : > { %18740 = vmatmul.mubr.bf16.gmra.mrb[36].mxu1 %v20375_v40  ;;  %v9784_v40 = vshrl.u32 %v9672_v27, 16 }
 0x499   : > { %18743 = vmatprep.mubr.bf16.mxu1 %v20377_v52  ;;  %18772 = vmatpush3.bf16.msra.mxu1 %v20379_v0  ;;  %v9765_v0 = vrot.slane %v9763_v49, 5  ;;  %v9753_v52 = vrot.slane %v9752_v11, 4  ;;  %v9832_v49 = vshrl.u32 %v9678_v26, 16  ;;  %v9835_v11 = vshll.u32 %v9678_v26, 16  ;;  %v9684_v26 = vld [vmem:[#allocation2 + $0x6c] sm:$0xf] }
 0x49a   : > { %18773 = vmatprep.subr.bf16.mxu1 %v20382_v59 }
 0x49d   : > { %18774 = vmatpush3.bf16.msra.mxu1 %v20382_v59  ;;  %v23851_v59 = vld [vmem:[#allocation2 + $0x4c] sm:$0xf] }
 0x49e   : > { %18775 = vmatprep.subr.bf16.mxu1 %v20385_v28  ;;  %v9817_v18 = vshll.u32 %v23851_v59, 16  ;;  %v9821_v13 = vshrl.u32 %v23851_v59, 16 }
 0x4a0   : > { %18744 = vmatmul.mubr.bf16.gmra.mrb[40].mxu1 %v20378_v6  ;;  %v23853_v6 = vrot.slane %v9769_v63, 5  ;;  %v9823_v9 = vrot.slane %v9821_v13, 4  ;;  %v9805_v13 = vrot.slane %v9803_v37, 5 }
 0x4a1   : > { %18747 = vmatprep.mubr.bf16.mxu1 %v20380_v44  ;;  %18776 = vmatpush3.bf16.msra.mxu1 %v20385_v28  ;;  %v9757_v28 = vrot.slane %v9755_v25, 5  ;;  %v20390_v44 = vld [vmem:[#allocation2 + $0xb4] sm:$0xff]   ;;  %v23884_v25 = vsel %vm21274_vm9, %v17005_v19, %v10588_v61 }
 0x4a2   : > { %18777 = vmatprep.subr.bf16.mxu1 %v20388_v57  ;;  %26210 = vst [vmem:[#allocation28_spill] sm:$0xff] %v23884_v25 }
 0x4a3   : > { %v9758_v7 = vsel %vm21116_vm5, %v9753_v52, %v9757_v28  ;;  %v9827_v28 = vshll.u32 %v23880_v54, 16 }
 0x4a4   : > { %v16967_v60 = vcombine.low %v9748_v24, %v9758_v7  ;;  %v9856_v24 = vshrl.u32 %v9681_v31, 16 }
 0x4a5   : > { %18778 = vmatpush3.bf16.msra.mxu1 %v20388_v57  ;;  %v9775_v57 = vrot.slane %v9773_v16, 4  ;;  %v9841_v16 = vshll.u32 %v23874_v53, 16  ;;  %v9829_v29 = vrot.slane %v9827_v28, 5  ;;  %v9687_v28 = vld [vmem:[#allocation2 + $0x78] sm:$0xf] }
 0x4a6   : > { %18779 = vmatprep.subr.bf16.mxu1 %v20391_v3 }
 0x4a7   : > { %v9776_v33 = vor.u32 %v9775_v57, %v23853_v6  ;;  %v23897_v57 = vld [vmem:[#allocation2 + $0x64] sm:$0xf]  ;;  %v23902_v39 = vrot.slane %v9841_v16, 5 }
 0x4a8   : > { %18748 = vmatmul.mubr.bf16.gmra.mrb[44].mxu1 %v20381_v20  ;;  %v9787_v20 = vshll.u32 %v9672_v27, 16  ;;  %v9845_v27 = vshrl.u32 %v23874_v53, 16  ;;  %v9865_v7 = vshll.u32 %v23897_v57, 16 }
 0x4a9   : > { %18751 = vmatprep.mubr.bf16.mxu1 %v20383_v21  ;;  %18780 = vmatpush3.bf16.msra.mxu1 %v20391_v3  ;;  %v9779_v3 = vshll.u32 %v23843_v36, 16  ;;  %v9797_v21 = vshrl.u32 %v23847_v55, 16 }
 0x4aa   : > { %18781 = vmatprep.subr.bf16.mxu1 %v20394_v15  ;;  %v9789_v17 = vrot.slane %v9787_v20, 5  ;;  %v9834_v20 = vrot.slane %v9832_v49, 4  ;;  %v23917_v16 = vrot.slane %v9865_v7, 5  ;;  %v9904_v7 = vshrl.u32 %v9687_v28, 16 }
 0x4ab   : > { %v9799_v10 = vrot.slane %v9797_v21, 4  ;;  %v9781_v63 = vrot.slane %v9779_v3, 5  ;;  %v20403_v21 = vld [vmem:[#allocation9 + $0x40] sm:$0xff]  }
 0x4ac   : > { %18863 = vmatprep.subr.bf16.mxu0 %v20403_v21 }
 0x4ad   : > { %18782 = vmatpush3.bf16.msra.mxu1 %v20394_v15  ;;  %v9793_v15 = vshll.u32 %v23847_v55, 16  ;;  %18864 = vmatpush3.bf16.msra.mxu0 %v20403_v21  ;;  %v20406_v21 = vld [vmem:[#allocation9 + $0x58] sm:$0xff]  }
 0x4ae   : > { %18815 = vmatprep.subr.bf16.mxu1 %v23821_v47 }
 0x4af   : > { %v23872_v38 = vrot.slane %v9793_v15, 5  ;;  %v9837_v15 = vrot.slane %v9835_v11, 5  ;;  %v9880_v11 = vshrl.u32 %v9684_v26, 16 }
 0x4b0   : > { %18752 = vmatmul.mubr.bf16.gmra.mrb[48].mxu1 %v20384_v1  ;;  %v9766_v1 = vor.u32 %v9765_v0, %v9762_v45  ;;  %v9777_v0 = vrot.slane %v9776_v33, 4  ;;  %v9869_v33 = vshrl.u32 %v23897_v57, 16 }
 0x4b1   : > { %18755 = vmatprep.mubr.bf16.mxu1 %v20386_v62  ;;  %v9786_v62 = vrot.slane %v9784_v40, 4  ;;  %v9800_v52 = vor.u32 %v9799_v10, %v23872_v38 }
 0x4b2   : > { %v9767_v45 = vrot.slane %v9766_v1, 4  ;;  %v9859_v1 = vshll.u32 %v9681_v31, 16 }
 0x4b3   : > { %v9790_v40 = vor.u32 %v9789_v17, %v9786_v62  ;;  %v9801_v61 = vrot.slane %v9800_v52, 4  ;;  %v23911_v17 = vld [vmem:[#allocation2 + $0x70] sm:$0xf] }
 0x4b4   : > { %v9772_v62 = vsel %vm21116_vm5, %v9767_v45, %v23853_v6  ;;  %v9861_v49 = vrot.slane %v9859_v1, 5  ;;  %v9883_v45 = vshll.u32 %v9684_v26, 16  ;;  %v9889_v37 = vshll.u32 %v23911_v17, 16 }
 0x4b5   : > { %v9791_v58 = vrot.slane %v9790_v40, 4  ;;  %v9806_v40 = vsel %vm21116_vm5, %v9801_v61, %v9805_v13  ;;  %v9893_v52 = vshrl.u32 %v23911_v17, 16 }
 0x4b6   : > { %v23942_v13 = vrot.slane %v9889_v37, 5  ;;  %v23959_v37 = vld [vmem:[#allocation2 + $0x94] sm:$0xf] }
 0x4b7   : > { %v9895_v26 = vrot.slane %v9893_v52, 4  ;;  %v23964_v52 = vld [vmem:[#allocation2 + $0x80] sm:$0x1] }
 0x4b8   : > { %18756 = vmatmul.mubr.bf16.gmra.mrb[52].mxu1 %v20387_v14  ;;  %v9810_v14 = vrot.slane %v9808_v32, 4  ;;  %v23900_v32 = vld [vmem:[#allocation2 + $0x5c] sm:$0x1] }
 0x4b9   : > { %18759 = vmatprep.mubr.bf16.mxu1 %v20389_v46  ;;  %v23878_v46 = vrot.slane %v9817_v18, 5  ;;  %v9847_v18 = vrot.slane %v9845_v27, 4  ;;  %v9851_v6 = vshll.u32 %v23900_v32, 16  ;;  %v9871_v27 = vrot.slane %v9869_v33, 4  ;;  %v23944_v33 = vld [vmem:[#allocation2 + $0x74] sm:$0x1] }
 0x4bb   : > { %v9824_v3 = vor.u32 %v9823_v9, %v23878_v46  ;;  %v9848_v56 = vor.u32 %v9847_v18, %v23902_v39  ;;  %v9858_v9 = vrot.slane %v9856_v24, 4  ;;  %v20397_v24 = vld [vmem:[#allocation8 + $0x210] sm:$0xff]   ;;  %v9872_v1 = vor.u32 %v9871_v27, %v23917_v16  ;;  %v20398_v27 = vld [vmem:[#allocation8 + $0x218] sm:$0xff]  }
 0x4bd   : > { %v9825_v19 = vrot.slane %v9824_v3, 4 }
 0x4bf   : > { %v9830_v3 = vsel %vm21116_vm5, %v9825_v19, %v9829_v29 }
 0x4c0   : > { %18760 = vmatmul.mubr.bf16.gmra.mrb[56].mxu1 %v20390_v44  ;;  %v9814_v44 = vor.u32 %v9813_v5, %v9810_v14  ;;  %v9838_v14 = vor.u32 %v9837_v15, %v9834_v20  ;;  %v20405_v5 = vld [vmem:[#allocation9 + $0x50] sm:$0xff]   ;;  %v23933_v15 = vrot.slane %v9851_v6, 5 }
 0x4c1   : > { %18763 = vmatprep.mubr.bf16.mxu1 %v20392_v12  ;;  %v20404_v12 = vld [vmem:[#allocation9 + $0x48] sm:$0xff]  }
 0x4c2   : > { %v9815_v10 = vrot.slane %v9814_v44, 4  ;;  %18865 = vmatprep.subr.bf16.mxu0 %v20404_v12  ;;  %v23931_v20 = vrot.slane %v9838_v14, 4 }
 0x4c3   : > { %18866 = vmatpush3.bf16.msra.mxu0 %v20404_v12  ;;  %v23938_v12 = vrot.slane %v9848_v56, 4 }
 0x4c4   : > { %v9820_v44 = vsel %vm21116_vm5, %v9815_v10, %v23878_v46  ;;  %18867 = vmatprep.subr.bf16.mxu0 %v20405_v5  ;;  %v9882_v46 = vrot.slane %v9880_v11, 4  ;;  %v9693_v10 = vld [vmem:[#allocation2 + $0x90] sm:$0xf]  ;;  %v9844_v19 = vsel %vm21116_vm5, %v23931_v20, %v23902_v39  ;;  %v9896_v39 = vor.u32 %v9895_v26, %v23942_v13 }
 0x4c5   : > { %v16970_v29 = vcombine.low %v9820_v44, %v9830_v3  ;;  %v9854_v14 = vsel %vm21116_vm5, %v23938_v12, %v23933_v15  ;;  %v9952_v15 = vshrl.u32 %v9693_v10, 16  ;;  %v9955_v12 = vshll.u32 %v9693_v10, 16 }
 0x4c6   : > { %v9897_v26 = vrot.slane %v9896_v39, 4  ;;  %v20400_v39 = vld [vmem:[#allocation8 + $0x228] sm:$0xff]  }
 0x4c7   : > { %18868 = vmatpush3.bf16.msra.mxu0 %v20405_v5  ;;  %v9873_v5 = vrot.slane %v9872_v1, 4 }
 0x4c8   : > { %18764 = vmatmul.mubr.bf16.gmra.mrb[60].mxu1 %v20393_v43  ;;  %v23915_v43 = vld [vmem:[#allocation2 + $0x68] sm:$0x1]  ;;  %18869 = vmatprep.subr.bf16.mxu0 %v20406_v21 }
 0x4c9   : > { %18783 = vmatprep.mubr.bf16.mxu1 %v16966_v2  ;;  %v9782_v2 = vsel %vm21116_vm5, %v9777_v0, %v9781_v63  ;;  %v20396_v63 = vld [vmem:[#allocation8 + $0x208] sm:$0xff]   ;;  %v9796_v0 = vsel %vm21116_vm5, %v9791_v58, %v23872_v38  ;;  %v23935_v38 = vld [vmem:[#allocation2 + $0x7c] sm:$0xf]  ;;  %v9875_v18 = vshll.u32 %v23915_v43, 16 }
 0x4ca   : > { %v16968_v31 = vcombine.low %v9772_v62, %v9782_v2  ;;  %v9885_v62 = vrot.slane %v9883_v45, 5  ;;  %v9907_v2 = vshll.u32 %v9687_v28, 16  ;;  %v9917_v58 = vshrl.u32 %v23935_v38, 16 }
 0x4cb   : > { %v16969_v61 = vcombine.low %v9796_v0, %v9806_v40  ;;  %v9877_v56 = vrot.slane %v9875_v18, 5  ;;  %v9906_v45 = vrot.slane %v9904_v7, 4  ;;  %18870 = vmatpush3.bf16.msra.mxu0 %v20406_v21  ;;  %v9965_v18 = vshrl.u32 %v23959_v37, 16  ;;  %v20399_v7 = vld [vmem:[#allocation8 + $0x220] sm:$0xff]  }
 0x4cc   : > { %v9886_v11 = vor.u32 %v9885_v62, %v9882_v46  ;;  %v9919_v40 = vrot.slane %v9917_v58, 4 }
 0x4cd   : > { %v9878_v46 = vsel %vm21116_vm5, %v9873_v5, %v9877_v56  ;;  %v9957_v56 = vrot.slane %v9955_v12, 5  ;;  %v9967_v5 = vrot.slane %v9965_v18, 4  ;;  %v23992_v12 = vld [vmem:[#allocation2 + $0xac] sm:$0xf] }
 0x4ce   : > { %v9887_v1 = vrot.slane %v9886_v11, 4  ;;  %v16971_v11 = vcombine.low %v9844_v19, %v9854_v14  ;;  %26212 = vst [vmem:[#allocation53_spill] sm:$0xff] %v23992_v12 }
 0x4d0   : > { %18784 = vmatmul.mubr.bf16.vlgmr.msra.gmra.mrb[32].mxu1 %v16967_v60  ;;  %v9862_v60 = vor.u32 %v9861_v49, %v9858_v9  ;;  %v9690_v9 = vld [vmem:[#allocation2 + $0x84] sm:$0xf]  ;;  %v23956_v49 = vld [vmem:[#allocation2 + $0x88] sm:$0xf] }
 0x4d1   : > { %18787 = vmatprep.mubr.bf16.mxu1 %v16968_v31  ;;  %18816 = vmatpush3.bf16.msra.mxu1 %v23821_v47  ;;  %v9913_v47 = vshll.u32 %v23935_v38, 16  ;;  %v9909_v31 = vrot.slane %v9907_v2, 5  ;;  %v9928_v28 = vshrl.u32 %v9690_v9, 16  ;;  %v9931_v44 = vshll.u32 %v9690_v9, 16 }
 0x4d2   : > { %18817 = vmatprep.subr.bf16.mxu1 %v20396_v63  ;;  %v9863_v6 = vrot.slane %v9862_v60, 4  ;;  %v9937_v3 = vshll.u32 %v23956_v49, 16  ;;  %v9941_v20 = vshrl.u32 %v23956_v49, 16  ;;  %v9961_v60 = vshll.u32 %v23959_v37, 16 }
 0x4d3   : > { %v23962_v0 = vrot.slane %v9913_v47, 5  ;;  %v9910_v2 = vor.u32 %v9909_v31, %v9906_v45  ;;  %v9923_v47 = vshll.u32 %v23964_v52, 16  ;;  %v9930_v58 = vrot.slane %v9928_v28, 4  ;;  %v9696_v45 = vld [vmem:[#allocation2 + $0x9c] sm:$0xf] }
 0x4d4   : > { %v9868_v21 = vsel %vm21116_vm5, %v9863_v6, %v23917_v16  ;;  %v9943_v10 = vrot.slane %v9941_v20, 4  ;;  %v23979_v16 = vld [vmem:[#allocation2 + $0x8c] sm:$0x1]  ;;  %v9954_v6 = vrot.slane %v9952_v15, 4  ;;  %v23981_v9 = vrot.slane %v9961_v60, 5 }
 0x4d5   : > { %18818 = vmatpush3.bf16.msra.mxu1 %v20396_v63  ;;  %v9899_v63 = vshll.u32 %v23944_v33, 16  ;;  %v9892_v31 = vsel %vm21116_vm5, %v9887_v1, %v23942_v13  ;;  %v9925_v28 = vrot.slane %v9923_v47, 5  ;;  %v9947_v14 = vshll.u32 %v23979_v16, 16  ;;  %v23994_v60 = vld [vmem:[#allocation2 + $0x98] sm:$0x1] }
 0x4d6   : > { %18819 = vmatprep.subr.bf16.mxu1 %v20397_v24  ;;  %v9958_v13 = vor.u32 %v9957_v56, %v9954_v6  ;;  %v9968_v18 = vor.u32 %v9967_v5, %v23981_v9  ;;  %v9971_v5 = vshll.u32 %v23994_v60, 16 }
 0x4d7   : > { %v9901_v62 = vrot.slane %v9899_v63, 5  ;;  %v16972_v63 = vcombine.low %v9868_v21, %v9878_v46  ;;  %v9976_v21 = vshrl.u32 %v9696_v45, 16  ;;  %v9979_v46 = vshll.u32 %v9696_v45, 16  ;;  %v24007_v45 = vld [vmem:[#allocation2 + $0xa4] sm:$0x1] }
 0x4d8   : > { %18788 = vmatmul.mubr.bf16.gmra.mrb[36].mxu1 %v16969_v61  ;;  %v9933_v61 = vrot.slane %v9931_v44, 5  ;;  %v23988_v44 = vld [vmem:[#allocation2 + $0xa0] sm:$0xf]  ;;  %26213 = vst [vmem:[#allocation51_spill] sm:$0xff] %v24007_v45 }
 0x4d9   : > { %18791 = vmatprep.mubr.bf16.mxu1 %v16970_v29  ;;  %18820 = vmatpush3.bf16.msra.mxu1 %v20397_v24  ;;  %v9920_v24 = vor.u32 %v9919_v40, %v23962_v0  ;;  %v23977_v29 = vrot.slane %v9937_v3, 5  ;;  %v9902_v40 = vsel %vm21116_vm5, %v9897_v26, %v9901_v62  ;;  %v9699_v3 = vld [vmem:[#allocation2 + $0xa8] sm:$0xf]  ;;  %v9985_v1 = vshll.u32 %v23988_v44, 16 }
 0x4da   : > { %18821 = vmatprep.subr.bf16.mxu1 %v20398_v27  ;;  %v9934_v15 = vor.u32 %v9933_v61, %v9930_v58  ;;  %v9989_v62 = vshrl.u32 %v23988_v44, 16  ;;  %v10000_v26 = vshrl.u32 %v9699_v3, 16  ;;  %v16973_v47 = vcombine.low %v9892_v31, %v9902_v40 }
 0x4db   : > { %v9921_v20 = vrot.slane %v9920_v24, 4  ;;  %v9944_v19 = vor.u32 %v9943_v10, %v23977_v29  ;;  %v20401_v24 = vld [vmem:[#allocation8 + $0x230] sm:$0xff]   ;;  %v10009_v61 = vshll.u32 %v23992_v12, 16  ;;  %v10013_v10 = vshrl.u32 %v23992_v12, 16 }
 0x4dc   : > { %v9935_v6 = vrot.slane %v9934_v15, 4  ;;  %v9978_v31 = vrot.slane %v9976_v21, 4  ;;  %v9981_v40 = vrot.slane %v9979_v46, 5 }
 0x4dd   : > { %18822 = vmatpush3.bf16.msra.mxu1 %v20398_v27  ;;  %v9911_v27 = vrot.slane %v9910_v2, 4  ;;  %v10003_v2 = vshll.u32 %v9699_v3, 16  ;;  %v9945_v56 = vrot.slane %v9944_v19, 4  ;;  %v24009_v3 = vrot.slane %v9985_v1, 5  ;;  %v9702_v19 = vld [vmem:[#allocation2 + $0xb4] sm:$0xf] }
 0x4de   : > { %18823 = vmatprep.subr.bf16.mxu1 %v20399_v7  ;;  %v10015_v15 = vrot.slane %v10013_v10, 4  ;;  %v9982_v46 = vor.u32 %v9981_v40, %v9978_v31  ;;  %v9995_v1 = vshll.u32 %v24007_v45, 16 }
 0x4df   : > { %v9916_v58 = vsel %vm21116_vm5, %v9911_v27, %v23962_v0  ;;  %v9991_v0 = vrot.slane %v9989_v62, 4  ;;  %v10002_v27 = vrot.slane %v10000_v26, 4  ;;  %v10005_v23 = vrot.slane %v10003_v2, 5  ;;  %v9705_v62 = vld [vmem:[#allocation2 + $0xc0] sm:$0xf] }
 0x4e0   : > { %18792 = vmatmul.mubr.bf16.gmra.mrb[40].mxu1 %v16971_v11  ;;  %v9959_v11 = vrot.slane %v9958_v13, 4  ;;  %v9940_v13 = vsel %vm21116_vm5, %v9935_v6, %v23977_v29  ;;  %v24024_v26 = vld [vmem:[#allocation2 + $0xc4] sm:$0xf]  ;;  %v10048_v6 = vshrl.u32 %v9705_v62, 16  ;;  %v9997_v31 = vrot.slane %v9995_v1, 5 }
 0x4e1   : > { %18795 = vmatprep.mubr.bf16.mxu1 %v16972_v63  ;;  %18824 = vmatpush3.bf16.msra.mxu1 %v20399_v7  ;;  %v9926_v7 = vsel %vm21116_vm5, %v9921_v20, %v9925_v28  ;;  %v9969_v63 = vrot.slane %v9968_v18, 4  ;;  %v9949_v28 = vrot.slane %v9947_v14, 5  ;;  %v24011_v20 = vrot.slane %v10009_v61, 5  ;;  %26215 = vst [vmem:[#allocation34_spill] sm:$0xff] %v24024_v26 }
 0x4e2   : > { %18825 = vmatprep.subr.bf16.mxu1 %v20400_v39  ;;  %v16974_v25 = vcombine.low %v9916_v58, %v9926_v7  ;;  %v9973_v18 = vrot.slane %v9971_v5, 5  ;;  %v9964_v14 = vsel %vm21116_vm5, %v9959_v11, %v23981_v9  ;;  %v9992_v2 = vor.u32 %v9991_v0, %v24009_v3  ;;  %v24029_v58 = vld [vmem:[#allocation2 + $0xb0] sm:$0x1] }
 0x4e3   : > { %v9950_v21 = vsel %vm21116_vm5, %v9945_v56, %v9949_v28  ;;  %v10016_v61 = vor.u32 %v10015_v15, %v24011_v20  ;;  %v10027_v9 = vshll.u32 %v9702_v19, 16  ;;  %v10051_v56 = vshll.u32 %v9705_v62, 16  ;;  %v9708_v15 = vld [vmem:[#allocation2 + $0xcc] sm:$0xf]  ;;  %v24037_v62 = vld [vmem:[#allocation2 + $0xbc] sm:$0x1] }
 0x4e4   : > { %v9974_v29 = vsel %vm21116_vm5, %v9969_v63, %v9973_v18  ;;  %v10061_v5 = vshrl.u32 %v24024_v26, 16  ;;  %v16975_v11 = vcombine.low %v9940_v13, %v9950_v21  ;;  %v9993_v40 = vrot.slane %v9992_v2, 4 }
 0x4e5   : > { %18826 = vmatpush3.bf16.msra.mxu1 %v20400_v39  ;;  %v24016_v39 = vld [vmem:[#allocation2 + $0xb8] sm:$0xf]  ;;  %v16976_v63 = vcombine.low %v9964_v14, %v9974_v29  ;;  %v10029_v18 = vrot.slane %v10027_v9, 5  ;;  %v10050_v12 = vrot.slane %v10048_v6, 4  ;;  %v10072_v14 = vshrl.u32 %v9708_v15, 16 }
 0x4e6   : > { %18827 = vmatprep.subr.bf16.mxu1 %v20401_v24  ;;  %26214 = vst [vmem:[#allocation29_spill] sm:$0xff] %v24016_v39  ;;  %v10033_v10 = vshll.u32 %v24016_v39, 16  ;;  %v10037_v7 = vshrl.u32 %v24016_v39, 16  ;;  %v10063_v21 = vrot.slane %v10061_v5, 4  ;;  %v10085_v1 = vshrl.u32 %v23863_v51, 16 }
 0x4e7   : > { %v10043_v9 = vshll.u32 %v24037_v62, 16 }
 0x4e8   : > { %18796 = vmatmul.mubr.bf16.gmra.mrb[44].mxu1 %v16973_v47  ;;  %v10024_v47 = vshrl.u32 %v9702_v19, 16  ;;  %v10017_v19 = vrot.slane %v10016_v61, 4  ;;  %v10035_v39 = vrot.slane %v10033_v10, 5  ;;  %v10039_v45 = vrot.slane %v10037_v7, 4  ;;  %v24047_v10 = vld [vmem:[#allocation2 + $0xc8] sm:$0x1] }
 0x4e9   : > { %18799 = vmatprep.mubr.bf16.mxu1 %v16974_v25  ;;  %18828 = vmatpush3.bf16.msra.mxu1 %v20401_v24  ;;  %v10006_v25 = vor.u32 %v10005_v23, %v10002_v27  ;;  %v10057_v24 = vshll.u32 %v24024_v26, 16  ;;  %v9983_v23 = vrot.slane %v9982_v46, 4  ;;  %v10019_v27 = vshll.u32 %v24029_v58, 16 }
 0x4ea   : > { %18829 = vmatprep.subr.bf16.mxu1 %v20402_v41  ;;  %v10026_v28 = vrot.slane %v10024_v47, 4  ;;  %v10053_v26 = vrot.slane %v10051_v56, 5  ;;  %v10081_v46 = vshll.u32 %v23863_v51, 16  ;;  %v10040_v61 = vor.u32 %v10039_v45, %v10035_v39 }
 0x4eb   : > { %v10007_v0 = vrot.slane %v10006_v25, 4  ;;  %v10059_v13 = vrot.slane %v10057_v24, 5  ;;  %v9988_v29 = vsel %vm21116_vm5, %v9983_v23, %v24009_v3  ;;  %v10021_v2 = vrot.slane %v10019_v27, 5 }
 0x4ec   : > { %v9998_v25 = vsel %vm21116_vm5, %v9993_v40, %v9997_v31  ;;  %v10030_v47 = vor.u32 %v10029_v18, %v10026_v28  ;;  %v10054_v6 = vor.u32 %v10053_v26, %v10050_v12  ;;  %v10074_v3 = vrot.slane %v10072_v14, 4 }
 0x4ed   : > { %18830 = vmatpush3.bf16.msra.mxu1 %v20402_v41  ;;  %v10075_v41 = vshll.u32 %v9708_v15, 16  ;;  %v10012_v7 = vsel %vm21116_vm5, %v10007_v0, %v24011_v20  ;;  %v10022_v51 = vsel %vm21116_vm5, %v10017_v19, %v10021_v2  ;;  %v10064_v56 = vor.u32 %v10063_v21, %v10059_v13 }
 0x4ee   : > { %v10083_v5 = vrot.slane %v10081_v46, 5  ;;  %v10067_v45 = vshll.u32 %v24047_v10, 16  ;;  %v16978_v23 = vcombine.low %v10012_v7, %v10022_v51  ;;  %v10031_v31 = vrot.slane %v10030_v47, 4 }
 0x4ef   : > { %v10077_v24 = vrot.slane %v10075_v41, 5  ;;  %v10041_v40 = vrot.slane %v10040_v61, 4  ;;  %v10055_v27 = vrot.slane %v10054_v6, 4  ;;  %v10065_v28 = vrot.slane %v10064_v56, 4 }
 0x4f0   : > { %18800 = vmatmul.mubr.bf16.gmra.mrb[48].mxu1 %v16975_v11  ;;  %v10087_v11 = vrot.slane %v10085_v1, 4  ;;  %v10045_v20 = vrot.slane %v10043_v9, 5  ;;  %v10091_v12 = vshll.u32 %v23865_v4, 16  ;;  %v10069_v26 = vrot.slane %v10067_v45, 5 }
 0x4f1   : > { %18803 = vmatprep.mubr.bf16.mxu1 %v16976_v63  ;;  %v16977_v63 = vcombine.low %v9988_v29, %v9998_v25  ;;  %v10078_v0 = vor.u32 %v10077_v24, %v10074_v3  ;;  %v10036_v19 = vsel %vm21116_vm5, %v10031_v31, %v10035_v39  ;;  %v10060_v21 = vsel %vm21116_vm5, %v10055_v27, %v10059_v13  ;;  %v10417_v25 = vld [vmem:[#allocation2 + $0x18] sm:$0xe]  ;;  %v10418_v3 = vld [vmem:[#allocation2 + $0x24] sm:$0xe] }
 0x4f2   : > { %v10088_v15 = vor.u32 %v10087_v11, %v10083_v5  ;;  %v10046_v18 = vsel %vm21116_vm5, %v10041_v40, %v10045_v20  ;;  %v10070_v14 = vsel %vm21116_vm5, %v10065_v28, %v10069_v26  ;;  %v10483_v41 = vrot.slane %v23819_v50, 5  ;;  %v10419_v11 = vld [vmem:[#allocation2 + $0x30] sm:$0xe] }
 0x4f3   : > { %v10079_v46 = vrot.slane %v10078_v0, 4  ;;  %v10093_v29 = vrot.slane %v10091_v12, 5  ;;  %v16979_v2 = vcombine.low %v10036_v19, %v10046_v18  ;;  %v16980_v4 = vcombine.low %v10060_v21, %v10070_v14  ;;  %v10420_v0 = vld [vmem:[#allocation2 + $0x3c] sm:$0xe]  ;;  %v10421_v12 = vld [vmem:[#allocation2 + $0x48] sm:$0xe] }
 0x4f4   : > { %v10089_v1 = vrot.slane %v10088_v15, 4  ;;  %v10485_v47 = vrot.slane %v10483_v41, 4  ;;  %v16990_v61 = vrot.slane %v10417_v25, 9  ;;  %v10486_v9 = vrot.slane %v23830_v48, 5  ;;  %v10423_v25 = vld [vmem:[#allocation2 + $0x60] sm:$0xe] }
 0x4f5   : > { %v10084_v39 = vsel %vm21116_vm5, %v10079_v46, %v10083_v5  ;;  %v10490_v50 = vrot.slane %v23825_v22, 5  ;;  %v10497_v6 = vrot.slane %v23837_v42, 5  ;;  %v16991_v45 = vrot.slane %v10418_v3, 9 }
 0x4f6   : > { %v10094_v13 = vsel %vm21116_vm5, %v10089_v1, %v10093_v29  ;;  %v10487_v51 = vsel %vm21274_vm9, %v10485_v47, %v10486_v9  ;;  %v10484_v56 = vsel %vm21274_vm9, %v16990_v61, %v10483_v41  ;;  %v10493_v48 = vrot.slane %v23835_v35, 5 }
 0x4f7   : > { %v16981_v7 = vcombine.low %v10084_v39, %v10094_v13  ;;  %v17006_v24 = vcombine.low %v10484_v56, %v10487_v51  ;;  %v10492_v5 = vrot.slane %v10490_v50, 4  ;;  %v16992_v22 = vrot.slane %v10419_v11, 9  ;;  %v10424_v56 = vld [vmem:[#allocation2 + $0x6c] sm:$0xe] }
 0x4f8   : > { %18804 = vmatmul.mubr.bf16.gmra.mrb[52].mxu1 %v16977_v63  ;;  %v10499_v63 = vrot.slane %v10497_v6, 4  ;;  %v10504_v42 = vrot.slane %v23847_v55, 5  ;;  %v10511_v27 = vrot.slane %v23851_v59, 5  ;;  %v10491_v28 = vsel %vm21274_vm9, %v16991_v45, %v10490_v50 }
 0x4f9   : > { %18807 = vmatprep.mubr.bf16.mxu1 %v16978_v23  ;;  %v10500_v23 = vrot.slane %v23843_v36, 5  ;;  %v10494_v31 = vsel %vm21274_vm9, %v10492_v5, %v10493_v48  ;;  %v10498_v35 = vsel %vm21274_vm9, %v16992_v22, %v10497_v6  ;;  %v16993_v55 = vrot.slane %v10420_v0, 9 }
 0x4fa   : > { %v17007_v20 = vcombine.low %v10491_v28, %v10494_v31  ;;  %v10506_v36 = vrot.slane %v10504_v42, 4  ;;  %v10513_v26 = vrot.slane %v10511_v27, 4  ;;  %v10507_v19 = vrot.slane %v23876_v8, 5  ;;  %v10427_v28 = vld [vmem:[#allocation2 + $0x90] sm:$0xe] }
 0x4fb   : > { %v10501_v40 = vsel %vm21274_vm9, %v10499_v63, %v10500_v23  ;;  %v16994_v18 = vrot.slane %v10421_v12, 9  ;;  %v10514_v59 = vrot.slane %v23880_v54, 5  ;;  %v10518_v14 = vrot.slane %v23874_v53, 5 }
 0x4fc   : > { %v17008_v15 = vcombine.low %v10498_v35, %v10501_v40  ;;  %v10508_v21 = vsel %vm21274_vm9, %v10506_v36, %v10507_v19  ;;  %v10525_v46 = vrot.slane %v23897_v57, 5  ;;  %v10505_v1 = vsel %vm21274_vm9, %v16993_v55, %v10504_v42  ;;  %v10426_v40 = vld [vmem:[#allocation2 + $0x84] sm:$0xe] }
 0x4fd   : > { %v10515_v41 = vsel %vm21274_vm9, %v10513_v26, %v10514_v59  ;;  %v17009_v29 = vcombine.low %v10505_v1, %v10508_v21  ;;  %v10512_v8 = vsel %vm21274_vm9, %v16994_v18, %v10511_v27  ;;  %v10520_v54 = vrot.slane %v10518_v14, 4  ;;  %v26216_v26 = vld [vmem:[#allocation53_spill] sm:$0xff] }
 0x4fe   : > { %v10527_v47 = vrot.slane %v10525_v46, 4  ;;  %v10521_v39 = vrot.slane %v23900_v32, 5  ;;  %v16996_v13 = vrot.slane %v10423_v25, 9  ;;  %v10528_v57 = vrot.slane %v23915_v43, 5  ;;  %v10428_v59 = vld [vmem:[#allocation2 + $0x9c] sm:$0xe] }
 0x4ff   : > { %v10532_v9 = vrot.slane %v23911_v17, 5  ;;  %v16997_v17 = vrot.slane %v10424_v56, 9  ;;  %v10535_v11 = vrot.slane %v23944_v33, 5  ;;  %v10546_v48 = vrot.slane %v23956_v49, 5 }
 0x500   : > { %18808 = vmatmul.mubr.bf16.gmra.mrb[56].mxu1 %v16979_v2  ;;  %v10422_v2 = vld [vmem:[#allocation2 + $0x54] sm:$0xe]  ;;  %v10522_v61 = vsel %vm21274_vm9, %v10520_v54, %v10521_v39  ;;  %v10529_v50 = vsel %vm21274_vm9, %v10527_v47, %v10528_v57  ;;  %v10526_v32 = vsel %vm21274_vm9, %v16996_v13, %v10525_v46  ;;  %v10553_v23 = vrot.slane %v23959_v37, 5  ;;  %v26217_v46 = vld [vmem:[#allocation51_spill] sm:$0xff]  ;;  %v26219_v47 = vld [vmem:[#allocation34_spill] sm:$0xff] }
 0x501   : > { %18811 = vmatprep.mubr.bf16.mxu1 %v16980_v4  ;;  %v17010_v4 = vcombine.low %v10512_v8, %v10515_v41  ;;  %v16995_v53 = vrot.slane %v10422_v2, 9  ;;  %v17012_v3 = vcombine.low %v10526_v32, %v10529_v50  ;;  %v10534_v43 = vrot.slane %v10532_v9, 4  ;;  %v10431_v50 = vld [vmem:[#allocation2 + $0xc0] sm:$0xe] }
 0x502   : > { %v10533_v31 = vsel %vm21274_vm9, %v16997_v17, %v10532_v9  ;;  %v16999_v49 = vrot.slane %v10426_v40, 9  ;;  %v10549_v35 = vrot.slane %v23979_v16, 5  ;;  %v17000_v0 = vrot.slane %v10427_v28, 9 }
 0x503   : > { %v10519_v51 = vsel %vm21274_vm9, %v16995_v53, %v10518_v14  ;;  %v10536_v45 = vsel %vm21274_vm9, %v10534_v43, %v10535_v11  ;;  %v10556_v37 = vrot.slane %v23994_v60, 5  ;;  %v10560_v36 = vrot.slane %v23988_v44, 5  ;;  %v10429_v14 = vld [vmem:[#allocation2 + $0xa8] sm:$0xe] }
 0x504   : > { %v17011_v6 = vcombine.low %v10519_v51, %v10522_v61  ;;  %v17013_v42 = vcombine.low %v10533_v31, %v10536_v45  ;;  %v10567_v55 = vrot.slane %v26216_v26, 5  ;;  %v10547_v19 = vsel %vm21274_vm9, %v16999_v49, %v10546_v48  ;;  %v10430_v61 = vld [vmem:[#allocation2 + $0xb4] sm:$0xe]  ;;  %v20408_v45 = vld [vmem:[#allocation9 + $0x68] sm:$0xff]  }
 0x505   : > { %v10554_v16 = vsel %vm21274_vm9, %v17000_v0, %v10553_v23  ;;  %v10562_v60 = vrot.slane %v10560_v36, 4  ;;  %v17001_v44 = vrot.slane %v10428_v59, 9  ;;  %v10563_v1 = vrot.slane %v26217_v46, 5  ;;  %v11403_v31 = vld [vmem:[#allocation2 + $0x4] sm:$0xf] }
 0x506   : > { %v10569_v41 = vrot.slane %v10567_v55, 4  ;;  %v10570_v8 = vrot.slane %v24029_v58, 5  ;;  %v10581_v53 = vrot.slane %v26219_v47, 5  ;;  %v17003_v51 = vrot.slane %v10430_v61, 9  ;;  %v24171_v59 = vld [vmem:[%s25778_s4] ss:$0 sm:$0xff] }
 0x507   : > { %v10564_v2 = vsel %vm21274_vm9, %v10562_v60, %v10563_v1  ;;  %v10561_v39 = vsel %vm21274_vm9, %v17001_v44, %v10560_v36  ;;  %v17004_v32 = vrot.slane %v10431_v50, 9  ;;  %v10584_v56 = vrot.slane %v24047_v10, 5  ;;  %v20407_v10 = vld [vmem:[#allocation9 + $0x60] sm:$0xff]  }
 0x508   : > { %18812 = vmatmul.mubr.bf16.gmra.mrb[60].mxu1 %v16981_v7  ;;  %v10539_v7 = vrot.slane %v23935_v38, 5  ;;  %v10542_v38 = vrot.slane %v23964_v52, 5  ;;  %v10548_v52 = vrot.slane %v10546_v48, 4  ;;  %v10571_v25 = vsel %vm21274_vm9, %v10569_v41, %v10570_v8  ;;  %18871 = vmatprep.subr.bf16.mxu0 %v20407_v10  ;;  %v20409_v48 = vld [vmem:[#allocation9 + $0x70] sm:$0xff]  }
 0x509   : > { %18831 = vmatprep.mubr.bf16.mxu1 %v17006_v24  ;;  %v10425_v24 = vld [vmem:[#allocation2 + $0x78] sm:$0xe]  ;;  %v17017_v13 = vcombine.low %v10561_v39, %v10564_v2  ;;  %v10582_v17 = vsel %vm21274_vm9, %v17004_v32, %v10581_v53  ;;  %18872 = vmatpush3.bf16.msra.mxu0 %v20407_v10 }
 0x50a   : > { %v10541_v5 = vrot.slane %v10539_v7, 4  ;;  %v16998_v63 = vrot.slane %v10425_v24, 9  ;;  %18873 = vmatprep.subr.bf16.mxu0 %v20408_v45 }
 0x50c   : > { %v10543_v22 = vsel %vm21274_vm9, %v10541_v5, %v10542_v38  ;;  %v10540_v33 = vsel %vm21274_vm9, %v16998_v63, %v10539_v7  ;;  %v10583_v7 = vrot.slane %v10581_v53, 4  ;;  %v26221_v63 = vld [vmem:[#allocation42_spill] sm:$0xff] }
 0x50d   : > { %v17014_v27 = vcombine.low %v10540_v33, %v10543_v22  ;;  %18874 = vmatpush3.bf16.msra.mxu0 %v20408_v45  ;;  %v20410_v22 = vld [vmem:[#allocation9 + $0x78] sm:$0xff]  }
 0x50e   : > { %v10585_v43 = vsel %vm21274_vm9, %v10583_v7, %v10584_v56  ;;  %18875 = vmatprep.subr.bf16.mxu0 %v20409_v48 }
 0x50f   : > { %v17020_v11 = vcombine.low %v10582_v17, %v10585_v43 }
 0x510   : > { %18832 = vmatmul.mubr.bf16.vlgmr.msra.gmra.mrb[32].mxu1 %v17007_v20  ;;  %v10555_v20 = vrot.slane %v10553_v23, 4  ;;  %v11402_v23 = vld [vmem:[#allocation2] sm:$0xf] }
 0x511   : > { %18835 = vmatprep.mubr.bf16.mxu1 %v17008_v15  ;;  %v10550_v15 = vsel %vm21274_vm9, %v10548_v52, %v10549_v35  ;;  %18876 = vmatpush3.bf16.msra.mxu0 %v20409_v48  ;;  %v11467_v33 = vshrl.u32 %v11402_v23, 16  ;;  %v11470_v40 = vshll.u32 %v11402_v23, 16  ;;  %v11480_v52 = vshrl.u32 %v11403_v31, 16 }
 0x512   : > { %v10557_v12 = vsel %vm21274_vm9, %v10555_v20, %v10556_v37  ;;  %v17015_v18 = vcombine.low %v10547_v19, %v10550_v15  ;;  %18877 = vmatprep.subr.bf16.mxu0 %v20410_v22  ;;  %v24161_v20 = vld [vmem:[#allocation9] sm:$0xff]  }
 0x513   : > { %v17016_v21 = vcombine.low %v10554_v16, %v10557_v12  ;;  %v11469_v49 = vrot.slane %v11467_v33, 4  ;;  %v11472_v35 = vrot.slane %v11470_v40, 5  ;;  %v11482_v37 = vrot.slane %v11480_v52, 4 }
 0x515   : > { %18878 = vmatpush3.bf16.msra.mxu0 %v20410_v22  ;;  %v11473_v15 = vor.u32 %v11472_v35, %v11469_v49 }
 0x516   : > { %18911 = vmatprep.subr.bf16.mxu0 %v24161_v20 }
 0x517   : > { %v11474_v26 = vrot.slane %v11473_v15, 4 }
 0x518   : > { %18836 = vmatmul.mubr.bf16.gmra.mrb[36].mxu1 %v17009_v29  ;;  %v17002_v29 = vrot.slane %v10429_v14, 9 }
 0x519   : > { %18839 = vmatprep.mubr.bf16.mxu1 %v17010_v4  ;;  %v26218_v4 = vld [vmem:[#allocation29_spill] sm:$0xff] }
 0x51a   : > { %v10574_v54 = vrot.slane %v26218_v4, 5  ;;  %v10568_v57 = vsel %vm21274_vm9, %v17002_v29, %v10567_v55 }
 0x51b   : > { %v17018_v9 = vcombine.low %v10568_v57, %v10571_v25 }
 0x51c   : > { %v10576_v58 = vrot.slane %v10574_v54, 4  ;;  %v10575_v24 = vsel %vm21274_vm9, %v17003_v51, %v10574_v54 }
 0x520   : > { %18840 = vmatmul.mubr.bf16.gmra.mrb[40].mxu1 %v17011_v6  ;;  %v10577_v6 = vrot.slane %v24037_v62, 5  ;;  %v26220_v62 = vld [vmem:[#allocation28_spill] sm:$0xff] }
 0x521   : > { %18843 = vmatprep.mubr.bf16.mxu1 %v17012_v3  ;;  %v26222_v38 = vcombine.low %v26220_v62, %v26221_v63 }
 0x522   : > { %v10578_v3 = vsel %vm21274_vm9, %v10576_v58, %v10577_v6 }
 0x523   : > { %v17019_v5 = vcombine.low %v10575_v24, %v10578_v3 }
 0x528   : > { %18844 = vmatmul.mubr.bf16.gmra.mrb[44].mxu1 %v17013_v42  ;;  %v11450_v42 = vld [vmem:[#allocation2 + $0x8] sm:$0x1] }
 0x529   : > { %18847 = vmatprep.mubr.bf16.mxu1 %v17014_v27  ;;  %v11476_v27 = vshll.u32 %v11403_v31, 16  ;;  %v11486_v28 = vshll.u32 %v11450_v42, 16 }
 0x52b   : > { %v11478_v0 = vrot.slane %v11476_v27, 5  ;;  %v11488_v12 = vrot.slane %v11486_v28, 5 }
 0x52d   : > { %v11483_v36 = vor.u32 %v11482_v37, %v11478_v0  ;;  %v11479_v19 = vsel %vm21116_vm5, %v11474_v26, %v11478_v0 }
 0x52f   : > { %v11484_v55 = vrot.slane %v11483_v36, 4 }
 0x530   : > { %18848 = vmatmul.mubr.bf16.gmra.mrb[48].mxu1 %v17015_v18 }
 0x531   : > { %18851 = vmatprep.mubr.bf16.mxu1 %v17016_v21  ;;  %v11489_v18 = vsel %vm21116_vm5, %v11484_v55, %v11488_v12 }
 0x532   : > { %v17079_v16 = vcombine.low %v11479_v19, %v11489_v18 }
 0x534   : > { %18879 = vmatprep.mubr.bf16.mxu0 %v17079_v16 }
 0x538   : > { %18852 = vmatmul.mubr.bf16.gmra.mrb[52].mxu1 %v17017_v13 }
 0x539   : > { %18855 = vmatprep.mubr.bf16.mxu1 %v17018_v9 }
 0x540   : > { %18856 = vmatmul.mubr.bf16.gmra.mrb[56].mxu1 %v17019_v5 }
 0x541   : > { %18859 = vmatprep.mubr.bf16.mxu1 %v17020_v11 }
 0x548   : > { %18860 = vmatmul.mubr.bf16.gmra.mrb[60].mxu1 %v26222_v38 }
 0x5e3   : > { %v18833_v21 = vpop.f32.mrb[32].mxu1 }
 0x5e4   : > { %v10924_v60 = vadd.f32 %v18833_v21, %v24171_v59  ;;  %v10756_v14 = vpop.f32.mrb[33].mxu1 }
 0x5e5   : > { %v10922_v41 = vadd.f32 %v24171_v59, %v10756_v14  ;;  %v18834_v44 = vpop.f32.mrb[34].mxu1 }
 0x5e6   : > { %v10925_v46 = vadd.f32 %v18834_v44, %v24171_v59  ;;  %v10759_v1 = vpop.f32.mrb[35].mxu1  ;;  %v10956_v8 = vmax.f32 %v10924_v60, 0.0 }
 0x5e7   : > { %v10923_v29 = vadd.f32 %v24171_v59, %v10759_v1  ;;  %v10954_v4 = vmax.f32 %v10922_v41, 0.0 }
 0x5e8   : > { %v10957_v2 = vmax.f32 %v10925_v46, 0.0 }
 0x5e9   : > { %v10955_v54 = vmax.f32 %v10923_v29, 0.0 }
 0x5ea   : > { %v10987_v25 = vpack.c.bf16 %v10957_v2, %v10956_v8 }
 0x5eb   : > { %v10986_v47 = vpack.c.bf16 %v10955_v54, %v10954_v4  ;;  %v18837_v53 = vpop.f32.mrb[36].mxu1 }
 0x5ec   : > { %v11010_v39 = vshrl.u32 %v10987_v25, 16  ;;  %v10928_v13 = vadd.f32 %v18837_v53, %v24171_v59  ;;  %v10772_v57 = vpop.f32.mrb[37].mxu1  ;;  %v11013_v7 = vshll.u32 %v10987_v25, 16 }
 0x5ed   : > { %v11003_v61 = vshrl.u32 %v10986_v47, 16  ;;  %v10926_v9 = vadd.f32 %v24171_v59, %v10772_v57  ;;  %v18838_v58 = vpop.f32.mrb[38].mxu1  ;;  %v11006_v56 = vshll.u32 %v10986_v47, 16 }
 0x5ee   : > { %v11012_v50 = vrot.slane %v11010_v39, 7  ;;  %v10929_v51 = vadd.f32 %v18838_v58, %v24171_v59  ;;  %v10775_v6 = vpop.f32.mrb[39].mxu1  ;;  %v10960_v3 = vmax.f32 %v10928_v13, 0.0 }
 0x5ef   : > { %v11005_v32 = vrot.slane %v11003_v61, 7  ;;  %v10927_v43 = vadd.f32 %v24171_v59, %v10775_v6  ;;  %v10958_v11 = vmax.f32 %v10926_v9, 0.0 }
 0x5f0   : > { %v11015_v24 = vor.u32 %v11013_v7, %v11012_v50  ;;  %v11163_v17 = vsel %vm21123_vm6, %v11012_v50, 0  ;;  %v10961_v62 = vmax.f32 %v10929_v51, 0.0 }
 0x5f1   : > { %v17036_v63 = vcombine.low %v11163_v17, %v11163_v17  ;;  %v11008_v38 = vor.u32 %v11006_v56, %v11005_v32  ;;  %v11162_v10 = vsel %vm21123_vm6, %v11005_v32, 0  ;;  %v10959_v45 = vmax.f32 %v10927_v43, 0.0 }
 0x5f2   : > { %v11147_v48 = vsel %vm21123_vm6, 0, %v11015_v24  ;;  %v17033_v22 = vcombine.low %v11162_v10, %v11162_v10  ;;  %v10989_v23 = vpack.c.bf16 %v10961_v62, %v10960_v3 }
 0x5f3   : > { %v17034_v31 = vcombine.low %v11147_v48, %v11147_v48  ;;  %v17035_v42 = vcombine.high %v11147_v48, %v11147_v48  ;;  %11359 = vst [vmem:[#allocation2 + $0x20] sm:$0x1] %v17036_v63  ;;  %v11146_v33 = vsel %vm21123_vm6, 0, %v11008_v38  ;;  %v10988_v40 = vpack.c.bf16 %v10959_v45, %v10958_v11  ;;  %v18841_v27 = vpop.f32.mrb[40].mxu1 }
 0x5f4   : > { %v17031_v52 = vcombine.low %v11146_v33, %v11146_v33  ;;  %v17032_v28 = vcombine.high %v11146_v33, %v11146_v33  ;;  %11356 = vst [vmem:[#allocation2 + $0x14] sm:$0x1] %v17033_v22  ;;  %v11024_v49 = vshrl.u32 %v10989_v23, 16  ;;  %v10788_v35 = vpop.f32.mrb[41].mxu1  ;;  %v10932_v37 = vadd.f32 %v18841_v27, %v24171_v59 }
 0x5f5   : > { %11357 = vst [vmem:[#allocation2 + $0x18] sm:$0xf] %v17034_v31  ;;  %11358 = vst [vmem:[#allocation2 + $0x1c] sm:$0xf] %v17035_v42  ;;  %v11017_v0 = vshrl.u32 %v10988_v40, 16  ;;  %v10930_v15 = vadd.f32 %v24171_v59, %v10788_v35  ;;  %v18842_v36 = vpop.f32.mrb[42].mxu1 }
 0x5f6   : > { %11355 = vst [vmem:[#allocation2 + $0x10] sm:$0xf] %v17032_v28  ;;  %11354 = vst [vmem:[#allocation2 + $0xc] sm:$0xf] %v17031_v52  ;;  %v11026_v12 = vrot.slane %v11024_v49, 7  ;;  %v11027_v26 = vshll.u32 %v10989_v23, 16  ;;  %v10933_v55 = vadd.f32 %v18842_v36, %v24171_v59 }
 0x5f7   : > { %v10791_v19 = vpop.f32.mrb[43].mxu1  ;;  %v11019_v18 = vrot.slane %v11017_v0, 7  ;;  %v11020_v16 = vshll.u32 %v10988_v40, 16  ;;  %v10964_v21 = vmax.f32 %v10932_v37, 0.0  ;;  %v10962_v44 = vmax.f32 %v10930_v15, 0.0 }
 0x5f8   : > { %v10931_v60 = vadd.f32 %v24171_v59, %v10791_v19  ;;  %v11029_v14 = vor.u32 %v11027_v26, %v11026_v12  ;;  %v11165_v41 = vsel %vm21123_vm6, %v11026_v12, 0  ;;  %v10965_v46 = vmax.f32 %v10933_v55, 0.0 }
 0x5f9   : > { %v17042_v1 = vcombine.low %v11165_v41, %v11165_v41  ;;  %v11022_v29 = vor.u32 %v11020_v16, %v11019_v18  ;;  %v11164_v8 = vsel %vm21123_vm6, %v11019_v18, 0 }
 0x5fa   : > { %v10963_v2 = vmax.f32 %v10931_v60, 0.0  ;;  %v11149_v4 = vsel %vm21123_vm6, 0, %v11029_v14  ;;  %v17039_v54 = vcombine.low %v11164_v8, %v11164_v8  ;;  %v10991_v25 = vpack.c.bf16 %v10965_v46, %v10964_v21 }
 0x5fb   : > { %v17040_v47 = vcombine.low %v11149_v4, %v11149_v4  ;;  %v17041_v53 = vcombine.high %v11149_v4, %v11149_v4  ;;  %11365 = vst [vmem:[#allocation2 + $0x38] sm:$0x1] %v17042_v1  ;;  %v11148_v39 = vsel %vm21123_vm6, 0, %v11022_v29  ;;  %v18845_v57 = vpop.f32.mrb[44].mxu1 }
 0x5fc   : > { %v10990_v13 = vpack.c.bf16 %v10963_v2, %v10962_v44  ;;  %v17037_v61 = vcombine.low %v11148_v39, %v11148_v39  ;;  %v17038_v9 = vcombine.high %v11148_v39, %v11148_v39  ;;  %11362 = vst [vmem:[#allocation2 + $0x2c] sm:$0x1] %v17039_v54  ;;  %v11038_v58 = vshrl.u32 %v10991_v25, 16  ;;  %v10804_v7 = vpop.f32.mrb[45].mxu1 }
 0x5fd   : > { %v11041_v50 = vshll.u32 %v10991_v25, 16  ;;  %11363 = vst [vmem:[#allocation2 + $0x30] sm:$0xf] %v17040_v47  ;;  %11364 = vst [vmem:[#allocation2 + $0x34] sm:$0xf] %v17041_v53  ;;  %v10936_v32 = vadd.f32 %v18845_v57, %v24171_v59  ;;  %v10934_v56 = vadd.f32 %v24171_v59, %v10804_v7  ;;  %v18846_v3 = vpop.f32.mrb[46].mxu1 }
 0x5fe   : > { %v11031_v51 = vshrl.u32 %v10990_v13, 16  ;;  %v11034_v6 = vshll.u32 %v10990_v13, 16  ;;  %v11404_v43 = vld [vmem:[#allocation2 + $0xc] sm:$0xf]  ;;  %11360 = vst [vmem:[#allocation2 + $0x24] sm:$0xf] %v17037_v61  ;;  %v10937_v17 = vadd.f32 %v18846_v3, %v24171_v59 }
 0x5ff   : > { %11361 = vst [vmem:[#allocation2 + $0x28] sm:$0xf] %v17038_v9  ;;  %v11040_v24 = vrot.slane %v11038_v58, 7  ;;  %v10807_v11 = vpop.f32.mrb[47].mxu1  ;;  %v11491_v62 = vshrl.u32 %v11404_v43, 16  ;;  %v11494_v63 = vshll.u32 %v11404_v43, 16 }
 0x600   : > { %v11033_v38 = vrot.slane %v11031_v51, 7  ;;  %v10968_v10 = vmax.f32 %v10936_v32, 0.0  ;;  %v10966_v45 = vmax.f32 %v10934_v56, 0.0  ;;  %v10935_v48 = vadd.f32 %v24171_v59, %v10807_v11  ;;  %v24213_v55 = vld [vmem:[#allocation2 + $0x10] sm:$0xf] }
 0x601   : > { %v11043_v22 = vor.u32 %v11041_v50, %v11040_v24  ;;  %v11167_v23 = vsel %vm21123_vm6, %v11040_v24, 0  ;;  %v10969_v31 = vmax.f32 %v10937_v17, 0.0  ;;  %v11493_v42 = vrot.slane %v11491_v62, 4  ;;  %v11451_v3 = vld [vmem:[#allocation2 + $0x14] sm:$0x1] }
 0x602   : > { %v17048_v33 = vcombine.low %v11167_v23, %v11167_v23  ;;  %v11036_v40 = vor.u32 %v11034_v6, %v11033_v38  ;;  %v11166_v27 = vsel %vm21123_vm6, %v11033_v38, 0  ;;  %v10967_v52 = vmax.f32 %v10935_v48, 0.0  ;;  %v11407_v23 = vld [vmem:[#allocation2 + $0x1c] sm:$0xf] }
 0x603   : > { %v11151_v28 = vsel %vm21123_vm6, 0, %v11043_v22  ;;  %v17045_v49 = vcombine.low %v11166_v27, %v11166_v27  ;;  %v10993_v35 = vpack.c.bf16 %v10969_v31, %v10968_v10  ;;  %v11496_v0 = vrot.slane %v11494_v63, 5  ;;  %v18849_v26 = vpop.f32.mrb[48].mxu1  ;;  %v11406_v63 = vld [vmem:[#allocation2 + $0x18] sm:$0xf] }
 0x604   : > { %v17046_v37 = vcombine.low %v11151_v28, %v11151_v28  ;;  %v17047_v15 = vcombine.high %v11151_v28, %v11151_v28  ;;  %11371 = vst [vmem:[#allocation2 + $0x50] sm:$0x1] %v17048_v33  ;;  %v11150_v36 = vsel %vm21123_vm6, 0, %v11036_v40  ;;  %v10992_v12 = vpack.c.bf16 %v10967_v52, %v10966_v45  ;;  %v10820_v60 = vpop.f32.mrb[49].mxu1 }
 0x605   : > { %v17043_v19 = vcombine.low %v11150_v36, %v11150_v36  ;;  %v17044_v18 = vcombine.high %v11150_v36, %v11150_v36  ;;  %11368 = vst [vmem:[#allocation2 + $0x44] sm:$0x1] %v17045_v49  ;;  %v11052_v16 = vshrl.u32 %v10993_v35, 16  ;;  %v11055_v21 = vshll.u32 %v10993_v35, 16  ;;  %v18850_v1 = vpop.f32.mrb[50].mxu1 }
 0x606   : > { %11369 = vst [vmem:[#allocation2 + $0x48] sm:$0xf] %v17046_v37  ;;  %11370 = vst [vmem:[#allocation2 + $0x4c] sm:$0xf] %v17047_v15  ;;  %v11045_v14 = vshrl.u32 %v10992_v12, 16  ;;  %v11048_v41 = vshll.u32 %v10992_v12, 16  ;;  %v10940_v44 = vadd.f32 %v18849_v26, %v24171_v59  ;;  %v10938_v46 = vadd.f32 %v24171_v59, %v10820_v60 }
 0x607   : > { %11366 = vst [vmem:[#allocation2 + $0x3c] sm:$0xf] %v17043_v19  ;;  %11367 = vst [vmem:[#allocation2 + $0x40] sm:$0xf] %v17044_v18  ;;  %v11054_v29 = vrot.slane %v11052_v16, 7  ;;  %v10941_v8 = vadd.f32 %v18850_v1, %v24171_v59  ;;  %v10823_v2 = vpop.f32.mrb[51].mxu1  ;;  %v11497_v4 = vor.u32 %v11496_v0, %v11493_v42 }
 0x608   : > { %v11500_v54 = vshll.u32 %v24213_v55, 16  ;;  %v11047_v25 = vrot.slane %v11045_v14, 7  ;;  %v10972_v47 = vmax.f32 %v10940_v44, 0.0  ;;  %v10970_v53 = vmax.f32 %v10938_v46, 0.0  ;;  %v11452_v1 = vld [vmem:[#allocation2 + $0x20] sm:$0x1] }
 0x609   : > { %v10939_v39 = vadd.f32 %v24171_v59, %v10823_v2  ;;  %v11057_v13 = vor.u32 %v11055_v21, %v11054_v29  ;;  %v11169_v57 = vsel %vm21123_vm6, %v11054_v29, 0  ;;  %v10973_v61 = vmax.f32 %v10941_v8, 0.0 }
 0x60a   : > { %v24222_v9 = vrot.slane %v11497_v4, 4  ;;  %v17054_v58 = vcombine.low %v11169_v57, %v11169_v57  ;;  %v11050_v50 = vor.u32 %v11048_v41, %v11047_v25  ;;  %v11168_v7 = vsel %vm21123_vm6, %v11047_v25, 0 }
 0x60b   : > { %v10971_v51 = vmax.f32 %v10939_v39, 0.0  ;;  %v11153_v6 = vsel %vm21123_vm6, 0, %v11057_v13  ;;  %v17051_v32 = vcombine.low %v11168_v7, %v11168_v7  ;;  %v10995_v56 = vpack.c.bf16 %v10973_v61, %v10972_v47  ;;  %v18853_v38 = vpop.f32.mrb[52].mxu1  ;;  %v20412_v61 = vld [vmem:[#allocation9 + $0x8] sm:$0xff]  }
 0x60c   : > { %v24228_v43 = vrot.slane %v11500_v54, 5  ;;  %v17052_v24 = vcombine.low %v11153_v6, %v11153_v6  ;;  %v17053_v17 = vcombine.high %v11153_v6, %v11153_v6  ;;  %11377 = vst [vmem:[#allocation2 + $0x68] sm:$0x1] %v17054_v58  ;;  %v11152_v11 = vsel %vm21123_vm6, 0, %v11050_v50  ;;  %v10836_v31 = vpop.f32.mrb[53].mxu1 }
 0x60d   : > { %v10994_v62 = vpack.c.bf16 %v10971_v51, %v10970_v53  ;;  %v17049_v10 = vcombine.low %v11152_v11, %v11152_v11  ;;  %v17050_v45 = vcombine.high %v11152_v11, %v11152_v11  ;;  %11374 = vst [vmem:[#allocation2 + $0x5c] sm:$0x1] %v17051_v32  ;;  %v11066_v48 = vshrl.u32 %v10995_v56, 16  ;;  %v18854_v52 = vpop.f32.mrb[54].mxu1  ;;  %v24254_v6 = vld [vmem:[#allocation2 + $0x24] sm:$0xf] }
 0x60e   : > { %v11069_v22 = vshll.u32 %v10995_v56, 16  ;;  %11375 = vst [vmem:[#allocation2 + $0x60] sm:$0xf] %v17052_v24  ;;  %11376 = vst [vmem:[#allocation2 + $0x64] sm:$0xf] %v17053_v17  ;;  %v11503_v40 = vsel %vm21116_vm5, %v24222_v9, %v24228_v43  ;;  %v11504_v27 = vshrl.u32 %v24213_v55, 16  ;;  %v10944_v7 = vadd.f32 %v18853_v38, %v24171_v59 }
 0x60f   : > { %v11059_v42 = vshrl.u32 %v10994_v62, 16  ;;  %v11062_v33 = vshll.u32 %v10994_v62, 16  ;;  %11372 = vst [vmem:[#allocation2 + $0x54] sm:$0xf] %v17049_v10  ;;  %11373 = vst [vmem:[#allocation2 + $0x58] sm:$0xf] %v17050_v45  ;;  %v10942_v51 = vadd.f32 %v24171_v59, %v10836_v31  ;;  %v10945_v11 = vadd.f32 %v18854_v52, %v24171_v59 }
 0x610   : > { %v11068_v28 = vrot.slane %v11066_v48, 7  ;;  %v11510_v49 = vshll.u32 %v11451_v3, 16  ;;  %v11515_v35 = vshrl.u32 %v11406_v63, 16  ;;  %v11518_v0 = vshll.u32 %v11406_v63, 16  ;;  %v10839_v37 = vpop.f32.mrb[55].mxu1 }
 0x611   : > { %v11061_v15 = vrot.slane %v11059_v42, 7  ;;  %v11506_v36 = vrot.slane %v11504_v27, 4  ;;  %v11524_v12 = vshll.u32 %v11407_v23, 16  ;;  %v11528_v26 = vshrl.u32 %v11407_v23, 16  ;;  %v24256_v32 = vld [vmem:[#allocation2 + $0x28] sm:$0xf] }
 0x612   : > { %v11071_v19 = vor.u32 %v11069_v22, %v11068_v28  ;;  %v11171_v18 = vsel %vm21123_vm6, %v11068_v28, 0  ;;  %v11512_v16 = vrot.slane %v11510_v49, 5  ;;  %v11517_v21 = vrot.slane %v11515_v35, 4  ;;  %v11453_v56 = vld [vmem:[#allocation2 + $0x2c] sm:$0x1] }
 0x613   : > { %v17060_v60 = vcombine.low %v11171_v18, %v11171_v18  ;;  %v11064_v55 = vor.u32 %v11062_v33, %v11061_v15  ;;  %v11170_v14 = vsel %vm21123_vm6, %v11061_v15, 0  ;;  %v11507_v41 = vor.u32 %v11506_v36, %v24228_v43  ;;  %v24246_v47 = vpop.f32.mrb[56].mxu1 }
 0x614   : > { %v11155_v44 = vsel %vm21123_vm6, 0, %v11071_v19  ;;  %v17057_v46 = vcombine.low %v11170_v14, %v11170_v14  ;;  %v11520_v29 = vrot.slane %v11518_v0, 5  ;;  %v11526_v8 = vrot.slane %v11524_v12, 5  ;;  %v24248_v9 = vpop.f32.mrb[57].mxu1  ;;  %v24273_v0 = vld [vmem:[#allocation2 + $0x30] sm:$0xf] }
 0x615   : > { %v17058_v2 = vcombine.low %v11155_v44, %v11155_v44  ;;  %v17059_v4 = vcombine.high %v11155_v44, %v11155_v44  ;;  %11383 = vst [vmem:[#allocation2 + $0x80] sm:$0x1] %v17060_v60  ;;  %v11154_v54 = vsel %vm21123_vm6, 0, %v11064_v55  ;;  %v11508_v25 = vrot.slane %v11507_v41, 4  ;;  %v24258_v3 = vpop.f32.mrb[58].mxu1 }
 0x616   : > { %v17055_v53 = vcombine.low %v11154_v54, %v11154_v54  ;;  %v17056_v39 = vcombine.high %v11154_v54, %v11154_v54  ;;  %11380 = vst [vmem:[#allocation2 + $0x74] sm:$0x1] %v17057_v46  ;;  %v11521_v13 = vor.u32 %v11520_v29, %v11517_v21  ;;  %v11530_v57 = vrot.slane %v11528_v26, 4  ;;  %v24261_v62 = vpop.f32.mrb[59].mxu1  ;;  %v24275_v26 = vld [vmem:[#allocation2 + $0x34] sm:$0xf] }
 0x617   : > { %11381 = vst [vmem:[#allocation2 + $0x78] sm:$0xf] %v17058_v2  ;;  %11382 = vst [vmem:[#allocation2 + $0x7c] sm:$0xf] %v17059_v4  ;;  %v11513_v58 = vsel %vm21116_vm5, %v11508_v25, %v11512_v16  ;;  %v11534_v50 = vshll.u32 %v11452_v1, 16  ;;  %v10976_v38 = vmax.f32 %v10944_v7, 0.0  ;;  %v10943_v45 = vadd.f32 %v24171_v59, %v10839_v37 }
 0x618   : > { %11378 = vst [vmem:[#allocation2 + $0x6c] sm:$0xf] %v17055_v53  ;;  %11379 = vst [vmem:[#allocation2 + $0x70] sm:$0xf] %v17056_v39  ;;  %v17080_v43 = vcombine.low %v11503_v40, %v11513_v58  ;;  %v11522_v24 = vrot.slane %v11521_v13, 4  ;;  %v11531_v17 = vor.u32 %v11530_v57, %v11526_v8  ;;  %v10974_v10 = vmax.f32 %v10942_v51, 0.0 }
 0x619   : > { %v11536_v63 = vrot.slane %v11534_v50, 5  ;;  %v10977_v23 = vmax.f32 %v10945_v11, 0.0  ;;  %v11539_v31 = vshrl.u32 %v24254_v6, 16  ;;  %v10975_v42 = vmax.f32 %v10943_v45, 0.0  ;;  %v20413_v37 = vld [vmem:[#allocation9 + $0x10] sm:$0xff]   ;;  %v20414_v25 = vld [vmem:[#allocation9 + $0x18] sm:$0xff]  }
 0x61a   : > { %18880 = vmatmul.mubr.bf16.vlgmr.msra.gmra.mrb[32].mxu0 %v17080_v43  ;;  %v11527_v48 = vsel %vm21116_vm5, %v11522_v24, %v11526_v8  ;;  %v11532_v22 = vrot.slane %v11531_v17, 4  ;;  %v11542_v33 = vshll.u32 %v24254_v6, 16  ;;  %v11548_v40 = vshll.u32 %v24256_v32, 16  ;;  %v11454_v7 = vld [vmem:[#allocation2 + $0x38] sm:$0x1] }
 0x61b   : > { %18912 = vmatpush3.bf16.msra.mxu0 %v24161_v20  ;;  %v11552_v27 = vshrl.u32 %v24256_v32, 16  ;;  %v10997_v28 = vpack.c.bf16 %v10977_v23, %v10976_v38  ;;  %v11541_v49 = vrot.slane %v11539_v31, 4  ;;  %v11558_v35 = vshll.u32 %v11453_v56, 16  ;;  %v24277_v19 = vpop.f32.mrb[60].mxu1  ;;  %v24295_v11 = vld [vmem:[#allocation2 + $0x3c] sm:$0xf] }
 0x61c   : > { %v11537_v52 = vsel %vm21116_vm5, %v11532_v22, %v11536_v63  ;;  %18913 = vmatprep.subr.bf16.mxu0 %v20412_v61  ;;  %v10996_v36 = vpack.c.bf16 %v10975_v42, %v10974_v10  ;;  %v11544_v20 = vrot.slane %v11542_v33, 5  ;;  %v11550_v12 = vrot.slane %v11548_v40, 5  ;;  %v24279_v55 = vpop.f32.mrb[61].mxu1  ;;  %v20415_v42 = vld [vmem:[#allocation9 + $0x20] sm:$0xff]  }
 0x61d   : > { %v17081_v15 = vcombine.low %v11527_v48, %v11537_v52  ;;  %v11080_v18 = vshrl.u32 %v10997_v28, 16  ;;  %v11083_v16 = vshll.u32 %v10997_v28, 16  ;;  %v11554_v21 = vrot.slane %v11552_v27, 4  ;;  %v24282_v1 = vpop.f32.mrb[62].mxu1  ;;  %v24303_v28 = vld [vmem:[#allocation2 + $0x40] sm:$0xf] }
 0x61e   : > { %v11560_v60 = vrot.slane %v11558_v35, 5  ;;  %v11073_v14 = vshrl.u32 %v10996_v36, 16  ;;  %v11076_v41 = vshll.u32 %v10996_v36, 16  ;;  %v11545_v44 = vor.u32 %v11544_v20, %v11541_v49  ;;  %v24286_v54 = vpop.f32.mrb[63].mxu1  ;;  %v11455_v49 = vld [vmem:[#allocation2 + $0x44] sm:$0x1] }
 0x61f   : > { %18883 = vmatprep.mubr.bf16.mxu0 %v17081_v15  ;;  %v11563_v46 = vshrl.u32 %v24273_v0, 16  ;;  %18914 = vmatpush3.bf16.msra.mxu0 %v20412_v61  ;;  %v11082_v29 = vrot.slane %v11080_v18, 7  ;;  %v11555_v8 = vor.u32 %v11554_v21, %v11550_v12  ;;  %v11566_v2 = vshll.u32 %v24273_v0, 16  ;;  %v24309_v20 = vld [vmem:[#allocation2 + $0x48] sm:$0xf] }
 0x620   : > { %v11572_v4 = vshll.u32 %v24275_v26, 16  ;;  %18915 = vmatprep.subr.bf16.mxu0 %v20413_v37  ;;  %v11075_v53 = vrot.slane %v11073_v14, 7  ;;  %v11546_v39 = vrot.slane %v11545_v44, 4  ;;  %v11576_v57 = vshrl.u32 %v24275_v26, 16 }
 0x621   : > { %v11565_v13 = vrot.slane %v11563_v46, 4  ;;  %v11085_v58 = vor.u32 %v11083_v16, %v11082_v29  ;;  %v11173_v61 = vsel %vm21123_vm6, %v11082_v29, 0  ;;  %v11556_v50 = vrot.slane %v11555_v8, 4 }
 0x622   : > { %v11568_v51 = vrot.slane %v11566_v2, 5  ;;  %v17066_v56 = vcombine.low %v11173_v61, %v11173_v61  ;;  %v11078_v43 = vor.u32 %v11076_v41, %v11075_v53  ;;  %v11172_v24 = vsel %vm21123_vm6, %v11075_v53, 0  ;;  %v20416_v41 = vld [vmem:[#allocation9 + $0x28] sm:$0xff]  }
 0x623   : > { %v11551_v17 = vsel %vm21116_vm5, %v11546_v39, %v11550_v12  ;;  %18916 = vmatpush3.bf16.msra.mxu0 %v20413_v37  ;;  %v11157_v63 = vsel %vm21123_vm6, 0, %v11085_v58  ;;  %v17063_v38 = vcombine.low %v11172_v24, %v11172_v24  ;;  %v11561_v10 = vsel %vm21116_vm5, %v11556_v50, %v11560_v60 }
 0x624   : > { %v11569_v45 = vor.u32 %v11568_v51, %v11565_v13  ;;  %18917 = vmatprep.subr.bf16.mxu0 %v20414_v25  ;;  %v17064_v48 = vcombine.low %v11157_v63, %v11157_v63  ;;  %v17065_v22 = vcombine.high %v11157_v63, %v11157_v63  ;;  %11389 = vst [vmem:[#allocation2 + $0x98] sm:$0x1] %v17066_v56  ;;  %v11156_v23 = vsel %vm21123_vm6, 0, %v11078_v43  ;;  %v20417_v51 = vld [vmem:[#allocation9 + $0x30] sm:$0xff]   ;;  %v24326_v63 = vld [vmem:[#allocation2 + $0x50] sm:$0x1] }
 0x625   : > { %v17082_v31 = vcombine.low %v11551_v17, %v11561_v10  ;;  %v17061_v33 = vcombine.low %v11156_v23, %v11156_v23  ;;  %v17062_v40 = vcombine.high %v11156_v23, %v11156_v23  ;;  %11386 = vst [vmem:[#allocation2 + $0x8c] sm:$0x1] %v17063_v38  ;;  %v11574_v52 = vrot.slane %v11572_v4, 5 }
 0x626   : > { %v11570_v27 = vrot.slane %v11569_v45, 4  ;;  %11387 = vst [vmem:[#allocation2 + $0x90] sm:$0xf] %v17064_v48  ;;  %11388 = vst [vmem:[#allocation2 + $0x94] sm:$0xf] %v17065_v22  ;;  %v11578_v35 = vrot.slane %v11576_v57, 4  ;;  %v10948_v15 = vadd.f32 %v24246_v47, %v24171_v59  ;;  %v10946_v36 = vadd.f32 %v24171_v59, %v24248_v9 }
 0x627   : > { %18884 = vmatmul.mubr.bf16.gmra.mrb[36].mxu0 %v17082_v31  ;;  %v11582_v37 = vshll.u32 %v11454_v7, 16  ;;  %11384 = vst [vmem:[#allocation2 + $0x84] sm:$0xf] %v17061_v33  ;;  %11385 = vst [vmem:[#allocation2 + $0x88] sm:$0xf] %v17062_v40  ;;  %v10949_v18 = vadd.f32 %v24258_v3, %v24171_v59  ;;  %v10947_v16 = vadd.f32 %v24171_v59, %v24261_v62  ;;  %v11587_v21 = vshrl.u32 %v24295_v11, 16 }
 0x628   : > { %v11575_v12 = vsel %vm21116_vm5, %v11570_v27, %v11574_v52  ;;  %18918 = vmatpush3.bf16.msra.mxu0 %v20414_v25  ;;  %v11579_v47 = vor.u32 %v11578_v35, %v11574_v52  ;;  %v10980_v14 = vmax.f32 %v10948_v15, 0.0  ;;  %v10978_v9 = vmax.f32 %v10946_v36, 0.0  ;;  %v24324_v7 = vld [vmem:[#allocation2 + $0x4c] sm:$0xf] }
 0x629   : > { %v11584_v60 = vrot.slane %v11582_v37, 5  ;;  %18919 = vmatprep.subr.bf16.mxu0 %v20415_v42  ;;  %v10981_v44 = vmax.f32 %v10949_v18, 0.0  ;;  %v10979_v46 = vmax.f32 %v10947_v16, 0.0  ;;  %v11589_v29 = vrot.slane %v11587_v21, 4 }
 0x62a   : > { %v11590_v8 = vshll.u32 %v24295_v11, 16  ;;  %v11580_v2 = vrot.slane %v11579_v47, 4  ;;  %v11596_v3 = vshll.u32 %v24303_v28, 16  ;;  %v11600_v4 = vshrl.u32 %v24303_v28, 16 }
 0x62b   : > { %v11606_v62 = vshll.u32 %v11455_v49, 16  ;;  %v10999_v53 = vpack.c.bf16 %v10981_v44, %v10980_v14  ;;  %v10998_v39 = vpack.c.bf16 %v10979_v46, %v10978_v9  ;;  %v11611_v13 = vshrl.u32 %v24309_v20, 16  ;;  %v20418_v49 = vld [vmem:[#allocation9 + $0x38] sm:$0xff]  }
 0x62c   : > { %v11592_v25 = vrot.slane %v11590_v8, 5  ;;  %18920 = vmatpush3.bf16.msra.mxu0 %v20415_v42  ;;  %v11585_v57 = vsel %vm21116_vm5, %v11580_v2, %v11584_v60  ;;  %v11598_v58 = vrot.slane %v11596_v3, 5  ;;  %v11602_v61 = vrot.slane %v11600_v4, 4  ;;  %v24346_v2 = vld [vmem:[#allocation2 + $0x54] sm:$0xf] }
 0x62d   : > { %v11608_v50 = vrot.slane %v11606_v62, 5  ;;  %18921 = vmatprep.subr.bf16.mxu0 %v20416_v41  ;;  %v17083_v56 = vcombine.low %v11575_v12, %v11585_v57  ;;  %v11094_v43 = vshrl.u32 %v10999_v53, 16  ;;  %v11097_v24 = vshll.u32 %v10999_v53, 16 }
 0x62e   : > { %v11087_v17 = vshrl.u32 %v10998_v39, 16  ;;  %v11090_v38 = vshll.u32 %v10998_v39, 16  ;;  %v11593_v10 = vor.u32 %v11592_v25, %v11589_v29  ;;  %v11603_v45 = vor.u32 %v11602_v61, %v11598_v58  ;;  %v24348_v39 = vld [vmem:[#allocation2 + $0x58] sm:$0xf]  ;;  %v24358_v61 = vld [vmem:[#allocation2 + $0x5c] sm:$0x1] }
 0x62f   : > { %v11613_v48 = vrot.slane %v11611_v13, 4  ;;  %18887 = vmatprep.mubr.bf16.mxu0 %v17083_v56  ;;  %v11096_v22 = vrot.slane %v11094_v43, 7  ;;  %v11614_v31 = vshll.u32 %v24309_v20, 16  ;;  %v11620_v42 = vshll.u32 %v24324_v7, 16 }
 0x630   : > { %v11089_v23 = vrot.slane %v11087_v17, 7  ;;  %18922 = vmatpush3.bf16.msra.mxu0 %v20416_v41  ;;  %v11594_v33 = vrot.slane %v11593_v10, 4  ;;  %v11604_v40 = vrot.slane %v11603_v45, 4  ;;  %v11624_v27 = vshrl.u32 %v24324_v7, 16  ;;  %v24344_v41 = vld [vmem:[#allocation9 + $0x80] sm:$0xff]  }
 0x631   : > { %v11630_v52 = vshll.u32 %v24326_v63, 16  ;;  %18923 = vmatprep.subr.bf16.mxu0 %v20417_v51  ;;  %v11099_v35 = vor.u32 %v11097_v24, %v11096_v22  ;;  %v11175_v37 = vsel %vm21123_vm6, %v11096_v22, 0  ;;  %v11616_v9 = vrot.slane %v11614_v31, 5 }
 0x632   : > { %v11092_v15 = vor.u32 %v11090_v38, %v11089_v23  ;;  %v11174_v36 = vsel %vm21123_vm6, %v11089_v23, 0  ;;  %v17072_v12 = vcombine.low %v11175_v37, %v11175_v37  ;;  %v11599_v16 = vsel %vm21116_vm5, %v11594_v33, %v11598_v58  ;;  %v24373_v37 = vld [vmem:[#allocation2 + $0x64] sm:$0xf] }
 0x633   : > { %v17069_v18 = vcombine.low %v11174_v36, %v11174_v36  ;;  %v11609_v21 = vsel %vm21116_vm5, %v11604_v40, %v11608_v50  ;;  %v11159_v47 = vsel %vm21123_vm6, 0, %v11099_v35  ;;  %v11617_v3 = vor.u32 %v11616_v9, %v11613_v48  ;;  %v24360_v50 = vld [vmem:[#allocation2 + $0x60] sm:$0xf] }
 0x634   : > { %v11158_v60 = vsel %vm21123_vm6, 0, %v11092_v15  ;;  %v17084_v14 = vcombine.low %v11599_v16, %v11609_v21  ;;  %18924 = vmatpush3.bf16.msra.mxu0 %v20417_v51  ;;  %v17070_v44 = vcombine.low %v11159_v47, %v11159_v47  ;;  %v17071_v46 = vcombine.high %v11159_v47, %v11159_v47  ;;  %11395 = vst [vmem:[#allocation2 + $0xb0] sm:$0x1] %v17072_v12 }
 0x635   : > { %v17067_v29 = vcombine.low %v11158_v60, %v11158_v60  ;;  %v17068_v8 = vcombine.high %v11158_v60, %v11158_v60  ;;  %11392 = vst [vmem:[#allocation2 + $0xa4] sm:$0x1] %v17069_v18  ;;  %18925 = vmatprep.subr.bf16.mxu0 %v20418_v49  ;;  %v11622_v4 = vrot.slane %v11620_v42, 5  ;;  %v11626_v62 = vrot.slane %v11624_v27, 4 }
 0x636   : > { %18888 = vmatmul.mubr.bf16.gmra.mrb[40].mxu0 %v17084_v14  ;;  %v11632_v53 = vrot.slane %v11630_v52, 5  ;;  %11393 = vst [vmem:[#allocation2 + $0xa8] sm:$0xf] %v17070_v44  ;;  %11394 = vst [vmem:[#allocation2 + $0xac] sm:$0xf] %v17071_v46  ;;  %v10952_v25 = vadd.f32 %v24277_v19, %v24171_v59  ;;  %v10950_v13 = vadd.f32 %v24171_v59, %v24279_v55  ;;  %v11618_v51 = vrot.slane %v11617_v3, 4 }
 0x637   : > { %11390 = vst [vmem:[#allocation2 + $0x9c] sm:$0xf] %v17067_v29  ;;  %11391 = vst [vmem:[#allocation2 + $0xa0] sm:$0xf] %v17068_v8  ;;  %v10953_v57 = vadd.f32 %v24282_v1, %v24171_v59  ;;  %v10951_v58 = vadd.f32 %v24171_v59, %v24286_v54  ;;  %v11627_v56 = vor.u32 %v11626_v62, %v11622_v4  ;;  %v11635_v43 = vshrl.u32 %v24346_v2, 16 }
 0x638   : > { %v11638_v24 = vshll.u32 %v24346_v2, 16  ;;  %18926 = vmatpush3.bf16.msra.mxu0 %v20418_v49  ;;  %v10984_v19 = vmax.f32 %v10952_v25, 0.0  ;;  %v10982_v17 = vmax.f32 %v10950_v13, 0.0  ;;  %v11623_v59 = vsel %vm21116_vm5, %v11618_v51, %v11622_v4  ;;  %v24377_v44 = vld [vmem:[#allocation2 + $0x68] sm:$0x1] }
 0x639   : > { %v10985_v55 = vmax.f32 %v10953_v57, 0.0  ;;  %v10983_v38 = vmax.f32 %v10951_v58, 0.0  ;;  %18959 = vmatprep.subr.bf16.mxu0 %v24344_v41  ;;  %v11628_v1 = vrot.slane %v11627_v56, 4  ;;  %v11637_v54 = vrot.slane %v11635_v43, 4  ;;  %v24387_v25 = vld [vmem:[#allocation2 + $0x70] sm:$0xf] }
 0x63a   : > { %v11640_v10 = vrot.slane %v11638_v24, 5  ;;  %v11644_v22 = vshll.u32 %v24348_v39, 16  ;;  %v11648_v23 = vshrl.u32 %v24348_v39, 16  ;;  %v11654_v33 = vshll.u32 %v24358_v61, 16 }
 0x63b   : > { %v11001_v45 = vpack.c.bf16 %v10985_v55, %v10984_v19  ;;  %v11000_v48 = vpack.c.bf16 %v10983_v38, %v10982_v17  ;;  %v11633_v31 = vsel %vm21116_vm5, %v11628_v1, %v11632_v53  ;;  %v11659_v40 = vshrl.u32 %v24360_v50, 16  ;;  %v24385_v53 = vld [vmem:[#allocation2 + $0x6c] sm:$0xf]  ;;  %v24394_v1 = vld [vmem:[#allocation2 + $0x74] sm:$0x1] }
 0x63c   : > { %v11641_v42 = vor.u32 %v11640_v10, %v11637_v54  ;;  %v17085_v27 = vcombine.low %v11623_v59, %v11633_v31  ;;  %v11646_v12 = vrot.slane %v11644_v22, 5  ;;  %v11650_v18 = vrot.slane %v11648_v23, 4  ;;  %v24396_v54 = vld [vmem:[#allocation2 + $0x78] sm:$0xf]  ;;  %v24401_v22 = vld [vmem:[#allocation2 + $0x7c] sm:$0xf] }
 0x63d   : > { %v11108_v52 = vshrl.u32 %v11001_v45, 16  ;;  %v11111_v49 = vshll.u32 %v11001_v45, 16  ;;  %v11101_v35 = vshrl.u32 %v11000_v48, 16  ;;  %v11104_v15 = vshll.u32 %v11000_v48, 16 }
 0x63e   : > { %v11642_v36 = vrot.slane %v11641_v42, 4  ;;  %18891 = vmatprep.mubr.bf16.mxu0 %v17085_v27  ;;  %v11656_v47 = vrot.slane %v11654_v33, 5  ;;  %v11661_v60 = vrot.slane %v11659_v40, 4  ;;  %v11651_v9 = vor.u32 %v11650_v18, %v11646_v12 }
 0x63f   : > { %v11110_v16 = vrot.slane %v11108_v52, 7  ;;  %v11103_v21 = vrot.slane %v11101_v35, 7  ;;  %v11662_v46 = vshll.u32 %v24360_v50, 16  ;;  %v11668_v29 = vshll.u32 %v24373_v37, 16 }
 0x640   : > { %v11647_v14 = vsel %vm21116_vm5, %v11642_v36, %v11646_v12  ;;  %v11652_v58 = vrot.slane %v11651_v9, 4  ;;  %v11672_v19 = vshrl.u32 %v24373_v37, 16  ;;  %v11678_v5 = vshll.u32 %v24377_v44, 16 }
 0x641   : > { %v11113_v8 = vor.u32 %v11111_v49, %v11110_v16  ;;  %v11177_v3 = vsel %vm21123_vm6, %v11110_v16, 0  ;;  %v11106_v4 = vor.u32 %v11104_v15, %v11103_v21  ;;  %v11176_v62 = vsel %vm21123_vm6, %v11103_v21, 0 }
 0x642   : > { %v17078_v13 = vcombine.low %v11177_v3, %v11177_v3  ;;  %v17075_v57 = vcombine.low %v11176_v62, %v11176_v62  ;;  %v11664_v51 = vrot.slane %v11662_v46, 5  ;;  %v11670_v24 = vrot.slane %v11668_v29, 5 }
 0x643   : > { %v11161_v56 = vsel %vm21123_vm6, 0, %v11113_v8  ;;  %v11160_v43 = vsel %vm21123_vm6, 0, %v11106_v4  ;;  %v11657_v10 = vsel %vm21116_vm5, %v11652_v58, %v11656_v47  ;;  %v11674_v48 = vrot.slane %v11672_v19, 4  ;;  %v24410_v47 = vld [vmem:[#allocation2 + $0x80] sm:$0x1] }
 0x644   : > { %v17076_v17 = vcombine.low %v11161_v56, %v11161_v56  ;;  %v17077_v55 = vcombine.high %v11161_v56, %v11161_v56  ;;  %11401 = vst [vmem:[#allocation2 + $0xc8] sm:$0x1] %v17078_v13  ;;  %v17073_v38 = vcombine.low %v11160_v43, %v11160_v43  ;;  %v17074_v59 = vcombine.high %v11160_v43, %v11160_v43  ;;  %v24415_v8 = vld [vmem:[#allocation2 + $0x84] sm:$0xf] }
 0x645   : > { %11398 = vst [vmem:[#allocation2 + $0xbc] sm:$0x1] %v17075_v57  ;;  %v11665_v45 = vor.u32 %v11664_v51, %v11661_v60  ;;  %v17086_v23 = vcombine.low %v11647_v14, %v11657_v10  ;;  %v11683_v31 = vshrl.u32 %v24385_v53, 16  ;;  %v11686_v42 = vshll.u32 %v24385_v53, 16  ;;  %v24420_v57 = vld [vmem:[#allocation2 + $0x88] sm:$0xf] }
 0x646   : > { %11399 = vst [vmem:[#allocation2 + $0xc0] sm:$0xf] %v17076_v17  ;;  %11400 = vst [vmem:[#allocation2 + $0xc4] sm:$0xf] %v17077_v55  ;;  %v11692_v33 = vshll.u32 %v24387_v25, 16  ;;  %v11675_v27 = vor.u32 %v11674_v48, %v11670_v24  ;;  %v11680_v52 = vrot.slane %v11678_v5, 5 }
 0x647   : > { %11396 = vst [vmem:[#allocation2 + $0xb4] sm:$0xf] %v17073_v38  ;;  %11397 = vst [vmem:[#allocation2 + $0xb8] sm:$0xf] %v17074_v59  ;;  %v11666_v40 = vrot.slane %v11665_v45, 4  ;;  %v11696_v49 = vshrl.u32 %v24387_v25, 16  ;;  %18892 = vmatmul.mubr.bf16.gmra.mrb[44].mxu0 %v17086_v23 }
 0x648   : > { %v11685_v35 = vrot.slane %v11683_v31, 4  ;;  %v11688_v15 = vrot.slane %v11686_v42, 5  ;;  %v11694_v36 = vrot.slane %v11692_v33, 5  ;;  %v11702_v12 = vshll.u32 %v24394_v1, 16  ;;  %v24423_v55 = vld [vmem:[#allocation2 + $0x8c] sm:$0x1] }
 0x649   : > { %v11671_v18 = vsel %vm21116_vm5, %v11666_v40, %v11670_v24  ;;  %v11676_v16 = vrot.slane %v11675_v27, 4  ;;  %v11698_v21 = vrot.slane %v11696_v49, 4  ;;  %v11707_v60 = vshrl.u32 %v24396_v54, 16  ;;  %v24430_v5 = vld [vmem:[#allocation2 + $0x90] sm:$0xf] }
 0x64a   : > { %v11689_v14 = vor.u32 %v11688_v15, %v11685_v35  ;;  %v11704_v9 = vrot.slane %v11702_v12, 5  ;;  %v11710_v46 = vshll.u32 %v24396_v54, 16  ;;  %v11716_v29 = vshll.u32 %v24401_v22, 16  ;;  %v24432_v23 = vld [vmem:[#allocation2 + $0x94] sm:$0xf] }
 0x64b   : > { %v11681_v3 = vsel %vm21116_vm5, %v11676_v16, %v11680_v52  ;;  %v11699_v4 = vor.u32 %v11698_v21, %v11694_v36  ;;  %v11709_v62 = vrot.slane %v11707_v60, 4  ;;  %v11720_v13 = vshrl.u32 %v24401_v22, 16  ;;  %v24436_v15 = vld [vmem:[#allocation2 + $0x9c] sm:$0xf]  ;;  %v24440_v16 = vld [vmem:[#allocation2 + $0x98] sm:$0x1] }
 0x64c   : > { %v17087_v58 = vcombine.low %v11671_v18, %v11681_v3  ;;  %v11690_v51 = vrot.slane %v11689_v14, 4  ;;  %v11712_v56 = vrot.slane %v11710_v46, 5  ;;  %v11718_v43 = vrot.slane %v11716_v29, 5 }
 0x64d   : > { %v11700_v24 = vrot.slane %v11699_v4, 4  ;;  %v11722_v19 = vrot.slane %v11720_v13, 4  ;;  %v11726_v17 = vshll.u32 %v24410_v47, 16  ;;  %v11731_v38 = vshrl.u32 %v24415_v8, 16 }
 0x64e   : > { %18895 = vmatprep.mubr.bf16.mxu0 %v17087_v58  ;;  %v11695_v59 = vsel %vm21116_vm5, %v11690_v51, %v11694_v36  ;;  %v11713_v10 = vor.u32 %v11712_v56, %v11709_v62  ;;  %v11734_v45 = vshll.u32 %v24415_v8, 16  ;;  %v11740_v48 = vshll.u32 %v24420_v57, 16  ;;  %v24449_v62 = vld [vmem:[#allocation2 + $0xa0] sm:$0xf] }
 0x64f   : > { %v11705_v31 = vsel %vm21116_vm5, %v11700_v24, %v11704_v9  ;;  %v11723_v42 = vor.u32 %v11722_v19, %v11718_v43  ;;  %v11728_v33 = vrot.slane %v11726_v17, 5  ;;  %v11733_v40 = vrot.slane %v11731_v38, 4  ;;  %v24451_v24 = vld [vmem:[#allocation2 + $0xa4] sm:$0x1] }
 0x650   : > { %v17088_v27 = vcombine.low %v11695_v59, %v11705_v31  ;;  %v11714_v52 = vrot.slane %v11713_v10, 4  ;;  %v11736_v49 = vrot.slane %v11734_v45, 5  ;;  %v11742_v35 = vrot.slane %v11740_v48, 5  ;;  %v24455_v59 = vld [vmem:[#allocation2 + $0xa8] sm:$0xf] }
 0x651   : > { %v11724_v36 = vrot.slane %v11723_v42, 4  ;;  %v11744_v12 = vshrl.u32 %v24420_v57, 16  ;;  %v11750_v18 = vshll.u32 %v24423_v55, 16  ;;  %v11755_v21 = vshrl.u32 %v24430_v5, 16 }
 0x652   : > { %18896 = vmatmul.mubr.bf16.gmra.mrb[48].mxu0 %v17088_v27  ;;  %v11719_v60 = vsel %vm21116_vm5, %v11714_v52, %v11718_v43  ;;  %v11737_v14 = vor.u32 %v11736_v49, %v11733_v40  ;;  %v11758_v9 = vshll.u32 %v24430_v5, 16  ;;  %v11764_v46 = vshll.u32 %v24432_v23, 16 }
 0x653   : > { %v11729_v29 = vsel %vm21116_vm5, %v11724_v36, %v11728_v33  ;;  %v11746_v3 = vrot.slane %v11744_v12, 4  ;;  %v11757_v4 = vrot.slane %v11755_v21, 4  ;;  %v11752_v51 = vrot.slane %v11750_v18, 5 }
 0x654   : > { %v17089_v13 = vcombine.low %v11719_v60, %v11729_v29  ;;  %v11738_v58 = vrot.slane %v11737_v14, 4  ;;  %v11760_v56 = vrot.slane %v11758_v9, 5  ;;  %v11766_v43 = vrot.slane %v11764_v46, 5  ;;  %v24466_v14 = vld [vmem:[#allocation2 + $0xac] sm:$0xf] }
 0x655   : > { %v11747_v19 = vor.u32 %v11746_v3, %v11742_v35  ;;  %v11768_v17 = vshrl.u32 %v24432_v23, 16  ;;  %v11779_v38 = vshrl.u32 %v24436_v15, 16  ;;  %v11774_v45 = vshll.u32 %v24440_v16, 16 }
 0x656   : > { %18899 = vmatprep.mubr.bf16.mxu0 %v17089_v13  ;;  %v11761_v10 = vor.u32 %v11760_v56, %v11757_v4  ;;  %v11782_v48 = vshll.u32 %v24436_v15, 16  ;;  %v11788_v31 = vshll.u32 %v24449_v62, 16  ;;  %v11743_v42 = vsel %vm21116_vm5, %v11738_v58, %v11742_v35  ;;  %v24469_v4 = vld [vmem:[#allocation2 + $0xb4] sm:$0xf] }
 0x657   : > { %v11748_v33 = vrot.slane %v11747_v19, 4  ;;  %v11770_v40 = vrot.slane %v11768_v17, 4  ;;  %v11781_v27 = vrot.slane %v11779_v38, 4  ;;  %v11792_v12 = vshrl.u32 %v24449_v62, 16  ;;  %v24474_v38 = vld [vmem:[#allocation2 + $0xb0] sm:$0x1] }
 0x658   : > { %v11762_v52 = vrot.slane %v11761_v10, 4  ;;  %v11784_v49 = vrot.slane %v11782_v48, 5  ;;  %v11790_v36 = vrot.slane %v11788_v31, 5  ;;  %v11798_v60 = vshll.u32 %v24451_v24, 16 }
 0x659   : > { %v11753_v18 = vsel %vm21116_vm5, %v11748_v33, %v11752_v51  ;;  %v11771_v21 = vor.u32 %v11770_v40, %v11766_v43  ;;  %v11803_v9 = vshrl.u32 %v24455_v59, 16  ;;  %v11776_v35 = vrot.slane %v11774_v45, 5  ;;  %v24480_v33 = vld [vmem:[#allocation2 + $0xb8] sm:$0xf] }
 0x65a   : > { %v17090_v46 = vcombine.low %v11743_v42, %v11753_v18  ;;  %v11785_v29 = vor.u32 %v11784_v49, %v11781_v27  ;;  %v11794_v3 = vrot.slane %v11792_v12, 4  ;;  %v11767_v13 = vsel %vm21116_vm5, %v11762_v52, %v11766_v43  ;;  %v24485_v12 = vld [vmem:[#allocation2 + $0xbc] sm:$0x1] }
 0x65b   : > { %v11772_v58 = vrot.slane %v11771_v21, 4  ;;  %v11805_v56 = vrot.slane %v11803_v9, 4  ;;  %v11806_v51 = vshll.u32 %v24455_v59, 16  ;;  %v11812_v10 = vshll.u32 %v24466_v14, 16 }
 0x65c   : > { %18900 = vmatmul.mubr.bf16.gmra.mrb[52].mxu0 %v17090_v46  ;;  %v11786_v19 = vrot.slane %v11785_v29, 4  ;;  %v11795_v17 = vor.u32 %v11794_v3, %v11790_v36  ;;  %v11816_v45 = vshrl.u32 %v24466_v14, 16  ;;  %v11800_v31 = vrot.slane %v11798_v60, 5 }
 0x65d   : > { %v11777_v48 = vsel %vm21116_vm5, %v11772_v58, %v11776_v35  ;;  %v11808_v42 = vrot.slane %v11806_v51, 5  ;;  %v11827_v43 = vshrl.u32 %v24469_v4, 16  ;;  %v11814_v49 = vrot.slane %v11812_v10, 5 }
 0x65e   : > { %v17091_v40 = vcombine.low %v11767_v13, %v11777_v48  ;;  %v11791_v27 = vsel %vm21116_vm5, %v11786_v19, %v11790_v36  ;;  %v11796_v52 = vrot.slane %v11795_v17, 4  ;;  %v11818_v21 = vrot.slane %v11816_v45, 4 }
 0x65f   : > { %v11809_v18 = vor.u32 %v11808_v42, %v11805_v56  ;;  %v11822_v9 = vshll.u32 %v24474_v38, 16  ;;  %v11829_v46 = vrot.slane %v11827_v43, 4  ;;  %v11830_v35 = vshll.u32 %v24469_v4, 16 }
 0x660   : > { %18903 = vmatprep.mubr.bf16.mxu0 %v17091_v40  ;;  %v11801_v60 = vsel %vm21116_vm5, %v11796_v52, %v11800_v31  ;;  %v11836_v29 = vshll.u32 %v24480_v33, 16  ;;  %v11840_v3 = vshrl.u32 %v24480_v33, 16  ;;  %v11819_v58 = vor.u32 %v11818_v21, %v11814_v49 }
 0x661   : > { %v17092_v36 = vcombine.low %v11791_v27, %v11801_v60  ;;  %v11810_v13 = vrot.slane %v11809_v18, 4  ;;  %v11846_v51 = vshll.u32 %v24485_v12, 16  ;;  %v11832_v56 = vrot.slane %v11830_v35, 5 }
 0x662   : > { %v11838_v19 = vrot.slane %v11836_v29, 5  ;;  %v11842_v17 = vrot.slane %v11840_v3, 4  ;;  %v11820_v45 = vrot.slane %v11819_v58, 4  ;;  %v11824_v48 = vrot.slane %v11822_v9, 5 }
 0x663   : > { %v11815_v10 = vsel %vm21116_vm5, %v11810_v13, %v11814_v49  ;;  %v11833_v31 = vor.u32 %v11832_v56, %v11829_v46  ;;  %v11848_v40 = vrot.slane %v11846_v51, 5  ;;  %v17110_v27 = vcombine.low %v24346_v2, %v24348_v39  ;;  %v20604_v51 = vld [vmem:[#allocation2] sm:$0xf]  ;;  %v24518_v56 = vld [vmem:[#allocation2 + $0x4] sm:$0xf] }
 0x664   : > { %18904 = vmatmul.mubr.bf16.gmra.mrb[56].mxu0 %v17092_v36  ;;  %v11843_v42 = vor.u32 %v11842_v17, %v11838_v19  ;;  %v11825_v43 = vsel %vm21116_vm5, %v11820_v45, %v11824_v48  ;;  %v17111_v60 = vcombine.low %v24360_v50, %v24373_v37  ;;  %v17103_v17 = vcombine.low %v20604_v51, %v24518_v56  ;;  %v20606_v45 = vld [vmem:[#allocation2 + $0xc] sm:$0xf]  ;;  %v24523_v48 = vld [vmem:[#allocation2 + $0x10] sm:$0xf]  ;;  %v12455_v51 = vld [vmem:[#allocation2 + $0x78] sm:$0xe] }
 0x665   : > { %v17093_v52 = vcombine.low %v11815_v10, %v11825_v43  ;;  %v11834_v18 = vrot.slane %v11833_v31, 4  ;;  %v17104_v31 = vcombine.low %v20606_v45, %v24523_v48  ;;  %v20608_v43 = vld [vmem:[#allocation2 + $0x18] sm:$0xf]  ;;  %v20427_v45 = vld [vmem:[#allocation9 + $0x90] sm:$0xff]   ;;  %v12568_v35 = vrot.slane %v24410_v47, 5 }
 0x666   : > { %v11844_v21 = vrot.slane %v11843_v42, 4  ;;  %v20424_v42 = vld [vmem:[#allocation9 + $0x88] sm:$0xff]   ;;  %v12572_v46 = vrot.slane %v24420_v57, 5  ;;  %v12600_v49 = vrot.slane %v24480_v33, 5  ;;  %v26226_v2 = vcombine.low %v24415_v8, %v24420_v57 }
 0x667   : > { %18907 = vmatprep.mubr.bf16.mxu0 %v17093_v52  ;;  %v11839_v29 = vsel %vm21116_vm5, %v11834_v18, %v11838_v19  ;;  %v12452_v19 = vld [vmem:[#allocation2 + $0x54] sm:$0xe]  ;;  %v12495_v50 = vrot.slane %v24518_v56, 5  ;;  %v12502_v57 = vrot.slane %v24523_v48, 5  ;;  %v12446_v56 = vld [vmem:[#allocation2 + $0xc] sm:$0xe] }
 0x668   : > { %v11849_v3 = vsel %vm21116_vm5, %v11844_v21, %v11848_v40  ;;  %v24526_v40 = vld [vmem:[#allocation2 + $0x1c] sm:$0xf]  ;;  %v17134_v18 = vrot.slane %v12452_v19, 9  ;;  %v12453_v21 = vld [vmem:[#allocation2 + $0x60] sm:$0xe]  ;;  %v12547_v19 = vrot.slane %v24358_v61, 5 }
 0x669   : > { %v17094_v58 = vcombine.low %v11839_v29, %v11849_v3  ;;  %v17105_v52 = vcombine.low %v20608_v43, %v24526_v40  ;;  %v12544_v29 = vrot.slane %v24348_v39, 5  ;;  %v12454_v3 = vld [vmem:[#allocation2 + $0x6c] sm:$0xe]  ;;  %v17135_v43 = vrot.slane %v12453_v21, 9 }
 0x66a   : > { %v17137_v61 = vrot.slane %v12455_v51, 9  ;;  %v26227_v39 = vcombine.low %v24430_v5, %v24432_v23  ;;  %v12509_v5 = vrot.slane %v24526_v40, 5  ;;  %v20613_v40 = vld [vmem:[#allocation2 + $0x28] sm:$0xf] }
 0x66b   : > { %v12546_v10 = vrot.slane %v12544_v29, 4 }
 0x66c   : > { %18908 = vmatmul.mubr.bf16.gmra.mrb[60].mxu0 %v17094_v58  ;;  %v17106_v58 = vcombine.low %v24254_v6, %v24256_v32  ;;  %v17136_v6 = vrot.slane %v12454_v3, 9  ;;  %v12456_v32 = vld [vmem:[#allocation2 + $0x84] sm:$0xe]  ;;  %v20430_v3 = vld [vmem:[#allocation9 + $0x98] sm:$0xff]  }
 0x66d   : > { %18927 = vmatprep.mubr.bf16.mxu0 %v17103_v17  ;;  %v17107_v17 = vcombine.low %v24273_v0, %v24275_v26  ;;  %v24545_v13 = vsel %vm21274_vm9, %v12546_v10, %v12547_v19  ;;  %v12554_v0 = vrot.slane %v24377_v44, 5  ;;  %v12558_v26 = vrot.slane %v24387_v25, 5  ;;  %v12457_v19 = vld [vmem:[#allocation2 + $0x90] sm:$0xe] }
 0x66f   : > { %v24559_v44 = vsel %vm21274_vm9, %v17136_v6, %v12558_v26  ;;  %v12560_v51 = vrot.slane %v12558_v26, 4  ;;  %v12574_v26 = vrot.slane %v12572_v46, 4 }
 0x674   : > { %18928 = vmatmul.mubr.bf16.vlgmr.msra.gmra.mrb[32].mxu0 %v17104_v31  ;;  %v17108_v31 = vcombine.low %v24295_v11, %v24303_v28 }
 0x675   : > { %18931 = vmatprep.mubr.bf16.mxu0 %v17105_v52  ;;  %18960 = vmatpush3.bf16.msra.mxu0 %v24344_v41  ;;  %v24540_v52 = vsel %vm21274_vm9, %v17134_v18, %v12544_v29  ;;  %v12551_v41 = vrot.slane %v24373_v37, 5  ;;  %v12561_v18 = vrot.slane %v24394_v1, 5  ;;  %v12565_v29 = vrot.slane %v24401_v22, 5  ;;  %v12445_v37 = vld [vmem:[#allocation2] sm:$0xe] }
 0x676   : > { %18961 = vmatprep.subr.bf16.mxu0 %v20424_v42 }
 0x677   : > { %v12553_v36 = vrot.slane %v12551_v41, 4  ;;  %v24555_v10 = vsel %vm21274_vm9, %v17135_v43, %v12551_v41  ;;  %v12567_v1 = vrot.slane %v12565_v29, 4  ;;  %v24571_v41 = vsel %vm21274_vm9, %v12560_v51, %v12561_v18 }
 0x678   : > { %v24575_v6 = vsel %vm21274_vm9, %v17137_v61, %v12565_v29  ;;  %v17139_v18 = vrot.slane %v12457_v19, 9  ;;  %v17109_v51 = vcombine.low %v24309_v20, %v24324_v7  ;;  %v20433_v61 = vld [vmem:[#allocation9 + $0xa0] sm:$0xff]   ;;  %v12586_v19 = vrot.slane %v24449_v62, 5  ;;  %v12460_v20 = vld [vmem:[#allocation2 + $0xb4] sm:$0xe] }
 0x679   : > { %18962 = vmatpush3.bf16.msra.mxu0 %v20424_v42  ;;  %v17138_v42 = vrot.slane %v12456_v32, 9  ;;  %v24563_v21 = vsel %vm21274_vm9, %v12553_v36, %v12554_v0  ;;  %v12575_v36 = vrot.slane %v24423_v55, 5  ;;  %v12458_v32 = vld [vmem:[#allocation2 + $0x9c] sm:$0xe]  ;;  %v12459_v0 = vld [vmem:[#allocation2 + $0xa8] sm:$0xe] }
 0x67a   : > { %18963 = vmatprep.subr.bf16.mxu0 %v20427_v45  ;;  %v17140_v29 = vrot.slane %v12458_v32, 9  ;;  %v12582_v55 = vrot.slane %v24440_v16, 5  ;;  %v12589_v32 = vrot.slane %v24451_v24, 5  ;;  %v17142_v16 = vrot.slane %v12460_v20, 9 }
 0x67b   : > { %v12504_v20 = vrot.slane %v12502_v57, 4 }
 0x67c   : > { %18932 = vmatmul.mubr.bf16.gmra.mrb[36].mxu0 %v17106_v58  ;;  %v24582_v58 = vsel %vm21274_vm9, %v12567_v1, %v12568_v35  ;;  %v24595_v35 = vsel %vm21274_vm9, %v12574_v26, %v12575_v36  ;;  %v17141_v1 = vrot.slane %v12459_v0, 9  ;;  %v12588_v36 = vrot.slane %v12586_v19, 4  ;;  %v20436_v0 = vld [vmem:[#allocation9 + $0xa8] sm:$0xff]  }
 0x67d   : > { %18935 = vmatprep.mubr.bf16.mxu0 %v17107_v17  ;;  %18964 = vmatpush3.bf16.msra.mxu0 %v20427_v45  ;;  %v24590_v17 = vsel %vm21274_vm9, %v17138_v42, %v12572_v46  ;;  %v12579_v45 = vrot.slane %v24432_v23, 5  ;;  %v12593_v46 = vrot.slane %v24466_v14, 5  ;;  %v12596_v26 = vrot.slane %v24474_v38, 5 }
 0x67e   : > { %18965 = vmatprep.subr.bf16.mxu0 %v20430_v3  ;;  %v24621_v24 = vsel %vm21274_vm9, %v12588_v36, %v12589_v32  ;;  %v24641_v11 = vsel %vm21274_vm9, %v17142_v16, %v12600_v49  ;;  %v12516_v16 = vrot.slane %v20613_v40, 5  ;;  %v12540_v40 = vrot.slane %v24326_v63, 5  ;;  %v20449_v63 = vld [vmem:[#allocation9 + $0xf0] sm:$0xff]  }
 0x67f   : > { %v12581_v43 = vrot.slane %v12579_v45, 4  ;;  %v24604_v42 = vsel %vm21274_vm9, %v17139_v18, %v12579_v45  ;;  %v12595_v9 = vrot.slane %v12593_v46, 4  ;;  %v24617_v18 = vsel %vm21274_vm9, %v17140_v29, %v12586_v19  ;;  %v14079_v19 = vld [vmem:[#allocation2 + $0x9c] sm:$0xe] }
 0x680   : > { %v24625_v38 = vsel %vm21274_vm9, %v17141_v1, %v12593_v46  ;;  %v12602_v45 = vrot.slane %v12600_v49, 4  ;;  %v12603_v29 = vrot.slane %v24485_v12, 5  ;;  %v20439_v1 = vld [vmem:[#allocation9 + $0xb0] sm:$0xff]   ;;  %v20442_v12 = vld [vmem:[#allocation9 + $0xb8] sm:$0xff]   ;;  %v20443_v49 = vld [vmem:[#allocation9 + $0xc0] sm:$0xff]  }
 0x681   : > { %18966 = vmatpush3.bf16.msra.mxu0 %v20430_v3  ;;  %v24610_v47 = vsel %vm21274_vm9, %v12581_v43, %v12582_v55  ;;  %v24634_v55 = vsel %vm21274_vm9, %v12595_v9, %v12596_v26  ;;  %v12447_v46 = vld [vmem:[#allocation2 + $0x18] sm:$0xe]  ;;  %v20612_v26 = vld [vmem:[#allocation2 + $0x20] sm:$0x1]  ;;  %v13353_v43 = vld [vmem:[#allocation2 + $0xac] sm:$0xf] }
 0x682   : > { %18967 = vmatprep.subr.bf16.mxu0 %v20433_v61  ;;  %v24645_v28 = vsel %vm21274_vm9, %v12602_v45, %v12603_v29  ;;  %v17129_v32 = vrot.slane %v12447_v46, 9  ;;  %v20614_v29 = vld [vmem:[#allocation2 + $0x34] sm:$0xf] }
 0x684   : > { %18936 = vmatmul.mubr.bf16.gmra.mrb[40].mxu0 %v17108_v31  ;;  %v26224_v31 = vcombine.low %v24385_v53, %v24387_v25  ;;  %v26228_v25 = vcombine.low %v24436_v15, %v24449_v62  ;;  %v26230_v15 = vcombine.low %v24469_v4, %v24480_v33  ;;  %v12511_v62 = vrot.slane %v12509_v5, 4 }
 0x685   : > { %18939 = vmatprep.mubr.bf16.mxu0 %v17109_v51  ;;  %18968 = vmatpush3.bf16.msra.mxu0 %v20433_v61  ;;  %v26225_v51 = vcombine.low %v24396_v54, %v24401_v22  ;;  %v20610_v61 = vld [vmem:[#allocation2 + $0x8] sm:$0x1]  ;;  %v26229_v54 = vcombine.low %v24455_v59, %v24466_v14  ;;  %v17128_v59 = vrot.slane %v12446_v56, 9  ;;  %v20611_v14 = vld [vmem:[#allocation2 + $0x14] sm:$0x1]  ;;  %v12537_v56 = vrot.slane %v24324_v7, 5 }
 0x686   : > { %18969 = vmatprep.subr.bf16.mxu0 %v20436_v0  ;;  %v12498_v53 = vrot.slane %v20610_v61, 5  ;;  %v12505_v36 = vrot.slane %v20611_v14, 5 }
 0x687   : > { %v12503_v4 = vsel %vm21274_vm9, %v17128_v59, %v12502_v57  ;;  %v20617_v57 = vld [vmem:[#allocation2 + $0x40] sm:$0xf] }
 0x688   : > { %v12506_v48 = vsel %vm21274_vm9, %v12504_v20, %v12505_v36  ;;  %v12451_v36 = vld [vmem:[#allocation2 + $0x48] sm:$0xe] }
 0x689   : > { %18970 = vmatpush3.bf16.msra.mxu0 %v20436_v0  ;;  %v12512_v0 = vrot.slane %v20612_v26, 5  ;;  %v17144_v33 = vcombine.low %v12503_v4, %v12506_v48  ;;  %v17133_v48 = vrot.slane %v12451_v36, 9 }
 0x68a   : > { %18971 = vmatprep.subr.bf16.mxu0 %v20439_v1 }
 0x68b   : > { %v12513_v45 = vsel %vm21274_vm9, %v12511_v62, %v12512_v0  ;;  %v20446_v62 = vld [vmem:[#allocation9 + $0xd8] sm:$0xff]   ;;  %v20618_v0 = vld [vmem:[#allocation2 + $0x44] sm:$0x1] }
 0x68c   : > { %18940 = vmatmul.mubr.bf16.gmra.mrb[44].mxu0 %v17110_v27  ;;  %v17127_v27 = vrot.slane %v12445_v37, 9  ;;  %v12533_v7 = vrot.slane %v20618_v0, 5 }
 0x68d   : > { %18943 = vmatprep.mubr.bf16.mxu0 %v17111_v60  ;;  %18972 = vmatpush3.bf16.msra.mxu0 %v20439_v1  ;;  %v12497_v60 = vrot.slane %v12495_v50, 4  ;;  %v12523_v1 = vrot.slane %v20614_v29, 5 }
 0x68e   : > { %18973 = vmatprep.subr.bf16.mxu0 %v20442_v12  ;;  %v12496_v22 = vsel %vm21274_vm9, %v17127_v27, %v12495_v50  ;;  %v12449_v50 = vld [vmem:[#allocation2 + $0x30] sm:$0xe] }
 0x68f   : > { %v12499_v8 = vsel %vm21274_vm9, %v12497_v60, %v12498_v53  ;;  %v12525_v37 = vrot.slane %v12523_v1, 4  ;;  %v20615_v60 = vld [vmem:[#allocation2 + $0x2c] sm:$0x1]  ;;  %v17131_v53 = vrot.slane %v12449_v50, 9  ;;  %v24711_v50 = vld [vmem:[#allocation2 + $0x34] sm:$0xf] }
 0x690   : > { %v17143_v23 = vcombine.low %v12496_v22, %v12499_v8  ;;  %v12519_v61 = vrot.slane %v20615_v60, 5  ;;  %v20445_v22 = vld [vmem:[#allocation9 + $0xd0] sm:$0xff]   ;;  %v24715_v60 = vld [vmem:[#allocation2 + $0x38] sm:$0x1] }
 0x691   : > { %18974 = vmatpush3.bf16.msra.mxu0 %v20442_v12  ;;  %v12510_v12 = vsel %vm21274_vm9, %v17129_v32, %v12509_v5  ;;  %v12530_v5 = vrot.slane %v20617_v57, 5  ;;  %v12524_v46 = vsel %vm21274_vm9, %v17131_v53, %v12523_v1  ;;  %v12539_v32 = vrot.slane %v12537_v56, 4  ;;  %v24726_v57 = vld [vmem:[#allocation2 + $0x4c] sm:$0xf] }
 0x692   : > { %19007 = vmatprep.subr.bf16.mxu0 %v20443_v49  ;;  %v26231_v53 = vcombine.low %v24540_v52, %v24545_v13  ;;  %v24731_v13 = vld [vmem:[#allocation2 + $0x44] sm:$0x1]  ;;  %v14168_v0 = vrot.slane %v24726_v57, 5 }
 0x693   : > { %v12532_v14 = vrot.slane %v12530_v5, 4  ;;  %v12541_v29 = vsel %vm21274_vm9, %v12539_v32, %v12540_v40  ;;  %v24842_v40 = vld [vmem:[#allocation2 + $0xa0] sm:$0xf] }
 0x694   : > { %18944 = vmatmul.mubr.bf16.gmra.mrb[48].mxu0 %v26224_v31  ;;  %v12448_v31 = vld [vmem:[#allocation2 + $0x24] sm:$0xe] }
 0x695   : > { %18947 = vmatprep.mubr.bf16.mxu0 %v26225_v51  ;;  %v20444_v51 = vld [vmem:[#allocation9 + $0xc8] sm:$0xff]   ;;  %v17130_v27 = vrot.slane %v12448_v31, 9 }
 0x69c   : > { %18948 = vmatmul.mubr.bf16.gmra.mrb[52].mxu0 %v26226_v2  ;;  %v17145_v2 = vcombine.low %v12510_v12, %v12513_v45  ;;  %v12534_v45 = vsel %vm21274_vm9, %v12532_v14, %v12533_v7  ;;  %v20448_v12 = vld [vmem:[#allocation9 + $0xe8] sm:$0xff]   ;;  %v24742_v14 = vld [vmem:[#allocation2 + $0x58] sm:$0xf]  ;;  %v14073_v7 = vld [vmem:[#allocation2 + $0x54] sm:$0xe] }
 0x69d   : > { %18951 = vmatprep.mubr.bf16.mxu0 %v26227_v39  ;;  %v12518_v39 = vrot.slane %v12516_v16, 4 }
 0x69f   : > { %v12520_v8 = vsel %vm21274_vm9, %v12518_v39, %v12519_v61  ;;  %v20450_v39 = vld [vmem:[#allocation9 + $0xf8] sm:$0xff]  }
 0x6a4   : > { %18952 = vmatmul.mubr.bf16.gmra.mrb[56].mxu0 %v26228_v25  ;;  %v20616_v25 = vld [vmem:[#allocation2 + $0x38] sm:$0x1] }
 0x6a5   : > { %18955 = vmatprep.mubr.bf16.mxu0 %v26229_v54  ;;  %v12526_v54 = vrot.slane %v20616_v25, 5  ;;  %v24720_v25 = vld [vmem:[#allocation2 + $0x40] sm:$0xf] }
 0x6ac   : > { %18956 = vmatmul.mubr.bf16.gmra.mrb[60].mxu0 %v26230_v15  ;;  %v12450_v15 = vld [vmem:[#allocation2 + $0x3c] sm:$0xe] }
 0x6ad   : > { %18975 = vmatprep.mubr.bf16.mxu0 %v17143_v23  ;;  %v12527_v23 = vsel %vm21274_vm9, %v12525_v37, %v12526_v54  ;;  %v17132_v26 = vrot.slane %v12450_v15, 9  ;;  %v14070_v37 = vld [vmem:[#allocation2 + $0x30] sm:$0xe]  ;;  %v14157_v15 = vrot.slane %v24715_v60, 5 }
 0x6ae   : > { %v17147_v59 = vcombine.low %v12524_v46, %v12527_v23  ;;  %v14154_v23 = vrot.slane %v24711_v50, 5 }
 0x6af   : > { %v12531_v1 = vsel %vm21274_vm9, %v17132_v26, %v12530_v5  ;;  %v17218_v5 = vrot.slane %v14070_v37, 9 }
 0x6b0   : > { %v17148_v4 = vcombine.low %v12531_v1, %v12534_v45  ;;  %v14156_v46 = vrot.slane %v14154_v23, 4  ;;  %v14074_v1 = vld [vmem:[#allocation2 + $0x60] sm:$0xe] }
 0x6b1   : > { %v24750_v32 = vsel %vm21274_vm9, %v17218_v5, %v14154_v23  ;;  %v24788_v5 = vld [vmem:[#allocation2 + $0x7c] sm:$0xf]  ;;  %v24833_v23 = vld [vmem:[#allocation2 + $0x8c] sm:$0x1] }
 0x6b4   : > { %18976 = vmatmul.mubr.bf16.vlgmr.msra.gmra.mrb[32].mxu0 %v17144_v33  ;;  %v12538_v33 = vsel %vm21274_vm9, %v17133_v48, %v12537_v56  ;;  %v14072_v56 = vld [vmem:[#allocation2 + $0x48] sm:$0xe]  ;;  %v24753_v48 = vld [vmem:[#allocation2 + $0x64] sm:$0xf] }
 0x6b5   : > { %18979 = vmatprep.mubr.bf16.mxu0 %v17145_v2  ;;  %19008 = vmatpush3.bf16.msra.mxu0 %v20443_v49  ;;  %v12517_v49 = vsel %vm21274_vm9, %v17130_v27, %v12516_v16  ;;  %v20447_v16 = vld [vmem:[#allocation9 + $0xe0] sm:$0xff]   ;;  %v17149_v31 = vcombine.low %v12538_v33, %v12541_v29  ;;  %v24709_v2 = vld [vmem:[#allocation2 + $0x28] sm:$0xf]  ;;  %v24713_v27 = vld [vmem:[#allocation2 + $0x2c] sm:$0x1]  ;;  %v17220_v26 = vrot.slane %v14072_v56, 9 }
 0x6b6   : > { %19009 = vmatprep.subr.bf16.mxu0 %v20444_v51  ;;  %v17146_v20 = vcombine.low %v12517_v49, %v12520_v8  ;;  %v14147_v54 = vrot.slane %v24709_v2, 5  ;;  %v26232_v8 = vcombine.low %v24555_v10, %v24563_v21  ;;  %v24729_v49 = vld [vmem:[#allocation9 + $0x100] sm:$0xff]   ;;  %v14150_v21 = vrot.slane %v24713_v27, 5  ;;  %v24738_v10 = vld [vmem:[#allocation2 + $0x50] sm:$0x1] }
 0x6b7   : > { %v14164_v29 = vrot.slane %v24731_v13, 5  ;;  %v24765_v33 = vld [vmem:[#allocation2 + $0x68] sm:$0x1] }
 0x6b9   : > { %19010 = vmatpush3.bf16.msra.mxu0 %v20444_v51  ;;  %v14069_v51 = vld [vmem:[#allocation2 + $0x24] sm:$0xe] }
 0x6ba   : > { %19011 = vmatprep.subr.bf16.mxu0 %v20445_v22  ;;  %v17217_v61 = vrot.slane %v14069_v51, 9  ;;  %v14171_v51 = vrot.slane %v24738_v10, 5 }
 0x6bc   : > { %18980 = vmatmul.mubr.bf16.gmra.mrb[36].mxu0 %v17146_v20  ;;  %v24735_v52 = vsel %vm21274_vm9, %v17217_v61, %v14147_v54  ;;  %v14149_v20 = vrot.slane %v14147_v54, 4  ;;  %v24782_v61 = vsel %vm21274_vm9, %v17220_v26, %v14168_v0  ;;  %v14175_v54 = vrot.slane %v24742_v14, 5 }
 0x6bd   : > { %18983 = vmatprep.mubr.bf16.mxu0 %v17147_v59  ;;  %19012 = vmatpush3.bf16.msra.mxu0 %v20445_v22  ;;  %v14071_v22 = vld [vmem:[#allocation2 + $0x3c] sm:$0xe]  ;;  %v14161_v59 = vrot.slane %v24720_v25, 5  ;;  %26236 = vst [vmem:[#allocation32_spill] sm:$0xff] %v24782_v61 }
 0x6be   : > { %19013 = vmatprep.subr.bf16.mxu0 %v20446_v62  ;;  %v24746_v36 = vsel %vm21274_vm9, %v14149_v20, %v14150_v21  ;;  %v17222_v20 = vrot.slane %v14074_v1, 9  ;;  %v14182_v21 = vrot.slane %v24753_v48, 5 }
 0x6bf   : > { %v14163_v45 = vrot.slane %v14161_v59, 4 }
 0x6c1   : > { %19014 = vmatpush3.bf16.msra.mxu0 %v20446_v62  ;;  %v17219_v62 = vrot.slane %v14071_v22, 9  ;;  %v24778_v37 = vsel %vm21274_vm9, %v14163_v45, %v14164_v29  ;;  %v14075_v22 = vld [vmem:[#allocation2 + $0x6c] sm:$0xe]  ;;  %v14185_v45 = vrot.slane %v24765_v33, 5 }
 0x6c2   : > { %19015 = vmatprep.subr.bf16.mxu0 %v20447_v16  ;;  %26235 = vst [vmem:[#allocation30_spill] sm:$0xff] %v24778_v37  ;;  %v17223_v29 = vrot.slane %v14075_v22, 9 }
 0x6c4   : > { %18984 = vmatmul.mubr.bf16.gmra.mrb[40].mxu0 %v17148_v4  ;;  %v24763_v4 = vld [vmem:[#allocation2 + $0x5c] sm:$0x1] }
 0x6c5   : > { %18987 = vmatprep.mubr.bf16.mxu0 %v17149_v31  ;;  %19016 = vmatpush3.bf16.msra.mxu0 %v20447_v16  ;;  %v24759_v16 = vsel %vm21274_vm9, %v14156_v46, %v14157_v15  ;;  %v24771_v31 = vsel %vm21274_vm9, %v17219_v62, %v14161_v59  ;;  %v14076_v46 = vld [vmem:[#allocation2 + $0x78] sm:$0xe]  ;;  %v26239_v15 = vcombine.low %v24575_v6, %v24582_v58  ;;  %v24800_v62 = vld [vmem:[#allocation2 + $0x74] sm:$0x1]  ;;  %v14177_v59 = vrot.slane %v14175_v54, 4 }
 0x6c6   : > { %19017 = vmatprep.subr.bf16.mxu0 %v20448_v12  ;;  %26233 = vst [vmem:[#allocation54_spill] sm:$0xff] %v24759_v16  ;;  %26234 = vst [vmem:[#allocation27_spill] sm:$0xff] %v24771_v31  ;;  %v14178_v26 = vrot.slane %v24763_v4, 5  ;;  %v24813_v58 = vld [vmem:[#allocation2 + $0x88] sm:$0xf] }
 0x6c7   : > { %v25142_v31 = vld [vmem:[#allocation2 + $0x64] sm:$0xf]  ;;  %v14971_v16 = vld [vmem:[#allocation2 + $0x68] sm:$0x1] }
 0x6c8   : > { %v24817_v1 = vsel %vm21274_vm9, %v14177_v59, %v14178_v26  ;;  %v14192_v59 = vrot.slane %v24800_v62, 5  ;;  %v14078_v26 = vld [vmem:[#allocation2 + $0x90] sm:$0xe]  ;;  %26280 = vst [vmem:[#allocation42_spill] sm:$0xff] %v25142_v31 }
 0x6c9   : > { %19018 = vmatpush3.bf16.msra.mxu0 %v20448_v12  ;;  %26241 = vst [vmem:[#allocation31_spill] sm:$0xff] %v24817_v1  ;;  %v17226_v3 = vrot.slane %v14078_v26, 9  ;;  %v13354_v26 = vld [vmem:[#allocation2 + $0xb0] sm:$0x1]  ;;  %v13325_v1 = vld [vmem:[#allocation2 + $0x3c] sm:$0xf] }
 0x6ca   : > { %19019 = vmatprep.subr.bf16.mxu0 %v20449_v63 }
 0x6cc   : > { %18988 = vmatmul.mubr.bf16.gmra.mrb[44].mxu0 %v26231_v53  ;;  %v17221_v53 = vrot.slane %v14073_v7, 9  ;;  %v14184_v7 = vrot.slane %v14182_v21, 4 }
 0x6cd   : > { %18991 = vmatprep.mubr.bf16.mxu0 %v26232_v8  ;;  %19020 = vmatpush3.bf16.msra.mxu0 %v20449_v63  ;;  %v14170_v63 = vrot.slane %v14168_v0, 4  ;;  %v26237_v8 = vcombine.low %v24559_v44, %v24571_v41  ;;  %v24809_v0 = vld [vmem:[#allocation2 + $0x80] sm:$0x1] }
 0x6ce   : > { %19021 = vmatprep.subr.bf16.mxu0 %v20450_v39  ;;  %v24806_v41 = vsel %vm21274_vm9, %v17221_v53, %v14175_v54  ;;  %v14196_v53 = vrot.slane %v24788_v5, 5  ;;  %v14077_v54 = vld [vmem:[#allocation2 + $0x84] sm:$0xe]  ;;  %v14199_v22 = vrot.slane %v24809_v0, 5 }
 0x6cf   : > { %v24794_v56 = vsel %vm21274_vm9, %v14170_v63, %v14171_v51  ;;  %26240 = vst [vmem:[#allocation33_spill] sm:$0xff] %v24806_v41  ;;  %v24821_v63 = vsel %vm21274_vm9, %v17222_v20, %v14182_v21  ;;  %v17224_v51 = vrot.slane %v14076_v46, 9  ;;  %v13348_v20 = vld [vmem:[#allocation2 + $0x98] sm:$0x1]  ;;  %v17225_v9 = vrot.slane %v14077_v54, 9 }
 0x6d0   : > { %26238 = vst [vmem:[#allocation24_spill] sm:$0xff] %v24794_v56  ;;  %26242 = vst [vmem:[#allocation37_spill] sm:$0xff] %v24821_v63  ;;  %v14198_v12 = vrot.slane %v14196_v53, 4  ;;  %v14203_v21 = vrot.slane %v24813_v58, 5  ;;  %v14082_v63 = vld [vmem:[#allocation2 + $0xc0] sm:$0xe] }
 0x6d1   : > { %19022 = vmatpush3.bf16.msra.mxu0 %v20450_v39  ;;  %v24774_v39 = vld [vmem:[#allocation2 + $0x70] sm:$0xf] }
 0x6d2   : > { %19055 = vmatprep.subr.bf16.mxu0 %v24729_v49  ;;  %v14189_v6 = vrot.slane %v24774_v39, 5 }
 0x6d4   : > { %18992 = vmatmul.mubr.bf16.gmra.mrb[48].mxu0 %v26237_v8  ;;  %v24824_v8 = vld [vmem:[#allocation2 + $0x94] sm:$0xf]  ;;  %v14191_v44 = vrot.slane %v14189_v6, 4  ;;  %v24839_v46 = vsel %vm21274_vm9, %v17223_v29, %v14189_v6  ;;  %v24857_v6 = vsel %vm21274_vm9, %v14198_v12, %v14199_v22  ;;  %v14205_v29 = vrot.slane %v14203_v21, 4 }
 0x6d5   : > { %18995 = vmatprep.mubr.bf16.mxu0 %v26239_v15  ;;  %v24830_v15 = vsel %vm21274_vm9, %v14184_v7, %v14185_v45  ;;  %26244 = vst [vmem:[#allocation35_spill] sm:$0xff] %v24839_v46  ;;  %v24850_v45 = vsel %vm21274_vm9, %v17224_v51, %v14196_v53  ;;  %26247 = vst [vmem:[#allocation38_spill] sm:$0xff] %v24857_v6  ;;  %v26248_v51 = vcombine.low %v24590_v17, %v24595_v35  ;;  %v13351_v53 = vld [vmem:[#allocation2 + $0xa4] sm:$0x1] }
 0x6d6   : > { %26243 = vst [vmem:[#allocation26_spill] sm:$0xff] %v24830_v15  ;;  %v24846_v7 = vsel %vm21274_vm9, %v14191_v44, %v14192_v59  ;;  %26246 = vst [vmem:[#allocation39_spill] sm:$0xff] %v24850_v45  ;;  %v14210_v44 = vrot.slane %v24824_v8, 5  ;;  %v14080_v59 = vld [vmem:[#allocation2 + $0xa8] sm:$0xe]  ;;  %v24867_v15 = vsel %vm21274_vm9, %v17225_v9, %v14203_v21  ;;  %v14206_v12 = vrot.slane %v24833_v23, 5 }
 0x6d7   : > { %26245 = vst [vmem:[#allocation36_spill] sm:$0xff] %v24846_v7  ;;  %26249 = vst [vmem:[#allocation44_spill] sm:$0xff] %v24867_v15  ;;  %v26250_v22 = vcombine.low %v24604_v42, %v24610_v47  ;;  %v14213_v46 = vrot.slane %v13348_v20, 5  ;;  %v17227_v17 = vrot.slane %v14079_v19, 9  ;;  %v14217_v35 = vrot.slane %v24842_v40, 5 }
 0x6d8   : > { %v14212_v7 = vrot.slane %v14210_v44, 4  ;;  %v24878_v54 = vsel %vm21274_vm9, %v14205_v29, %v14206_v12  ;;  %v24882_v9 = vsel %vm21274_vm9, %v17226_v3, %v14210_v44  ;;  %v17228_v21 = vrot.slane %v14080_v59, 9  ;;  %v14081_v47 = vld [vmem:[#allocation2 + $0xb4] sm:$0xe]  ;;  %v13359_v42 = vld [vmem:[#allocation2 + $0xc4] sm:$0xf] }
 0x6d9   : > { %26251 = vst [vmem:[#allocation40_spill] sm:$0xff] %v24878_v54  ;;  %26252 = vst [vmem:[#allocation43_spill] sm:$0xff] %v24882_v9  ;;  %v14224_v6 = vrot.slane %v13353_v43, 5  ;;  %v14220_v45 = vrot.slane %v13351_v53, 5  ;;  %v13357_v29 = vld [vmem:[#allocation2 + $0xbc] sm:$0x1]  ;;  %v24894_v3 = vsel %vm21274_vm9, %v17227_v17, %v14217_v35  ;;  %v26259_v12 = vcombine.low %v24625_v38, %v24634_v55 }
 0x6da   : > { %v24888_v19 = vsel %vm21274_vm9, %v14212_v7, %v14213_v46  ;;  %26254 = vst [vmem:[#allocation18_spill] sm:$0xff] %v24894_v3  ;;  %v14227_v44 = vrot.slane %v13354_v26, 5  ;;  %v13360_v59 = vld [vmem:[#allocation2 + $0xc8] sm:$0x1]  ;;  %v17229_v7 = vrot.slane %v14081_v47, 9  ;;  %v17230_v26 = vrot.slane %v14082_v63, 9 }
 0x6db   : > { %26253 = vst [vmem:[#allocation41_spill] sm:$0xff] %v24888_v19  ;;  %v14226_v43 = vrot.slane %v14224_v6, 4  ;;  %v24902_v46 = vsel %vm21274_vm9, %v17228_v21, %v14224_v6  ;;  %v14234_v19 = vrot.slane %v13357_v29, 5  ;;  %v26258_v6 = vcombine.low %v24617_v18, %v24621_v24  ;;  %v20451_v55 = vld [vmem:[#allocation2 + $0xc] sm:$0xff]   ;;  %v13317_v38 = vld [vmem:[#allocation2 + $0x1c] sm:$0xf] }
 0x6dc   : > { %18996 = vmatmul.mubr.bf16.gmra.mrb[52].mxu0 %v26248_v51  ;;  %v24874_v51 = vld [vmem:[#allocation2 + $0xb8] sm:$0xf]  ;;  %26256 = vst [vmem:[#allocation46_spill] sm:$0xff] %v24902_v46  ;;  %v14241_v47 = vrot.slane %v13360_v59, 5  ;;  %v26264_v29 = vcombine.low %v24641_v11, %v24645_v28  ;;  %v13313_v59 = vld [vmem:[#allocation2 + $0xc] sm:$0xf] }
 0x6dd   : > { %18999 = vmatprep.mubr.bf16.mxu0 %v26250_v22  ;;  %v14219_v22 = vrot.slane %v14217_v35, 4  ;;  %v14231_v53 = vrot.slane %v24874_v51, 5  ;;  %v24909_v17 = vsel %vm21274_vm9, %v14226_v43, %v14227_v44  ;;  %v14238_v35 = vrot.slane %v13359_v42, 5  ;;  %v20454_v44 = vld [vmem:[#allocation2 + $0x24] sm:$0xff]   ;;  %v20455_v11 = vld [vmem:[#allocation2 + $0x30] sm:$0xff]  }
 0x6de   : > { %26257 = vst [vmem:[#allocation45_spill] sm:$0xff] %v24909_v17  ;;  %v20462_v28 = vld [vmem:[#allocation9 + $0x118] sm:$0xff]  }
 0x6df   : > { %v24898_v20 = vsel %vm21274_vm9, %v14219_v22, %v14220_v45  ;;  %v14233_v22 = vrot.slane %v14231_v53, 4  ;;  %v14240_v21 = vrot.slane %v14238_v35, 4  ;;  %v24921_v43 = vsel %vm21274_vm9, %v17229_v7, %v14231_v53  ;;  %v13314_v7 = vld [vmem:[#allocation2 + $0x10] sm:$0xf]  ;;  %v20459_v53 = vld [vmem:[#allocation9 + $0x110] sm:$0xff]  }
 0x6e0   : > { %26255 = vst [vmem:[#allocation47_spill] sm:$0xff] %v24898_v20  ;;  %26260 = vst [vmem:[#allocation20_spill] sm:$0xff] %v24921_v43  ;;  %v24931_v18 = vsel %vm21274_vm9, %v17230_v26, %v14238_v35  ;;  %v13362_v26 = vshrl.u32 %v13313_v59, 16  ;;  %v13365_v35 = vshll.u32 %v13313_v59, 16  ;;  %v20465_v59 = vld [vmem:[#allocation9 + $0x120] sm:$0xff]   ;;  %v20471_v20 = vld [vmem:[#allocation9 + $0x130] sm:$0xff]  }
 0x6e1   : > { %v24925_v63 = vsel %vm21274_vm9, %v14233_v22, %v14234_v19  ;;  %26262 = vst [vmem:[#allocation55_spill] sm:$0xff] %v24931_v18  ;;  %v24935_v24 = vsel %vm21274_vm9, %v14240_v21, %v14241_v47  ;;  %v20452_v19 = vld [vmem:[#allocation2 + $0x18] sm:$0xff]   ;;  %v13371_v22 = vshll.u32 %v13314_v7, 16  ;;  %v24945_v45 = vld [vmem:[#allocation2 + $0x14] sm:$0x1] }
 0x6e2   : > { %26261 = vst [vmem:[#allocation48_spill] sm:$0xff] %v24925_v63  ;;  %26263 = vst [vmem:[#allocation50_spill] sm:$0xff] %v24935_v24  ;;  %v13316_v21 = vld [vmem:[#allocation2 + $0x18] sm:$0xf]  ;;  %v20457_v47 = vld [vmem:[#allocation2 + $0x3c] sm:$0xff]   ;;  %v13395_v24 = vshll.u32 %v13317_v38, 16 }
 0x6e3   : > { %v13389_v42 = vshll.u32 %v13316_v21, 16  ;;  %v24948_v63 = vld [vmem:[#allocation2 + $0x20] sm:$0x1]  ;;  %v20460_v43 = vld [vmem:[#allocation2 + $0x54] sm:$0xff]  }
 0x6e4   : > { %19000 = vmatmul.mubr.bf16.gmra.mrb[56].mxu0 %v26258_v6  ;;  %v13375_v6 = vshrl.u32 %v13314_v7, 16  ;;  %v13319_v7 = vld [vmem:[#allocation2 + $0x24] sm:$0xf]  ;;  %v24951_v17 = vrot.slane %v13395_v24, 5  ;;  %v13322_v24 = vld [vmem:[#allocation2 + $0x30] sm:$0xf] }
 0x6e5   : > { %19003 = vmatprep.mubr.bf16.mxu0 %v26259_v12  ;;  %v20456_v12 = vld [vmem:[#allocation9 + $0x108] sm:$0xff]  }
 0x6ec   : > { %19004 = vmatmul.mubr.bf16.gmra.mrb[60].mxu0 %v26264_v29  ;;  %v13386_v29 = vshrl.u32 %v13316_v21, 16  ;;  %v20458_v21 = vld [vmem:[#allocation2 + $0x48] sm:$0xff]  }
 0x6ed   : > { %19023 = vmatprep.mubr.bf16.mxu0 %v20451_v55  ;;  %v13364_v55 = vrot.slane %v13362_v26, 4 }
 0x6f4   : > { %19024 = vmatmul.mubr.bf16.vlgmr.msra.gmra.mrb[32].mxu0 %v20452_v19  ;;  %v13367_v19 = vrot.slane %v13365_v35, 5  ;;  %v13391_v35 = vrot.slane %v13389_v42, 5 }
 0x6f5   : > { %19027 = vmatprep.mubr.bf16.mxu0 %v20454_v44  ;;  %19056 = vmatpush3.bf16.msra.mxu0 %v24729_v49  ;;  %v24943_v44 = vrot.slane %v13371_v22, 5  ;;  %v13377_v49 = vrot.slane %v13375_v6, 4  ;;  %v13399_v22 = vshrl.u32 %v13317_v38, 16  ;;  %v13410_v6 = vshrl.u32 %v13319_v7, 16 }
 0x6f6   : > { %19057 = vmatprep.subr.bf16.mxu0 %v20456_v12  ;;  %v13368_v18 = vor.u32 %v13367_v19, %v13364_v55  ;;  %v13419_v55 = vshll.u32 %v24709_v2, 16  ;;  %v13423_v19 = vshrl.u32 %v24709_v2, 16 }
 0x6f7   : > { %v13378_v26 = vor.u32 %v13377_v49, %v24943_v44  ;;  %v13401_v49 = vrot.slane %v13399_v22, 4  ;;  %v13434_v22 = vshrl.u32 %v13322_v24, 16 }
 0x6f8   : > { %v13369_v42 = vrot.slane %v13368_v18, 4  ;;  %v24958_v54 = vrot.slane %v13419_v55, 5  ;;  %v13425_v15 = vrot.slane %v13423_v19, 4  ;;  %v20463_v55 = vld [vmem:[#allocation2 + $0x6c] sm:$0xff]  }
 0x6f9   : > { %19058 = vmatpush3.bf16.msra.mxu0 %v20456_v12  ;;  %v13388_v12 = vrot.slane %v13386_v29, 4  ;;  %v13405_v29 = vshll.u32 %v24948_v63, 16  ;;  %v13379_v38 = vrot.slane %v13378_v26, 4 }
 0x6fa   : > { %19059 = vmatprep.subr.bf16.mxu0 %v20459_v53  ;;  %v13374_v2 = vsel %vm21116_vm5, %v13369_v42, %v24943_v44  ;;  %v13447_v44 = vshrl.u32 %v24711_v50, 16  ;;  %v13426_v19 = vor.u32 %v13425_v15, %v24958_v54  ;;  %v13467_v42 = vshll.u32 %v24720_v25, 16 }
 0x6fb   : > { %v24956_v9 = vrot.slane %v13405_v29, 5  ;;  %v13458_v29 = vshrl.u32 %v13325_v1, 16  ;;  %v13436_v15 = vrot.slane %v13434_v22, 4 }
 0x6fc   : > { %19028 = vmatmul.mubr.bf16.gmra.mrb[36].mxu0 %v20455_v11  ;;  %v13413_v11 = vshll.u32 %v13319_v7, 16  ;;  %v13412_v7 = vrot.slane %v13410_v6, 4  ;;  %v13437_v6 = vshll.u32 %v13322_v24, 16  ;;  %v13331_v24 = vld [vmem:[#allocation2 + $0x54] sm:$0xf]  ;;  %v24986_v41 = vrot.slane %v13426_v19, 4 }
 0x6fd   : > { %19031 = vmatprep.mubr.bf16.mxu0 %v20457_v47  ;;  %19060 = vmatpush3.bf16.msra.mxu0 %v20459_v53  ;;  %v20468_v53 = vld [vmem:[#allocation9 + $0x128] sm:$0xff]   ;;  %v13381_v47 = vshll.u32 %v24945_v45, 16  ;;  %v20464_v19 = vld [vmem:[#allocation2 + $0x78] sm:$0xff]  }
 0x6fe   : > { %19061 = vmatprep.subr.bf16.mxu0 %v20462_v28  ;;  %v13415_v46 = vrot.slane %v13413_v11, 5  ;;  %v20461_v11 = vld [vmem:[#allocation2 + $0x60] sm:$0xff]  }
 0x6ff   : > { %v13383_v3 = vrot.slane %v13381_v47, 5  ;;  %v13443_v47 = vshll.u32 %v24711_v50, 16 }
 0x700   : > { %v13416_v26 = vor.u32 %v13415_v46, %v13412_v7  ;;  %v13471_v46 = vshrl.u32 %v24720_v25, 16  ;;  %v13439_v7 = vrot.slane %v13437_v6, 5  ;;  %v24982_v25 = vld [vmem:[#allocation9 + $0x140] sm:$0xff]   ;;  %v13506_v6 = vshrl.u32 %v13331_v24, 16 }
 0x701   : > { %19062 = vmatpush3.bf16.msra.mxu0 %v20462_v28  ;;  %v13392_v28 = vor.u32 %v13391_v35, %v13388_v12  ;;  %v13328_v12 = vld [vmem:[#allocation2 + $0x48] sm:$0xf]  ;;  %v13429_v35 = vshll.u32 %v24713_v27, 16 }
 0x702   : > { %19063 = vmatprep.subr.bf16.mxu0 %v20465_v59 }
 0x703   : > { %v24965_v18 = vrot.slane %v13392_v28, 4  ;;  %v13491_v28 = vshll.u32 %v24726_v57, 16 }
 0x704   : > { %19032 = vmatmul.mubr.bf16.gmra.mrb[40].mxu0 %v20458_v21  ;;  %v20474_v21 = vld [vmem:[#allocation9 + $0x138] sm:$0xff]  }
 0x705   : > { %19035 = vmatprep.mubr.bf16.mxu0 %v20460_v43  ;;  %19064 = vmatpush3.bf16.msra.mxu0 %v20465_v59  ;;  %v13384_v43 = vsel %vm21116_vm5, %v13379_v38, %v13383_v3  ;;  %v13402_v59 = vor.u32 %v13401_v49, %v24951_v17  ;;  %v13461_v3 = vshll.u32 %v13325_v1, 16  ;;  %v13485_v38 = vshll.u32 %v13328_v12, 16 }
 0x706   : > { %19065 = vmatprep.subr.bf16.mxu0 %v20468_v53  ;;  %v24974_v27 = vcombine.low %v13374_v2, %v13384_v43  ;;  %v13495_v49 = vshrl.u32 %v24726_v57, 16  ;;  %v24980_v1 = vrot.slane %v13416_v26, 4  ;;  %v13449_v2 = vrot.slane %v13447_v44, 4 }
 0x707   : > { %v24978_v50 = vrot.slane %v13402_v59, 4  ;;  %v13460_v43 = vrot.slane %v13458_v29, 4  ;;  %v24988_v57 = vrot.slane %v13467_v42, 5  ;;  %v24990_v26 = vrot.slane %v13491_v28, 5 }
 0x708   : > { %v13497_v22 = vrot.slane %v13495_v49, 4  ;;  %v13431_v29 = vrot.slane %v13429_v35, 5  ;;  %v13440_v42 = vor.u32 %v13439_v7, %v13436_v15  ;;  %v13453_v35 = vshll.u32 %v24715_v60, 16 }
 0x709   : > { %19066 = vmatpush3.bf16.msra.mxu0 %v20468_v53  ;;  %v13482_v53 = vshrl.u32 %v13328_v12, 16  ;;  %v13463_v12 = vrot.slane %v13461_v3, 5  ;;  %v13408_v44 = vsel %vm21116_vm5, %v24978_v50, %v24956_v9  ;;  %v13509_v3 = vshll.u32 %v13331_v24, 16 }
 0x70a   : > { %19067 = vmatprep.subr.bf16.mxu0 %v20471_v20  ;;  %v13432_v9 = vsel %vm21116_vm5, %v24986_v41, %v13431_v29  ;;  %v13477_v28 = vshll.u32 %v24731_v13, 16  ;;  %v13508_v50 = vrot.slane %v13506_v6, 4  ;;  %v13519_v7 = vshrl.u32 %v24742_v14, 16 }
 0x70b   : > { %v13484_v59 = vrot.slane %v13482_v53, 4  ;;  %v13464_v53 = vor.u32 %v13463_v12, %v13460_v43  ;;  %v13511_v15 = vrot.slane %v13509_v3, 5  ;;  %v13441_v41 = vrot.slane %v13440_v42, 4  ;;  %v20467_v42 = vld [vmem:[#allocation2 + $0x90] sm:$0xff]  }
 0x70c   : > { %19036 = vmatmul.mubr.bf16.gmra.mrb[44].mxu0 %v20461_v11  ;;  %v24984_v11 = vrot.slane %v13443_v47, 5  ;;  %v13398_v47 = vsel %vm21116_vm5, %v24965_v18, %v24951_v17  ;;  %v13334_v17 = vld [vmem:[#allocation2 + $0x60] sm:$0xf]  ;;  %v20466_v18 = vld [vmem:[#allocation2 + $0x84] sm:$0xff]   ;;  %v13501_v12 = vshll.u32 %v24738_v10, 16 }
 0x70d   : > { %19039 = vmatprep.mubr.bf16.mxu0 %v20463_v55  ;;  %19068 = vmatpush3.bf16.msra.mxu0 %v20471_v20  ;;  %v13473_v20 = vrot.slane %v13471_v46, 4  ;;  %v13487_v55 = vrot.slane %v13485_v38, 5  ;;  %v13530_v24 = vshrl.u32 %v13334_v17, 16  ;;  %v13465_v60 = vrot.slane %v13464_v53, 4 }
 0x70e   : > { %19069 = vmatprep.subr.bf16.mxu0 %v20474_v21  ;;  %v13450_v46 = vor.u32 %v13449_v2, %v24984_v11  ;;  %v13533_v2 = vshll.u32 %v13334_v17, 16  ;;  %v13512_v3 = vor.u32 %v13511_v15, %v13508_v50  ;;  %v13446_v10 = vsel %vm21116_vm5, %v13441_v41, %v24984_v11  ;;  %v13337_v50 = vld [vmem:[#allocation2 + $0x6c] sm:$0xf]  ;;  %v13340_v41 = vld [vmem:[#allocation2 + $0x78] sm:$0xf] }
 0x70f   : > { %v13474_v38 = vor.u32 %v13473_v20, %v24988_v57  ;;  %v13488_v49 = vor.u32 %v13487_v55, %v13484_v59  ;;  %v13455_v20 = vrot.slane %v13453_v35, 5  ;;  %v13539_v59 = vshll.u32 %v24753_v48, 16  ;;  %v20469_v35 = vld [vmem:[#allocation2 + $0x9c] sm:$0xff]  }
 0x710   : > { %v13451_v43 = vrot.slane %v13450_v46, 4  ;;  %v13543_v55 = vshrl.u32 %v24753_v48, 16  ;;  %v13535_v17 = vrot.slane %v13533_v2, 5  ;;  %v13470_v48 = vsel %vm21116_vm5, %v13465_v60, %v24988_v57 }
 0x711   : > { %19070 = vmatpush3.bf16.msra.mxu0 %v20474_v21  ;;  %v13422_v21 = vsel %vm21116_vm5, %v24980_v1, %v24958_v54  ;;  %v13498_v54 = vor.u32 %v13497_v22, %v24990_v26  ;;  %v13515_v1 = vshll.u32 %v24742_v14, 16  ;;  %v13475_v13 = vrot.slane %v13474_v38, 4 }
 0x712   : > { %19103 = vmatprep.subr.bf16.mxu0 %v24982_v25  ;;  %v13479_v22 = vrot.slane %v13477_v28, 5  ;;  %v13489_v6 = vrot.slane %v13488_v49, 4  ;;  %v13521_v14 = vrot.slane %v13519_v7, 4  ;;  %v13456_v46 = vsel %vm21116_vm5, %v13451_v43, %v13455_v20  ;;  %v25056_v20 = vld [vmem:[#allocation2 + $0x1c] sm:$0xf] }
 0x713   : > { %v13499_v29 = vrot.slane %v13498_v54, 4  ;;  %v13503_v53 = vrot.slane %v13501_v12, 5  ;;  %v13525_v28 = vshll.u32 %v24763_v4, 16  ;;  %v25031_v49 = vrot.slane %v13539_v59, 5  ;;  %26265 = vst [vmem:[#allocation23_spill] sm:$0xff] %v25056_v20 }
 0x714   : > { %19040 = vmatmul.mubr.bf16.gmra.mrb[48].mxu0 %v20464_v19  ;;  %v25018_v19 = vrot.slane %v13515_v1, 5  ;;  %v13480_v38 = vsel %vm21116_vm5, %v13475_v13, %v13479_v22  ;;  %v13545_v54 = vrot.slane %v13543_v55, 4  ;;  %v25033_v11 = vcombine.low %v13398_v47, %v13408_v44  ;;  %v15705_v13 = vld [vmem:[#allocation2 + $0x18] sm:$0xe] }
 0x715   : > { %19043 = vmatprep.mubr.bf16.mxu0 %v20466_v18  ;;  %v13532_v18 = vrot.slane %v13530_v24, 4  ;;  %v25035_v1 = vcombine.low %v13422_v21, %v13432_v9  ;;  %v13494_v57 = vsel %vm21116_vm5, %v13489_v6, %v24990_v26  ;;  %v13504_v15 = vsel %vm21116_vm5, %v13499_v29, %v13503_v53  ;;  %v25060_v6 = vld [vmem:[#allocation2 + $0x20] sm:$0x1]  ;;  %v25062_v29 = vld [vmem:[#allocation2 + $0x28] sm:$0xf] }
 0x716   : > { %v25042_v7 = vrot.slane %v13512_v3, 4  ;;  %v13522_v4 = vor.u32 %v13521_v14, %v25018_v19  ;;  %v13549_v2 = vshll.u32 %v24765_v33, 16  ;;  %v25046_v47 = vcombine.low %v13446_v10, %v13456_v46  ;;  %26266 = vst [vmem:[#allocation49_spill] sm:$0xff] %v25060_v6  ;;  %26267 = vst [vmem:[#allocation56_spill] sm:$0xff] %v25062_v29  ;;  %v20470_v3 = vld [vmem:[#allocation2 + $0xa8] sm:$0xff]   ;;  %v20472_v14 = vld [vmem:[#allocation2 + $0xb4] sm:$0xff]  }
 0x717   : > { %v13536_v24 = vor.u32 %v13535_v17, %v13532_v18  ;;  %v25048_v44 = vcombine.low %v13470_v48, %v13480_v38  ;;  %v13554_v21 = vshrl.u32 %v13337_v50, 16  ;;  %v13557_v9 = vshll.u32 %v13337_v50, 16  ;;  %v25079_v53 = vld [vmem:[#allocation2 + $0x2c] sm:$0x1]  ;;  %v15708_v18 = vld [vmem:[#allocation2 + $0x3c] sm:$0xe] }
 0x718   : > { %v25050_v43 = vcombine.low %v13494_v57, %v13504_v15  ;;  %v25052_v26 = vrot.slane %v13525_v28, 5  ;;  %v13546_v60 = vor.u32 %v13545_v54, %v25031_v49  ;;  %v13563_v12 = vshll.u32 %v24774_v39, 16  ;;  %26268 = vst [vmem:[#allocation19_spill] sm:$0xff] %v25079_v53  ;;  %v15706_v28 = vld [vmem:[#allocation2 + $0x24] sm:$0xe] }
 0x719   : > { %v13567_v33 = vshrl.u32 %v24774_v39, 16  ;;  %v13578_v59 = vshrl.u32 %v13340_v41, 16  ;;  %v13581_v55 = vshll.u32 %v13340_v41, 16  ;;  %v13587_v22 = vshll.u32 %v24788_v5, 16 }
 0x71a   : > { %v25068_v17 = vrot.slane %v13522_v4, 4  ;;  %v25072_v39 = vrot.slane %v13549_v2, 5  ;;  %v25074_v10 = vrot.slane %v13554_v21, 4  ;;  %v25076_v46 = vrot.slane %v13557_v9, 5  ;;  %v15707_v4 = vld [vmem:[#allocation2 + $0x30] sm:$0xe] }
 0x71b   : > { %v13591_v48 = vshrl.u32 %v24788_v5, 16  ;;  %v17303_v38 = vrot.slane %v15705_v13, 9  ;;  %v25083_v54 = vrot.slane %v13546_v60, 4  ;;  %v25085_v50 = vrot.slane %v13563_v12, 5  ;;  %v25097_v21 = vld [vmem:[#allocation2 + $0x38] sm:$0x1] }
 0x71c   : > { %19044 = vmatmul.mubr.bf16.gmra.mrb[52].mxu0 %v20467_v42  ;;  %v25070_v42 = vrot.slane %v13536_v24, 4  ;;  %v15771_v15 = vrot.slane %v25056_v20, 5  ;;  %v25089_v24 = vrot.slane %v13567_v33, 4  ;;  %v25091_v2 = vrot.slane %v13578_v59, 4  ;;  %26270 = vst [vmem:[#allocation57_spill] sm:$0xff] %v25097_v21 }
 0x71d   : > { %19047 = vmatprep.mubr.bf16.mxu0 %v20469_v35  ;;  %v25081_v35 = vld [vmem:[#allocation2 + $0x34] sm:$0xf]  ;;  %v25093_v5 = vrot.slane %v13581_v55, 5  ;;  %v25095_v41 = vrot.slane %v13587_v22, 5  ;;  %v25099_v9 = vld [vmem:[#allocation2 + $0x40] sm:$0xf] }
 0x71e   : > { %26269 = vst [vmem:[#allocation52_spill] sm:$0xff] %v25081_v35  ;;  %26271 = vst [vmem:[#allocation58_spill] sm:$0xff] %v25099_v9  ;;  %v15773_v60 = vrot.slane %v15771_v15, 4  ;;  %v15774_v12 = vrot.slane %v25060_v6, 5  ;;  %v17304_v13 = vrot.slane %v15706_v28, 9  ;;  %v15778_v57 = vrot.slane %v25062_v29, 5 }
 0x71f   : > { %v25107_v59 = vrot.slane %v13591_v48, 4  ;;  %v25109_v55 = vld [vmem:[#allocation2 + $0x44] sm:$0x1]  ;;  %v25111_v22 = vld [vmem:[#allocation2 + $0x4c] sm:$0xf]  ;;  %v15781_v29 = vrot.slane %v25079_v53, 5 }
 0x720   : > { %26272 = vst [vmem:[#allocation25_spill] sm:$0xff] %v25109_v55  ;;  %26273 = vst [vmem:[#allocation22_spill] sm:$0xff] %v25111_v22  ;;  %v25119_v28 = vsel %vm21274_vm9, %v15773_v60, %v15774_v12  ;;  %v15780_v6 = vrot.slane %v15778_v57, 4  ;;  %v15785_v48 = vrot.slane %v25081_v35, 5  ;;  %v15709_v33 = vld [vmem:[#allocation2 + $0x48] sm:$0xe]  ;;  %v25135_v60 = vsel %vm21274_vm9, %v17304_v13, %v15778_v57 }
 0x721   : > { %26275 = vst [vmem:[#allocation53_spill] sm:$0xff] %v25119_v28  ;;  %26278 = vst [vmem:[#allocation34_spill] sm:$0xff] %v25135_v60  ;;  %v15710_v12 = vld [vmem:[#allocation2 + $0x54] sm:$0xe]  ;;  %v20473_v35 = vld [vmem:[#allocation2 + $0xc0] sm:$0xff]   ;;  %v15788_v56 = vrot.slane %v25097_v21, 5 }
 0x722   : > { %v14968_v53 = vld [vmem:[#allocation2 + $0x5c] sm:$0x1]  ;;  %v25139_v20 = vsel %vm21274_vm9, %v15780_v6, %v15781_v29  ;;  %v15787_v61 = vrot.slane %v15785_v48, 4  ;;  %v17306_v37 = vrot.slane %v15708_v18, 9  ;;  %v15792_v13 = vrot.slane %v25099_v9, 5  ;;  %v20476_v9 = vld [vmem:[#allocation9 + $0x148] sm:$0xff]  }
 0x723   : > { %26279 = vst [vmem:[#allocation28_spill] sm:$0xff] %v25139_v20  ;;  %v17307_v28 = vrot.slane %v15709_v33, 9  ;;  %v15795_v29 = vrot.slane %v25109_v55, 5  ;;  %v15799_v18 = vrot.slane %v25111_v22, 5  ;;  %v17308_v21 = vrot.slane %v15710_v12, 9 }
 0x724   : > { %19048 = vmatmul.mubr.bf16.gmra.mrb[56].mxu0 %v20470_v3  ;;  %v25115_v3 = vsel %vm21274_vm9, %v17303_v38, %v15771_v15  ;;  %v25127_v38 = vld [vmem:[#allocation2 + $0x50] sm:$0x1]  ;;  %v25129_v15 = vld [vmem:[#allocation2 + $0x58] sm:$0xf]  ;;  %v25153_v6 = vsel %vm21274_vm9, %v15787_v61, %v15788_v56  ;;  %v14974_v61 = vld [vmem:[#allocation2 + $0x74] sm:$0x1]  ;;  %v25166_v60 = vsel %vm21274_vm9, %v17306_v37, %v15792_v13 }
 0x725   : > { %19051 = vmatprep.mubr.bf16.mxu0 %v20472_v14  ;;  %26274 = vst [vmem:[#allocation21_spill] sm:$0xff] %v25115_v3  ;;  %v17305_v14 = vrot.slane %v15707_v4, 9  ;;  %26276 = vst [vmem:[#allocation51_spill] sm:$0xff] %v25127_v38  ;;  %v15711_v3 = vld [vmem:[#allocation2 + $0x60] sm:$0xe]  ;;  %v15802_v33 = vrot.slane %v25127_v38, 5 }
 0x726   : > { %26277 = vst [vmem:[#allocation29_spill] sm:$0xff] %v25129_v15  ;;  %26282 = vst [vmem:[#allocation59_spill] sm:$0xff] %v25153_v6  ;;  %v25157_v4 = vld [vmem:[#allocation2 + $0x70] sm:$0xf]  ;;  %v15806_v20 = vrot.slane %v25129_v15, 5  ;;  %v15801_v12 = vrot.slane %v15799_v18, 4 }
 0x727   : > { %v25148_v57 = vsel %vm21274_vm9, %v17305_v14, %v15785_v48  ;;  %v15794_v48 = vrot.slane %v15792_v13, 4  ;;  %v14976_v56 = vld [vmem:[#allocation2 + $0x7c] sm:$0xf]  ;;  %26283 = vst [vmem:[#allocation60_spill] sm:$0xff] %v25166_v60  ;;  %v17309_v55 = vrot.slane %v15711_v3, 9  ;;  %v15809_v38 = vrot.slane %v14968_v53, 5 }
 0x728   : > { %26281 = vst [vmem:[#allocation17_spill] sm:$0xff] %v25148_v57  ;;  %v15712_v14 = vld [vmem:[#allocation2 + $0x6c] sm:$0xe]  ;;  %v15808_v57 = vrot.slane %v15806_v20, 4  ;;  %v15713_v15 = vld [vmem:[#allocation2 + $0x78] sm:$0xe]  ;;  %v25185_v3 = vsel %vm21274_vm9, %v17308_v21, %v15806_v20 }
 0x729   : > { %v25174_v6 = vsel %vm21274_vm9, %v15794_v48, %v15795_v29  ;;  %v14977_v22 = vld [vmem:[#allocation2 + $0x80] sm:$0x1]  ;;  %26287 = vst [vmem:[#allocation64_spill] sm:$0xff] %v25185_v3  ;;  %v15816_v13 = vrot.slane %v14971_v16, 5  ;;  %v15714_v29 = vld [vmem:[#allocation2 + $0x84] sm:$0xe] }
 0x72a   : > { %26285 = vst [vmem:[#allocation62_spill] sm:$0xff] %v25174_v6  ;;  %v14980_v48 = vld [vmem:[#allocation2 + $0x8c] sm:$0x1]  ;;  %v17310_v6 = vrot.slane %v15712_v14, 9  ;;  %v14982_v60 = vld [vmem:[#allocation2 + $0x94] sm:$0xf] }
 0x72b   : > { %v15820_v16 = vrot.slane %v25157_v4, 5  ;;  %v17311_v21 = vrot.slane %v15713_v15, 9  ;;  %v14983_v53 = vld [vmem:[#allocation2 + $0x98] sm:$0x1]  ;;  %v15827_v14 = vrot.slane %v14976_v56, 5 }
 0x72c   : > { %19052 = vmatmul.mubr.bf16.gmra.mrb[60].mxu0 %v20473_v35  ;;  %v25170_v35 = vsel %vm21274_vm9, %v17307_v28, %v15799_v18  ;;  %v25181_v28 = vsel %vm21274_vm9, %v15801_v12, %v15802_v33  ;;  %v14979_v18 = vld [vmem:[#allocation2 + $0x88] sm:$0xf]  ;;  %v15715_v12 = vld [vmem:[#allocation2 + $0x90] sm:$0xe]  ;;  %v14986_v15 = vld [vmem:[#allocation2 + $0xa4] sm:$0x1] }
 0x72d   : > { %19071 = vmatprep.mubr.bf16.mxu0 %v24974_v27  ;;  %26284 = vst [vmem:[#allocation61_spill] sm:$0xff] %v25170_v35  ;;  %v15813_v27 = vrot.slane %v25142_v31, 5  ;;  %26286 = vst [vmem:[#allocation63_spill] sm:$0xff] %v25181_v28  ;;  %v25191_v31 = vsel %vm21274_vm9, %v15808_v57, %v15809_v38  ;;  %v15823_v57 = vrot.slane %v14974_v61, 5  ;;  %v17312_v28 = vrot.slane %v15714_v29, 9 }
 0x72e   : > { %26288 = vst [vmem:[#allocation65_spill] sm:$0xff] %v25191_v31  ;;  %v14985_v35 = vld [vmem:[#allocation2 + $0xa0] sm:$0xf]  ;;  %v15822_v31 = vrot.slane %v15820_v16, 4  ;;  %v25209_v3 = vsel %vm21274_vm9, %v17310_v6, %v15820_v16  ;;  %v15829_v61 = vrot.slane %v15827_v14, 4  ;;  %v17313_v56 = vrot.slane %v15715_v12, 9 }
 0x72f   : > { %v15815_v37 = vrot.slane %v15813_v27, 4  ;;  %v25197_v20 = vsel %vm21274_vm9, %v17309_v55, %v15813_v27  ;;  %v15830_v55 = vrot.slane %v14977_v22, 5  ;;  %v15834_v27 = vrot.slane %v14979_v18, 5  ;;  %26290 = vst [vmem:[#allocation67_spill] sm:$0xff] %v25209_v3  ;;  %v15717_v6 = vld [vmem:[#allocation2 + $0xa8] sm:$0xe] }
 0x730   : > { %v25219_v22 = vsel %vm21274_vm9, %v15822_v31, %v15823_v57  ;;  %v15837_v29 = vrot.slane %v14980_v48, 5  ;;  %v15841_v18 = vrot.slane %v14982_v60, 5  ;;  %v20477_v16 = vld [vmem:[#allocation9 + $0x150] sm:$0xff]   ;;  %v15844_v31 = vrot.slane %v14983_v53, 5  ;;  %v14989_v57 = vld [vmem:[#allocation2 + $0xb0] sm:$0x1] }
 0x731   : > { %v25202_v38 = vsel %vm21274_vm9, %v15815_v37, %v15816_v13  ;;  %v25213_v37 = vsel %vm21274_vm9, %v17311_v21, %v15827_v14  ;;  %v15716_v13 = vld [vmem:[#allocation2 + $0x9c] sm:$0xe]  ;;  %26292 = vst [vmem:[#allocation69_spill] sm:$0xff] %v25219_v22  ;;  %v14988_v33 = vld [vmem:[#allocation2 + $0xac] sm:$0xf]  ;;  %v25225_v12 = vsel %vm21274_vm9, %v15829_v61, %v15830_v55  ;;  %v15848_v53 = vrot.slane %v14985_v35, 5 }
 0x732   : > { %26289 = vst [vmem:[#allocation66_spill] sm:$0xff] %v25202_v38  ;;  %26291 = vst [vmem:[#allocation68_spill] sm:$0xff] %v25213_v37  ;;  %v14991_v48 = vld [vmem:[#allocation2 + $0xb8] sm:$0xf]  ;;  %v15843_v21 = vrot.slane %v15841_v18, 4  ;;  %v17314_v22 = vrot.slane %v15716_v13, 9 }
 0x733   : > { %26293 = vst [vmem:[#allocation70_spill] sm:$0xff] %v25225_v12  ;;  %v14992_v3 = vld [vmem:[#allocation2 + $0xbc] sm:$0x1]  ;;  %v14994_v55 = vld [vmem:[#allocation2 + $0xc4] sm:$0xf]  ;;  %v20478_v37 = vld [vmem:[#allocation9 + $0x158] sm:$0xff]  }
 0x734   : > { %19072 = vmatmul.mubr.bf16.vlgmr.msra.gmra.mrb[32].mxu0 %v25033_v11  ;;  %v15836_v11 = vrot.slane %v15834_v27, 4  ;;  %v25245_v60 = vsel %vm21274_vm9, %v15843_v21, %v15844_v31  ;;  %v15719_v13 = vld [vmem:[#allocation2 + $0xc0] sm:$0xe]  ;;  %v13343_v38 = vld [vmem:[#allocation2 + $0x84] sm:$0xf]  ;;  %v26363_v34 = vld [vmem:[#allocation61_spill] sm:$0xff] }
 0x735   : > { %19075 = vmatprep.mubr.bf16.mxu0 %v25035_v1  ;;  %19104 = vmatpush3.bf16.msra.mxu0 %v24982_v25  ;;  %v25229_v25 = vsel %vm21274_vm9, %v17312_v28, %v15834_v27  ;;  %v15718_v1 = vld [vmem:[#allocation2 + $0xb4] sm:$0xe]  ;;  %v25241_v28 = vsel %vm21274_vm9, %v17313_v56, %v15841_v18  ;;  %v17315_v27 = vrot.slane %v15717_v6, 9  ;;  %v15858_v56 = vrot.slane %v14989_v57, 5  ;;  %v14995_v35 = vld [vmem:[#allocation2 + $0xc8] sm:$0x1] }
 0x736   : > { %19105 = vmatprep.subr.bf16.mxu0 %v20476_v9  ;;  %v25235_v14 = vsel %vm21274_vm9, %v15836_v11, %v15837_v29  ;;  %v15851_v11 = vrot.slane %v14986_v15, 5  ;;  %v15855_v29 = vrot.slane %v14988_v33, 5  ;;  %v17316_v12 = vrot.slane %v15718_v1, 9 }
 0x737   : > { %26294 = vst [vmem:[#allocation71_spill] sm:$0xff] %v25235_v14  ;;  %v17329_v61 = vcombine.low %v25241_v28, %v25245_v60  ;;  %v15850_v14 = vrot.slane %v15848_v53, 4  ;;  %v15862_v18 = vrot.slane %v14991_v48, 5  ;;  %v15865_v6 = vrot.slane %v14992_v3, 5  ;;  %v20479_v3 = vld [vmem:[#allocation9 + $0x160] sm:$0xff]  }
 0x738   : > { %v25255_v15 = vsel %vm21274_vm9, %v17315_v27, %v15855_v29  ;;  %v15857_v33 = vrot.slane %v15855_v29, 4  ;;  %v17317_v1 = vrot.slane %v15719_v13, 9  ;;  %v15869_v57 = vrot.slane %v14994_v55, 5 }
 0x739   : > { %19106 = vmatpush3.bf16.msra.mxu0 %v20476_v9  ;;  %v25251_v9 = vsel %vm21274_vm9, %v17314_v22, %v15848_v53  ;;  %v25260_v21 = vsel %vm21274_vm9, %v15850_v14, %v15851_v11  ;;  %v15864_v31 = vrot.slane %v15862_v18, 4  ;;  %v13602_v22 = vshrl.u32 %v13343_v38, 16 }
 0x73a   : > { %19107 = vmatprep.subr.bf16.mxu0 %v20477_v16  ;;  %v17330_v48 = vcombine.low %v25251_v9, %v25260_v21  ;;  %v25267_v53 = vsel %vm21274_vm9, %v15857_v33, %v15858_v56  ;;  %v15872_v55 = vrot.slane %v14995_v35, 5  ;;  %v13605_v27 = vshll.u32 %v13343_v38, 16 }
 0x73b   : > { %v17331_v14 = vcombine.low %v25255_v15, %v25267_v53  ;;  %v13611_v11 = vshll.u32 %v24813_v58, 16  ;;  %v13615_v29 = vshrl.u32 %v24813_v58, 16  ;;  %v13584_v13 = vor.u32 %v25093_v5, %v25091_v2 }
 0x73c   : > { %19076 = vmatmul.mubr.bf16.gmra.mrb[36].mxu0 %v25046_v47  ;;  %v25271_v47 = vsel %vm21274_vm9, %v17316_v12, %v15862_v18  ;;  %v13594_v56 = vor.u32 %v25107_v59, %v25095_v41  ;;  %v25289_v18 = vsel %vm21274_vm9, %v17317_v1, %v15869_v57  ;;  %v26295_v58 = vsel %vm21116_vm5, %v25068_v17, %v25052_v26 }
 0x73d   : > { %19079 = vmatprep.mubr.bf16.mxu0 %v25048_v44  ;;  %19108 = vmatpush3.bf16.msra.mxu0 %v20477_v16  ;;  %v25277_v44 = vsel %vm21274_vm9, %v15864_v31, %v15865_v6  ;;  %v15871_v16 = vrot.slane %v15869_v57, 4  ;;  %v26296_v2 = vsel %vm21116_vm5, %v25042_v7, %v25018_v19  ;;  %v13542_v59 = vsel %vm21116_vm5, %v25070_v42, %v25031_v49  ;;  %v13346_v6 = vld [vmem:[#allocation2 + $0x90] sm:$0xf]  ;;  %v20480_v42 = vld [vmem:[#allocation9 + $0x168] sm:$0xff]  }
 0x73e   : > { %19109 = vmatprep.subr.bf16.mxu0 %v20478_v37  ;;  %v17332_v12 = vcombine.low %v25271_v47, %v25277_v44  ;;  %v17197_v5 = vcombine.low %v26296_v2, %v26295_v58  ;;  %v26297_v35 = vshll.u32 %v24800_v62, 16  ;;  %v13552_v26 = vsel %vm21116_vm5, %v25083_v54, %v25072_v39 }
 0x73f   : > { %v25293_v38 = vsel %vm21274_vm9, %v15871_v16, %v15872_v55  ;;  %v26298_v19 = vor.u32 %v25076_v46, %v25074_v10  ;;  %v26299_v49 = vor.u32 %v25089_v24, %v25085_v50  ;;  %v13597_v62 = vshll.u32 %v24809_v0, 16 }
 0x740   : > { %v13575_v33 = vrot.slane %v26297_v35, 5  ;;  %v17333_v31 = vcombine.low %v25289_v18, %v25293_v38  ;;  %v13604_v1 = vrot.slane %v13602_v22, 4  ;;  %v13607_v57 = vrot.slane %v13605_v27, 5 }
 0x741   : > { %19110 = vmatpush3.bf16.msra.mxu0 %v20478_v37  ;;  %v13561_v7 = vrot.slane %v26298_v19, 4  ;;  %v13571_v17 = vrot.slane %v26299_v49, 4  ;;  %v13349_v37 = vld [vmem:[#allocation2 + $0x9c] sm:$0xf]  ;;  %v25324_v16 = vrot.slane %v13611_v11, 5  ;;  %v13617_v55 = vrot.slane %v13615_v29, 4 }
 0x742   : > { %19111 = vmatprep.subr.bf16.mxu0 %v20479_v3  ;;  %v13585_v39 = vrot.slane %v13584_v13, 4  ;;  %v13595_v54 = vrot.slane %v13594_v56, 4  ;;  %v13626_v10 = vshrl.u32 %v13346_v6, 16  ;;  %v13629_v46 = vshll.u32 %v13346_v6, 16  ;;  %v20481_v29 = vld [vmem:[#allocation9 + $0x170] sm:$0xff]  }
 0x743   : > { %v13635_v24 = vshll.u32 %v24824_v8, 16  ;;  %v13639_v0 = vshrl.u32 %v24824_v8, 16  ;;  %v13650_v58 = vshrl.u32 %v13349_v37, 16  ;;  %v13653_v2 = vshll.u32 %v13349_v37, 16  ;;  %v20482_v37 = vld [vmem:[#allocation9 + $0x178] sm:$0xff]  }
 0x744   : > { %19080 = vmatmul.mubr.bf16.gmra.mrb[40].mxu0 %v25050_v43  ;;  %v13566_v22 = vsel %vm21116_vm5, %v13561_v7, %v25085_v50  ;;  %v13599_v27 = vrot.slane %v13597_v62, 5  ;;  %v13659_v43 = vshll.u32 %v24842_v40, 16  ;;  %v13663_v11 = vshrl.u32 %v24842_v40, 16 }
 0x745   : > { %19083 = vmatprep.mubr.bf16.mxu0 %v17197_v5  ;;  %19112 = vmatpush3.bf16.msra.mxu0 %v20479_v3  ;;  %v13576_v3 = vsel %vm21116_vm5, %v13571_v17, %v13575_v33  ;;  %v13608_v13 = vor.u32 %v13607_v57, %v13604_v1  ;;  %v13618_v56 = vor.u32 %v13617_v55, %v25324_v16  ;;  %v13621_v8 = vshll.u32 %v24833_v23, 16  ;;  %v13352_v23 = vld [vmem:[#allocation2 + $0xa8] sm:$0xf] }
 0x746   : > { %19113 = vmatprep.subr.bf16.mxu0 %v20480_v42  ;;  %v13590_v5 = vsel %vm21116_vm5, %v13585_v39, %v25095_v41  ;;  %v13600_v50 = vsel %vm21116_vm5, %v13595_v54, %v13599_v27  ;;  %v13628_v35 = vrot.slane %v13626_v10, 4  ;;  %v13631_v6 = vrot.slane %v13629_v46, 5 }
 0x747   : > { %v25343_v19 = vrot.slane %v13635_v24, 5  ;;  %v13641_v40 = vrot.slane %v13639_v0, 4  ;;  %v13652_v7 = vrot.slane %v13650_v58, 4  ;;  %v13655_v49 = vrot.slane %v13653_v2, 5  ;;  %v20619_v0 = vld [vmem:[#allocation2 + $0xac] sm:$0xf] }
 0x748   : > { %v17198_v33 = vcombine.low %v13542_v59, %v13552_v26  ;;  %v25345_v17 = vrot.slane %v13659_v43, 5  ;;  %v13665_v62 = vrot.slane %v13663_v11, 4  ;;  %v17199_v1 = vcombine.low %v13566_v22, %v13576_v3  ;;  %v25349_v22 = vld [vmem:[#allocation9 + $0x180] sm:$0xff]  }
 0x749   : > { %19114 = vmatpush3.bf16.msra.mxu0 %v20480_v42  ;;  %v13609_v41 = vrot.slane %v13608_v13, 4  ;;  %v13619_v57 = vrot.slane %v13618_v56, 4  ;;  %v17200_v55 = vcombine.low %v13590_v5, %v13600_v50  ;;  %v13623_v39 = vrot.slane %v13621_v8, 5  ;;  %v13355_v42 = vld [vmem:[#allocation2 + $0xb4] sm:$0xf] }
 0x74a   : > { %19115 = vmatprep.subr.bf16.mxu0 %v20481_v29  ;;  %v13632_v54 = vor.u32 %v13631_v6, %v13628_v35  ;;  %v13642_v10 = vor.u32 %v13641_v40, %v25343_v19  ;;  %v13656_v46 = vor.u32 %v13655_v49, %v13652_v7  ;;  %v13674_v24 = vshrl.u32 %v13352_v23, 16  ;;  %v20620_v11 = vld [vmem:[#allocation2 + $0x98] sm:$0x1]  ;;  %v20621_v13 = vld [vmem:[#allocation2 + $0xa4] sm:$0x1] }
 0x74b   : > { %v13666_v59 = vor.u32 %v13665_v62, %v25345_v17  ;;  %v13677_v26 = vshll.u32 %v13352_v23, 16  ;;  %v13683_v58 = vshll.u32 %v20619_v0, 16  ;;  %v13687_v2 = vshrl.u32 %v20619_v0, 16 }
 0x74c   : > { %19084 = vmatmul.mubr.bf16.gmra.mrb[44].mxu0 %v17198_v33  ;;  %v13614_v27 = vsel %vm21116_vm5, %v13609_v41, %v25324_v16  ;;  %v13624_v43 = vsel %vm21116_vm5, %v13619_v57, %v13623_v39  ;;  %v13645_v3 = vshll.u32 %v20620_v11, 16  ;;  %v13698_v56 = vshrl.u32 %v13355_v42, 16 }
 0x74d   : > { %19087 = vmatprep.mubr.bf16.mxu0 %v17199_v1  ;;  %19116 = vmatpush3.bf16.msra.mxu0 %v20481_v29  ;;  %v13669_v29 = vshll.u32 %v20621_v13, 16  ;;  %v13701_v8 = vshll.u32 %v13355_v42, 16  ;;  %v13707_v5 = vshll.u32 %v24874_v51, 16  ;;  %v13711_v50 = vshrl.u32 %v24874_v51, 16  ;;  %v13358_v51 = vld [vmem:[#allocation2 + $0xc0] sm:$0xf] }
 0x74e   : > { %19117 = vmatprep.subr.bf16.mxu0 %v20482_v37  ;;  %v13633_v35 = vrot.slane %v13632_v54, 4  ;;  %v13643_v6 = vrot.slane %v13642_v10, 4  ;;  %v13657_v40 = vrot.slane %v13656_v46, 4  ;;  %v13676_v7 = vrot.slane %v13674_v24, 4 }
 0x74f   : > { %v13667_v49 = vrot.slane %v13666_v59, 4  ;;  %v13679_v16 = vrot.slane %v13677_v26, 5  ;;  %v13685_v33 = vrot.slane %v13683_v58, 5  ;;  %v13689_v62 = vrot.slane %v13687_v2, 4  ;;  %v20622_v58 = vld [vmem:[#allocation2 + $0xc4] sm:$0xf] }
 0x750   : > { %v17201_v23 = vcombine.low %v13614_v27, %v13624_v43  ;;  %v13647_v1 = vrot.slane %v13645_v3, 5  ;;  %v13671_v41 = vrot.slane %v13669_v29, 5  ;;  %v13700_v57 = vrot.slane %v13698_v56, 4  ;;  %v20623_v3 = vld [vmem:[#allocation2 + $0xb0] sm:$0x1] }
 0x751   : > { %19118 = vmatpush3.bf16.msra.mxu0 %v20482_v37  ;;  %v13703_v39 = vrot.slane %v13701_v8, 5  ;;  %v13709_v42 = vrot.slane %v13707_v5, 5  ;;  %v13713_v0 = vrot.slane %v13711_v50, 4  ;;  %v13638_v37 = vsel %vm21116_vm5, %v13633_v35, %v25343_v19  ;;  %v20624_v5 = vld [vmem:[#allocation2 + $0xbc] sm:$0x1] }
 0x752   : > { %19151 = vmatprep.subr.bf16.mxu0 %v25349_v22  ;;  %v13648_v54 = vsel %vm21116_vm5, %v13643_v6, %v13647_v1  ;;  %v13662_v10 = vsel %vm21116_vm5, %v13657_v40, %v25345_v17  ;;  %v13680_v46 = vor.u32 %v13679_v16, %v13676_v7  ;;  %v13690_v24 = vor.u32 %v13689_v62, %v13685_v33 }
 0x753   : > { %v13722_v59 = vshrl.u32 %v13358_v51, 16  ;;  %v13725_v26 = vshll.u32 %v13358_v51, 16  ;;  %v13731_v2 = vshll.u32 %v20622_v58, 16  ;;  %v13735_v27 = vshrl.u32 %v20622_v58, 16  ;;  %v20625_v51 = vld [vmem:[#allocation2 + $0x10] sm:$0xf] }
 0x754   : > { %19088 = vmatmul.mubr.bf16.gmra.mrb[48].mxu0 %v17200_v55  ;;  %v13672_v55 = vsel %vm21116_vm5, %v13667_v49, %v13671_v41  ;;  %v13704_v43 = vor.u32 %v13703_v39, %v13700_v57  ;;  %v13714_v11 = vor.u32 %v13713_v0, %v13709_v42  ;;  %v17202_v19 = vcombine.low %v13638_v37, %v13648_v54  ;;  %v20626_v54 = vld [vmem:[#allocation2 + $0xc8] sm:$0x1] }
 0x755   : > { %19091 = vmatprep.mubr.bf16.mxu0 %v17201_v23  ;;  %v13693_v13 = vshll.u32 %v20623_v3, 16  ;;  %v17203_v29 = vcombine.low %v13662_v10, %v13672_v55  ;;  %v13681_v56 = vrot.slane %v13680_v46, 4  ;;  %v13691_v8 = vrot.slane %v13690_v24, 4 }
 0x756   : > { %v13717_v17 = vshll.u32 %v20624_v5, 16  ;;  %v13724_v50 = vrot.slane %v13722_v59, 4  ;;  %v13727_v35 = vrot.slane %v13725_v26, 5  ;;  %v13733_v6 = vrot.slane %v13731_v2, 5 }
 0x757   : > { %v13737_v40 = vrot.slane %v13735_v27, 4  ;;  %v13705_v7 = vrot.slane %v13704_v43, 4  ;;  %v13715_v49 = vrot.slane %v13714_v11, 4  ;;  %v13695_v16 = vrot.slane %v13693_v13, 5  ;;  %v20627_v11 = vld [vmem:[#allocation2 + $0x1c] sm:$0xf] }
 0x758   : > { %v13719_v62 = vrot.slane %v13717_v17, 5  ;;  %v13686_v23 = vsel %vm21116_vm5, %v13681_v56, %v13685_v33  ;;  %v13728_v41 = vor.u32 %v13727_v35, %v13724_v50  ;;  %v14133_v37 = vrot.slane %v20625_v51, 5  ;;  %v14067_v33 = vld [vmem:[#allocation2 + $0xc] sm:$0xe]  ;;  %v14068_v56 = vld [vmem:[#allocation2 + $0x18] sm:$0xe] }
 0x759   : > { %v13696_v1 = vsel %vm21116_vm5, %v13691_v8, %v13695_v16  ;;  %v13738_v57 = vor.u32 %v13737_v40, %v13733_v6  ;;  %v13710_v39 = vsel %vm21116_vm5, %v13705_v7, %v13709_v42  ;;  %v13741_v10 = vshll.u32 %v20626_v54, 16  ;;  %v20484_v40 = vld [vmem:[#allocation9 + $0x188] sm:$0xff]   ;;  %v26310_v51 = vld [vmem:[#allocation31_spill] sm:$0xff]  ;;  %v20490_v54 = vld [vmem:[#allocation9 + $0x1b8] sm:$0xff]  }
 0x75a   : > { %v13720_v0 = vsel %vm21116_vm5, %v13715_v49, %v13719_v62  ;;  %v17204_v55 = vcombine.low %v13686_v23, %v13696_v1  ;;  %v13729_v24 = vrot.slane %v13728_v41, 4  ;;  %v14135_v26 = vrot.slane %v14133_v37, 4  ;;  %v20485_v49 = vld [vmem:[#allocation9 + $0x190] sm:$0xff]   ;;  %v26301_v16 = vld [vmem:[#allocation54_spill] sm:$0xff] }
 0x75b   : > { %v17205_v46 = vcombine.low %v13710_v39, %v13720_v0  ;;  %v13739_v59 = vrot.slane %v13738_v57, 4  ;;  %v13743_v58 = vrot.slane %v13741_v10, 5  ;;  %v17215_v2 = vrot.slane %v14067_v33, 9  ;;  %v26303_v23 = vld [vmem:[#allocation27_spill] sm:$0xff]  ;;  %v26304_v1 = vld [vmem:[#allocation30_spill] sm:$0xff]  ;;  %v20487_v57 = vld [vmem:[#allocation9 + $0x1a0] sm:$0xff]  }
 0x75c   : > { %19092 = vmatmul.mubr.bf16.gmra.mrb[52].mxu0 %v17202_v19  ;;  %v14136_v27 = vrot.slane %v24945_v45, 5  ;;  %v13734_v42 = vsel %vm21116_vm5, %v13729_v24, %v13733_v6  ;;  %v14140_v19 = vrot.slane %v20627_v11, 5  ;;  %v17216_v45 = vrot.slane %v14068_v56, 9  ;;  %v26309_v0 = vld [vmem:[#allocation33_spill] sm:$0xff]  ;;  %v26315_v24 = vld [vmem:[#allocation35_spill] sm:$0xff] }
 0x75d   : > { %19095 = vmatprep.mubr.bf16.mxu0 %v17203_v29  ;;  %v13744_v43 = vsel %vm21116_vm5, %v13739_v59, %v13743_v58  ;;  %v14134_v29 = vsel %vm21274_vm9, %v17215_v2, %v14133_v37  ;;  %v14143_v17 = vrot.slane %v24948_v63, 5  ;;  %v26300_v7 = vcombine.low %v24735_v52, %v24746_v36  ;;  %v20486_v63 = vld [vmem:[#allocation9 + $0x198] sm:$0xff]   ;;  %v20488_v52 = vld [vmem:[#allocation9 + $0x1a8] sm:$0xff]   ;;  %v26312_v10 = vld [vmem:[#allocation37_spill] sm:$0xff] }
 0x75e   : > { %v14137_v3 = vsel %vm21274_vm9, %v14135_v26, %v14136_v27  ;;  %v17206_v13 = vcombine.low %v13734_v42, %v13744_v43  ;;  %v14142_v5 = vrot.slane %v14140_v19, 4  ;;  %v14141_v35 = vsel %vm21274_vm9, %v17216_v45, %v14140_v19  ;;  %v26306_v36 = vld [vmem:[#allocation32_spill] sm:$0xff]  ;;  %v20493_v26 = vld [vmem:[#allocation9 + $0x1c0] sm:$0xff]   ;;  %v26318_v58 = vld [vmem:[#allocation39_spill] sm:$0xff] }
 0x75f   : > { %v17231_v8 = vcombine.low %v14134_v29, %v14137_v3  ;;  %v26302_v62 = vcombine.low %v24750_v32, %v26301_v16  ;;  %v26305_v41 = vcombine.low %v26303_v23, %v26304_v1  ;;  %v26311_v37 = vcombine.low %v26309_v0, %v26310_v51  ;;  %v20489_v32 = vld [vmem:[#allocation9 + $0x1b0] sm:$0xff]   ;;  %v26316_v59 = vld [vmem:[#allocation36_spill] sm:$0xff]  ;;  %v26319_v2 = vld [vmem:[#allocation38_spill] sm:$0xff] }
 0x760   : > { %v14144_v50 = vsel %vm21274_vm9, %v14142_v5, %v14143_v17  ;;  %v26317_v33 = vcombine.low %v26315_v24, %v26316_v59  ;;  %v26320_v27 = vcombine.low %v26318_v58, %v26319_v2  ;;  %v26321_v42 = vld [vmem:[#allocation44_spill] sm:$0xff]  ;;  %v26324_v19 = vld [vmem:[#allocation43_spill] sm:$0xff]  ;;  %v26325_v3 = vld [vmem:[#allocation41_spill] sm:$0xff] }
 0x761   : > { %v17232_v6 = vcombine.low %v14141_v35, %v14144_v50  ;;  %v26322_v43 = vld [vmem:[#allocation40_spill] sm:$0xff]  ;;  %v26327_v29 = vld [vmem:[#allocation18_spill] sm:$0xff]  ;;  %v26328_v56 = vld [vmem:[#allocation47_spill] sm:$0xff] }
 0x762   : > { %v26323_v11 = vcombine.low %v26321_v42, %v26322_v43  ;;  %v26330_v5 = vld [vmem:[#allocation46_spill] sm:$0xff]  ;;  %v26331_v45 = vld [vmem:[#allocation45_spill] sm:$0xff]  ;;  %v26333_v50 = vld [vmem:[#allocation20_spill] sm:$0xff] }
 0x763   : > { %v26332_v17 = vcombine.low %v26330_v5, %v26331_v45  ;;  %v26334_v35 = vld [vmem:[#allocation48_spill] sm:$0xff]  ;;  %v20492_v16 = vld [vmem:[#allocation2 + $0x24] sm:$0xff]  }
 0x764   : > { %19096 = vmatmul.mubr.bf16.gmra.mrb[56].mxu0 %v17204_v55  ;;  %v26313_v55 = vld [vmem:[#allocation26_spill] sm:$0xff]  ;;  %v20494_v23 = vld [vmem:[#allocation2 + $0x30] sm:$0xff]   ;;  %v20499_v1 = vld [vmem:[#allocation9 + $0x1d0] sm:$0xff]  }
 0x765   : > { %19099 = vmatprep.mubr.bf16.mxu0 %v17205_v46  ;;  %v26314_v46 = vcombine.low %v26312_v10, %v26313_v55  ;;  %v20500_v0 = vld [vmem:[#allocation2 + $0x60] sm:$0xff]   ;;  %v20511_v51 = vld [vmem:[#allocation9 + $0x1f0] sm:$0xff]   ;;  %v14951_v10 = vld [vmem:[#allocation2 + $0x18] sm:$0xf] }
 0x766   : > { %v25434_v55 = vld [vmem:[#allocation9 + $0x200] sm:$0xff]   ;;  %v15003_v24 = vshll.u32 %v14951_v10, 16  ;;  %v26339_v59 = vld [vmem:[#allocation23_spill] sm:$0xff]  ;;  %v20506_v2 = vld [vmem:[#allocation2 + $0x90] sm:$0xff]  }
 0x767   : > { %v20504_v58 = vld [vmem:[#allocation2 + $0x84] sm:$0xff]  }
 0x768   : > { %v15005_v43 = vrot.slane %v15003_v24, 5 }
 0x76c   : > { %19100 = vmatmul.mubr.bf16.gmra.mrb[60].mxu0 %v17206_v13  ;;  %v26326_v13 = vcombine.low %v26324_v19, %v26325_v3 }
 0x76d   : > { %19119 = vmatprep.mubr.bf16.mxu0 %v17231_v8  ;;  %v26329_v8 = vcombine.low %v26327_v29, %v26328_v56  ;;  %v26340_v29 = vld [vmem:[#allocation56_spill] sm:$0xff] }
 0x76e   : > { %v15033_v56 = vshll.u32 %v26340_v29, 16 }
 0x774   : > { %19120 = vmatmul.mubr.bf16.vlgmr.msra.gmra.mrb[32].mxu0 %v17232_v6  ;;  %v26335_v6 = vcombine.low %v26333_v50, %v26334_v35  ;;  %v20507_v50 = vld [vmem:[#allocation2 + $0x9c] sm:$0xff]  }
 0x775   : > { %19123 = vmatprep.mubr.bf16.mxu0 %v26300_v7  ;;  %19152 = vmatpush3.bf16.msra.mxu0 %v25349_v22  ;;  %v26307_v22 = vld [vmem:[#allocation24_spill] sm:$0xff]  ;;  %v26336_v7 = vld [vmem:[#allocation55_spill] sm:$0xff] }
 0x776   : > { %19153 = vmatprep.subr.bf16.mxu0 %v20484_v40  ;;  %v26308_v39 = vcombine.low %v26306_v36, %v26307_v22  ;;  %v20505_v36 = vld [vmem:[#allocation9 + $0x1e0] sm:$0xff]  }
 0x777   : > { %v20498_v22 = vld [vmem:[#allocation2 + $0x54] sm:$0xff]  }
 0x779   : > { %19154 = vmatpush3.bf16.msra.mxu0 %v20484_v40  ;;  %v20491_v40 = vld [vmem:[#allocation2 + $0x18] sm:$0xff]  }
 0x77a   : > { %19155 = vmatprep.subr.bf16.mxu0 %v20485_v49 }
 0x77c   : > { %19124 = vmatmul.mubr.bf16.gmra.mrb[36].mxu0 %v26302_v62  ;;  %v20496_v62 = vld [vmem:[#allocation9 + $0x1c8] sm:$0xff]  }
 0x77d   : > { %19127 = vmatprep.mubr.bf16.mxu0 %v26305_v41  ;;  %19156 = vmatpush3.bf16.msra.mxu0 %v20485_v49  ;;  %v26337_v49 = vld [vmem:[#allocation50_spill] sm:$0xff] }
 0x77e   : > { %19157 = vmatprep.subr.bf16.mxu0 %v20486_v63  ;;  %v20495_v41 = vld [vmem:[#allocation2 + $0x3c] sm:$0xff]  }
 0x781   : > { %19158 = vmatpush3.bf16.msra.mxu0 %v20486_v63  ;;  %v26338_v63 = vcombine.low %v26336_v7, %v26337_v49  ;;  %v26341_v7 = vld [vmem:[#allocation49_spill] sm:$0xff] }
 0x782   : > { %19159 = vmatprep.subr.bf16.mxu0 %v20487_v57  ;;  %v15019_v49 = vshll.u32 %v26341_v7, 16 }
 0x784   : > { %19128 = vmatmul.mubr.bf16.gmra.mrb[40].mxu0 %v26308_v39  ;;  %v20508_v39 = vld [vmem:[#allocation9 + $0x1e8] sm:$0xff]  }
 0x785   : > { %19131 = vmatprep.mubr.bf16.mxu0 %v26311_v37  ;;  %19160 = vmatpush3.bf16.msra.mxu0 %v20487_v57  ;;  %v20502_v57 = vld [vmem:[#allocation9 + $0x1d8] sm:$0xff]  }
 0x786   : > { %19161 = vmatprep.subr.bf16.mxu0 %v20488_v52  ;;  %v20501_v37 = vld [vmem:[#allocation2 + $0x6c] sm:$0xff]  }
 0x789   : > { %19162 = vmatpush3.bf16.msra.mxu0 %v20488_v52  ;;  %v20497_v52 = vld [vmem:[#allocation2 + $0x48] sm:$0xff]  }
 0x78a   : > { %19163 = vmatprep.subr.bf16.mxu0 %v20489_v32 }
 0x78c   : > { %19132 = vmatmul.mubr.bf16.gmra.mrb[44].mxu0 %v26314_v46  ;;  %v15000_v46 = vshrl.u32 %v14951_v10, 16 }
 0x78d   : > { %19135 = vmatprep.mubr.bf16.mxu0 %v26317_v33  ;;  %19164 = vmatpush3.bf16.msra.mxu0 %v20489_v32  ;;  %v20514_v32 = vld [vmem:[#allocation9 + $0x1f8] sm:$0xff]   ;;  %v15009_v33 = vshll.u32 %v26339_v59, 16 }
 0x78e   : > { %19165 = vmatprep.subr.bf16.mxu0 %v20490_v54  ;;  %v15002_v42 = vrot.slane %v15000_v46, 4 }
 0x790   : > { %v15006_v5 = vor.u32 %v15005_v43, %v15002_v42  ;;  %v20510_v43 = vld [vmem:[#allocation2 + $0xb4] sm:$0xff]  }
 0x791   : > { %19166 = vmatpush3.bf16.msra.mxu0 %v20490_v54  ;;  %v20503_v54 = vld [vmem:[#allocation2 + $0x78] sm:$0xff]  }
 0x792   : > { %19199 = vmatprep.subr.bf16.mxu0 %v20493_v26 }
 0x794   : > { %19136 = vmatmul.mubr.bf16.gmra.mrb[48].mxu0 %v26320_v27  ;;  %v14954_v27 = vld [vmem:[#allocation2 + $0x24] sm:$0xf] }
 0x795   : > { %19139 = vmatprep.mubr.bf16.mxu0 %v26323_v11  ;;  %v15011_v11 = vrot.slane %v15009_v33, 5  ;;  %v15024_v3 = vshrl.u32 %v14954_v27, 16 }
 0x797   : > { %v15026_v35 = vrot.slane %v15024_v3, 4 }
 0x79c   : > { %19140 = vmatmul.mubr.bf16.gmra.mrb[52].mxu0 %v26326_v13  ;;  %v15027_v13 = vshll.u32 %v14954_v27, 16 }
 0x79d   : > { %19143 = vmatprep.mubr.bf16.mxu0 %v26329_v8  ;;  %v15037_v8 = vshrl.u32 %v26340_v29, 16  ;;  %v26345_v29 = vld [vmem:[#allocation58_spill] sm:$0xff] }
 0x7a4   : > { %19144 = vmatmul.mubr.bf16.gmra.mrb[56].mxu0 %v26332_v17  ;;  %v14957_v17 = vld [vmem:[#allocation2 + $0x30] sm:$0xf] }
 0x7a5   : > { %19147 = vmatprep.mubr.bf16.mxu0 %v26335_v6  ;;  %v15029_v6 = vrot.slane %v15027_v13, 5 }
 0x7ac   : > { %19148 = vmatmul.mubr.bf16.gmra.mrb[60].mxu0 %v26338_v63  ;;  %v25442_v63 = vrot.slane %v15033_v56, 5  ;;  %v15081_v56 = vshll.u32 %v26345_v29, 16 }
 0x7ad   : > { %19167 = vmatprep.mubr.bf16.mxu0 %v20491_v40  ;;  %v20509_v40 = vld [vmem:[#allocation2 + $0xa8] sm:$0xff]  }
 0x7b4   : > { %19168 = vmatmul.mubr.bf16.vlgmr.msra.gmra.mrb[32].mxu0 %v20492_v16  ;;  %v15039_v16 = vrot.slane %v15037_v8, 4 }
 0x7b5   : > { %19171 = vmatprep.mubr.bf16.mxu0 %v20494_v23  ;;  %19200 = vmatpush3.bf16.msra.mxu0 %v20493_v26  ;;  %v15013_v26 = vshrl.u32 %v26339_v59, 16  ;;  %v26344_v59 = vld [vmem:[#allocation57_spill] sm:$0xff] }
 0x7b6   : > { %19201 = vmatprep.subr.bf16.mxu0 %v20496_v62  ;;  %v15067_v33 = vshll.u32 %v26344_v59, 16 }
 0x7b7   : > { %v15015_v19 = vrot.slane %v15013_v26, 4  ;;  %v14963_v26 = vld [vmem:[#allocation2 + $0x48] sm:$0xf] }
 0x7b8   : > { %v25460_v7 = vrot.slane %v15067_v33, 5 }
 0x7b9   : > { %19202 = vmatpush3.bf16.msra.mxu0 %v20496_v62  ;;  %v15016_v45 = vor.u32 %v15015_v19, %v15011_v11  ;;  %v26342_v62 = vld [vmem:[#allocation19_spill] sm:$0xff]  ;;  %v20512_v19 = vld [vmem:[#allocation2 + $0xc0] sm:$0xff]  }
 0x7ba   : > { %19203 = vmatprep.subr.bf16.mxu0 %v20499_v1  ;;  %v15043_v23 = vshll.u32 %v26342_v62, 16  ;;  %v25465_v62 = vld [vmem:[#allocation2 + $0xd4] sm:$0x1] }
 0x7bc   : > { %19172 = vmatmul.mubr.bf16.gmra.mrb[36].mxu0 %v20495_v41  ;;  %v15048_v41 = vshrl.u32 %v14957_v17, 16 }
 0x7bd   : > { %19175 = vmatprep.mubr.bf16.mxu0 %v20497_v52  ;;  %19204 = vmatpush3.bf16.msra.mxu0 %v20499_v1  ;;  %v15007_v1 = vrot.slane %v15006_v5, 4  ;;  %v15017_v52 = vrot.slane %v15016_v45, 4  ;;  %v15096_v5 = vshrl.u32 %v14963_v26, 16  ;;  %v15099_v45 = vshll.u32 %v14963_v26, 16 }
 0x7be   : > { %19205 = vmatprep.subr.bf16.mxu0 %v20502_v57  ;;  %v15050_v46 = vrot.slane %v15048_v41, 4  ;;  %v15720_v41 = vld [vmem:[#allocation2 + $0xcc] sm:$0xe] }
 0x7bf   : > { %v15012_v10 = vsel %vm21116_vm5, %v15007_v1, %v15011_v11  ;;  %v15085_v11 = vshrl.u32 %v26345_v29, 16 }
 0x7c1   : > { %19206 = vmatpush3.bf16.msra.mxu0 %v20502_v57  ;;  %v15051_v57 = vshll.u32 %v14957_v17, 16  ;;  %v26346_v17 = vld [vmem:[#allocation22_spill] sm:$0xff] }
 0x7c2   : > { %19207 = vmatprep.subr.bf16.mxu0 %v20505_v36 }
 0x7c3   : > { %v15053_v24 = vrot.slane %v15051_v57, 5 }
 0x7c4   : > { %19176 = vmatmul.mubr.bf16.gmra.mrb[40].mxu0 %v20498_v22 }
 0x7c5   : > { %19179 = vmatprep.mubr.bf16.mxu0 %v20500_v0  ;;  %19208 = vmatpush3.bf16.msra.mxu0 %v20505_v36  ;;  %v26343_v36 = vld [vmem:[#allocation52_spill] sm:$0xff]  ;;  %v15030_v0 = vor.u32 %v15029_v6, %v15026_v35 }
 0x7c6   : > { %19209 = vmatprep.subr.bf16.mxu0 %v20508_v39  ;;  %v15057_v22 = vshll.u32 %v26343_v36, 16  ;;  %v14966_v35 = vld [vmem:[#allocation2 + $0x54] sm:$0xf] }
 0x7c7   : > { %v15031_v3 = vrot.slane %v15030_v0, 4  ;;  %v17318_v0 = vrot.slane %v15720_v41, 9  ;;  %v15120_v59 = vshrl.u32 %v14966_v35, 16  ;;  %v15123_v33 = vshll.u32 %v14966_v35, 16 }
 0x7c9   : > { %19210 = vmatpush3.bf16.msra.mxu0 %v20508_v39  ;;  %v15061_v39 = vshrl.u32 %v26343_v36, 16  ;;  %v15122_v41 = vrot.slane %v15120_v59, 4 }
 0x7ca   : > { %19211 = vmatprep.subr.bf16.mxu0 %v20511_v51 }
 0x7cb   : > { %v15063_v27 = vrot.slane %v15061_v39, 4  ;;  %v15087_v39 = vrot.slane %v15085_v11, 4  ;;  %v14969_v11 = vld [vmem:[#allocation2 + $0x60] sm:$0xf] }
 0x7cc   : > { %19180 = vmatmul.mubr.bf16.gmra.mrb[44].mxu0 %v20501_v37  ;;  %v15021_v37 = vrot.slane %v15019_v49, 5  ;;  %v15109_v49 = vshrl.u32 %v26346_v17, 16 }
 0x7cd   : > { %19183 = vmatprep.mubr.bf16.mxu0 %v20503_v54  ;;  %19212 = vmatpush3.bf16.msra.mxu0 %v20511_v51  ;;  %v14960_v51 = vld [vmem:[#allocation2 + $0x3c] sm:$0xf]  ;;  %v25448_v54 = vrot.slane %v15043_v23, 5 }
 0x7ce   : > { %19213 = vmatprep.subr.bf16.mxu0 %v20514_v32  ;;  %v15072_v42 = vshrl.u32 %v14960_v51, 16  ;;  %v15075_v13 = vshll.u32 %v14960_v51, 16  ;;  %v15098_v51 = vrot.slane %v15096_v5, 4 }
 0x7d0   : > { %v15074_v1 = vrot.slane %v15072_v42, 4  ;;  %v15077_v36 = vrot.slane %v15075_v13, 5 }
 0x7d1   : > { %19214 = vmatpush3.bf16.msra.mxu0 %v20514_v32  ;;  %v15040_v32 = vor.u32 %v15039_v16, %v25442_v63  ;;  %v25463_v16 = vld [vmem:[#allocation2 + $0xd0] sm:$0xf] }
 0x7d2   : > { %19247 = vmatprep.subr.bf16.mxu0 %v25434_v55  ;;  %v15876_v57 = vrot.slane %v25463_v16, 5 }
 0x7d3   : > { %v15041_v8 = vrot.slane %v15040_v32, 4 }
 0x7d4   : > { %19184 = vmatmul.mubr.bf16.gmra.mrb[48].mxu0 %v20504_v58  ;;  %v15022_v58 = vsel %vm21116_vm5, %v15017_v52, %v15021_v37  ;;  %v15879_v52 = vrot.slane %v25465_v62, 5  ;;  %v15101_v37 = vrot.slane %v15099_v45, 5  ;;  %v25476_v26 = vsel %vm21274_vm9, %v17318_v0, %v15876_v57 }
 0x7d5   : > { %19187 = vmatprep.mubr.bf16.mxu0 %v20506_v2  ;;  %v25455_v2 = vrot.slane %v15057_v22, 5  ;;  %v17279_v6 = vcombine.low %v15012_v10, %v15022_v58  ;;  %v25470_v22 = vrot.slane %v15081_v56, 5  ;;  %v15878_v10 = vrot.slane %v15876_v57, 4 }
 0x7d6   : > { %v15036_v58 = vsel %vm21116_vm5, %v15031_v3, %v25442_v63  ;;  %v15046_v13 = vsel %vm21116_vm5, %v15041_v8, %v25448_v54  ;;  %v15078_v45 = vor.u32 %v15077_v36, %v15074_v1  ;;  %v26348_v3 = vld [vmem:[#allocation25_spill] sm:$0xff]  ;;  %v15102_v30 = vor.u32 %v15101_v37, %v15098_v51  ;;  %v26350_v36 = vld [vmem:[#allocation42_spill] sm:$0xff]  ;;  %v14972_v51 = vld [vmem:[#allocation2 + $0x6c] sm:$0xf] }
 0x7d7   : > { %v15064_v23 = vor.u32 %v15063_v27, %v25455_v2  ;;  %v26347_v27 = vld [vmem:[#allocation29_spill] sm:$0xff]  ;;  %v15088_v63 = vor.u32 %v15087_v39, %v25470_v22  ;;  %v15125_v57 = vrot.slane %v15123_v33, 5  ;;  %v15153_v39 = vshll.u32 %v26350_v36, 16 }
 0x7d8   : > { %v15129_v42 = vshll.u32 %v26347_v27, 16  ;;  %v15157_v0 = vshrl.u32 %v26350_v36, 16 }
 0x7d9   : > { %v15065_v56 = vrot.slane %v15064_v23, 4  ;;  %v15147_v23 = vshll.u32 %v14969_v11, 16 }
 0x7da   : > { %v25496_v54 = vrot.slane %v15129_v42, 5 }
 0x7db   : > { %v15070_v37 = vsel %vm21116_vm5, %v15065_v56, %v25460_v7 }
 0x7dc   : > { %19188 = vmatmul.mubr.bf16.gmra.mrb[52].mxu0 %v20507_v50  ;;  %v15105_v50 = vshll.u32 %v26346_v17, 16  ;;  %v15091_v17 = vshll.u32 %v26348_v3, 16  ;;  %v15171_v3 = vshll.u32 %v14972_v51, 16 }
 0x7dd   : > { %19191 = vmatprep.mubr.bf16.mxu0 %v20509_v40  ;;  %v15054_v40 = vor.u32 %v15053_v24, %v15050_v46  ;;  %v20513_v46 = vld [vmem:[#allocation2 + $0xcc] sm:$0xff]   ;;  %v15111_v24 = vrot.slane %v15109_v49, 4 }
 0x7de   : > { %v25472_v32 = vrot.slane %v15105_v50, 5  ;;  %v26349_v50 = vld [vmem:[#allocation51_spill] sm:$0xff] }
 0x7df   : > { %v15055_v29 = vrot.slane %v15054_v40, 4  ;;  %v15115_v35 = vshll.u32 %v26349_v50, 16  ;;  %v15144_v40 = vshrl.u32 %v14969_v11, 16  ;;  %v15159_v11 = vrot.slane %v15157_v0, 4 }
 0x7e0   : > { %v15112_v49 = vor.u32 %v15111_v24, %v25472_v32  ;;  %v15103_v24 = vrot.slane %v15102_v30, 4  ;;  %v15177_v50 = vshll.u32 %v25157_v4, 16 }
 0x7e1   : > { %v15060_v1 = vsel %vm21116_vm5, %v15055_v29, %v25455_v2  ;;  %v15117_v33 = vrot.slane %v15115_v35, 5  ;;  %v15146_v42 = vrot.slane %v15144_v40, 4  ;;  %v15149_v2 = vrot.slane %v15147_v23, 5 }
 0x7e2   : > { %v15113_v59 = vrot.slane %v15112_v49, 4  ;;  %v25507_v29 = vrot.slane %v15153_v39, 5  ;;  %v17281_v7 = vcombine.low %v15060_v1, %v15070_v37  ;;  %v15108_v35 = vsel %vm21116_vm5, %v15103_v24, %v25472_v32  ;;  %v20630_v37 = vld [vmem:[#allocation2 + $0x7c] sm:$0xf] }
 0x7e3   : > { %v15173_v1 = vrot.slane %v15171_v3, 5  ;;  %v25527_v36 = vrot.slane %v15177_v50, 5  ;;  %v14981_v50 = vld [vmem:[#allocation2 + $0x90] sm:$0xf] }
 0x7e4   : > { %19192 = vmatmul.mubr.bf16.gmra.mrb[56].mxu0 %v20510_v43  ;;  %v15133_v43 = vshrl.u32 %v26347_v27, 16  ;;  %v15118_v30 = vsel %vm21116_vm5, %v15113_v59, %v15117_v33  ;;  %v15160_v32 = vor.u32 %v15159_v11, %v25507_v29  ;;  %v20518_v11 = vld [vmem:[#allocation9 + $0x218] sm:$0xff]  }
 0x7e5   : > { %19195 = vmatprep.mubr.bf16.mxu0 %v20512_v19  ;;  %v25485_v19 = vsel %vm21274_vm9, %v15878_v10, %v15879_v52  ;;  %v17280_v52 = vcombine.low %v15036_v58, %v15046_v13  ;;  %v15089_v10 = vrot.slane %v15088_v63, 4  ;;  %v15126_v58 = vor.u32 %v15125_v57, %v15122_v41  ;;  %v20516_v13 = vld [vmem:[#allocation9 + $0x208] sm:$0xff]   ;;  %v20628_v41 = vld [vmem:[#allocation2 + $0x5c] sm:$0x1] }
 0x7e6   : > { %v17334_v5 = vcombine.low %v25476_v26, %v25485_v19  ;;  %v15135_v8 = vrot.slane %v15133_v43, 4  ;;  %v15168_v43 = vshrl.u32 %v14972_v51, 16  ;;  %v15181_v63 = vshrl.u32 %v25157_v4, 16  ;;  %v20629_v4 = vld [vmem:[#allocation2 + $0x68] sm:$0x1] }
 0x7e7   : > { %v25521_v49 = vrot.slane %v15126_v58, 4  ;;  %v15139_v57 = vshll.u32 %v20628_v41, 16  ;;  %v15163_v40 = vshll.u32 %v20629_v4, 16  ;;  %v17283_v24 = vcombine.low %v15108_v35, %v15118_v30  ;;  %v20632_v41 = vld [vmem:[#allocation2 + $0x74] sm:$0x1] }
 0x7e8   : > { %v15136_v27 = vor.u32 %v15135_v8, %v25496_v54  ;;  %v15150_v8 = vor.u32 %v15149_v2, %v15146_v42  ;;  %v15170_v23 = vrot.slane %v15168_v43, 4  ;;  %v15183_v0 = vrot.slane %v15181_v63, 4 }
 0x7e9   : > { %v15132_v59 = vsel %vm21116_vm5, %v25521_v49, %v25496_v54  ;;  %v15165_v58 = vrot.slane %v15163_v40, 5  ;;  %v15161_v2 = vrot.slane %v15160_v32, 4  ;;  %v20633_v32 = vld [vmem:[#allocation2 + $0x94] sm:$0xf] }
 0x7ea   : > { %v15151_v33 = vrot.slane %v15150_v8, 4  ;;  %v15174_v43 = vor.u32 %v15173_v1, %v15170_v23  ;;  %v15243_v8 = vshll.u32 %v14981_v50, 16  ;;  %v20519_v23 = vld [vmem:[#allocation9 + $0x220] sm:$0xff]   ;;  %v15249_v1 = vshll.u32 %v20633_v32, 16 }
 0x7eb   : > { %v15166_v4 = vsel %vm21116_vm5, %v15161_v2, %v15165_v58 }
 0x7ec   : > { %19196 = vmatmul.mubr.bf16.gmra.mrb[60].mxu0 %v20513_v46  ;;  %v15093_v46 = vrot.slane %v15091_v17, 5  ;;  %v14975_v17 = vld [vmem:[#allocation2 + $0x78] sm:$0xf]  ;;  %v15156_v49 = vsel %vm21116_vm5, %v15151_v33, %v25507_v29  ;;  %v15175_v40 = vrot.slane %v15174_v43, 4  ;;  %v15245_v58 = vrot.slane %v15243_v8, 5 }
 0x7ed   : > { %19215 = vmatprep.mubr.bf16.mxu0 %v17279_v6  ;;  %v15079_v6 = vrot.slane %v15078_v45, 4  ;;  %v15192_v39 = vshrl.u32 %v14975_v17, 16  ;;  %v15195_v51 = vshll.u32 %v14975_v17, 16  ;;  %v20631_v17 = vld [vmem:[#allocation2 + $0x88] sm:$0xf]  ;;  %v17285_v2 = vcombine.low %v15156_v49, %v15166_v4 }
 0x7ee   : > { %v15094_v45 = vsel %vm21116_vm5, %v15089_v10, %v15093_v46  ;;  %v15205_v10 = vshrl.u32 %v20630_v37, 16  ;;  %v15141_v46 = vrot.slane %v15139_v57, 5  ;;  %v15225_v35 = vshll.u32 %v20631_v17, 16 }
 0x7ef   : > { %v15084_v56 = vsel %vm21116_vm5, %v15079_v6, %v25470_v22  ;;  %v25524_v22 = vrot.slane %v15136_v27, 4  ;;  %v15201_v6 = vshll.u32 %v20630_v37, 16  ;;  %v14978_v27 = vld [vmem:[#allocation2 + $0x84] sm:$0xf]  ;;  %v15194_v3 = vrot.slane %v15192_v39, 4 }
 0x7f0   : > { %v15216_v54 = vshrl.u32 %v14978_v27, 16  ;;  %v15219_v63 = vshll.u32 %v14978_v27, 16  ;;  %v15229_v30 = vshrl.u32 %v20631_v17, 16  ;;  %v15187_v57 = vshll.u32 %v20632_v41, 16 }
 0x7f1   : > { %v15142_v42 = vsel %vm21116_vm5, %v25524_v22, %v15141_v46  ;;  %v15240_v22 = vshrl.u32 %v14981_v50, 16  ;;  %v15253_v39 = vshrl.u32 %v20633_v32, 16  ;;  %v25547_v43 = vrot.slane %v15249_v1, 5  ;;  %v20521_v1 = vld [vmem:[#allocation9 + $0x230] sm:$0xff]  }
 0x7f2   : > { %v15231_v46 = vrot.slane %v15229_v30, 4  ;;  %v17284_v27 = vcombine.low %v15132_v59, %v15142_v42 }
 0x7f3   : > { %v15242_v33 = vrot.slane %v15240_v22, 4  ;;  %v15255_v50 = vrot.slane %v15253_v39, 4  ;;  %v20636_v22 = vld [vmem:[#allocation2 + $0xa0] sm:$0xf] }
 0x7f4   : > { %19216 = vmatmul.mubr.bf16.vlgmr.msra.gmra.mrb[32].mxu0 %v17280_v52  ;;  %v20517_v52 = vld [vmem:[#allocation9 + $0x210] sm:$0xff]   ;;  %v15277_v4 = vshrl.u32 %v20636_v22, 16 }
 0x7f5   : > { %19219 = vmatprep.mubr.bf16.mxu0 %v17281_v7  ;;  %19248 = vmatpush3.bf16.msra.mxu0 %v25434_v55  ;;  %v17282_v55 = vcombine.low %v15084_v56, %v15094_v45  ;;  %v15197_v7 = vrot.slane %v15195_v51, 5  ;;  %v25537_v56 = vrot.slane %v15201_v6, 5  ;;  %v15207_v45 = vrot.slane %v15205_v10, 4  ;;  %v20634_v6 = vld [vmem:[#allocation2 + $0x80] sm:$0x1] }
 0x7f6   : > { %19249 = vmatprep.subr.bf16.mxu0 %v20516_v13  ;;  %v15211_v29 = vshll.u32 %v20634_v6, 16  ;;  %v15221_v10 = vrot.slane %v15219_v63, 5  ;;  %v15246_v49 = vor.u32 %v15245_v58, %v15242_v33  ;;  %v15256_v8 = vor.u32 %v15255_v50, %v25547_v43 }
 0x7f7   : > { %v15198_v51 = vor.u32 %v15197_v7, %v15194_v3  ;;  %v15208_v37 = vor.u32 %v15207_v45, %v25537_v56  ;;  %v14984_v3 = vld [vmem:[#allocation2 + $0x9c] sm:$0xf]  ;;  %v15180_v7 = vsel %vm21116_vm5, %v15175_v40, %v25527_v36  ;;  %v15279_v50 = vrot.slane %v15277_v4, 4 }
 0x7f8   : > { %v15213_v63 = vrot.slane %v15211_v29, 5  ;;  %v15264_v41 = vshrl.u32 %v14984_v3, 16 }
 0x7f9   : > { %19250 = vmatpush3.bf16.msra.mxu0 %v20516_v13  ;;  %v15184_v13 = vor.u32 %v15183_v0, %v25527_v36  ;;  %v15209_v17 = vrot.slane %v15208_v37, 4  ;;  %v15273_v36 = vshll.u32 %v20636_v22, 16 }
 0x7fa   : > { %19251 = vmatprep.subr.bf16.mxu0 %v20517_v52  ;;  %v15266_v33 = vrot.slane %v15264_v41, 4 }
 0x7fb   : > { %v15185_v0 = vrot.slane %v15184_v13, 4  ;;  %v20520_v13 = vld [vmem:[#allocation9 + $0x228] sm:$0xff]  }
 0x7fc   : > { %19220 = vmatmul.mubr.bf16.gmra.mrb[36].mxu0 %v17282_v55  ;;  %v25545_v55 = vrot.slane %v15225_v35, 5  ;;  %v20635_v35 = vld [vmem:[#allocation2 + $0x8c] sm:$0x1] }
 0x7fd   : > { %19223 = vmatprep.mubr.bf16.mxu0 %v17283_v24  ;;  %19252 = vmatpush3.bf16.msra.mxu0 %v20517_v52  ;;  %v15218_v52 = vrot.slane %v15216_v54, 4  ;;  %v15189_v24 = vrot.slane %v15187_v57, 5  ;;  %v15199_v54 = vrot.slane %v15198_v51, 4  ;;  %v15235_v30 = vshll.u32 %v20635_v35, 16  ;;  %v20637_v51 = vld [vmem:[#allocation2 + $0xac] sm:$0xf] }
 0x7fe   : > { %19253 = vmatprep.subr.bf16.mxu0 %v20518_v11  ;;  %v15232_v42 = vor.u32 %v15231_v46, %v25545_v55  ;;  %v15267_v57 = vshll.u32 %v14984_v3, 16  ;;  %v15297_v37 = vshll.u32 %v20637_v51, 16  ;;  %v15301_v6 = vshrl.u32 %v20637_v51, 16 }
 0x7ff   : > { %v15190_v45 = vsel %vm21116_vm5, %v15185_v0, %v15189_v24  ;;  %v15222_v59 = vor.u32 %v15221_v10, %v15218_v52  ;;  %v15204_v0 = vsel %vm21116_vm5, %v15199_v54, %v25537_v56  ;;  %v20638_v10 = vld [vmem:[#allocation2 + $0x98] sm:$0x1]  ;;  %v15247_v24 = vrot.slane %v15246_v49, 4 }
 0x800   : > { %v17286_v39 = vcombine.low %v15180_v7, %v15190_v45  ;;  %v15233_v52 = vrot.slane %v15232_v42, 4  ;;  %v15259_v46 = vshll.u32 %v20638_v10, 16  ;;  %v15269_v58 = vrot.slane %v15267_v57, 5  ;;  %v20522_v7 = vld [vmem:[#allocation9 + $0x238] sm:$0xff]   ;;  %v14993_v57 = vld [vmem:[#allocation2 + $0xc0] sm:$0xf] }
 0x801   : > { %19254 = vmatpush3.bf16.msra.mxu0 %v20518_v11  ;;  %v14987_v11 = vld [vmem:[#allocation2 + $0xa8] sm:$0xf]  ;;  %v15223_v29 = vrot.slane %v15222_v59, 4  ;;  %v15237_v54 = vrot.slane %v15235_v30, 5  ;;  %v15252_v35 = vsel %vm21116_vm5, %v15247_v24, %v25547_v43  ;;  %v20639_v30 = vld [vmem:[#allocation2 + $0xa4] sm:$0x1] }
 0x802   : > { %19255 = vmatprep.subr.bf16.mxu0 %v20519_v23  ;;  %v15288_v40 = vshrl.u32 %v14987_v11, 16  ;;  %v15291_v32 = vshll.u32 %v14987_v11, 16  ;;  %v25563_v11 = vrot.slane %v15297_v37, 5  ;;  %v15261_v42 = vrot.slane %v15259_v46, 5  ;;  %v20641_v37 = vld [vmem:[#allocation2 + $0xc4] sm:$0xf] }
 0x803   : > { %v15228_v59 = vsel %vm21116_vm5, %v15223_v29, %v25545_v55  ;;  %v15270_v49 = vor.u32 %v15269_v58, %v15266_v33  ;;  %v15283_v41 = vshll.u32 %v20639_v30, 16  ;;  %v15336_v43 = vshrl.u32 %v14993_v57, 16  ;;  %v20642_v33 = vld [vmem:[#allocation2 + $0xb0] sm:$0x1] }
 0x804   : > { %19224 = vmatmul.mubr.bf16.gmra.mrb[40].mxu0 %v17284_v27  ;;  %v25561_v27 = vrot.slane %v15273_v36, 5  ;;  %v15290_v3 = vrot.slane %v15288_v40, 4  ;;  %v15293_v56 = vrot.slane %v15291_v32, 5  ;;  %v20640_v32 = vld [vmem:[#allocation2 + $0xb8] sm:$0xf]  ;;  %v15339_v51 = vshll.u32 %v14993_v57, 16 }
 0x805   : > { %19227 = vmatprep.mubr.bf16.mxu0 %v17285_v2  ;;  %19256 = vmatpush3.bf16.msra.mxu0 %v20519_v23  ;;  %v15214_v23 = vsel %vm21116_vm5, %v15209_v17, %v15213_v63  ;;  %v15257_v2 = vrot.slane %v15256_v8, 4  ;;  %v15303_v63 = vrot.slane %v15301_v6, 4  ;;  %v14990_v17 = vld [vmem:[#allocation2 + $0xb4] sm:$0xf]  ;;  %v15345_v6 = vshll.u32 %v20641_v37, 16 }
 0x806   : > { %19257 = vmatprep.subr.bf16.mxu0 %v20520_v13  ;;  %v17287_v45 = vcombine.low %v15204_v0, %v15214_v23  ;;  %v15280_v36 = vor.u32 %v15279_v50, %v25561_v27  ;;  %v15294_v55 = vor.u32 %v15293_v56, %v15290_v3  ;;  %v15312_v8 = vshrl.u32 %v14990_v17, 16  ;;  %v14996_v50 = vld [vmem:[#allocation2 + $0xcc] sm:$0xf] }
 0x807   : > { %v15262_v22 = vsel %vm21116_vm5, %v15257_v2, %v15261_v42  ;;  %v15304_v4 = vor.u32 %v15303_v63, %v25563_v11  ;;  %v15315_v40 = vshll.u32 %v14990_v17, 16  ;;  %v15325_v0 = vshrl.u32 %v20640_v32, 16 }
 0x808   : > { %v15349_v23 = vshrl.u32 %v20641_v37, 16  ;;  %v17289_v29 = vcombine.low %v15252_v35, %v15262_v22  ;;  %v15285_v10 = vrot.slane %v15283_v41, 5  ;;  %v15281_v46 = vrot.slane %v15280_v36, 4  ;;  %v20644_v37 = vld [vmem:[#allocation2 + $0xc8] sm:$0x1] }
 0x809   : > { %19258 = vmatpush3.bf16.msra.mxu0 %v20520_v13  ;;  %v15238_v13 = vsel %vm21116_vm5, %v15233_v52, %v15237_v54  ;;  %v15271_v52 = vrot.slane %v15270_v49, 4  ;;  %v15295_v24 = vrot.slane %v15294_v55, 4  ;;  %v15307_v58 = vshll.u32 %v20642_v33, 16  ;;  %v20643_v55 = vld [vmem:[#allocation2 + $0xbc] sm:$0x1] }
 0x80a   : > { %19259 = vmatprep.subr.bf16.mxu0 %v20521_v1  ;;  %v15314_v2 = vrot.slane %v15312_v8, 4  ;;  %v15305_v3 = vrot.slane %v15304_v4, 4  ;;  %v15317_v56 = vrot.slane %v15315_v40, 5  ;;  %v15327_v54 = vrot.slane %v15325_v0, 4 }
 0x80b   : > { %v15338_v63 = vrot.slane %v15336_v43, 4  ;;  %v15341_v17 = vrot.slane %v15339_v51, 5  ;;  %v15347_v42 = vrot.slane %v15345_v6, 5  ;;  %v15351_v30 = vrot.slane %v15349_v23, 4 }
 0x80c   : > { %19228 = vmatmul.mubr.bf16.gmra.mrb[44].mxu0 %v17286_v39  ;;  %v15321_v39 = vshll.u32 %v20640_v32, 16  ;;  %v15373_v35 = vshrl.u32 %v25463_v16, 16  ;;  %v15276_v49 = vsel %vm21116_vm5, %v15271_v52, %v25561_v27  ;;  %v15309_v41 = vrot.slane %v15307_v58, 5 }
 0x80d   : > { %19231 = vmatprep.mubr.bf16.mxu0 %v17287_v45  ;;  %19260 = vmatpush3.bf16.msra.mxu0 %v20521_v1  ;;  %v17288_v1 = vcombine.low %v15228_v59, %v15238_v13  ;;  %v15360_v59 = vshrl.u32 %v14996_v50, 16  ;;  %v15363_v13 = vshll.u32 %v14996_v50, 16  ;;  %v15286_v57 = vsel %vm21116_vm5, %v15281_v46, %v15285_v10 }
 0x80e   : > { %19261 = vmatprep.subr.bf16.mxu0 %v20522_v7  ;;  %v15323_v45 = vrot.slane %v15321_v39, 5  ;;  %v15318_v22 = vor.u32 %v15317_v56, %v15314_v2  ;;  %v15331_v8 = vshll.u32 %v20643_v55, 16  ;;  %v15300_v4 = vsel %vm21116_vm5, %v15295_v24, %v25563_v11 }
 0x80f   : > { %v15310_v40 = vsel %vm21116_vm5, %v15305_v3, %v15309_v41  ;;  %v15352_v32 = vor.u32 %v15351_v30, %v15347_v42  ;;  %v15362_v39 = vrot.slane %v15360_v59, 4  ;;  %v15365_v0 = vrot.slane %v15363_v13, 5  ;;  %v26355_v41 = vld [vmem:[#allocation28_spill] sm:$0xff] }
 0x810   : > { %v15328_v36 = vor.u32 %v15327_v54, %v15323_v45  ;;  %v15375_v43 = vrot.slane %v15373_v35, 4  ;;  %v17290_v51 = vcombine.low %v15276_v49, %v15286_v57  ;;  %v15355_v6 = vshll.u32 %v20644_v37, 16  ;;  %v26354_v49 = vld [vmem:[#allocation34_spill] sm:$0xff]  ;;  %v26371_v37 = vld [vmem:[#allocation67_spill] sm:$0xff] }
 0x811   : > { %19262 = vmatpush3.bf16.msra.mxu0 %v20522_v7  ;;  %v15369_v7 = vshll.u32 %v25463_v16, 16  ;;  %v15342_v16 = vor.u32 %v15341_v17, %v15338_v63  ;;  %v17291_v23 = vcombine.low %v15300_v4, %v15310_v40  ;;  %v15353_v10 = vrot.slane %v15352_v32, 4  ;;  %v26361_v4 = vld [vmem:[#allocation62_spill] sm:$0xff] }
 0x812   : > { %v15333_v11 = vrot.slane %v15331_v8, 5  ;;  %v15366_v46 = vor.u32 %v15365_v0, %v15362_v39  ;;  %v15379_v33 = vshll.u32 %v25465_v62, 16  ;;  %v15357_v58 = vrot.slane %v15355_v6, 5  ;;  %v26360_v8 = vld [vmem:[#allocation60_spill] sm:$0xff]  ;;  %v26367_v0 = vld [vmem:[#allocation65_spill] sm:$0xff] }
 0x813   : > { %v15371_v27 = vrot.slane %v15369_v7, 5  ;;  %v15343_v52 = vrot.slane %v15342_v16, 4  ;;  %v26351_v7 = vld [vmem:[#allocation21_spill] sm:$0xff]  ;;  %v26356_v57 = vcombine.low %v26354_v49, %v26355_v41  ;;  %v26362_v40 = vcombine.low %v26360_v8, %v26361_v4  ;;  %v26364_v16 = vld [vmem:[#allocation63_spill] sm:$0xff]  ;;  %v26366_v39 = vld [vmem:[#allocation64_spill] sm:$0xff] }
 0x814   : > { %19232 = vmatmul.mubr.bf16.gmra.mrb[48].mxu0 %v17288_v1  ;;  %v15319_v1 = vrot.slane %v15318_v22, 4  ;;  %v15358_v56 = vsel %vm21116_vm5, %v15353_v10, %v15357_v58  ;;  %v15367_v54 = vrot.slane %v15366_v46, 4  ;;  %v15381_v17 = vrot.slane %v15379_v33, 5  ;;  %v26357_v22 = vld [vmem:[#allocation17_spill] sm:$0xff]  ;;  %v26377_v10 = vld [vmem:[#allocation71_spill] sm:$0xff] }
 0x815   : > { %19235 = vmatprep.mubr.bf16.mxu0 %v17289_v29  ;;  %v15329_v29 = vrot.slane %v15328_v36, 4  ;;  %v15376_v24 = vor.u32 %v15375_v43, %v15371_v27  ;;  %v15348_v3 = vsel %vm21116_vm5, %v15343_v52, %v15347_v42  ;;  %v26352_v42 = vld [vmem:[#allocation53_spill] sm:$0xff]  ;;  %v26358_v36 = vld [vmem:[#allocation59_spill] sm:$0xff]  ;;  %v26365_v32 = vcombine.low %v26363_v34, %v26364_v16  ;;  %v26369_v43 = vld [vmem:[#allocation66_spill] sm:$0xff] }
 0x816   : > { %v15324_v2 = vsel %vm21116_vm5, %v15319_v1, %v15323_v45  ;;  %v17293_v59 = vcombine.low %v15348_v3, %v15358_v56  ;;  %v15372_v62 = vsel %vm21116_vm5, %v15367_v54, %v15371_v27  ;;  %v26353_v35 = vcombine.low %v26351_v7, %v26352_v42  ;;  %v26372_v6 = vld [vmem:[#allocation69_spill] sm:$0xff]  ;;  %v26374_v1 = vld [vmem:[#allocation68_spill] sm:$0xff] }
 0x817   : > { %v15334_v50 = vsel %vm21116_vm5, %v15329_v29, %v15333_v11  ;;  %v15377_v63 = vrot.slane %v15376_v24, 4  ;;  %v26359_v55 = vcombine.low %v26357_v22, %v26358_v36  ;;  %v26368_v27 = vcombine.low %v26366_v39, %v26367_v0  ;;  %v26375_v29 = vld [vmem:[#allocation70_spill] sm:$0xff] }
 0x818   : > { %v17292_v30 = vcombine.low %v15324_v2, %v15334_v50  ;;  %v26376_v52 = vcombine.low %v26374_v1, %v26375_v29  ;;  %v26378_v11 = vcombine.low %v25229_v25, %v26377_v10 }
 0x819   : > { %v15382_v45 = vsel %vm21116_vm5, %v15377_v63, %v15381_v17 }
 0x81a   : > { %v17294_v13 = vcombine.low %v15372_v62, %v15382_v45 }
 0x81c   : > { %19236 = vmatmul.mubr.bf16.gmra.mrb[52].mxu0 %v17290_v51  ;;  %v26370_v51 = vcombine.low %v25197_v20, %v26369_v43  ;;  %v25653_v20 = vld [vmem:[%s25780_s6] ss:$0 sm:$0xff] }
 0x81d   : > { %19239 = vmatprep.mubr.bf16.mxu0 %v17291_v23  ;;  %v26373_v23 = vcombine.low %v26371_v37, %v26372_v6 }
 0x824   : > { %19240 = vmatmul.mubr.bf16.gmra.mrb[56].mxu0 %v17292_v30 }
 0x825   : > { %19243 = vmatprep.mubr.bf16.mxu0 %v17293_v59 }
 0x82c   : > { %19244 = vmatmul.mubr.bf16.gmra.mrb[60].mxu0 %v17294_v13 }
 0x82d   : > { %19263 = vmatprep.mubr.bf16.mxu0 %v26353_v35 }
 0x834   : > { %19264 = vmatmul.mubr.bf16.vlgmr.msra.gmra.mrb[32].mxu0 %v26356_v57 }
 0x835   : > { %19267 = vmatprep.mubr.bf16.mxu0 %v26359_v55 }
 0x83c   : > { %19268 = vmatmul.mubr.bf16.gmra.mrb[36].mxu0 %v26362_v40 }
 0x83d   : > { %19271 = vmatprep.mubr.bf16.mxu0 %v26365_v32 }
 0x844   : > { %19272 = vmatmul.mubr.bf16.gmra.mrb[40].mxu0 %v26368_v27 }
 0x845   : > { %19275 = vmatprep.mubr.bf16.mxu0 %v26370_v51 }
 0x84c   : > { %19276 = vmatmul.mubr.bf16.gmra.mrb[44].mxu0 %v26373_v23 }
 0x84d   : > { %19279 = vmatprep.mubr.bf16.mxu0 %v26376_v52 }
 0x854   : > { %19280 = vmatmul.mubr.bf16.gmra.mrb[48].mxu0 %v26378_v11 }
 0x855   : > { %19283 = vmatprep.mubr.bf16.mxu0 %v17329_v61 }
 0x85c   : > { %19284 = vmatmul.mubr.bf16.gmra.mrb[52].mxu0 %v17330_v48 }
 0x85d   : > { %19287 = vmatprep.mubr.bf16.mxu0 %v17331_v14 }
 0x864   : > { %19288 = vmatmul.mubr.bf16.gmra.mrb[56].mxu0 %v17332_v12 }
 0x865   : > { %19291 = vmatprep.mubr.bf16.mxu0 %v17333_v31 }
 0x86c   : > { %19292 = vmatmul.mubr.bf16.gmra.mrb[60].mxu0 %v17334_v5 }
 0x907   : > { %v19265_v25 = vpop.f32.mrb[32].mxu0 }
 0x908   : > { %v16212_v60 = vadd.f32 %v19265_v25, %v25653_v20  ;;  %v16044_v61 = vpop.f32.mrb[33].mxu0 }
 0x909   : > { %v16210_v28 = vadd.f32 %v25653_v20, %v16044_v61  ;;  %v19266_v9 = vpop.f32.mrb[34].mxu0 }
 0x90a   : > { %16244 = vst [vmem:[%s25659_s15 + $0x10] sm:$0xff] %v16212_v60  ;;  %v16213_v15 = vadd.f32 %v19266_v9, %v25653_v20  ;;  %v16047_v21 = vpop.f32.mrb[35].mxu0 }
 0x90b   : > { %16242 = vst [vmem:[%s25659_s15] sm:$0xff] %v16210_v28  ;;  %v16211_v48 = vadd.f32 %v25653_v20, %v16047_v21 }
 0x90c   : > { %16245 = vst [vmem:[%s25659_s15 + $0x18] sm:$0xff] %v16213_v15 }
 0x90d   : > { %16243 = vst [vmem:[%s25659_s15 + $0x8] sm:$0xff] %v16211_v48 }
 0x90f   : > { %v19269_v53 = vpop.f32.mrb[36].mxu0 }
 0x910   : > { %v16216_v47 = vadd.f32 %v19269_v53, %v25653_v20  ;;  %v16060_v14 = vpop.f32.mrb[37].mxu0 }
 0x911   : > { %v16214_v44 = vadd.f32 %v25653_v20, %v16060_v14  ;;  %v19270_v12 = vpop.f32.mrb[38].mxu0 }
 0x912   : > { %16248 = vst [vmem:[%s25659_s15 + $0x30] sm:$0xff] %v16216_v47  ;;  %v16217_v18 = vadd.f32 %v19270_v12, %v25653_v20  ;;  %v16063_v38 = vpop.f32.mrb[39].mxu0 }
 0x913   : > { %16246 = vst [vmem:[%s25659_s15 + $0x20] sm:$0xff] %v16214_v44  ;;  %v16215_v31 = vadd.f32 %v25653_v20, %v16063_v38 }
 0x914   : > { %16249 = vst [vmem:[%s25659_s15 + $0x38] sm:$0xff] %v16217_v18 }
 0x915   : > { %16247 = vst [vmem:[%s25659_s15 + $0x28] sm:$0xff] %v16215_v31 }
 0x917   : > { %v19273_v26 = vpop.f32.mrb[40].mxu0 }
 0x918   : > { %v16220_v19 = vadd.f32 %v19273_v26, %v25653_v20  ;;  %v16076_v5 = vpop.f32.mrb[41].mxu0 }
 0x919   : > { %v16218_v46 = vadd.f32 %v25653_v20, %v16076_v5  ;;  %v19274_v24 = vpop.f32.mrb[42].mxu0 }
 0x91a   : > { %16252 = vst [vmem:[%s25659_s15 + $0x50] sm:$0xff] %v16220_v19  ;;  %v16221_v33 = vadd.f32 %v19274_v24, %v25653_v20  ;;  %v16079_v58 = vpop.f32.mrb[43].mxu0 }
 0x91b   : > { %16250 = vst [vmem:[%s25659_s15 + $0x40] sm:$0xff] %v16218_v46  ;;  %v16219_v2 = vadd.f32 %v25653_v20, %v16079_v58 }
 0x91c   : > { %16253 = vst [vmem:[%s25659_s15 + $0x58] sm:$0xff] %v16221_v33 }
 0x91d   : > { %16251 = vst [vmem:[%s25659_s15 + $0x48] sm:$0xff] %v16219_v2 }
 0x91f   : > { %v19277_v50 = vpop.f32.mrb[44].mxu0 }
 0x920   : > { %v16224_v3 = vadd.f32 %v19277_v50, %v25653_v20  ;;  %v16092_v56 = vpop.f32.mrb[45].mxu0 }
 0x921   : > { %v16222_v54 = vadd.f32 %v25653_v20, %v16092_v56  ;;  %v19278_v63 = vpop.f32.mrb[46].mxu0 }
 0x922   : > { %16256 = vst [vmem:[%s25659_s15 + $0x70] sm:$0xff] %v16224_v3  ;;  %v16225_v17 = vadd.f32 %v19278_v63, %v25653_v20  ;;  %v16095_v30 = vpop.f32.mrb[47].mxu0 }
 0x923   : > { %16254 = vst [vmem:[%s25659_s15 + $0x60] sm:$0xff] %v16222_v54  ;;  %v16223_v59 = vadd.f32 %v25653_v20, %v16095_v30 }
 0x924   : > { %16257 = vst [vmem:[%s25659_s15 + $0x78] sm:$0xff] %v16225_v17 }
 0x925   : > { %16255 = vst [vmem:[%s25659_s15 + $0x68] sm:$0xff] %v16223_v59 }
 0x927   : > { %v19281_v62 = vpop.f32.mrb[48].mxu0 }
 0x928   : > { %v16228_v45 = vadd.f32 %v19281_v62, %v25653_v20  ;;  %v16108_v13 = vpop.f32.mrb[49].mxu0 }
 0x929   : > { %v16226_v7 = vadd.f32 %v25653_v20, %v16108_v13  ;;  %v19282_v42 = vpop.f32.mrb[50].mxu0 }
 0x92a   : > { %16260 = vst [vmem:[%s25659_s15 + $0x90] sm:$0xff] %v16228_v45  ;;  %v16229_v35 = vadd.f32 %v19282_v42, %v25653_v20  ;;  %v16111_v49 = vpop.f32.mrb[51].mxu0 }
 0x92b   : > { %16258 = vst [vmem:[%s25659_s15 + $0x80] sm:$0xff] %v16226_v7  ;;  %v16227_v41 = vadd.f32 %v25653_v20, %v16111_v49 }
 0x92c   : > { %16261 = vst [vmem:[%s25659_s15 + $0x98] sm:$0xff] %v16229_v35 }
 0x92d   : > { %16259 = vst [vmem:[%s25659_s15 + $0x88] sm:$0xff] %v16227_v41 }
 0x92f   : > { %v19285_v57 = vpop.f32.mrb[52].mxu0 }
 0x930   : > { %v16232_v22 = vadd.f32 %v19285_v57, %v25653_v20  ;;  %v16124_v36 = vpop.f32.mrb[53].mxu0 }
 0x931   : > { %v16230_v55 = vadd.f32 %v25653_v20, %v16124_v36  ;;  %v19286_v8 = vpop.f32.mrb[54].mxu0 }
 0x932   : > { %16264 = vst [vmem:[%s25659_s15 + $0xb0] sm:$0xff] %v16232_v22  ;;  %v16233_v4 = vadd.f32 %v19286_v8, %v25653_v20  ;;  %v16127_v40 = vpop.f32.mrb[55].mxu0 }
 0x933   : > { %16262 = vst [vmem:[%s25659_s15 + $0xa0] sm:$0xff] %v16230_v55  ;;  %v16231_v34 = vadd.f32 %v25653_v20, %v16127_v40 }
 0x934   : > { %16265 = vst [vmem:[%s25659_s15 + $0xb8] sm:$0xff] %v16233_v4 }
 0x935   : > { %16263 = vst [vmem:[%s25659_s15 + $0xa8] sm:$0xff] %v16231_v34 }
 0x937   : > { %v19289_v16 = vpop.f32.mrb[56].mxu0 }
 0x938   : > { %v16236_v32 = vadd.f32 %v19289_v16, %v25653_v20  ;;  %v16140_v39 = vpop.f32.mrb[57].mxu0 }
 0x939   : > { %v16234_v0 = vadd.f32 %v25653_v20, %v16140_v39  ;;  %v19290_v27 = vpop.f32.mrb[58].mxu0 }
 0x93a   : > { %16268 = vst [vmem:[%s25659_s15 + $0xd0] sm:$0xff] %v16236_v32  ;;  %v16237_v43 = vadd.f32 %v19290_v27, %v25653_v20  ;;  %v16143_v51 = vpop.f32.mrb[59].mxu0 }
 0x93b   : > { %16266 = vst [vmem:[%s25659_s15 + $0xc0] sm:$0xff] %v16234_v0  ;;  %v16235_v37 = vadd.f32 %v25653_v20, %v16143_v51 }
 0x93c   : > { %16269 = vst [vmem:[%s25659_s15 + $0xd8] sm:$0xff] %v16237_v43 }
 0x93d   : > { %16267 = vst [vmem:[%s25659_s15 + $0xc8] sm:$0xff] %v16235_v37 }
 0x93f   : > { %v19293_v6 = vpop.f32.mrb[60].mxu0 }
 0x940   : > { %v16240_v23 = vadd.f32 %v19293_v6, %v25653_v20  ;;  %v16156_v1 = vpop.f32.mrb[61].mxu0 }
 0x941   : > { %v16238_v29 = vadd.f32 %v25653_v20, %v16156_v1  ;;  %v19294_v52 = vpop.f32.mrb[62].mxu0 }
 0x942   : > { %16272 = vst [vmem:[%s25659_s15 + $0xf0] sm:$0xff] %v16240_v23  ;;  %v16241_v10 = vadd.f32 %v19294_v52, %v25653_v20  ;;  %v16159_v11 = vpop.f32.mrb[63].mxu0 }
 0x943   : > { %16270 = vst [vmem:[%s25659_s15 + $0xe0] sm:$0xff] %v16238_v29  ;;  %v16239_v25 = vadd.f32 %v25653_v20, %v16159_v11 }
 0x944   : > { %16273 = vst [vmem:[%s25659_s15 + $0xf8] sm:$0xff] %v16241_v10 }
 0x945   : > { %16271 = vst [vmem:[%s25659_s15 + $0xe8] sm:$0xff] %v16239_v25 }
 0x946   : > { %20772 = shalt.err (!%p20769_p4)
}
 0x947   : > { %s20773_s23 = scalar_lea.hbm %s25724_s16, 4096  ;;  %s20777_s14 = scalar_lea.hbm %s25781_s7, 8192 }
 0x948   : > { %p20774_p9 = scmp.ne.s32.totalorder %s25724_s16, %s20773_s23  ;;  %p20778_p8 = scmp.lt.u32.totalorder %s25724_s16, %s25781_s7 }
 0x949   : > { %p20779_p13 = scmp.lt.u32.totalorder %s20777_s14, %s20773_s23  ;;  %p20781_p10 = scmp.lt.u32.totalorder %s20773_s23, %s25724_s16 }
 0x94a   : > { %p20775_p0 = pnand %p20774_p9, %p21041_p5 }
 0x94b   : > { %p20780_p6 = por %p20779_p13, %p20778_p8 }
 0x94c   : > { %p20776_p11 = pneg %p20775_p0 }
 0x94d   : > { %p20782_p3 = por %p20781_p10, %p20780_p6 }
 0x94f   : > { %p20783_p7 = pnand %p20782_p3, %p20776_p11 }
 0x951   : > { %20786 = shalt.err (!%p20783_p7)
}
 0x952   : > { %s20845_s8 = smov 128   ;;  %s20846_s17 = smov 8  }
 0x953   : > { %20093 = dma.vmem_to_hbm [thread:$0]  (%p21041_p5), %s25726_s12, 4096, %s25724_s16, %s16275_s28, %s20845_s8, %s20845_s8, %s20846_s17  }
 0x954 PF: > { %s26379_s13 = sld [smem:[#allocation16_spill]]  ;;  %s16303_s20 = sand.u32 1, %s20821_s24  }
 0x955   : > { %p26381_p1 = scmp.ge.s32.totalorder %s20833_s27, 2  ;;  %s16304_s30 = scalar_lea.sflag [#allocation5], %s16303_s20 }
 0x95a   : > { %p26380_p12 = scmp.ne.s32.totalorder %s26379_s13, 0 }
 0x95c   : > { %p20110_p2 = pnand %p26381_p1, %p26380_p12 }
 0x95e   : > { %20816 = dma.done.wait (!%p20110_p2), %s16304_s30, 4096  }
 0x95f   : > { %20818 = vsyncadd (!%p20110_p2), %s16304_s30, 4294963200  ;;  %p22_p4 = scmp.ge.s32.totalorder %s21027_s22, 4   ;;  %s26382_s24 = smov %s20825_s25 }
 0x960   : > { %s26383_s25 = smov %s20829_s26  ;;  %s26384_s26 = smov %s21037_s18 }
 0x961   : > { %s26385_s27 = smov %s21027_s22  ;;  %24 = sbr.rel (!%p22_p4) target bundleno = 7 (0x7), region = 132 }
 0x968   :  { %16309 = vsyncpa [#allocation4], 1 }
 0x969   :  { %16311 = vsyncpa [#allocation4 + $0x1], 1 }
 0x96a   :  { %16312 = vsyncpa [#allocation7], 1 }
 0x96b   :  { %16313 = vsyncpa [#allocation10], 1 }
 0x96c   :  { %16314 = vsyncpa [#allocation5], 1 }
 0x96d   :  { %16316 = vsyncpa [#allocation5 + $0x1], 1 }

</bundles_post_ra>
